<compile_context>
chip_gen: v7x
topology: tpu7x:2x2x1
jax: 0.10.0
libtpu: 0.0.40
codegen_flags: <defaults>
</compile_context>

<pallas_src>
import numpy as np
import jax
import jax.numpy as jnp
from jax.experimental import pallas as pl
from jax.experimental.pallas import tpu as pltpu

C1 = 16   # conv1 channels padded 15 -> 16 (lane 15 carries the constant 1)
C2 = 64   # conv2 channels padded 48 -> 64 (lane 63 carries the constant 1)


# ---------------------------------------------------------------------------
# The single fused kernel
# ---------------------------------------------------------------------------
def _fused_kernel(x_ref, wa_ref, wb_ref, wl_ref, o_ref, slab_ref):
    B = x_ref.shape[1]                       # images in this batch tile (multiple of 8)

    # ---- conv1 (3x3 binary conv, folded 1x1 conv, folded bias): one matmul ---------
    x = x_ref[...].reshape(72 * B, 25)       # rows = (wp, wf, hh, b)
    y1 = jnp.dot(x, wa_ref[...], preferred_element_type=jnp.float32)       # (72B, 128)

    # 2x2 max-pool over the quad q (32-lane slices), then ReLU (bias already in y1).
    m1 = jnp.maximum(jnp.maximum(y1[:, 0:32], y1[:, 32:64]),
                     jnp.maximum(y1[:, 64:96], y1[:, 96:128]))
    p1 = jnp.maximum(m1, 0.0).reshape(2, 6, 6, B, 32)      # (wp, wf, hh, b, (hp,c1))

    # ---- conv2 im2col slab: 8 whole-vreg leading-dim slices of p1, written once into
    #      a (25B, 256) VMEM scratch at 32-aligned lane offsets.  Rows = (w3, h3, b). --
    for tw in range(4):
        for th in range(2):
            pc = tw * 2 + th
            piece = p1[tw % 2, tw // 2:tw // 2 + 5, th:th + 5]             # (5,5,B,32)
            slab_ref[:, pc * 32:(pc + 1) * 32] = piece.reshape(25 * B, 32)

    # ---- conv2 (folded 1x1 + bias via constant channel): ONE deep-K matmul ----------
    acc = jnp.dot(slab_ref[...], wb_ref[...],
                  preferred_element_type=jnp.float32)                       # (25B, 256)
    m2 = jnp.maximum(jnp.maximum(acc[:, 0:64], acc[:, 64:128]),
                     jnp.maximum(acc[:, 128:192], acc[:, 192:256]))
    pooled = jnp.maximum(m2, 0.0).reshape(25, B, C2)        # (pos = w3*5+h3, b, c2)

    # ---- classifier Linear(1200->10), fused: 25 accumulating (B,64)x(64,128) dots ---
    logits = jnp.dot(pooled[0], wl_ref[0], preferred_element_type=jnp.float32)
    for pos in range(1, 25):
        logits = logits + jnp.dot(pooled[pos], wl_ref[pos],
                                  preferred_element_type=jnp.float32)
    o_ref[...] = logits                                     # (B, 128) lane-dense store


# ---------------------------------------------------------------------------
# Host-side packing (pure layout plumbing: weight folding / patch layout)
# ---------------------------------------------------------------------------
def _pack_input(x):
    """x: (N, 28, 28) -> conv1 im2col slab (72, N, 25), rows (wp, wf, hh, b), 25th tap=1."""
    N = x.shape[0]
    cols = []
    for tw in range(4):
        for th in range(6):
            cols.append(x[:, th:th + 21:4, tw:tw + 23:2])    # (N, hh=6, w1=12)
    xt = jnp.stack(cols, axis=-1)                             # (N, 6, 12, 24)
    ones = jnp.ones((N, 6, 12, 1), x.dtype)
    xt = jnp.concatenate([xt, ones], axis=-1)                 # (N, 6, 12, 25)
    xt = xt.reshape(N, 6, 6, 2, 25)                           # (N, hh, wf, wp, 25)
    xt = jnp.transpose(xt, (3, 2, 1, 0, 4))                   # (wp, wf, hh, N, 25)
    return xt.reshape(72, N, 25)


def _pack_conv1(eff_a, b1a):
    """eff_a: (15,1,3,3) folded conv1 weight; b1a: (15,) -> (25, 128) oct-block weight.
    Row 24 is the bias row (matches the constant-1 input tap); lane c=15 of every (q,hp)
    group is set to 1 there so p1 channel 15 becomes a constant-1 carrier."""
    w = np.zeros((25, 128), np.float32)
    for tw in range(4):
        for th in range(6):
            t = tw * 6 + th
            for hq in range(2):
                for wq in range(2):
                    q = hq * 2 + wq
                    for hp in range(2):
                        di = th - 2 * hp - hq
                        dj = tw - wq
                        if 0 <= di <= 2 and 0 <= dj <= 2:
                            col = (q * 2 + hp) * C1
                            w[t, col:col + 15] = eff_a[:, 0, di, dj]
    for q in range(4):
        for hp in range(2):
            col = (q * 2 + hp) * C1
            w[24, col:col + 15] = b1a
            w[24, col + 15] = 1.0                            # constant-1 channel
    return w


def _pack_conv2(eff_b, b1b):
    """eff_b: (48,15,3,3) folded conv2 weight; b1b: (48,) -> (256, 256) deep-K weight.
    Row 15 (the constant-1 p1 channel of piece pc=0, hp=0) carries b1b and sets the
    constant-1 output lane c2=63 used to fold the Linear bias downstream."""
    w = np.zeros((256, 256), np.float32)
    for tw in range(4):
        for th in range(2):
            pc = tw * 2 + th
            for hp in range(2):
                for qh in range(2):
                    for qw in range(2):
                        di = 2 * th + hp - qh
                        dj = tw - qw
                        if 0 <= di <= 2 and 0 <= dj <= 2:
                            q = qh * 2 + qw
                            r0 = pc * 32 + hp * C1
                            c0 = q * C2
                            w[r0:r0 + 15, c0:c0 + 48] = eff_b[:, :, di, dj].T
    for q in range(4):
        w[15, q * C2:q * C2 + 48] = b1b
        w[15, q * C2 + 63] = 1.0                             # constant-1 output channel
    return w


def _pack_linear(wl_t, bl_t):
    """Linear(1200,10) weight reordered to (pos=w3*5+h3, c2=64, out=128); the Linear bias
    rides on the constant-1 channel c2=63 at pos 0."""
    wl = np.asarray(wl_t, np.float32).reshape(10, 48, 5, 5)   # (o, co, h3, w3)
    wp = np.zeros((25, C2, 128), np.float32)
    for w3 in range(5):
        for h3 in range(5):
            wp[w3 * 5 + h3, :48, :10] = wl[:, :, h3, w3].T    # (co, o)
    wp[0, 63, :10] = np.asarray(bl_t, np.float32)
    return wp


def pack_params(p):
    """Fold each 1x1 conv into its 3x3 binary conv, fold all biases, pad channels."""
    w1a = np.asarray(p["w1a"], np.float32)[:, :, 0, 0]
    w1b = np.asarray(p["w1b"], np.float32)[:, :, 0, 0]
    eff_a = np.einsum("om,mihw->oihw", w1a, np.asarray(p["w3a"], np.float32))
    eff_b = np.einsum("om,mihw->oihw", w1b, np.asarray(p["w3b"], np.float32))
    return {
        "wa": jnp.asarray(_pack_conv1(eff_a, np.asarray(p["b1a"], np.float32))),  # (25,128)
        "wb": jnp.asarray(_pack_conv2(eff_b, np.asarray(p["b1b"], np.float32))),  # (256,256)
        "wl": jnp.asarray(_pack_linear(p["wl"], p["bl"])),                        # (25,64,128)
    }


# ---------------------------------------------------------------------------
# Full forward pass
# ---------------------------------------------------------------------------
def small_lbcnn_forward(x_nchw, packed, block_b=128):
    N = x_nchw.shape[0]
    bb = min(block_b, max(N, 1))
    bb = max(8, ((bb + 7) // 8) * 8)                         # batch tile: multiple of 8
    n_pad = ((N + bb - 1) // bb) * bb

    x = x_nchw[:, 0, :, :].astype(jnp.float32)               # (N, 28, 28)
    if n_pad != N:
        x = jnp.pad(x, ((0, n_pad - N), (0, 0), (0, 0)))
    x_oct = _pack_input(x)                                    # (72, n_pad, 25)

    logits = pl.pallas_call(
        _fused_kernel,
        out_shape=jax.ShapeDtypeStruct((n_pad, 128), jnp.float32),
        grid=(n_pad // bb,),
        in_specs=[
            pl.BlockSpec((72, bb, 25), lambda n: (0, n, 0)),      # input im2col slab
            pl.BlockSpec((25, 128), lambda n: (0, 0)),            # conv1 weight (+bias row)
            pl.BlockSpec((256, 256), lambda n: (0, 0)),           # conv2 deep-K weight
            pl.BlockSpec((25, C2, 128), lambda n: (0, 0, 0)),     # classifier weights
        ],
        out_specs=pl.BlockSpec((bb, 128), lambda n: (n, 0)),
        scratch_shapes=[pltpu.VMEM((25 * bb, 256), jnp.float32)],  # conv2 im2col slab
        compiler_params=pltpu.CompilerParams(
            dimension_semantics=("parallel",),                     # both TCs on v7x
            vmem_limit_bytes=48 * 1024 * 1024),                    # <= v7x 64 MiB VMEM
    )(x_oct, packed["wa"], packed["wb"], packed["wl"])

    return logits[:N, :10]


# ---------------------------------------------------------------------------
# Deterministic parameter initialization (PyTorch layout / shapes)
# ---------------------------------------------------------------------------
def init_params(key):
    ks = jax.random.split(key, 8)

    def binary_weights(k, cout, cin, percent=0.2):
        k1, k2 = jax.random.split(k)
        pos = jax.random.bernoulli(k1, percent, (cout, cin, 3, 3)).astype(jnp.float32)
        neg = jax.random.bernoulli(k2, percent, (cout, cin, 3, 3)).astype(jnp.float32)
        return pos - neg                                  # values in {-1, 0, 1}, OIHW

    def uniform(k, shape, fan_in):
        bound = 1.0 / float(fan_in) ** 0.5
        return jax.random.uniform(k, shape, jnp.float32, -bound, bound)

    return {
        "w3a": binary_weights(ks[0], 15, 1),
        "w1a": uniform(ks[1], (15, 15, 1, 1), 15),
        "b1a": uniform(ks[2], (15,), 15),
        "w3b": binary_weights(ks[3], 48, 15),
        "w1b": uniform(ks[4], (48, 48, 1, 1), 48),
        "b1b": uniform(ks[5], (48,), 48),
        "wl": uniform(ks[6], (10, 1200), 1200),
        "bl": uniform(ks[7], (10,), 1200),
    }


# ---------------------------------------------------------------------------
# Pure-JAX reference (mirrors the PyTorch module exactly)
# ---------------------------------------------------------------------------
def reference_forward(x_nchw, p):
    dn = ("NCHW", "OIHW", "NCHW")
    hi = jax.lax.Precision.HIGHEST

    def lb(x, w3, w1, b1):
        y = jax.lax.conv_general_dilated(x, w3, (1, 1), "VALID",
                                         dimension_numbers=dn, precision=hi)
        y = jax.lax.conv_general_dilated(y, w1, (1, 1), "VALID",
                                         dimension_numbers=dn, precision=hi)
        return y + b1.reshape(1, -1, 1, 1)

    def pool(x):
        return jax.lax.reduce_window(x, -jnp.inf, jax.lax.max,
                                     (1, 1, 2, 2), (1, 1, 2, 2), "VALID")

    x = x_nchw.astype(jnp.float32)
    h = pool(jnp.maximum(lb(x, p["w3a"], p["w1a"], p["b1a"]), 0.0))
    h = pool(jnp.maximum(lb(h, p["w3b"], p["w1b"], p["b1b"]), 0.0))
    flat = h.reshape(h.shape[0], -1)                     # PyTorch NCHW flatten order
    return jnp.dot(flat, p["wl"].T, precision=hi) + p["bl"]


if __name__ == "__main__":
    key = jax.random.PRNGKey(0)
    pkey, xkey = jax.random.split(key)
    params = init_params(pkey)
    packed = pack_params(params)

    # NCHW MNIST-like input (28x28 spatial size is implied by Linear(1200, 10)).
    x = jax.random.normal(xkey, (16, 1, 28, 28), jnp.float32)

    fwd = jax.jit(small_lbcnn_forward, static_argnames=("block_b",))
    out = fwd(x, packed, block_b=128)
    out = jax.block_until_ready(out)
    assert out.shape == (16, 10) and out.dtype == jnp.float32

    ref = reference_forward(x, params)
    max_err = float(jnp.max(jnp.abs(out - ref)))
    assert jnp.allclose(out, ref, atol=1e-2, rtol=1e-2), ("mismatch", max_err)

    print("KERNEL_OK")
</pallas_src>

<mosaic_0001>
module attributes {stable_mosaic.version = 11 : i64} {
  func.func @_fused_kernel(%arg0: i32, %arg1: memref<72x16x25xf32, #tpu.memory_space<vmem>>, %arg2: memref<25x128xf32, #tpu.memory_space<vmem>>, %arg3: memref<256x256xf32, #tpu.memory_space<vmem>>, %arg4: memref<25x64x128xf32, #tpu.memory_space<vmem>>, %arg5: memref<16x128xf32, #tpu.memory_space<vmem>>, %arg6: memref<400x256xf32, #tpu.memory_space<vmem>>) attributes {dimension_semantics = [#tpu.dimension_semantics<parallel>], iteration_bounds = array<i64: 1>, scalar_prefetch = 0 : i64, scratch_operands = 1 : i64, tpu.core_type = #tpu.core_type<tc>, window_params = [{transform_indices = @transform_0, window_bounds = array<i64: 72, 16, 25>}, {pipeline_mode = #tpu.pipeline_mode<synchronous>, transform_indices = @transform_1, window_bounds = array<i64: 25, 128>}, {pipeline_mode = #tpu.pipeline_mode<synchronous>, transform_indices = @transform_2, window_bounds = array<i64: 256, 256>}, {pipeline_mode = #tpu.pipeline_mode<synchronous>, transform_indices = @transform_3, window_bounds = array<i64: 25, 64, 128>}, {transform_indices = @transform_4, window_bounds = array<i64: 16, 128>}]} {
    %c0 = arith.constant 0 : index
    %c0_0 = arith.constant 0 : index
    %c0_1 = arith.constant 0 : index
    %0 = vector.load %arg1[%c0, %c0_0, %c0_1] : memref<72x16x25xf32, #tpu.memory_space<vmem>>, vector<72x16x25xf32>
    %1 = vector.shape_cast %0 : vector<72x16x25xf32> to vector<1152x25xf32>
    %c0_2 = arith.constant 0 : index
    %c0_3 = arith.constant 0 : index
    %2 = vector.load %arg2[%c0_2, %c0_3] : memref<25x128xf32, #tpu.memory_space<vmem>>, vector<25x128xf32>
    %cst = arith.constant dense<0.000000e+00> : vector<1152x128xf32>
    %3 = tpu.matmul %1, %2, %cst {dimension_numbers = #tpu.dot_dimension_numbers<[1], [0], [0], [1], [0, 0, 1, 1], [], []>} : vector<1152x25xf32>, vector<25x128xf32>, vector<1152x128xf32> -> vector<1152x128xf32>
    %4 = vector.extract_strided_slice %3 {offsets = [0, 0], sizes = [1152, 32], strides = [1, 1]} : vector<1152x128xf32> to vector<1152x32xf32>
    %5 = vector.extract_strided_slice %3 {offsets = [0, 32], sizes = [1152, 32], strides = [1, 1]} : vector<1152x128xf32> to vector<1152x32xf32>
    %6 = arith.maximumf %4, %5 : vector<1152x32xf32>
    %7 = vector.extract_strided_slice %3 {offsets = [0, 64], sizes = [1152, 32], strides = [1, 1]} : vector<1152x128xf32> to vector<1152x32xf32>
    %8 = vector.extract_strided_slice %3 {offsets = [0, 96], sizes = [1152, 32], strides = [1, 1]} : vector<1152x128xf32> to vector<1152x32xf32>
    %9 = arith.maximumf %7, %8 : vector<1152x32xf32>
    %10 = arith.maximumf %6, %9 : vector<1152x32xf32>
    %cst_4 = arith.constant 0.000000e+00 : f32
    %11 = vector.broadcast %cst_4 : f32 to vector<1152x32xf32>
    %12 = arith.maximumf %10, %11 : vector<1152x32xf32>
    %13 = vector.shape_cast %12 : vector<1152x32xf32> to vector<2x6x6x16x32xf32>
    %14 = vector.extract_strided_slice %13 {offsets = [0, 0, 0, 0, 0], sizes = [1, 5, 5, 16, 32], strides = [1, 1, 1, 1, 1]} : vector<2x6x6x16x32xf32> to vector<1x5x5x16x32xf32>
    %15 = vector.shape_cast %14 : vector<1x5x5x16x32xf32> to vector<5x5x16x32xf32>
    %16 = vector.shape_cast %15 : vector<5x5x16x32xf32> to vector<400x32xf32>
    %c0_5 = arith.constant 0 : index
    %c0_6 = arith.constant 0 : index
    %17 = vector.load %arg6[%c0_5, %c0_6] : memref<400x256xf32, #tpu.memory_space<vmem>>, vector<400x32xf32>
    tpu.vector_store %arg6[%c0_5, %c0_6], %16 {strides = array<i32>} : memref<400x256xf32, #tpu.memory_space<vmem>>, vector<400x32xf32>,
    %18 = vector.extract_strided_slice %13 {offsets = [0, 0, 1, 0, 0], sizes = [1, 5, 5, 16, 32], strides = [1, 1, 1, 1, 1]} : vector<2x6x6x16x32xf32> to vector<1x5x5x16x32xf32>
    %19 = vector.shape_cast %18 : vector<1x5x5x16x32xf32> to vector<5x5x16x32xf32>
    %20 = vector.shape_cast %19 : vector<5x5x16x32xf32> to vector<400x32xf32>
    %c0_7 = arith.constant 0 : index
    %c32 = arith.constant 32 : index
    %21 = vector.load %arg6[%c0_7, %c32] : memref<400x256xf32, #tpu.memory_space<vmem>>, vector<400x32xf32>
    tpu.vector_store %arg6[%c0_7, %c32], %20 {strides = array<i32>} : memref<400x256xf32, #tpu.memory_space<vmem>>, vector<400x32xf32>,
    %22 = vector.extract_strided_slice %13 {offsets = [1, 0, 0, 0, 0], sizes = [1, 5, 5, 16, 32], strides = [1, 1, 1, 1, 1]} : vector<2x6x6x16x32xf32> to vector<1x5x5x16x32xf32>
    %23 = vector.shape_cast %22 : vector<1x5x5x16x32xf32> to vector<5x5x16x32xf32>
    %24 = vector.shape_cast %23 : vector<5x5x16x32xf32> to vector<400x32xf32>
    %c0_8 = arith.constant 0 : index
    %c64 = arith.constant 64 : index
    %25 = vector.load %arg6[%c0_8, %c64] : memref<400x256xf32, #tpu.memory_space<vmem>>, vector<400x32xf32>
    tpu.vector_store %arg6[%c0_8, %c64], %24 {strides = array<i32>} : memref<400x256xf32, #tpu.memory_space<vmem>>, vector<400x32xf32>,
    %26 = vector.extract_strided_slice %13 {offsets = [1, 0, 1, 0, 0], sizes = [1, 5, 5, 16, 32], strides = [1, 1, 1, 1, 1]} : vector<2x6x6x16x32xf32> to vector<1x5x5x16x32xf32>
    %27 = vector.shape_cast %26 : vector<1x5x5x16x32xf32> to vector<5x5x16x32xf32>
    %28 = vector.shape_cast %27 : vector<5x5x16x32xf32> to vector<400x32xf32>
    %c0_9 = arith.constant 0 : index
    %c96 = arith.constant 96 : index
    %29 = vector.load %arg6[%c0_9, %c96] : memref<400x256xf32, #tpu.memory_space<vmem>>, vector<400x32xf32>
    tpu.vector_store %arg6[%c0_9, %c96], %28 {strides = array<i32>} : memref<400x256xf32, #tpu.memory_space<vmem>>, vector<400x32xf32>,
    %30 = vector.extract_strided_slice %13 {offsets = [0, 1, 0, 0, 0], sizes = [1, 5, 5, 16, 32], strides = [1, 1, 1, 1, 1]} : vector<2x6x6x16x32xf32> to vector<1x5x5x16x32xf32>
    %31 = vector.shape_cast %30 : vector<1x5x5x16x32xf32> to vector<5x5x16x32xf32>
    %32 = vector.shape_cast %31 : vector<5x5x16x32xf32> to vector<400x32xf32>
    %c0_10 = arith.constant 0 : index
    %c128 = arith.constant 128 : index
    %33 = vector.load %arg6[%c0_10, %c128] : memref<400x256xf32, #tpu.memory_space<vmem>>, vector<400x32xf32>
    tpu.vector_store %arg6[%c0_10, %c128], %32 {strides = array<i32>} : memref<400x256xf32, #tpu.memory_space<vmem>>, vector<400x32xf32>,
    %34 = vector.extract_strided_slice %13 {offsets = [0, 1, 1, 0, 0], sizes = [1, 5, 5, 16, 32], strides = [1, 1, 1, 1, 1]} : vector<2x6x6x16x32xf32> to vector<1x5x5x16x32xf32>
    %35 = vector.shape_cast %34 : vector<1x5x5x16x32xf32> to vector<5x5x16x32xf32>
    %36 = vector.shape_cast %35 : vector<5x5x16x32xf32> to vector<400x32xf32>
    %c0_11 = arith.constant 0 : index
    %c160 = arith.constant 160 : index
    %37 = vector.load %arg6[%c0_11, %c160] : memref<400x256xf32, #tpu.memory_space<vmem>>, vector<400x32xf32>
    tpu.vector_store %arg6[%c0_11, %c160], %36 {strides = array<i32>} : memref<400x256xf32, #tpu.memory_space<vmem>>, vector<400x32xf32>,
    %38 = vector.extract_strided_slice %13 {offsets = [1, 1, 0, 0, 0], sizes = [1, 5, 5, 16, 32], strides = [1, 1, 1, 1, 1]} : vector<2x6x6x16x32xf32> to vector<1x5x5x16x32xf32>
    %39 = vector.shape_cast %38 : vector<1x5x5x16x32xf32> to vector<5x5x16x32xf32>
    %40 = vector.shape_cast %39 : vector<5x5x16x32xf32> to vector<400x32xf32>
    %c0_12 = arith.constant 0 : index
    %c192 = arith.constant 192 : index
    %41 = vector.load %arg6[%c0_12, %c192] : memref<400x256xf32, #tpu.memory_space<vmem>>, vector<400x32xf32>
    tpu.vector_store %arg6[%c0_12, %c192], %40 {strides = array<i32>} : memref<400x256xf32, #tpu.memory_space<vmem>>, vector<400x32xf32>,
    %42 = vector.extract_strided_slice %13 {offsets = [1, 1, 1, 0, 0], sizes = [1, 5, 5, 16, 32], strides = [1, 1, 1, 1, 1]} : vector<2x6x6x16x32xf32> to vector<1x5x5x16x32xf32>
    %43 = vector.shape_cast %42 : vector<1x5x5x16x32xf32> to vector<5x5x16x32xf32>
    %44 = vector.shape_cast %43 : vector<5x5x16x32xf32> to vector<400x32xf32>
    %c0_13 = arith.constant 0 : index
    %c224 = arith.constant 224 : index
    %45 = vector.load %arg6[%c0_13, %c224] : memref<400x256xf32, #tpu.memory_space<vmem>>, vector<400x32xf32>
    tpu.vector_store %arg6[%c0_13, %c224], %44 {strides = array<i32>} : memref<400x256xf32, #tpu.memory_space<vmem>>, vector<400x32xf32>,
    %c0_14 = arith.constant 0 : index
    %c0_15 = arith.constant 0 : index
    %46 = vector.load %arg6[%c0_14, %c0_15] : memref<400x256xf32, #tpu.memory_space<vmem>>, vector<400x256xf32>
    %c0_16 = arith.constant 0 : index
    %c0_17 = arith.constant 0 : index
    %47 = vector.load %arg3[%c0_16, %c0_17] : memref<256x256xf32, #tpu.memory_space<vmem>>, vector<256x256xf32>
    %cst_18 = arith.constant dense<0.000000e+00> : vector<400x256xf32>
    %48 = tpu.matmul %46, %47, %cst_18 {dimension_numbers = #tpu.dot_dimension_numbers<[1], [0], [0], [1], [0, 0, 1, 1], [], []>} : vector<400x256xf32>, vector<256x256xf32>, vector<400x256xf32> -> vector<400x256xf32>
    %49 = vector.extract_strided_slice %48 {offsets = [0, 0], sizes = [400, 64], strides = [1, 1]} : vector<400x256xf32> to vector<400x64xf32>
    %50 = vector.extract_strided_slice %48 {offsets = [0, 64], sizes = [400, 64], strides = [1, 1]} : vector<400x256xf32> to vector<400x64xf32>
    %51 = arith.maximumf %49, %50 : vector<400x64xf32>
    %52 = vector.extract_strided_slice %48 {offsets = [0, 128], sizes = [400, 64], strides = [1, 1]} : vector<400x256xf32> to vector<400x64xf32>
    %53 = vector.extract_strided_slice %48 {offsets = [0, 192], sizes = [400, 64], strides = [1, 1]} : vector<400x256xf32> to vector<400x64xf32>
    %54 = arith.maximumf %52, %53 : vector<400x64xf32>
    %55 = arith.maximumf %51, %54 : vector<400x64xf32>
    %cst_19 = arith.constant 0.000000e+00 : f32
    %56 = vector.broadcast %cst_19 : f32 to vector<400x64xf32>
    %57 = arith.maximumf %55, %56 : vector<400x64xf32>
    %58 = vector.shape_cast %57 : vector<400x64xf32> to vector<25x16x64xf32>
    %59 = vector.extract_strided_slice %58 {offsets = [0, 0, 0], sizes = [1, 16, 64], strides = [1, 1, 1]} : vector<25x16x64xf32> to vector<1x16x64xf32>
    %60 = vector.shape_cast %59 : vector<1x16x64xf32> to vector<16x64xf32>
    %c0_20 = arith.constant 0 : index
    %c0_21 = arith.constant 0 : index
    %c0_22 = arith.constant 0 : index
    %61 = vector.load %arg4[%c0_20, %c0_21, %c0_22] : memref<25x64x128xf32, #tpu.memory_space<vmem>>, vector<1x64x128xf32>
    %62 = vector.shape_cast %61 : vector<1x64x128xf32> to vector<64x128xf32>
    %cst_23 = arith.constant dense<0.000000e+00> : vector<16x128xf32>
    %63 = tpu.matmul %60, %62, %cst_23 {dimension_numbers = #tpu.dot_dimension_numbers<[1], [0], [0], [1], [0, 0, 1, 1], [], []>} : vector<16x64xf32>, vector<64x128xf32>, vector<16x128xf32> -> vector<16x128xf32>
    %64 = vector.extract_strided_slice %58 {offsets = [1, 0, 0], sizes = [1, 16, 64], strides = [1, 1, 1]} : vector<25x16x64xf32> to vector<1x16x64xf32>
    %65 = vector.shape_cast %64 : vector<1x16x64xf32> to vector<16x64xf32>
    %c1 = arith.constant 1 : index
    %c0_24 = arith.constant 0 : index
    %c0_25 = arith.constant 0 : index
    %66 = vector.load %arg4[%c1, %c0_24, %c0_25] : memref<25x64x128xf32, #tpu.memory_space<vmem>>, vector<1x64x128xf32>
    %67 = vector.shape_cast %66 : vector<1x64x128xf32> to vector<64x128xf32>
    %cst_26 = arith.constant dense<0.000000e+00> : vector<16x128xf32>
    %68 = tpu.matmul %65, %67, %cst_26 {dimension_numbers = #tpu.dot_dimension_numbers<[1], [0], [0], [1], [0, 0, 1, 1], [], []>} : vector<16x64xf32>, vector<64x128xf32>, vector<16x128xf32> -> vector<16x128xf32>
    %69 = arith.addf %63, %68 : vector<16x128xf32>
    %70 = vector.extract_strided_slice %58 {offsets = [2, 0, 0], sizes = [1, 16, 64], strides = [1, 1, 1]} : vector<25x16x64xf32> to vector<1x16x64xf32>
    %71 = vector.shape_cast %70 : vector<1x16x64xf32> to vector<16x64xf32>
    %c2 = arith.constant 2 : index
    %c0_27 = arith.constant 0 : index
    %c0_28 = arith.constant 0 : index
    %72 = vector.load %arg4[%c2, %c0_27, %c0_28] : memref<25x64x128xf32, #tpu.memory_space<vmem>>, vector<1x64x128xf32>
    %73 = vector.shape_cast %72 : vector<1x64x128xf32> to vector<64x128xf32>
    %cst_29 = arith.constant dense<0.000000e+00> : vector<16x128xf32>
    %74 = tpu.matmul %71, %73, %cst_29 {dimension_numbers = #tpu.dot_dimension_numbers<[1], [0], [0], [1], [0, 0, 1, 1], [], []>} : vector<16x64xf32>, vector<64x128xf32>, vector<16x128xf32> -> vector<16x128xf32>
    %75 = arith.addf %69, %74 : vector<16x128xf32>
    %76 = vector.extract_strided_slice %58 {offsets = [3, 0, 0], sizes = [1, 16, 64], strides = [1, 1, 1]} : vector<25x16x64xf32> to vector<1x16x64xf32>
    %77 = vector.shape_cast %76 : vector<1x16x64xf32> to vector<16x64xf32>
    %c3 = arith.constant 3 : index
    %c0_30 = arith.constant 0 : index
    %c0_31 = arith.constant 0 : index
    %78 = vector.load %arg4[%c3, %c0_30, %c0_31] : memref<25x64x128xf32, #tpu.memory_space<vmem>>, vector<1x64x128xf32>
    %79 = vector.shape_cast %78 : vector<1x64x128xf32> to vector<64x128xf32>
    %cst_32 = arith.constant dense<0.000000e+00> : vector<16x128xf32>
    %80 = tpu.matmul %77, %79, %cst_32 {dimension_numbers = #tpu.dot_dimension_numbers<[1], [0], [0], [1], [0, 0, 1, 1], [], []>} : vector<16x64xf32>, vector<64x128xf32>, vector<16x128xf32> -> vector<16x128xf32>
    %81 = arith.addf %75, %80 : vector<16x128xf32>
    %82 = vector.extract_strided_slice %58 {offsets = [4, 0, 0], sizes = [1, 16, 64], strides = [1, 1, 1]} : vector<25x16x64xf32> to vector<1x16x64xf32>
    %83 = vector.shape_cast %82 : vector<1x16x64xf32> to vector<16x64xf32>
    %c4 = arith.constant 4 : index
    %c0_33 = arith.constant 0 : index
    %c0_34 = arith.constant 0 : index
    %84 = vector.load %arg4[%c4, %c0_33, %c0_34] : memref<25x64x128xf32, #tpu.memory_space<vmem>>, vector<1x64x128xf32>
    %85 = vector.shape_cast %84 : vector<1x64x128xf32> to vector<64x128xf32>
    %cst_35 = arith.constant dense<0.000000e+00> : vector<16x128xf32>
    %86 = tpu.matmul %83, %85, %cst_35 {dimension_numbers = #tpu.dot_dimension_numbers<[1], [0], [0], [1], [0, 0, 1, 1], [], []>} : vector<16x64xf32>, vector<64x128xf32>, vector<16x128xf32> -> vector<16x128xf32>
    %87 = arith.addf %81, %86 : vector<16x128xf32>
    %88 = vector.extract_strided_slice %58 {offsets = [5, 0, 0], sizes = [1, 16, 64], strides = [1, 1, 1]} : vector<25x16x64xf32> to vector<1x16x64xf32>
    %89 = vector.shape_cast %88 : vector<1x16x64xf32> to vector<16x64xf32>
    %c5 = arith.constant 5 : index
    %c0_36 = arith.constant 0 : index
    %c0_37 = arith.constant 0 : index
    %90 = vector.load %arg4[%c5, %c0_36, %c0_37] : memref<25x64x128xf32, #tpu.memory_space<vmem>>, vector<1x64x128xf32>
    %91 = vector.shape_cast %90 : vector<1x64x128xf32> to vector<64x128xf32>
    %cst_38 = arith.constant dense<0.000000e+00> : vector<16x128xf32>
    %92 = tpu.matmul %89, %91, %cst_38 {dimension_numbers = #tpu.dot_dimension_numbers<[1], [0], [0], [1], [0, 0, 1, 1], [], []>} : vector<16x64xf32>, vector<64x128xf32>, vector<16x128xf32> -> vector<16x128xf32>
    %93 = arith.addf %87, %92 : vector<16x128xf32>
    %94 = vector.extract_strided_slice %58 {offsets = [6, 0, 0], sizes = [1, 16, 64], strides = [1, 1, 1]} : vector<25x16x64xf32> to vector<1x16x64xf32>
    %95 = vector.shape_cast %94 : vector<1x16x64xf32> to vector<16x64xf32>
    %c6 = arith.constant 6 : index
    %c0_39 = arith.constant 0 : index
    %c0_40 = arith.constant 0 : index
    %96 = vector.load %arg4[%c6, %c0_39, %c0_40] : memref<25x64x128xf32, #tpu.memory_space<vmem>>, vector<1x64x128xf32>
    %97 = vector.shape_cast %96 : vector<1x64x128xf32> to vector<64x128xf32>
    %cst_41 = arith.constant dense<0.000000e+00> : vector<16x128xf32>
    %98 = tpu.matmul %95, %97, %cst_41 {dimension_numbers = #tpu.dot_dimension_numbers<[1], [0], [0], [1], [0, 0, 1, 1], [], []>} : vector<16x64xf32>, vector<64x128xf32>, vector<16x128xf32> -> vector<16x128xf32>
    %99 = arith.addf %93, %98 : vector<16x128xf32>
    %100 = vector.extract_strided_slice %58 {offsets = [7, 0, 0], sizes = [1, 16, 64], strides = [1, 1, 1]} : vector<25x16x64xf32> to vector<1x16x64xf32>
    %101 = vector.shape_cast %100 : vector<1x16x64xf32> to vector<16x64xf32>
    %c7 = arith.constant 7 : index
    %c0_42 = arith.constant 0 : index
    %c0_43 = arith.constant 0 : index
    %102 = vector.load %arg4[%c7, %c0_42, %c0_43] : memref<25x64x128xf32, #tpu.memory_space<vmem>>, vector<1x64x128xf32>
    %103 = vector.shape_cast %102 : vector<1x64x128xf32> to vector<64x128xf32>
    %cst_44 = arith.constant dense<0.000000e+00> : vector<16x128xf32>
    %104 = tpu.matmul %101, %103, %cst_44 {dimension_numbers = #tpu.dot_dimension_numbers<[1], [0], [0], [1], [0, 0, 1, 1], [], []>} : vector<16x64xf32>, vector<64x128xf32>, vector<16x128xf32> -> vector<16x128xf32>
    %105 = arith.addf %99, %104 : vector<16x128xf32>
    %106 = vector.extract_strided_slice %58 {offsets = [8, 0, 0], sizes = [1, 16, 64], strides = [1, 1, 1]} : vector<25x16x64xf32> to vector<1x16x64xf32>
    %107 = vector.shape_cast %106 : vector<1x16x64xf32> to vector<16x64xf32>
    %c8 = arith.constant 8 : index
    %c0_45 = arith.constant 0 : index
    %c0_46 = arith.constant 0 : index
    %108 = vector.load %arg4[%c8, %c0_45, %c0_46] : memref<25x64x128xf32, #tpu.memory_space<vmem>>, vector<1x64x128xf32>
    %109 = vector.shape_cast %108 : vector<1x64x128xf32> to vector<64x128xf32>
    %cst_47 = arith.constant dense<0.000000e+00> : vector<16x128xf32>
    %110 = tpu.matmul %107, %109, %cst_47 {dimension_numbers = #tpu.dot_dimension_numbers<[1], [0], [0], [1], [0, 0, 1, 1], [], []>} : vector<16x64xf32>, vector<64x128xf32>, vector<16x128xf32> -> vector<16x128xf32>
    %111 = arith.addf %105, %110 : vector<16x128xf32>
    %112 = vector.extract_strided_slice %58 {offsets = [9, 0, 0], sizes = [1, 16, 64], strides = [1, 1, 1]} : vector<25x16x64xf32> to vector<1x16x64xf32>
    %113 = vector.shape_cast %112 : vector<1x16x64xf32> to vector<16x64xf32>
    %c9 = arith.constant 9 : index
    %c0_48 = arith.constant 0 : index
    %c0_49 = arith.constant 0 : index
    %114 = vector.load %arg4[%c9, %c0_48, %c0_49] : memref<25x64x128xf32, #tpu.memory_space<vmem>>, vector<1x64x128xf32>
    %115 = vector.shape_cast %114 : vector<1x64x128xf32> to vector<64x128xf32>
    %cst_50 = arith.constant dense<0.000000e+00> : vector<16x128xf32>
    %116 = tpu.matmul %113, %115, %cst_50 {dimension_numbers = #tpu.dot_dimension_numbers<[1], [0], [0], [1], [0, 0, 1, 1], [], []>} : vector<16x64xf32>, vector<64x128xf32>, vector<16x128xf32> -> vector<16x128xf32>
    %117 = arith.addf %111, %116 : vector<16x128xf32>
    %118 = vector.extract_strided_slice %58 {offsets = [10, 0, 0], sizes = [1, 16, 64], strides = [1, 1, 1]} : vector<25x16x64xf32> to vector<1x16x64xf32>
    %119 = vector.shape_cast %118 : vector<1x16x64xf32> to vector<16x64xf32>
    %c10 = arith.constant 10 : index
    %c0_51 = arith.constant 0 : index
    %c0_52 = arith.constant 0 : index
    %120 = vector.load %arg4[%c10, %c0_51, %c0_52] : memref<25x64x128xf32, #tpu.memory_space<vmem>>, vector<1x64x128xf32>
    %121 = vector.shape_cast %120 : vector<1x64x128xf32> to vector<64x128xf32>
    %cst_53 = arith.constant dense<0.000000e+00> : vector<16x128xf32>
    %122 = tpu.matmul %119, %121, %cst_53 {dimension_numbers = #tpu.dot_dimension_numbers<[1], [0], [0], [1], [0, 0, 1, 1], [], []>} : vector<16x64xf32>, vector<64x128xf32>, vector<16x128xf32> -> vector<16x128xf32>
    %123 = arith.addf %117, %122 : vector<16x128xf32>
    %124 = vector.extract_strided_slice %58 {offsets = [11, 0, 0], sizes = [1, 16, 64], strides = [1, 1, 1]} : vector<25x16x64xf32> to vector<1x16x64xf32>
    %125 = vector.shape_cast %124 : vector<1x16x64xf32> to vector<16x64xf32>
    %c11 = arith.constant 11 : index
    %c0_54 = arith.constant 0 : index
    %c0_55 = arith.constant 0 : index
    %126 = vector.load %arg4[%c11, %c0_54, %c0_55] : memref<25x64x128xf32, #tpu.memory_space<vmem>>, vector<1x64x128xf32>
    %127 = vector.shape_cast %126 : vector<1x64x128xf32> to vector<64x128xf32>
    %cst_56 = arith.constant dense<0.000000e+00> : vector<16x128xf32>
    %128 = tpu.matmul %125, %127, %cst_56 {dimension_numbers = #tpu.dot_dimension_numbers<[1], [0], [0], [1], [0, 0, 1, 1], [], []>} : vector<16x64xf32>, vector<64x128xf32>, vector<16x128xf32> -> vector<16x128xf32>
    %129 = arith.addf %123, %128 : vector<16x128xf32>
    %130 = vector.extract_strided_slice %58 {offsets = [12, 0, 0], sizes = [1, 16, 64], strides = [1, 1, 1]} : vector<25x16x64xf32> to vector<1x16x64xf32>
    %131 = vector.shape_cast %130 : vector<1x16x64xf32> to vector<16x64xf32>
    %c12 = arith.constant 12 : index
    %c0_57 = arith.constant 0 : index
    %c0_58 = arith.constant 0 : index
    %132 = vector.load %arg4[%c12, %c0_57, %c0_58] : memref<25x64x128xf32, #tpu.memory_space<vmem>>, vector<1x64x128xf32>
    %133 = vector.shape_cast %132 : vector<1x64x128xf32> to vector<64x128xf32>
    %cst_59 = arith.constant dense<0.000000e+00> : vector<16x128xf32>
    %134 = tpu.matmul %131, %133, %cst_59 {dimension_numbers = #tpu.dot_dimension_numbers<[1], [0], [0], [1], [0, 0, 1, 1], [], []>} : vector<16x64xf32>, vector<64x128xf32>, vector<16x128xf32> -> vector<16x128xf32>
    %135 = arith.addf %129, %134 : vector<16x128xf32>
    %136 = vector.extract_strided_slice %58 {offsets = [13, 0, 0], sizes = [1, 16, 64], strides = [1, 1, 1]} : vector<25x16x64xf32> to vector<1x16x64xf32>
    %137 = vector.shape_cast %136 : vector<1x16x64xf32> to vector<16x64xf32>
    %c13 = arith.constant 13 : index
    %c0_60 = arith.constant 0 : index
    %c0_61 = arith.constant 0 : index
    %138 = vector.load %arg4[%c13, %c0_60, %c0_61] : memref<25x64x128xf32, #tpu.memory_space<vmem>>, vector<1x64x128xf32>
    %139 = vector.shape_cast %138 : vector<1x64x128xf32> to vector<64x128xf32>
    %cst_62 = arith.constant dense<0.000000e+00> : vector<16x128xf32>
    %140 = tpu.matmul %137, %139, %cst_62 {dimension_numbers = #tpu.dot_dimension_numbers<[1], [0], [0], [1], [0, 0, 1, 1], [], []>} : vector<16x64xf32>, vector<64x128xf32>, vector<16x128xf32> -> vector<16x128xf32>
    %141 = arith.addf %135, %140 : vector<16x128xf32>
    %142 = vector.extract_strided_slice %58 {offsets = [14, 0, 0], sizes = [1, 16, 64], strides = [1, 1, 1]} : vector<25x16x64xf32> to vector<1x16x64xf32>
    %143 = vector.shape_cast %142 : vector<1x16x64xf32> to vector<16x64xf32>
    %c14 = arith.constant 14 : index
    %c0_63 = arith.constant 0 : index
    %c0_64 = arith.constant 0 : index
    %144 = vector.load %arg4[%c14, %c0_63, %c0_64] : memref<25x64x128xf32, #tpu.memory_space<vmem>>, vector<1x64x128xf32>
    %145 = vector.shape_cast %144 : vector<1x64x128xf32> to vector<64x128xf32>
    %cst_65 = arith.constant dense<0.000000e+00> : vector<16x128xf32>
    %146 = tpu.matmul %143, %145, %cst_65 {dimension_numbers = #tpu.dot_dimension_numbers<[1], [0], [0], [1], [0, 0, 1, 1], [], []>} : vector<16x64xf32>, vector<64x128xf32>, vector<16x128xf32> -> vector<16x128xf32>
    %147 = arith.addf %141, %146 : vector<16x128xf32>
    %148 = vector.extract_strided_slice %58 {offsets = [15, 0, 0], sizes = [1, 16, 64], strides = [1, 1, 1]} : vector<25x16x64xf32> to vector<1x16x64xf32>
    %149 = vector.shape_cast %148 : vector<1x16x64xf32> to vector<16x64xf32>
    %c15 = arith.constant 15 : index
    %c0_66 = arith.constant 0 : index
    %c0_67 = arith.constant 0 : index
    %150 = vector.load %arg4[%c15, %c0_66, %c0_67] : memref<25x64x128xf32, #tpu.memory_space<vmem>>, vector<1x64x128xf32>
    %151 = vector.shape_cast %150 : vector<1x64x128xf32> to vector<64x128xf32>
    %cst_68 = arith.constant dense<0.000000e+00> : vector<16x128xf32>
    %152 = tpu.matmul %149, %151, %cst_68 {dimension_numbers = #tpu.dot_dimension_numbers<[1], [0], [0], [1], [0, 0, 1, 1], [], []>} : vector<16x64xf32>, vector<64x128xf32>, vector<16x128xf32> -> vector<16x128xf32>
    %153 = arith.addf %147, %152 : vector<16x128xf32>
    %154 = vector.extract_strided_slice %58 {offsets = [16, 0, 0], sizes = [1, 16, 64], strides = [1, 1, 1]} : vector<25x16x64xf32> to vector<1x16x64xf32>
    %155 = vector.shape_cast %154 : vector<1x16x64xf32> to vector<16x64xf32>
    %c16 = arith.constant 16 : index
    %c0_69 = arith.constant 0 : index
    %c0_70 = arith.constant 0 : index
    %156 = vector.load %arg4[%c16, %c0_69, %c0_70] : memref<25x64x128xf32, #tpu.memory_space<vmem>>, vector<1x64x128xf32>
    %157 = vector.shape_cast %156 : vector<1x64x128xf32> to vector<64x128xf32>
    %cst_71 = arith.constant dense<0.000000e+00> : vector<16x128xf32>
    %158 = tpu.matmul %155, %157, %cst_71 {dimension_numbers = #tpu.dot_dimension_numbers<[1], [0], [0], [1], [0, 0, 1, 1], [], []>} : vector<16x64xf32>, vector<64x128xf32>, vector<16x128xf32> -> vector<16x128xf32>
    %159 = arith.addf %153, %158 : vector<16x128xf32>
    %160 = vector.extract_strided_slice %58 {offsets = [17, 0, 0], sizes = [1, 16, 64], strides = [1, 1, 1]} : vector<25x16x64xf32> to vector<1x16x64xf32>
    %161 = vector.shape_cast %160 : vector<1x16x64xf32> to vector<16x64xf32>
    %c17 = arith.constant 17 : index
    %c0_72 = arith.constant 0 : index
    %c0_73 = arith.constant 0 : index
    %162 = vector.load %arg4[%c17, %c0_72, %c0_73] : memref<25x64x128xf32, #tpu.memory_space<vmem>>, vector<1x64x128xf32>
    %163 = vector.shape_cast %162 : vector<1x64x128xf32> to vector<64x128xf32>
    %cst_74 = arith.constant dense<0.000000e+00> : vector<16x128xf32>
    %164 = tpu.matmul %161, %163, %cst_74 {dimension_numbers = #tpu.dot_dimension_numbers<[1], [0], [0], [1], [0, 0, 1, 1], [], []>} : vector<16x64xf32>, vector<64x128xf32>, vector<16x128xf32> -> vector<16x128xf32>
    %165 = arith.addf %159, %164 : vector<16x128xf32>
    %166 = vector.extract_strided_slice %58 {offsets = [18, 0, 0], sizes = [1, 16, 64], strides = [1, 1, 1]} : vector<25x16x64xf32> to vector<1x16x64xf32>
    %167 = vector.shape_cast %166 : vector<1x16x64xf32> to vector<16x64xf32>
    %c18 = arith.constant 18 : index
    %c0_75 = arith.constant 0 : index
    %c0_76 = arith.constant 0 : index
    %168 = vector.load %arg4[%c18, %c0_75, %c0_76] : memref<25x64x128xf32, #tpu.memory_space<vmem>>, vector<1x64x128xf32>
    %169 = vector.shape_cast %168 : vector<1x64x128xf32> to vector<64x128xf32>
    %cst_77 = arith.constant dense<0.000000e+00> : vector<16x128xf32>
    %170 = tpu.matmul %167, %169, %cst_77 {dimension_numbers = #tpu.dot_dimension_numbers<[1], [0], [0], [1], [0, 0, 1, 1], [], []>} : vector<16x64xf32>, vector<64x128xf32>, vector<16x128xf32> -> vector<16x128xf32>
    %171 = arith.addf %165, %170 : vector<16x128xf32>
    %172 = vector.extract_strided_slice %58 {offsets = [19, 0, 0], sizes = [1, 16, 64], strides = [1, 1, 1]} : vector<25x16x64xf32> to vector<1x16x64xf32>
    %173 = vector.shape_cast %172 : vector<1x16x64xf32> to vector<16x64xf32>
    %c19 = arith.constant 19 : index
    %c0_78 = arith.constant 0 : index
    %c0_79 = arith.constant 0 : index
    %174 = vector.load %arg4[%c19, %c0_78, %c0_79] : memref<25x64x128xf32, #tpu.memory_space<vmem>>, vector<1x64x128xf32>
    %175 = vector.shape_cast %174 : vector<1x64x128xf32> to vector<64x128xf32>
    %cst_80 = arith.constant dense<0.000000e+00> : vector<16x128xf32>
    %176 = tpu.matmul %173, %175, %cst_80 {dimension_numbers = #tpu.dot_dimension_numbers<[1], [0], [0], [1], [0, 0, 1, 1], [], []>} : vector<16x64xf32>, vector<64x128xf32>, vector<16x128xf32> -> vector<16x128xf32>
    %177 = arith.addf %171, %176 : vector<16x128xf32>
    %178 = vector.extract_strided_slice %58 {offsets = [20, 0, 0], sizes = [1, 16, 64], strides = [1, 1, 1]} : vector<25x16x64xf32> to vector<1x16x64xf32>
    %179 = vector.shape_cast %178 : vector<1x16x64xf32> to vector<16x64xf32>
    %c20 = arith.constant 20 : index
    %c0_81 = arith.constant 0 : index
    %c0_82 = arith.constant 0 : index
    %180 = vector.load %arg4[%c20, %c0_81, %c0_82] : memref<25x64x128xf32, #tpu.memory_space<vmem>>, vector<1x64x128xf32>
    %181 = vector.shape_cast %180 : vector<1x64x128xf32> to vector<64x128xf32>
    %cst_83 = arith.constant dense<0.000000e+00> : vector<16x128xf32>
    %182 = tpu.matmul %179, %181, %cst_83 {dimension_numbers = #tpu.dot_dimension_numbers<[1], [0], [0], [1], [0, 0, 1, 1], [], []>} : vector<16x64xf32>, vector<64x128xf32>, vector<16x128xf32> -> vector<16x128xf32>
    %183 = arith.addf %177, %182 : vector<16x128xf32>
    %184 = vector.extract_strided_slice %58 {offsets = [21, 0, 0], sizes = [1, 16, 64], strides = [1, 1, 1]} : vector<25x16x64xf32> to vector<1x16x64xf32>
    %185 = vector.shape_cast %184 : vector<1x16x64xf32> to vector<16x64xf32>
    %c21 = arith.constant 21 : index
    %c0_84 = arith.constant 0 : index
    %c0_85 = arith.constant 0 : index
    %186 = vector.load %arg4[%c21, %c0_84, %c0_85] : memref<25x64x128xf32, #tpu.memory_space<vmem>>, vector<1x64x128xf32>
    %187 = vector.shape_cast %186 : vector<1x64x128xf32> to vector<64x128xf32>
    %cst_86 = arith.constant dense<0.000000e+00> : vector<16x128xf32>
    %188 = tpu.matmul %185, %187, %cst_86 {dimension_numbers = #tpu.dot_dimension_numbers<[1], [0], [0], [1], [0, 0, 1, 1], [], []>} : vector<16x64xf32>, vector<64x128xf32>, vector<16x128xf32> -> vector<16x128xf32>
    %189 = arith.addf %183, %188 : vector<16x128xf32>
    %190 = vector.extract_strided_slice %58 {offsets = [22, 0, 0], sizes = [1, 16, 64], strides = [1, 1, 1]} : vector<25x16x64xf32> to vector<1x16x64xf32>
    %191 = vector.shape_cast %190 : vector<1x16x64xf32> to vector<16x64xf32>
    %c22 = arith.constant 22 : index
    %c0_87 = arith.constant 0 : index
    %c0_88 = arith.constant 0 : index
    %192 = vector.load %arg4[%c22, %c0_87, %c0_88] : memref<25x64x128xf32, #tpu.memory_space<vmem>>, vector<1x64x128xf32>
    %193 = vector.shape_cast %192 : vector<1x64x128xf32> to vector<64x128xf32>
    %cst_89 = arith.constant dense<0.000000e+00> : vector<16x128xf32>
    %194 = tpu.matmul %191, %193, %cst_89 {dimension_numbers = #tpu.dot_dimension_numbers<[1], [0], [0], [1], [0, 0, 1, 1], [], []>} : vector<16x64xf32>, vector<64x128xf32>, vector<16x128xf32> -> vector<16x128xf32>
    %195 = arith.addf %189, %194 : vector<16x128xf32>
    %196 = vector.extract_strided_slice %58 {offsets = [23, 0, 0], sizes = [1, 16, 64], strides = [1, 1, 1]} : vector<25x16x64xf32> to vector<1x16x64xf32>
    %197 = vector.shape_cast %196 : vector<1x16x64xf32> to vector<16x64xf32>
    %c23 = arith.constant 23 : index
    %c0_90 = arith.constant 0 : index
    %c0_91 = arith.constant 0 : index
    %198 = vector.load %arg4[%c23, %c0_90, %c0_91] : memref<25x64x128xf32, #tpu.memory_space<vmem>>, vector<1x64x128xf32>
    %199 = vector.shape_cast %198 : vector<1x64x128xf32> to vector<64x128xf32>
    %cst_92 = arith.constant dense<0.000000e+00> : vector<16x128xf32>
    %200 = tpu.matmul %197, %199, %cst_92 {dimension_numbers = #tpu.dot_dimension_numbers<[1], [0], [0], [1], [0, 0, 1, 1], [], []>} : vector<16x64xf32>, vector<64x128xf32>, vector<16x128xf32> -> vector<16x128xf32>
    %201 = arith.addf %195, %200 : vector<16x128xf32>
    %202 = vector.extract_strided_slice %58 {offsets = [24, 0, 0], sizes = [1, 16, 64], strides = [1, 1, 1]} : vector<25x16x64xf32> to vector<1x16x64xf32>
    %203 = vector.shape_cast %202 : vector<1x16x64xf32> to vector<16x64xf32>
    %c24 = arith.constant 24 : index
    %c0_93 = arith.constant 0 : index
    %c0_94 = arith.constant 0 : index
    %204 = vector.load %arg4[%c24, %c0_93, %c0_94] : memref<25x64x128xf32, #tpu.memory_space<vmem>>, vector<1x64x128xf32>
    %205 = vector.shape_cast %204 : vector<1x64x128xf32> to vector<64x128xf32>
    %cst_95 = arith.constant dense<0.000000e+00> : vector<16x128xf32>
    %206 = tpu.matmul %203, %205, %cst_95 {dimension_numbers = #tpu.dot_dimension_numbers<[1], [0], [0], [1], [0, 0, 1, 1], [], []>} : vector<16x64xf32>, vector<64x128xf32>, vector<16x128xf32> -> vector<16x128xf32>
    %207 = arith.addf %201, %206 : vector<16x128xf32>
    %c0_96 = arith.constant 0 : index
    %c0_97 = arith.constant 0 : index
    %208 = vector.load %arg5[%c0_96, %c0_97] : memref<16x128xf32, #tpu.memory_space<vmem>>, vector<16x128xf32>
    tpu.vector_store %arg5[%c0_96, %c0_97], %207 {strides = array<i32>} : memref<16x128xf32, #tpu.memory_space<vmem>>, vector<16x128xf32>,
    return
  }
  func.func @transform_0(%arg0: i32) -> (i32, i32, i32) {
    %c0_i32 = arith.constant 0 : i32
    %c0_i32_0 = arith.constant 0 : i32
    %c0_i32_1 = arith.constant 0 : i32
    return %c0_i32, %arg0, %c0_i32_0 : i32, i32, i32
  }
  func.func @transform_1(%arg0: i32) -> (i32, i32) {
    %c0_i32 = arith.constant 0 : i32
    %c0_i32_0 = arith.constant 0 : i32
    %c0_i32_1 = arith.constant 0 : i32
    return %c0_i32, %c0_i32_0 : i32, i32
  }
  func.func @transform_2(%arg0: i32) -> (i32, i32) {
    %c0_i32 = arith.constant 0 : i32
    %c0_i32_0 = arith.constant 0 : i32
    %c0_i32_1 = arith.constant 0 : i32
    return %c0_i32, %c0_i32_0 : i32, i32
  }
  func.func @transform_3(%arg0: i32) -> (i32, i32, i32) {
    %c0_i32 = arith.constant 0 : i32
    %c0_i32_0 = arith.constant 0 : i32
    %c0_i32_1 = arith.constant 0 : i32
    %c0_i32_2 = arith.constant 0 : i32
    return %c0_i32, %c0_i32_0, %c0_i32_1 : i32, i32, i32
  }
  func.func @transform_4(%arg0: i32) -> (i32, i32) {
    %c0_i32 = arith.constant 0 : i32
    %c0_i32_0 = arith.constant 0 : i32
    return %arg0, %c0_i32 : i32, i32
  }
}

</mosaic_0001>

<bundles_post_ra>
// kernel: small_lbcnn_forward.1
= control target key start
LH: loop header
LB: loop body
LE: loop exit
PB: predicated region body
PF: predicated region fallthrough
CT: control target
= control target key end

     0   :  { %vm599_vm0 = vcmask 1040384   ;;  %vm166_vm1 = vcmask 203776   ;;  %vm9560_vm2 = vmmov 1   ;;  %s14367_s0 = inlined_call_operand.vmem [shape: f32[72,16,25], index: 0, kind: input, shape index: {}]   ;;  %s14368_s1 = inlined_call_operand.vmem [shape: f32[25,128], index: 1, kind: input, shape index: {}]   ;;  %s14369_s2 = inlined_call_operand.vmem [shape: f32[256,256], index: 2, kind: input, shape index: {}]   ;;  %s14370_s3 = inlined_call_operand.vmem [shape: f32[25,64,128], index: 3, kind: input, shape index: {}]   ;;  %s14371_s4 = inlined_call_operand.hbm [shape: f32[16,128], index: 4, kind: output, shape index: {}]  }
   0x1   :  { %v162_v0 = vld [vmem:[%s14368_s1] sm:$0xff]  ;;  %v163_v1 = vld [vmem:[%s14368_s1 + $0x8] sm:$0xff]  ;;  %v164_v2 = vld [vmem:[%s14368_s1 + $0x10] sm:$0xff] }
   0x2   :  { %v8975_v3 = vpack.c.bf16 %v163_v1, %v162_v0  ;;  %v165_v4 = vld [vmem:[%s14368_s1 + $0x18] sm:$0x1]  ;;  %v18_v5 = vld [vmem:[%s14367_s0] sm:$0xff]  ;;  %vm8980_vm3 = vmpackc.low %vm599_vm0, %vm9560_vm2 }
   0x3   :  { %v8979_v6 = vpack.c.bf16 %v165_v4, %v164_v2  ;;  %8284 = vmatprep.mubr.msk.f32.mxu0 %vm166_vm1, %v18_v5  ;;  %v19_v7 = vld [vmem:[%s14367_s0 + $0x8] sm:$0xff]  ;;  %v20_v8 = vld [vmem:[%s14367_s0 + $0x10] sm:$0xff]  ;;  %v21_v9 = vld [vmem:[%s14367_s0 + $0x18] sm:$0xff] }
   0x4   :  { %8976 = vmatprep.subr.bf16.mxu0 %v8975_v3  ;;  %v22_v10 = vld [vmem:[%s14367_s0 + $0x20] sm:$0xff]  ;;  %v23_v11 = vld [vmem:[%s14367_s0 + $0x28] sm:$0xff]  ;;  %v24_v12 = vld [vmem:[%s14367_s0 + $0x30] sm:$0xff] }
   0x5   :  { %8978 = vmatpush3.bf16.msra.mxu0 %v8975_v3  ;;  %v25_v13 = vld [vmem:[%s14367_s0 + $0x38] sm:$0xff]  ;;  %v26_v14 = vld [vmem:[%s14367_s0 + $0x40] sm:$0xff]  ;;  %v27_v15 = vld [vmem:[%s14367_s0 + $0x48] sm:$0xff] }
   0x6   :  { %8981 = vmatprep.subr.msk.bf16.mxu0 %vm8980_vm3, %v8979_v6  ;;  %v28_v16 = vld [vmem:[%s14367_s0 + $0x50] sm:$0xff] }
   0x9   :  { %8984 = vmatpush3.bf16.msk.msra.mxu0 %vm8980_vm3, %v8979_v6 }
   0xc   :  { %8285 = vmatmul.mubr.msk.f32.vlgmr.msra.gmra.mrb[0].mxu0 %vm166_vm1, %v19_v7 }
   0xd   :  { %8287 = vmatprep.mubr.msk.f32.mxu0 %vm166_vm1, %v20_v8 }
  0x10   :  { %8288 = vmatmul.mubr.msk.f32.gmra.mrb[2].mxu0 %vm166_vm1, %v21_v9 }
  0x11   :  { %8290 = vmatprep.mubr.msk.f32.mxu0 %vm166_vm1, %v22_v10 }
  0x14   :  { %8291 = vmatmul.mubr.msk.f32.gmra.mrb[4].mxu0 %vm166_vm1, %v23_v11 }
  0x15   :  { %8293 = vmatprep.mubr.msk.f32.mxu0 %vm166_vm1, %v24_v12 }
  0x18   :  { %8294 = vmatmul.mubr.msk.f32.gmra.mrb[6].mxu0 %vm166_vm1, %v25_v13 }
  0x19   :  { %8296 = vmatprep.mubr.msk.f32.mxu0 %vm166_vm1, %v26_v14 }
  0x1a   :  { %9 = vsyncpa [#allocation4], 0  ;;  %v29_v17 = vld [vmem:[%s14367_s0 + $0x58] sm:$0xff]  ;;  %v30_v18 = vld [vmem:[%s14367_s0 + $0x60] sm:$0xff]  ;;  %s9561_s25 = smov 96   ;;  %vm2972_vm4 = vcmask 261120  }
  0x1b   :  { %v31_v19 = vld [vmem:[%s14367_s0 + $0x68] sm:$0xff]  ;;  %v32_v20 = vld [vmem:[%s14367_s0 + $0x70] sm:$0xff]  ;;  %v33_v21 = vld [vmem:[%s14367_s0 + $0x78] sm:$0xff]  ;;  %s9563_s17 = smov 32   ;;  %vm3223_vm5 = vcmask 523520   ;;  %vm3474_vm6 = vcmask 785920  }
  0x1c   :  { %8297 = vmatmul.mubr.msk.f32.gmra.mrb[8].mxu0 %vm166_vm1, %v27_v15  ;;  %v34_v22 = vld [vmem:[%s14367_s0 + $0x80] sm:$0xff]  ;;  %v35_v23 = vld [vmem:[%s14367_s0 + $0x88] sm:$0xff]  ;;  %v36_v24 = vld [vmem:[%s14367_s0 + $0x90] sm:$0xff]  ;;  %vm3685_vm7 = vcmask 1048320   ;;  %vm5194_vm8 = vcmask 523264   ;;  %s9564_s26 = smov [#allocation3]  }
  0x1d   :  { %8299 = vmatprep.mubr.msk.f32.mxu0 %vm166_vm1, %v28_v16  ;;  %v37_v25 = vld [vmem:[%s14367_s0 + $0x98] sm:$0xff]  ;;  %v38_v26 = vld [vmem:[%s14367_s0 + $0xa0] sm:$0xff]  ;;  %v39_v27 = vld [vmem:[%s14367_s0 + $0xa8] sm:$0xff]  ;;  %s7480_s27 = sshll.u32 %s9564_s26, 4  ;;  %s7481_s27 = int_to_ptr.vmem [resolvable:$true] %s7480_s27 }
  0x1e   :  { %v40_v28 = vld [vmem:[%s14367_s0 + $0xb0] sm:$0xff]  ;;  %v41_v29 = vld [vmem:[%s14367_s0 + $0xb8] sm:$0xff]  ;;  %v42_v30 = vld [vmem:[%s14367_s0 + $0xc0] sm:$0xff]  ;;  %s9536_s28 = scalar_lea.vmem %s7481_s27, 256  ;;  %p9541_p1 = scmp.lt.s32.totalorder %s7481_s27, %s7481_s27 }
  0x1f   :  { %v43_v31 = vld [vmem:[%s14367_s0 + $0xc8] sm:$0xff]  ;;  %v44_v32 = vld [vmem:[%s14367_s0 + $0xd0] sm:$0xff]  ;;  %v45_v33 = vld [vmem:[%s14367_s0 + $0xd8] sm:$0xff]  ;;  %p9537_p0 = scmp.ne.s32.totalorder %s7481_s27, %s9536_s28  ;;  %p9542_p2 = scmp.lt.s32.totalorder %s9536_s28, %s9536_s28 }
  0x20   :  { %8300 = vmatmul.mubr.msk.f32.gmra.mrb[10].mxu0 %vm166_vm1, %v29_v17  ;;  %v46_v34 = vld [vmem:[%s14367_s0 + $0xe0] sm:$0xff]  ;;  %v47_v35 = vld [vmem:[%s14367_s0 + $0xe8] sm:$0xff]  ;;  %v48_v36 = vld [vmem:[%s14367_s0 + $0xf0] sm:$0xff] }
  0x21   :  { %8302 = vmatprep.mubr.msk.f32.mxu0 %vm166_vm1, %v30_v18  ;;  %v49_v37 = vld [vmem:[%s14367_s0 + $0xf8] sm:$0xff]  ;;  %v50_v38 = vld [vmem:[%s14367_s0 + $0x100] sm:$0xff]  ;;  %v51_v39 = vld [vmem:[%s14367_s0 + $0x108] sm:$0xff]  ;;  %p9543_p3 = por %p9542_p2, %p9541_p1 }
  0x22   :  { %v52_v40 = vld [vmem:[%s14367_s0 + $0x110] sm:$0xff]  ;;  %v53_v41 = vld [vmem:[%s14367_s0 + $0x118] sm:$0xff]  ;;  %v54_v42 = vld [vmem:[%s14367_s0 + $0x120] sm:$0xff] }
  0x23   :  { %v55_v43 = vld [vmem:[%s14367_s0 + $0x128] sm:$0xff]  ;;  %v56_v44 = vld [vmem:[%s14367_s0 + $0x130] sm:$0xff]  ;;  %v57_v45 = vld [vmem:[%s14367_s0 + $0x138] sm:$0xff]  ;;  %p9544_p4 = pnand %p9543_p3, %p9537_p0 }
  0x24   :  { %8303 = vmatmul.mubr.msk.f32.gmra.mrb[12].mxu0 %vm166_vm1, %v31_v19  ;;  %v58_v46 = vld [vmem:[%s14367_s0 + $0x140] sm:$0xff]  ;;  %v59_v47 = vld [vmem:[%s14367_s0 + $0x148] sm:$0xff]  ;;  %v60_v48 = vld [vmem:[%s14367_s0 + $0x150] sm:$0xff] }
  0x25   :  { %8305 = vmatprep.mubr.msk.f32.mxu0 %vm166_vm1, %v32_v20  ;;  %v61_v49 = vld [vmem:[%s14367_s0 + $0x158] sm:$0xff]  ;;  %v62_v50 = vld [vmem:[%s14367_s0 + $0x160] sm:$0xff]  ;;  %v63_v51 = vld [vmem:[%s14367_s0 + $0x168] sm:$0xff] }
  0x26   :  { %v64_v52 = vld [vmem:[%s14367_s0 + $0x170] sm:$0xff]  ;;  %v65_v53 = vld [vmem:[%s14367_s0 + $0x178] sm:$0xff]  ;;  %v66_v54 = vld [vmem:[%s14367_s0 + $0x180] sm:$0xff] }
  0x27   :  { %v67_v55 = vld [vmem:[%s14367_s0 + $0x188] sm:$0xff]  ;;  %v68_v56 = vld [vmem:[%s14367_s0 + $0x190] sm:$0xff]  ;;  %v69_v57 = vld [vmem:[%s14367_s0 + $0x198] sm:$0xff] }
  0x28   :  { %8306 = vmatmul.mubr.msk.f32.gmra.mrb[14].mxu0 %vm166_vm1, %v33_v21  ;;  %v70_v58 = vld [vmem:[%s14367_s0 + $0x1a0] sm:$0xff]  ;;  %v71_v59 = vld [vmem:[%s14367_s0 + $0x1a8] sm:$0xff]  ;;  %v72_v60 = vld [vmem:[%s14367_s0 + $0x1b0] sm:$0xff] }
  0x29   :  { %8308 = vmatprep.mubr.msk.f32.mxu0 %vm166_vm1, %v34_v22  ;;  %v73_v61 = vld [vmem:[%s14367_s0 + $0x1b8] sm:$0xff]  ;;  %v74_v62 = vld [vmem:[%s14367_s0 + $0x1c0] sm:$0xff]  ;;  %v75_v63 = vld [vmem:[%s14367_s0 + $0x1c8] sm:$0xff] }
  0x2a   :  { %v76_v0 = vld [vmem:[%s14367_s0 + $0x1d0] sm:$0xff]  ;;  %v77_v1 = vld [vmem:[%s14367_s0 + $0x1d8] sm:$0xff]  ;;  %v78_v2 = vld [vmem:[%s14367_s0 + $0x1e0] sm:$0xff] }
  0x2b   :  { %v79_v3 = vld [vmem:[%s14367_s0 + $0x1e8] sm:$0xff]  ;;  %v80_v4 = vld [vmem:[%s14367_s0 + $0x1f0] sm:$0xff]  ;;  %v81_v5 = vld [vmem:[%s14367_s0 + $0x1f8] sm:$0xff] }
  0x2c   :  { %8309 = vmatmul.mubr.msk.f32.gmra.mrb[16].mxu0 %vm166_vm1, %v35_v23  ;;  %v82_v6 = vld [vmem:[%s14367_s0 + $0x200] sm:$0xff]  ;;  %v83_v7 = vld [vmem:[%s14367_s0 + $0x208] sm:$0xff]  ;;  %v84_v8 = vld [vmem:[%s14367_s0 + $0x210] sm:$0xff] }
  0x2d   :  { %8311 = vmatprep.mubr.msk.f32.mxu0 %vm166_vm1, %v36_v24  ;;  %v85_v9 = vld [vmem:[%s14367_s0 + $0x218] sm:$0xff]  ;;  %v86_v10 = vld [vmem:[%s14367_s0 + $0x220] sm:$0xff]  ;;  %v87_v11 = vld [vmem:[%s14367_s0 + $0x228] sm:$0xff] }
  0x2e   :  { %v88_v12 = vld [vmem:[%s14367_s0 + $0x230] sm:$0xff]  ;;  %v89_v13 = vld [vmem:[%s14367_s0 + $0x238] sm:$0xff]  ;;  %v90_v14 = vld [vmem:[%s14367_s0 + $0x240] sm:$0xff] }
  0x2f   :  { %v91_v15 = vld [vmem:[%s14367_s0 + $0x248] sm:$0xff]  ;;  %v92_v16 = vld [vmem:[%s14367_s0 + $0x250] sm:$0xff]  ;;  %v93_v17 = vld [vmem:[%s14367_s0 + $0x258] sm:$0xff] }
  0x30   :  { %8312 = vmatmul.mubr.msk.f32.gmra.mrb[18].mxu0 %vm166_vm1, %v37_v25  ;;  %v94_v18 = vld [vmem:[%s14367_s0 + $0x260] sm:$0xff]  ;;  %v95_v19 = vld [vmem:[%s14367_s0 + $0x268] sm:$0xff]  ;;  %v96_v20 = vld [vmem:[%s14367_s0 + $0x270] sm:$0xff] }
  0x31   :  { %8314 = vmatprep.mubr.msk.f32.mxu0 %vm166_vm1, %v38_v26  ;;  %v97_v21 = vld [vmem:[%s14367_s0 + $0x278] sm:$0xff]  ;;  %v98_v22 = vld [vmem:[%s14367_s0 + $0x280] sm:$0xff]  ;;  %v99_v23 = vld [vmem:[%s14367_s0 + $0x288] sm:$0xff] }
  0x32   :  { %v100_v24 = vld [vmem:[%s14367_s0 + $0x290] sm:$0xff]  ;;  %v101_v25 = vld [vmem:[%s14367_s0 + $0x298] sm:$0xff]  ;;  %v102_v26 = vld [vmem:[%s14367_s0 + $0x2a0] sm:$0xff] }
  0x34   :  { %8315 = vmatmul.mubr.msk.f32.gmra.mrb[20].mxu0 %vm166_vm1, %v39_v27  ;;  %v103_v27 = vld [vmem:[%s14367_s0 + $0x2a8] sm:$0xff] }
  0x35   :  { %8317 = vmatprep.mubr.msk.f32.mxu0 %vm166_vm1, %v40_v28  ;;  %v104_v28 = vld [vmem:[%s14367_s0 + $0x2b0] sm:$0xff] }
  0x38   :  { %8318 = vmatmul.mubr.msk.f32.gmra.mrb[22].mxu0 %vm166_vm1, %v41_v29  ;;  %v105_v29 = vld [vmem:[%s14367_s0 + $0x2b8] sm:$0xff] }
  0x39   :  { %8320 = vmatprep.mubr.msk.f32.mxu0 %vm166_vm1, %v42_v30  ;;  %v106_v30 = vld [vmem:[%s14367_s0 + $0x2c0] sm:$0xff] }
  0x3c   :  { %8321 = vmatmul.mubr.msk.f32.gmra.mrb[24].mxu0 %vm166_vm1, %v43_v31  ;;  %v107_v31 = vld [vmem:[%s14367_s0 + $0x2c8] sm:$0xff] }
  0x3d   :  { %8323 = vmatprep.mubr.msk.f32.mxu0 %vm166_vm1, %v44_v32  ;;  %v108_v32 = vld [vmem:[%s14367_s0 + $0x2d0] sm:$0xff] }
  0x40   :  { %8324 = vmatmul.mubr.msk.f32.gmra.mrb[26].mxu0 %vm166_vm1, %v45_v33  ;;  %v109_v33 = vld [vmem:[%s14367_s0 + $0x2d8] sm:$0xff] }
  0x41   :  { %8326 = vmatprep.mubr.msk.f32.mxu0 %vm166_vm1, %v46_v34  ;;  %v110_v34 = vld [vmem:[%s14367_s0 + $0x2e0] sm:$0xff] }
  0x44   :  { %8327 = vmatmul.mubr.msk.f32.gmra.mrb[28].mxu0 %vm166_vm1, %v47_v35  ;;  %v111_v35 = vld [vmem:[%s14367_s0 + $0x2e8] sm:$0xff] }
  0x45   :  { %8329 = vmatprep.mubr.msk.f32.mxu0 %vm166_vm1, %v48_v36  ;;  %v112_v36 = vld [vmem:[%s14367_s0 + $0x2f0] sm:$0xff] }
  0x48   :  { %8330 = vmatmul.mubr.msk.f32.gmra.mrb[30].mxu0 %vm166_vm1, %v49_v37  ;;  %v113_v37 = vld [vmem:[%s14367_s0 + $0x2f8] sm:$0xff] }
  0x49   :  { %8332 = vmatprep.mubr.msk.f32.mxu0 %vm166_vm1, %v50_v38  ;;  %v114_v38 = vld [vmem:[%s14367_s0 + $0x300] sm:$0xff] }
  0x4c   :  { %8333 = vmatmul.mubr.msk.f32.gmra.mrb[32].mxu0 %vm166_vm1, %v51_v39  ;;  %v115_v39 = vld [vmem:[%s14367_s0 + $0x308] sm:$0xff] }
  0x4d   :  { %8335 = vmatprep.mubr.msk.f32.mxu0 %vm166_vm1, %v52_v40  ;;  %v116_v40 = vld [vmem:[%s14367_s0 + $0x310] sm:$0xff] }
  0x50   :  { %8336 = vmatmul.mubr.msk.f32.gmra.mrb[34].mxu0 %vm166_vm1, %v53_v41  ;;  %v117_v41 = vld [vmem:[%s14367_s0 + $0x318] sm:$0xff] }
  0x51   :  { %8338 = vmatprep.mubr.msk.f32.mxu0 %vm166_vm1, %v54_v42  ;;  %v118_v42 = vld [vmem:[%s14367_s0 + $0x320] sm:$0xff] }
  0x54   :  { %8339 = vmatmul.mubr.msk.f32.gmra.mrb[36].mxu0 %vm166_vm1, %v55_v43  ;;  %v119_v43 = vld [vmem:[%s14367_s0 + $0x328] sm:$0xff] }
  0x55   :  { %8341 = vmatprep.mubr.msk.f32.mxu0 %vm166_vm1, %v56_v44  ;;  %v120_v44 = vld [vmem:[%s14367_s0 + $0x330] sm:$0xff] }
  0x58   :  { %8342 = vmatmul.mubr.msk.f32.gmra.mrb[38].mxu0 %vm166_vm1, %v57_v45  ;;  %v121_v45 = vld [vmem:[%s14367_s0 + $0x338] sm:$0xff] }
  0x59   :  { %8344 = vmatprep.mubr.msk.f32.mxu0 %vm166_vm1, %v58_v46  ;;  %v122_v46 = vld [vmem:[%s14367_s0 + $0x340] sm:$0xff] }
  0x5c   :  { %8345 = vmatmul.mubr.msk.f32.gmra.mrb[40].mxu0 %vm166_vm1, %v59_v47  ;;  %v123_v47 = vld [vmem:[%s14367_s0 + $0x348] sm:$0xff] }
  0x5d   :  { %8347 = vmatprep.mubr.msk.f32.mxu0 %vm166_vm1, %v60_v48  ;;  %v124_v48 = vld [vmem:[%s14367_s0 + $0x350] sm:$0xff] }
  0x60   :  { %8348 = vmatmul.mubr.msk.f32.gmra.mrb[42].mxu0 %vm166_vm1, %v61_v49  ;;  %v125_v49 = vld [vmem:[%s14367_s0 + $0x358] sm:$0xff] }
  0x61   :  { %8350 = vmatprep.mubr.msk.f32.mxu0 %vm166_vm1, %v62_v50  ;;  %v126_v50 = vld [vmem:[%s14367_s0 + $0x360] sm:$0xff] }
  0x64   :  { %8351 = vmatmul.mubr.msk.f32.gmra.mrb[44].mxu0 %vm166_vm1, %v63_v51 }
  0x65   :  { %8353 = vmatprep.mubr.msk.f32.mxu0 %vm166_vm1, %v64_v52 }
  0x68   :  { %8354 = vmatmul.mubr.msk.f32.gmra.mrb[46].mxu0 %vm166_vm1, %v65_v53  ;;  %v127_v53 = vld [vmem:[%s14367_s0 + $0x368] sm:$0xff] }
  0x69   :  { %8356 = vmatprep.mubr.msk.f32.mxu0 %vm166_vm1, %v66_v54 }
  0x6c   :  { %8357 = vmatmul.mubr.msk.f32.gmra.mrb[48].mxu0 %vm166_vm1, %v67_v55  ;;  %v128_v55 = vld [vmem:[%s14367_s0 + $0x370] sm:$0xff] }
  0x6d   :  { %8359 = vmatprep.mubr.msk.f32.mxu0 %vm166_vm1, %v68_v56 }
  0x70   :  { %8360 = vmatmul.mubr.msk.f32.gmra.mrb[50].mxu0 %vm166_vm1, %v69_v57  ;;  %v129_v57 = vld [vmem:[%s14367_s0 + $0x378] sm:$0xff] }
  0x71   :  { %8362 = vmatprep.mubr.msk.f32.mxu0 %vm166_vm1, %v70_v58 }
  0x74   :  { %8363 = vmatmul.mubr.msk.f32.gmra.mrb[52].mxu0 %vm166_vm1, %v71_v59  ;;  %v130_v59 = vld [vmem:[%s14367_s0 + $0x380] sm:$0xff] }
  0x75   :  { %8365 = vmatprep.mubr.msk.f32.mxu0 %vm166_vm1, %v72_v60 }
  0x78   :  { %8366 = vmatmul.mubr.msk.f32.gmra.mrb[54].mxu0 %vm166_vm1, %v73_v61  ;;  %v131_v61 = vld [vmem:[%s14367_s0 + $0x388] sm:$0xff] }
  0x79   :  { %8368 = vmatprep.mubr.msk.f32.mxu0 %vm166_vm1, %v74_v62 }
  0x7c   :  { %8369 = vmatmul.mubr.msk.f32.gmra.mrb[56].mxu0 %vm166_vm1, %v75_v63  ;;  %v132_v63 = vld [vmem:[%s14367_s0 + $0x390] sm:$0xff] }
  0x7d   :  { %8371 = vmatprep.mubr.msk.f32.mxu0 %vm166_vm1, %v76_v0 }
  0x80   :  { %8372 = vmatmul.mubr.msk.f32.gmra.mrb[58].mxu0 %vm166_vm1, %v77_v1  ;;  %v133_v1 = vld [vmem:[%s14367_s0 + $0x398] sm:$0xff] }
  0x81   :  { %8374 = vmatprep.mubr.msk.f32.mxu0 %vm166_vm1, %v78_v2 }
  0x84   :  { %8375 = vmatmul.mubr.msk.f32.gmra.mrb[60].mxu0 %vm166_vm1, %v79_v3  ;;  %v134_v3 = vld [vmem:[%s14367_s0 + $0x3a0] sm:$0xff] }
  0x85   :  { %8377 = vmatprep.mubr.msk.f32.mxu0 %vm166_vm1, %v80_v4 }
  0x88   :  { %8378 = vmatmul.mubr.msk.f32.gmra.mrb[62].mxu0 %vm166_vm1, %v81_v5  ;;  %v135_v5 = vld [vmem:[%s14367_s0 + $0x3a8] sm:$0xff] }
  0x89   :  { %8380 = vmatprep.mubr.msk.f32.mxu0 %vm166_vm1, %v82_v6 }
  0x8c   :  { %8381 = vmatmul.mubr.msk.f32.gmra.mrb[64].mxu0 %vm166_vm1, %v83_v7  ;;  %v136_v7 = vld [vmem:[%s14367_s0 + $0x3b0] sm:$0xff] }
  0x8d   :  { %8383 = vmatprep.mubr.msk.f32.mxu0 %vm166_vm1, %v84_v8 }
  0x90   :  { %8384 = vmatmul.mubr.msk.f32.gmra.mrb[66].mxu0 %vm166_vm1, %v85_v9  ;;  %v137_v9 = vld [vmem:[%s14367_s0 + $0x3b8] sm:$0xff] }
  0x91   :  { %8386 = vmatprep.mubr.msk.f32.mxu0 %vm166_vm1, %v86_v10 }
  0x94   :  { %8387 = vmatmul.mubr.msk.f32.gmra.mrb[68].mxu0 %vm166_vm1, %v87_v11  ;;  %v138_v11 = vld [vmem:[%s14367_s0 + $0x3c0] sm:$0xff] }
  0x95   :  { %8389 = vmatprep.mubr.msk.f32.mxu0 %vm166_vm1, %v88_v12 }
  0x98   :  { %8390 = vmatmul.mubr.msk.f32.gmra.mrb[70].mxu0 %vm166_vm1, %v89_v13  ;;  %v139_v13 = vld [vmem:[%s14367_s0 + $0x3c8] sm:$0xff] }
  0x99   :  { %8392 = vmatprep.mubr.msk.f32.mxu0 %vm166_vm1, %v90_v14 }
  0x9c   :  { %8393 = vmatmul.mubr.msk.f32.gmra.mrb[72].mxu0 %vm166_vm1, %v91_v15  ;;  %v140_v15 = vld [vmem:[%s14367_s0 + $0x3d0] sm:$0xff] }
  0x9d   :  { %8395 = vmatprep.mubr.msk.f32.mxu0 %vm166_vm1, %v92_v16 }
  0xa0   :  { %8396 = vmatmul.mubr.msk.f32.gmra.mrb[74].mxu0 %vm166_vm1, %v93_v17  ;;  %v141_v17 = vld [vmem:[%s14367_s0 + $0x3d8] sm:$0xff] }
  0xa1   :  { %8398 = vmatprep.mubr.msk.f32.mxu0 %vm166_vm1, %v94_v18 }
  0xa4   :  { %8399 = vmatmul.mubr.msk.f32.gmra.mrb[76].mxu0 %vm166_vm1, %v95_v19  ;;  %v142_v19 = vld [vmem:[%s14367_s0 + $0x3e0] sm:$0xff] }
  0xa5   :  { %8401 = vmatprep.mubr.msk.f32.mxu0 %vm166_vm1, %v96_v20 }
  0xa8   :  { %8402 = vmatmul.mubr.msk.f32.gmra.mrb[78].mxu0 %vm166_vm1, %v97_v21  ;;  %v143_v21 = vld [vmem:[%s14367_s0 + $0x3e8] sm:$0xff] }
  0xa9   :  { %8404 = vmatprep.mubr.msk.f32.mxu0 %vm166_vm1, %v98_v22 }
  0xac   :  { %8405 = vmatmul.mubr.msk.f32.gmra.mrb[80].mxu0 %vm166_vm1, %v99_v23  ;;  %v144_v23 = vld [vmem:[%s14367_s0 + $0x3f0] sm:$0xff] }
  0xad   :  { %8407 = vmatprep.mubr.msk.f32.mxu0 %vm166_vm1, %v100_v24 }
  0xb0   :  { %8408 = vmatmul.mubr.msk.f32.gmra.mrb[82].mxu0 %vm166_vm1, %v101_v25  ;;  %v145_v25 = vld [vmem:[%s14367_s0 + $0x3f8] sm:$0xff] }
  0xb1   :  { %8410 = vmatprep.mubr.msk.f32.mxu0 %vm166_vm1, %v102_v26 }
  0xb4   :  { %8411 = vmatmul.mubr.msk.f32.gmra.mrb[84].mxu0 %vm166_vm1, %v103_v27  ;;  %v146_v27 = vld [vmem:[%s14367_s0 + $0x400] sm:$0xff] }
  0xb5   :  { %8413 = vmatprep.mubr.msk.f32.mxu0 %vm166_vm1, %v104_v28 }
  0xb8   :  { %8414 = vmatmul.mubr.msk.f32.gmra.mrb[86].mxu0 %vm166_vm1, %v105_v29  ;;  %v147_v29 = vld [vmem:[%s14367_s0 + $0x408] sm:$0xff] }
  0xb9   :  { %8416 = vmatprep.mubr.msk.f32.mxu0 %vm166_vm1, %v106_v30 }
  0xbc   :  { %8417 = vmatmul.mubr.msk.f32.gmra.mrb[88].mxu0 %vm166_vm1, %v107_v31  ;;  %v148_v31 = vld [vmem:[%s14367_s0 + $0x410] sm:$0xff] }
  0xbd   :  { %8419 = vmatprep.mubr.msk.f32.mxu0 %vm166_vm1, %v108_v32 }
  0xc0   :  { %8420 = vmatmul.mubr.msk.f32.gmra.mrb[90].mxu0 %vm166_vm1, %v109_v33  ;;  %v149_v33 = vld [vmem:[%s14367_s0 + $0x418] sm:$0xff] }
  0xc1   :  { %8422 = vmatprep.mubr.msk.f32.mxu0 %vm166_vm1, %v110_v34 }
  0xc4   :  { %8423 = vmatmul.mubr.msk.f32.gmra.mrb[92].mxu0 %vm166_vm1, %v111_v35  ;;  %v150_v35 = vld [vmem:[%s14367_s0 + $0x420] sm:$0xff] }
  0xc5   :  { %8425 = vmatprep.mubr.msk.f32.mxu0 %vm166_vm1, %v112_v36 }
  0xc8   :  { %8426 = vmatmul.mubr.msk.f32.gmra.mrb[94].mxu0 %vm166_vm1, %v113_v37  ;;  %v151_v37 = vld [vmem:[%s14367_s0 + $0x428] sm:$0xff] }
  0xc9   :  { %8428 = vmatprep.mubr.msk.f32.mxu0 %vm166_vm1, %v114_v38 }
  0xcc   :  { %8429 = vmatmul.mubr.msk.f32.gmra.mrb[96].mxu0 %vm166_vm1, %v115_v39  ;;  %v152_v39 = vld [vmem:[%s14367_s0 + $0x430] sm:$0xff] }
  0xcd   :  { %8431 = vmatprep.mubr.msk.f32.mxu0 %vm166_vm1, %v116_v40 }
  0xd0   :  { %8432 = vmatmul.mubr.msk.f32.gmra.mrb[98].mxu0 %vm166_vm1, %v117_v41  ;;  %v153_v41 = vld [vmem:[%s14367_s0 + $0x438] sm:$0xff] }
  0xd1   :  { %8434 = vmatprep.mubr.msk.f32.mxu0 %vm166_vm1, %v118_v42 }
  0xd4   :  { %8435 = vmatmul.mubr.msk.f32.gmra.mrb[100].mxu0 %vm166_vm1, %v119_v43  ;;  %v154_v43 = vld [vmem:[%s14367_s0 + $0x440] sm:$0xff] }
  0xd5   :  { %8437 = vmatprep.mubr.msk.f32.mxu0 %vm166_vm1, %v120_v44 }
  0xd8   :  { %8438 = vmatmul.mubr.msk.f32.gmra.mrb[102].mxu0 %vm166_vm1, %v121_v45  ;;  %v155_v45 = vld [vmem:[%s14367_s0 + $0x448] sm:$0xff] }
  0xd9   :  { %8440 = vmatprep.mubr.msk.f32.mxu0 %vm166_vm1, %v122_v46 }
  0xdc   :  { %8441 = vmatmul.mubr.msk.f32.gmra.mrb[104].mxu0 %vm166_vm1, %v123_v47  ;;  %v156_v47 = vld [vmem:[%s14367_s0 + $0x450] sm:$0xff] }
  0xdd   :  { %8443 = vmatprep.mubr.msk.f32.mxu0 %vm166_vm1, %v124_v48 }
  0xdf   :  { %v10038_v51 = vpop.f32.mrb[0].mxu0 }
  0xe0   :  { %1534 = vrot.lane.b32.xlu0 %v10038_v51, %s9561_s25  ;;  %v10042_v52 = vpop.f32.mrb[1].mxu0  ;;  %8444 = vmatmul.mubr.msk.f32.gmra.mrb[106].mxu0 %vm166_vm1, %v125_v49  ;;  %v157_v49 = vld [vmem:[%s14367_s0 + $0x458] sm:$0xff] }
  0xe1   :  { %8446 = vmatprep.mubr.msk.f32.mxu0 %vm166_vm1, %v126_v50 }
  0xe3   :  { %v10049_v54 = vpop.f32.mrb[2].mxu0 }
  0xe4   :  { %1532 = vrot.lane.b32.xlu0 %v10042_v52, %s9561_s25  ;;  %1538 = vrot.lane.b32.xlu1 %v10049_v54, %s9561_s25  ;;  %v10058_v56 = vpop.f32.mrb[3].mxu0 }
  0xe5   :  { %8447 = vmatmul.mubr.msk.f32.gmra.mrb[108].mxu0 %vm166_vm1, %v127_v53 }
  0xe6   :  { %8449 = vmatprep.mubr.msk.f32.mxu0 %vm166_vm1, %v128_v55  ;;  %v158_v55 = vld [vmem:[%s14367_s0 + $0x460] sm:$0xff] }
  0xe7   :  { %v10065_v58 = vpop.f32.mrb[4].mxu0 }
  0xe8   :  { %1536 = vrot.lane.b32.xlu1 %v10058_v56, %s9561_s25  ;;  %v10072_v60 = vpop.f32.mrb[5].mxu0 }
  0xe9   :  { %1540 = vrot.lane.b32.xlu0 %v10072_v60, %s9561_s25  ;;  %8450 = vmatmul.mubr.msk.f32.gmra.mrb[110].mxu0 %vm166_vm1, %v129_v57 }
  0xea   :  { %8452 = vmatprep.mubr.msk.f32.mxu0 %vm166_vm1, %v130_v59  ;;  %v159_v59 = vld [vmem:[%s14367_s0 + $0x468] sm:$0xff] }
  0xeb   :  { %v10081_v62 = vpop.f32.mrb[6].mxu0 }
  0xec   :  { %1542 = vrot.lane.b32.xlu1 %v10065_v58, %s9561_s25  ;;  %v10088_v0 = vpop.f32.mrb[7].mxu0 }
  0xed   :  { %1544 = vrot.lane.b32.xlu0 %v10088_v0, %s9561_s25  ;;  %8453 = vmatmul.mubr.msk.f32.gmra.mrb[112].mxu0 %vm166_vm1, %v131_v61 }
  0xee   :  { %8455 = vmatprep.mubr.msk.f32.mxu0 %vm166_vm1, %v132_v63 }
  0xef   :  { %v10097_v2 = vpop.f32.mrb[8].mxu0 }
  0xf0   :  { %1546 = vrot.lane.b32.xlu1 %v10081_v62, %s9561_s25  ;;  %v10104_v4 = vpop.f32.mrb[9].mxu0 }
  0xf1   :  { %1548 = vrot.lane.b32.xlu0 %v10104_v4, %s9561_s25  ;;  %8456 = vmatmul.mubr.msk.f32.gmra.mrb[114].mxu0 %vm166_vm1, %v133_v1 }
  0xf2   :  { %8458 = vmatprep.mubr.msk.f32.mxu0 %vm166_vm1, %v134_v3 }
  0xf3   :  { %v10113_v6 = vpop.f32.mrb[10].mxu0 }
  0xf4   :  { %1550 = vrot.lane.b32.xlu1 %v10097_v2, %s9561_s25  ;;  %v10120_v8 = vpop.f32.mrb[11].mxu0 }
  0xf5   :  { %1552 = vrot.lane.b32.xlu0 %v10120_v8, %s9561_s25  ;;  %8459 = vmatmul.mubr.msk.f32.gmra.mrb[116].mxu0 %vm166_vm1, %v135_v5  ;;  %v160_v5 = vld [vmem:[%s14367_s0 + $0x470] sm:$0xff] }
  0xf6   :  { %8461 = vmatprep.mubr.msk.f32.mxu0 %vm166_vm1, %v136_v7 }
  0xf7   :  { %v10129_v10 = vpop.f32.mrb[12].mxu0 }
  0xf8   :  { %1554 = vrot.lane.b32.xlu1 %v10113_v6, %s9561_s25  ;;  %v10136_v12 = vpop.f32.mrb[13].mxu0 }
  0xf9   :  { %1556 = vrot.lane.b32.xlu0 %v10136_v12, %s9561_s25  ;;  %8462 = vmatmul.mubr.msk.f32.gmra.mrb[118].mxu0 %vm166_vm1, %v137_v9  ;;  %v161_v9 = vld [vmem:[%s14367_s0 + $0x478] sm:$0xff]  ;;  %s9562_s0 = smov 64  }
  0xfa   :  { %8464 = vmatprep.mubr.msk.f32.mxu0 %vm166_vm1, %v138_v11 }
  0xfb   :  { %v10145_v14 = vpop.f32.mrb[14].mxu0 }
  0xfc   :  { %1558 = vrot.lane.b32.xlu1 %v10129_v10, %s9561_s25  ;;  %v10152_v16 = vpop.f32.mrb[15].mxu0 }
  0xfd   :  { %1560 = vrot.lane.b32.xlu0 %v10152_v16, %s9561_s25  ;;  %8465 = vmatmul.mubr.msk.f32.gmra.mrb[120].mxu0 %vm166_vm1, %v139_v13 }
  0xfe   :  { %8467 = vmatprep.mubr.msk.f32.mxu0 %vm166_vm1, %v140_v15 }
  0xff   :  { %v10161_v18 = vpop.f32.mrb[16].mxu0 }
 0x100   :  { %1562 = vrot.lane.b32.xlu1 %v10145_v14, %s9561_s25  ;;  %v10168_v20 = vpop.f32.mrb[17].mxu0 }
 0x101   :  { %1564 = vrot.lane.b32.xlu0 %v10168_v20, %s9561_s25  ;;  %8468 = vmatmul.mubr.msk.f32.gmra.mrb[122].mxu0 %vm166_vm1, %v141_v17 }
 0x102   :  { %8470 = vmatprep.mubr.msk.f32.mxu0 %vm166_vm1, %v142_v19 }
 0x103   :  { %v10177_v22 = vpop.f32.mrb[18].mxu0 }
 0x104   :  { %1566 = vrot.lane.b32.xlu1 %v10161_v18, %s9561_s25  ;;  %v10184_v24 = vpop.f32.mrb[19].mxu0 }
 0x105   :  { %1568 = vrot.lane.b32.xlu0 %v10184_v24, %s9561_s25  ;;  %8471 = vmatmul.mubr.msk.f32.gmra.mrb[124].mxu0 %vm166_vm1, %v143_v21 }
 0x106   :  { %8473 = vmatprep.mubr.msk.f32.mxu0 %vm166_vm1, %v144_v23 }
 0x107   :  { %v10193_v26 = vpop.f32.mrb[20].mxu0 }
 0x108   :  { %1570 = vrot.lane.b32.xlu1 %v10177_v22, %s9561_s25  ;;  %v10200_v28 = vpop.f32.mrb[21].mxu0 }
 0x109   :  { %1572 = vrot.lane.b32.xlu0 %v10200_v28, %s9561_s25  ;;  %8474 = vmatmul.mubr.msk.f32.gmra.mrb[126].mxu0 %vm166_vm1, %v145_v25 }
 0x10a   :  { %8476 = vmatprep.mubr.msk.f32.mxu0 %vm166_vm1, %v146_v27 }
 0x10b   :  { %v10209_v30 = vpop.f32.mrb[22].mxu0 }
 0x10c   :  { %1574 = vrot.lane.b32.xlu1 %v10193_v26, %s9561_s25  ;;  %v10216_v32 = vpop.f32.mrb[23].mxu0 }
 0x10d   :  { %1576 = vrot.lane.b32.xlu0 %v10216_v32, %s9561_s25  ;;  %8477 = vmatmul.mubr.msk.f32.gmra.mrb[128].mxu0 %vm166_vm1, %v147_v29 }
 0x10e   :  { %8479 = vmatprep.mubr.msk.f32.mxu0 %vm166_vm1, %v148_v31 }
 0x10f   :  { %v10225_v34 = vpop.f32.mrb[24].mxu0 }
 0x110   :  { %1578 = vrot.lane.b32.xlu1 %v10209_v30, %s9561_s25  ;;  %v10232_v36 = vpop.f32.mrb[25].mxu0 }
 0x111   :  { %1580 = vrot.lane.b32.xlu0 %v10232_v36, %s9561_s25  ;;  %8480 = vmatmul.mubr.msk.f32.gmra.mrb[130].mxu0 %vm166_vm1, %v149_v33 }
 0x112   :  { %8482 = vmatprep.mubr.msk.f32.mxu0 %vm166_vm1, %v150_v35 }
 0x113   :  { %v10241_v38 = vpop.f32.mrb[26].mxu0 }
 0x114   :  { %1582 = vrot.lane.b32.xlu1 %v10225_v34, %s9561_s25  ;;  %v10248_v40 = vpop.f32.mrb[27].mxu0 }
 0x115   :  { %1584 = vrot.lane.b32.xlu0 %v10248_v40, %s9561_s25  ;;  %8483 = vmatmul.mubr.msk.f32.gmra.mrb[132].mxu0 %vm166_vm1, %v151_v37 }
 0x116   :  { %8485 = vmatprep.mubr.msk.f32.mxu0 %vm166_vm1, %v152_v39 }
 0x117   :  { %v10257_v42 = vpop.f32.mrb[28].mxu0 }
 0x118   :  { %1586 = vrot.lane.b32.xlu1 %v10241_v38, %s9561_s25  ;;  %v10264_v44 = vpop.f32.mrb[29].mxu0 }
 0x119   :  { %1588 = vrot.lane.b32.xlu0 %v10264_v44, %s9561_s25  ;;  %8486 = vmatmul.mubr.msk.f32.gmra.mrb[134].mxu0 %vm166_vm1, %v153_v41 }
 0x11a   :  { %8488 = vmatprep.mubr.msk.f32.mxu0 %vm166_vm1, %v154_v43 }
 0x11b   :  { %v10273_v46 = vpop.f32.mrb[30].mxu0 }
 0x11c   :  { %1590 = vrot.lane.b32.xlu1 %v10257_v42, %s9561_s25  ;;  %v10280_v48 = vpop.f32.mrb[31].mxu0 }
 0x11d   :  { %1592 = vrot.lane.b32.xlu0 %v10280_v48, %s9561_s25  ;;  %8489 = vmatmul.mubr.msk.f32.gmra.mrb[136].mxu0 %vm166_vm1, %v155_v45 }
 0x11e   :  { %8491 = vmatprep.mubr.msk.f32.mxu0 %vm166_vm1, %v156_v47 }
 0x11f   :  { %v10289_v50 = vpop.f32.mrb[32].mxu0 }
 0x120   :  { %1594 = vrot.lane.b32.xlu1 %v10273_v46, %s9561_s25  ;;  %v10293_v53 = vpop.f32.mrb[33].mxu0 }
 0x121   :  { %1596 = vrot.lane.b32.xlu0 %v10293_v53, %s9561_s25  ;;  %8492 = vmatmul.mubr.msk.f32.gmra.mrb[138].mxu0 %vm166_vm1, %v157_v49 }
 0x122   :  { %8494 = vmatprep.mubr.msk.f32.mxu0 %vm166_vm1, %v158_v55 }
 0x123   :  { %v10301_v57 = vpop.f32.mrb[34].mxu0 }
 0x124   :  { %14527 = vst [vmem:[#allocation6_spill] sm:$0xff] %v10301_v57  ;;  %1598 = vrot.lane.b32.xlu1 %v10289_v50, %s9561_s25  ;;  %v10309_v61 = vpop.f32.mrb[35].mxu0 }
 0x125   :  { %14528 = vst [vmem:[#allocation7_spill] sm:$0xff] %v10309_v61  ;;  %1600 = vrot.lane.b32.xlu0 %v10309_v61, %s9561_s25  ;;  %8495 = vmatmul.mubr.msk.f32.gmra.mrb[140].mxu0 %vm166_vm1, %v159_v59 }
 0x126   :  { %8497 = vmatprep.mubr.msk.f32.mxu0 %vm166_vm1, %v160_v5 }
 0x127   :  { %v10314_v63 = vpop.f32.mrb[36].mxu0 }
 0x128   :  { %1602 = vrot.lane.b32.xlu1 %v10301_v57, %s9561_s25  ;;  %v10318_v1 = vpop.f32.mrb[37].mxu0 }
 0x129   :  { %14529 = vst [vmem:[#allocation8_spill] sm:$0xff] %v10318_v1  ;;  %1604 = vrot.lane.b32.xlu0 %v10318_v1, %s9561_s25  ;;  %8498 = vmatmul.mubr.msk.f32.gmra.mrb[142].mxu0 %vm166_vm1, %v161_v9 }
 0x12b   :  { %v10322_v3 = vpop.f32.mrb[38].mxu0 }
 0x12c   :  { %14530 = vst [vmem:[#allocation9_spill] sm:$0xff] %v10322_v3  ;;  %1606 = vrot.lane.b32.xlu1 %v10314_v63, %s9561_s25  ;;  %v10329_v7 = vpop.f32.mrb[39].mxu0 }
 0x12d   :  { %14531 = vst [vmem:[#allocation10_spill] sm:$0xff] %v10329_v7  ;;  %1608 = vrot.lane.b32.xlu0 %v10329_v7, %s9561_s25 }
 0x12f   :  { %v10338_v11 = vpop.f32.mrb[40].mxu0 }
 0x130   :  { %14532 = vst [vmem:[#allocation11_spill] sm:$0xff] %v10338_v11  ;;  %1610 = vrot.lane.b32.xlu1 %v10322_v3, %s9561_s25  ;;  %v10342_v13 = vpop.f32.mrb[41].mxu0 }
 0x131   :  { %14533 = vst [vmem:[#allocation12_spill] sm:$0xff] %v10342_v13  ;;  %1612 = vrot.lane.b32.xlu0 %v10342_v13, %s9561_s25 }
 0x133   :  { %v10346_v15 = vpop.f32.mrb[42].mxu0 }
 0x134   :  { %14534 = vst [vmem:[#allocation13_spill] sm:$0xff] %v10346_v15  ;;  %1614 = vrot.lane.b32.xlu1 %v10338_v11, %s9561_s25  ;;  %v10350_v17 = vpop.f32.mrb[43].mxu0 }
 0x135   :  { %14535 = vst [vmem:[#allocation14_spill] sm:$0xff] %v10350_v17  ;;  %1618 = vrot.lane.b32.xlu0 %v10346_v15, %s9561_s25 }
 0x137   :  { %v10354_v19 = vpop.f32.mrb[44].mxu0 }
 0x138   :  { %14536 = vst [vmem:[#allocation15_spill] sm:$0xff] %v10354_v19  ;;  %v10356_v21 = vpop.f32.mrb[45].mxu0 }
 0x139   :  { %14537 = vst [vmem:[#allocation16_spill] sm:$0xff] %v10356_v21  ;;  %1616 = vrot.lane.b32.xlu0 %v10350_v17, %s9561_s25  ;;  %1620 = vrot.lane.b32.xlu1 %v10356_v21, %s9561_s25 }
 0x13b   :  { %v10362_v23 = vpop.f32.mrb[46].mxu0 }
 0x13c   :  { %14538 = vst [vmem:[#allocation17_spill] sm:$0xff] %v10362_v23  ;;  %v10364_v25 = vpop.f32.mrb[47].mxu0 }
 0x13d   :  { %14539 = vst [vmem:[#allocation18_spill] sm:$0xff] %v10364_v25  ;;  %1622 = vrot.lane.b32.xlu0 %v10354_v19, %s9561_s25 }
 0x13f   :  { %v10368_v27 = vpop.f32.mrb[48].mxu0 }
 0x140   :  { %14540 = vst [vmem:[#allocation19_spill] sm:$0xff] %v10368_v27  ;;  %1630 = vrot.lane.b32.xlu1 %v10368_v27, %s9561_s25  ;;  %v10372_v29 = vpop.f32.mrb[49].mxu0 }
 0x141   :  { %14541 = vst [vmem:[#allocation20_spill] sm:$0xff] %v10372_v29  ;;  %1626 = vrot.lane.b32.xlu0 %v10362_v23, %s9561_s25 }
 0x143   :  { %v10376_v31 = vpop.f32.mrb[50].mxu0 }
 0x144   :  { %14542 = vst [vmem:[#allocation21_spill] sm:$0xff] %v10376_v31  ;;  %1634 = vrot.lane.b32.xlu1 %v10376_v31, %s9561_s25  ;;  %v10380_v33 = vpop.f32.mrb[51].mxu0 }
 0x145   :  { %14543 = vst [vmem:[#allocation22_spill] sm:$0xff] %v10380_v33  ;;  %1624 = vrot.lane.b32.xlu0 %v10364_v25, %s9561_s25 }
 0x147   :  { %v10384_v35 = vpop.f32.mrb[52].mxu0 }
 0x148   :  { %14544 = vst [vmem:[#allocation23_spill] sm:$0xff] %v10384_v35  ;;  %1632 = vrot.lane.b32.xlu1 %v10380_v33, %s9561_s25  ;;  %v10388_v37 = vpop.f32.mrb[53].mxu0 }
 0x149   :  { %14545 = vst [vmem:[#allocation24_spill] sm:$0xff] %v10388_v37  ;;  %1628 = vrot.lane.b32.xlu0 %v10372_v29, %s9561_s25 }
 0x14b   :  { %v10392_v39 = vpop.f32.mrb[54].mxu0 }
 0x14c   :  { %14546 = vst [vmem:[#allocation25_spill] sm:$0xff] %v10392_v39  ;;  %1636 = vrot.lane.b32.xlu1 %v10388_v37, %s9561_s25  ;;  %v10396_v41 = vpop.f32.mrb[55].mxu0 }
 0x14d   :  { %14547 = vst [vmem:[#allocation26_spill] sm:$0xff] %v10396_v41  ;;  %1638 = vrot.lane.b32.xlu0 %v10384_v35, %s9561_s25 }
 0x14f   :  { %v10400_v43 = vpop.f32.mrb[56].mxu0 }
 0x150   :  { %14548 = vst [vmem:[#allocation27_spill] sm:$0xff] %v10400_v43  ;;  %1642 = vrot.lane.b32.xlu1 %v10392_v39, %s9561_s25  ;;  %v10404_v45 = vpop.f32.mrb[57].mxu0 }
 0x151   :  { %14549 = vst [vmem:[#allocation28_spill] sm:$0xff] %v10404_v45 }
 0x152   :  { %v1535_v47 = vpop.permute.xlu0 %1534 }
 0x153   :  { %v10406_v49 = vpop.f32.mrb[58].mxu0 }
 0x154   :  { %14550 = vst [vmem:[#allocation29_spill] sm:$0xff] %v10406_v49  ;;  %1640 = vrot.lane.b32.xlu1 %v10396_v41, %s9561_s25  ;;  %1650 = vrot.lane.b32.xlu0 %v10406_v49, %s9561_s25  ;;  %v10412_v55 = vpop.f32.mrb[59].mxu0 }
 0x155   :  { %14551 = vst [vmem:[#allocation30_spill] sm:$0xff] %v10412_v55 }
 0x156   :  { %v1533_v59 = vpop.permute.xlu0 %1532  ;;  %v1539_v5 = vpop.permute.xlu1 %1538 }
 0x157   :  { %v10414_v9 = vpop.f32.mrb[60].mxu0  ;;  %v10423_v29 = vmax.f32 %v10042_v52, %v1533_v59 }
 0x158   :  { %14552 = vst [vmem:[#allocation31_spill] sm:$0xff] %v10414_v9  ;;  %1646 = vrot.lane.b32.xlu1 %v10400_v43, %s9561_s25  ;;  %1648 = vrot.lane.b32.xlu0 %v10412_v55, %s9561_s25  ;;  %v10420_v27 = vpop.f32.mrb[61].mxu0  ;;  %v10434_v43 = vmax.f32 %v10038_v51, %v1535_v47 }
 0x159   :  { %14553 = vst [vmem:[#allocation32_spill] sm:$0xff] %v10420_v27  ;;  %v10437_v27 = vmax.f32 %v10049_v54, %v1539_v5 }
 0x15a   :  { %v1537_v39 = vpop.permute.xlu1 %1536 }
 0x15b   :  { %v1541_v41 = vpop.permute.xlu0 %1540  ;;  %v10425_v49 = vpop.f32.mrb[62].mxu0 }
 0x15c   :  { %14554 = vst [vmem:[#allocation33_spill] sm:$0xff] %v10425_v49  ;;  %1644 = vrot.lane.b32.xlu1 %v10404_v45, %s9561_s25  ;;  %2252 = vrot.lane.b32.xlu0 %v10423_v29, %s9562_s0  ;;  %v10431_v9 = vpop.f32.mrb[63].mxu0 }
 0x15d   :  { %14555 = vst [vmem:[#allocation34_spill] sm:$0xff] %v10431_v9  ;;  %v10448_v9 = vmax.f32 %v10058_v56, %v1537_v39  ;;  %v10466_v39 = vmax.f32 %v10072_v60, %v1541_v41 }
 0x15e   :  { %v1543_v52 = vpop.permute.xlu1 %1542 }
 0x15f   :  { %v1545_v59 = vpop.permute.xlu0 %1544  ;;  %v10439_v55 = vpop.f32.mrb[64].mxu0  ;;  %v10457_v5 = vmax.f32 %v10065_v58, %v1543_v52  ;;  %14562 = vst [vmem:[#allocation41_spill] sm:$0xff] %v10466_v39 }
 0x160   :  { %14556 = vst [vmem:[#allocation35_spill] sm:$0xff] %v10439_v55  ;;  %2254 = vrot.lane.b32.xlu1 %v10434_v43, %s9562_s0  ;;  %2258 = vrot.lane.b32.xlu0 %v10437_v27, %s9562_s0  ;;  %v10445_v45 = vpop.f32.mrb[65].mxu0 }
 0x161   :  { %14557 = vst [vmem:[#allocation36_spill] sm:$0xff] %v10445_v45 }
 0x162   :  { %v1547_v51 = vpop.permute.xlu1 %1546 }
 0x163   :  { %v1549_v47 = vpop.permute.xlu0 %1548  ;;  %v10450_v49 = vpop.f32.mrb[66].mxu0  ;;  %v10480_v52 = vmax.f32 %v10081_v62, %v1547_v51 }
 0x164   :  { %14558 = vst [vmem:[#allocation37_spill] sm:$0xff] %v10450_v49  ;;  %2256 = vrot.lane.b32.xlu0 %v10448_v9, %s9562_s0  ;;  %v10454_v54 = vpop.f32.mrb[67].mxu0 }
 0x165   :  { %14559 = vst [vmem:[#allocation38_spill] sm:$0xff] %v10454_v54  ;;  %14566 = vst [vmem:[#allocation45_spill] sm:$0xff] %v10480_v52 }
 0x166   :  { %v1551_v35 = vpop.permute.xlu1 %1550 }
 0x167   :  { %v1553_v55 = vpop.permute.xlu0 %1552  ;;  %v10459_v31 = vpop.f32.mrb[68].mxu0  ;;  %v10535_v19 = vmax.f32 %v10097_v2, %v1551_v35  ;;  %v10560_v35 = vmax.f32 %v10104_v4, %v1549_v47 }
 0x168   :  { %14560 = vst [vmem:[#allocation39_spill] sm:$0xff] %v10459_v31  ;;  %2262 = vrot.lane.b32.xlu0 %v10457_v5, %s9562_s0  ;;  %v10463_v56 = vpop.f32.mrb[69].mxu0  ;;  %v10483_v41 = vmax.f32 %v10120_v8, %v1553_v55  ;;  %v10507_v55 = vmax.f32 %v10088_v0, %v1545_v59 }
 0x169   :  { %14561 = vst [vmem:[#allocation40_spill] sm:$0xff] %v10463_v56  ;;  %14579 = vst [vmem:[#allocation58_spill] sm:$0xff] %v10535_v19 }
 0x16a   :  { %v1555_v25 = vpop.permute.xlu1 %1554  ;;  %14567 = vst [vmem:[#allocation46_spill] sm:$0xff] %v10483_v41  ;;  %14573 = vst [vmem:[#allocation52_spill] sm:$0xff] %v10507_v55 }
 0x16b   :  { %v10469_v21 = vmax.f32 %v10113_v6, %v1555_v25  ;;  %v1557_v37 = vpop.permute.xlu0 %1556  ;;  %v10471_v33 = vpop.f32.mrb[70].mxu0  ;;  %14584 = vst [vmem:[#allocation63_spill] sm:$0xff] %v10560_v35 }
 0x16c   :  { %14564 = vst [vmem:[#allocation43_spill] sm:$0xff] %v10471_v33  ;;  %2260 = vrot.lane.b32.xlu0 %v10466_v39, %s9562_s0  ;;  %v10475_v58 = vpop.f32.mrb[71].mxu0  ;;  %v10522_v13 = vmax.f32 %v10136_v12, %v1557_v37 }
 0x16d   :  { %14563 = vst [vmem:[#allocation42_spill] sm:$0xff] %v10469_v21  ;;  %14565 = vst [vmem:[#allocation44_spill] sm:$0xff] %v10475_v58  ;;  %2274 = vrot.lane.b32.xlu1 %v10469_v21, %s9562_s0 }
 0x16e   :  { %v1559_v60 = vpop.permute.xlu1 %1558  ;;  %14576 = vst [vmem:[#allocation55_spill] sm:$0xff] %v10522_v13 }
 0x16f   :  { %v1561_v6 = vpop.permute.xlu0 %1560  ;;  %v10485_v25 = vpop.f32.mrb[72].mxu0  ;;  %v10494_v21 = vmax.f32 %v10129_v10, %v1559_v60 }
 0x170   :  { %14568 = vst [vmem:[#allocation47_spill] sm:$0xff] %v10485_v25  ;;  %2266 = vrot.lane.b32.xlu0 %v10480_v52, %s9562_s0  ;;  %v10489_v17 = vpop.f32.mrb[73].mxu0  ;;  %v10580_v4 = vmax.f32 %v10152_v16, %v1561_v6 }
 0x171   :  { %14569 = vst [vmem:[#allocation48_spill] sm:$0xff] %v10489_v17  ;;  %2272 = vrot.lane.b32.xlu1 %v10483_v41, %s9562_s0  ;;  %14570 = vst [vmem:[#allocation49_spill] sm:$0xff] %v10494_v21 }
 0x172   :  { %v1563_v15 = vpop.permute.xlu1 %1562  ;;  %14588 = vst [vmem:[#allocation67_spill] sm:$0xff] %v10580_v4 }
 0x173   :  { %v10496_v62 = vpop.permute.xlu0 %1564  ;;  %v10498_v51 = vpop.f32.mrb[74].mxu0 }
 0x174   :  { %14571 = vst [vmem:[#allocation50_spill] sm:$0xff] %v10498_v51  ;;  %1660 = vrot.lane.b32.xlu0 %v10445_v45, %s9561_s25  ;;  %v10502_v8 = vpop.f32.mrb[75].mxu0 }
 0x175   :  { %14572 = vst [vmem:[#allocation51_spill] sm:$0xff] %v10502_v8  ;;  %2278 = vrot.lane.b32.xlu1 %v10494_v21, %s9562_s0 }
 0x176   :  { %v1567_v41 = vpop.permute.xlu1 %1566 }
 0x177   :  { %v10509_v23 = vpop.permute.xlu0 %1568  ;;  %v10511_v10 = vpop.f32.mrb[76].mxu0  ;;  %v10619_v52 = vmax.f32 %v10161_v18, %v1567_v41 }
 0x178   :  { %14574 = vst [vmem:[#allocation53_spill] sm:$0xff] %v10511_v10  ;;  %2264 = vrot.lane.b32.xlu0 %v10507_v55, %s9562_s0  ;;  %v10515_v60 = vpop.f32.mrb[77].mxu0 }
 0x179   :  { %14575 = vst [vmem:[#allocation54_spill] sm:$0xff] %v10515_v60  ;;  %1672 = vrot.lane.b32.xlu1 %v10475_v58, %s9561_s25  ;;  %14595 = vst [vmem:[#allocation74_spill] sm:$0xff] %v10619_v52 }
 0x17a   :  { %v10519_v45 = vpop.permute.xlu1 %1570 }
 0x17b   :  { %v10524_v0 = vpop.permute.xlu0 %1572  ;;  %v10526_v59 = vpop.f32.mrb[78].mxu0 }
 0x17c   :  { %14577 = vst [vmem:[#allocation56_spill] sm:$0xff] %v10526_v59  ;;  %1666 = vrot.lane.b32.xlu0 %v10450_v49, %s9561_s25  ;;  %v10530_v11 = vpop.f32.mrb[79].mxu0 }
 0x17d   :  { %14578 = vst [vmem:[#allocation57_spill] sm:$0xff] %v10530_v11  ;;  %2276 = vrot.lane.b32.xlu1 %v10522_v13, %s9562_s0 }
 0x17e   :  { %v10537_v58 = vpop.permute.xlu1 %1574 }
 0x17f   :  { %v10539_v3 = vpop.permute.xlu0 %1576  ;;  %v10541_v12 = vpop.f32.mrb[80].mxu0 }
 0x180   :  { %14580 = vst [vmem:[#allocation59_spill] sm:$0xff] %v10541_v12  ;;  %2270 = vrot.lane.b32.xlu0 %v10535_v19, %s9562_s0  ;;  %v10545_v37 = vpop.f32.mrb[81].mxu0 }
 0x181   :  { %14581 = vst [vmem:[#allocation60_spill] sm:$0xff] %v10545_v37  ;;  %1678 = vrot.lane.b32.xlu1 %v10485_v25, %s9561_s25  ;;  %v10565_v25 = vmax.f32 %v10145_v14, %v1563_v15 }
 0x182   :  { %v1579_v49 = vpop.permute.xlu1 %1578 }
 0x183   :  { %v10549_v7 = vpop.permute.xlu0 %1580  ;;  %v10551_v13 = vpop.f32.mrb[82].mxu0  ;;  %14585 = vst [vmem:[#allocation64_spill] sm:$0xff] %v10565_v25 }
 0x184   :  { %14582 = vst [vmem:[#allocation61_spill] sm:$0xff] %v10551_v13  ;;  %1664 = vrot.lane.b32.xlu0 %v10454_v54, %s9561_s25  ;;  %v10555_v2 = vpop.f32.mrb[83].mxu0 }
 0x185   :  { %14583 = vst [vmem:[#allocation62_spill] sm:$0xff] %v10555_v2  ;;  %1676 = vrot.lane.b32.xlu1 %v10489_v17, %s9561_s25 }
 0x186   :  { %v10562_v19 = vpop.permute.xlu1 %1582 }
 0x187   :  { %v10567_v55 = vpop.permute.xlu0 %1584  ;;  %v10569_v61 = vpop.f32.mrb[84].mxu0 }
 0x188   :  { %14586 = vst [vmem:[#allocation65_spill] sm:$0xff] %v10569_v61  ;;  %2268 = vrot.lane.b32.xlu0 %v10560_v35, %s9562_s0  ;;  %v10573_v54 = vpop.f32.mrb[85].mxu0 }
 0x189   :  { %14587 = vst [vmem:[#allocation66_spill] sm:$0xff] %v10573_v54  ;;  %2282 = vrot.lane.b32.xlu1 %v10565_v25, %s9562_s0 }
 0x18a   :  { %v10577_v17 = vpop.permute.xlu1 %1586 }
 0x18b   :  { %v10582_v47 = vpop.permute.xlu0 %1588  ;;  %v10584_v14 = vpop.f32.mrb[86].mxu0 }
 0x18c   :  { %14589 = vst [vmem:[#allocation68_spill] sm:$0xff] %v10584_v14  ;;  %1670 = vrot.lane.b32.xlu0 %v10459_v31, %s9561_s25  ;;  %v10588_v15 = vpop.f32.mrb[87].mxu0 }
 0x18d   :  { %14590 = vst [vmem:[#allocation69_spill] sm:$0xff] %v10588_v15  ;;  %2280 = vrot.lane.b32.xlu1 %v10580_v4, %s9562_s0 }
 0x18e   :  { %v10592_v35 = vpop.permute.xlu1 %1590 }
 0x18f   :  { %v10594_v25 = vpop.permute.xlu0 %1592  ;;  %v10596_v21 = vpop.f32.mrb[88].mxu0 }
 0x190   :  { %14591 = vst [vmem:[#allocation70_spill] sm:$0xff] %v10596_v21  ;;  %1668 = vrot.lane.b32.xlu0 %v10463_v56, %s9561_s25  ;;  %v10600_v16 = vpop.f32.mrb[89].mxu0 }
 0x191   :  { %14592 = vst [vmem:[#allocation71_spill] sm:$0xff] %v10600_v16  ;;  %1682 = vrot.lane.b32.xlu1 %v10498_v51, %s9561_s25 }
 0x192   :  { %v10604_v6 = vpop.permute.xlu1 %1594 }
 0x193   :  { %v10606_v31 = vpop.permute.xlu0 %1596  ;;  %v10608_v57 = vpop.f32.mrb[90].mxu0 }
 0x194   :  { %14593 = vst [vmem:[#allocation72_spill] sm:$0xff] %v10608_v57  ;;  %1674 = vrot.lane.b32.xlu0 %v10471_v33, %s9561_s25  ;;  %v10612_v4 = vpop.f32.mrb[91].mxu0 }
 0x195   :  { %14594 = vst [vmem:[#allocation73_spill] sm:$0xff] %v10612_v4  ;;  %1680 = vrot.lane.b32.xlu1 %v10502_v8, %s9561_s25  ;;  %v10635_v8 = vmax.f32 %v10168_v20, %v10496_v62  ;;  %v10660_v62 = vmax.f32 %v10209_v30, %v1579_v49  ;;  %v10680_v30 = vmax.f32 %v10177_v22, %v10519_v45 }
 0x196   :  { %v10616_v56 = vpop.permute.xlu1 %1598 }
 0x197   :  { %v10621_v51 = vpop.permute.xlu0 %1600  ;;  %v10623_v1 = vpop.f32.mrb[92].mxu0  ;;  %14600 = vst [vmem:[#allocation79_spill] sm:$0xff] %v10635_v8  ;;  %14606 = vst [vmem:[#allocation85_spill] sm:$0xff] %v10660_v62 }
 0x198   :  { %14596 = vst [vmem:[#allocation75_spill] sm:$0xff] %v10621_v51  ;;  %14597 = vst [vmem:[#allocation76_spill] sm:$0xff] %v10623_v1  ;;  %1690 = vrot.lane.b32.xlu0 %v10526_v59, %s9561_s25  ;;  %v10627_v39 = vpop.f32.mrb[93].mxu0 }
 0x199   :  { %14598 = vst [vmem:[#allocation77_spill] sm:$0xff] %v10627_v39  ;;  %2286 = vrot.lane.b32.xlu1 %v10619_v52, %s9562_s0  ;;  %14611 = vst [vmem:[#allocation90_spill] sm:$0xff] %v10680_v30 }
 0x19a   :  { %v10631_v33 = vpop.permute.xlu1 %1602 }
 0x19b   :  { %14599 = vst [vmem:[#allocation78_spill] sm:$0xff] %v10631_v33  ;;  %v10637_v18 = vpop.permute.xlu0 %1604  ;;  %v10639_v41 = vpop.f32.mrb[94].mxu0 }
 0x19c   :  { %14601 = vst [vmem:[#allocation80_spill] sm:$0xff] %v10639_v41  ;;  %1688 = vrot.lane.b32.xlu0 %v10530_v11, %s9561_s25  ;;  %v10643_v51 = vpop.f32.mrb[95].mxu0 }
 0x19d   :  { %14602 = vst [vmem:[#allocation81_spill] sm:$0xff] %v10643_v51  ;;  %2284 = vrot.lane.b32.xlu1 %v10635_v8, %s9562_s0 }
 0x19e   :  { %v10647_v59 = vpop.permute.xlu1 %1606 }
 0x19f   :  { %v10649_v52 = vpop.permute.xlu0 %1608  ;;  %v10651_v33 = vpop.f32.mrb[96].mxu0 }
 0x1a0   :  { %14603 = vst [vmem:[#allocation82_spill] sm:$0xff] %v10649_v52  ;;  %14604 = vst [vmem:[#allocation83_spill] sm:$0xff] %v10651_v33  ;;  %1692 = vrot.lane.b32.xlu0 %v10545_v37, %s9561_s25  ;;  %v10655_v20 = vpop.f32.mrb[97].mxu0  ;;  %v10676_v37 = vmax.f32 %v10216_v32, %v10539_v3  ;;  %v10696_v32 = vmax.f32 %v10184_v24, %v10509_v23 }
 0x1a1   :  { %14605 = vst [vmem:[#allocation84_spill] sm:$0xff] %v10655_v20  ;;  %1686 = vrot.lane.b32.xlu1 %v10511_v10, %s9561_s25 }
 0x1a2   :  { %v10662_v11 = vpop.permute.xlu1 %1610  ;;  %14610 = vst [vmem:[#allocation89_spill] sm:$0xff] %v10676_v37  ;;  %14614 = vst [vmem:[#allocation93_spill] sm:$0xff] %v10696_v32 }
 0x1a3   :  { %v10664_v8 = vpop.permute.xlu0 %1612  ;;  %v10666_v1 = vpop.f32.mrb[98].mxu0 }
 0x1a4   :  { %14607 = vst [vmem:[#allocation86_spill] sm:$0xff] %v10664_v8  ;;  %14608 = vst [vmem:[#allocation87_spill] sm:$0xff] %v10666_v1  ;;  %2298 = vrot.lane.b32.xlu0 %v10660_v62, %s9562_s0  ;;  %v10670_v52 = vpop.f32.mrb[99].mxu0 }
 0x1a5   :  { %14609 = vst [vmem:[#allocation88_spill] sm:$0xff] %v10670_v52  ;;  %1684 = vrot.lane.b32.xlu1 %v10515_v60, %s9561_s25 }
 0x1a6   :  { %v10686_v8 = vpop.permute.xlu1 %1614 }
 0x1a7   :  { %v10682_v49 = vpop.permute.xlu0 %1618  ;;  %v10684_v10 = vpop.f32.mrb[100].mxu0 }
 0x1a8   :  { %14612 = vst [vmem:[#allocation91_spill] sm:$0xff] %v10684_v10  ;;  %2296 = vrot.lane.b32.xlu0 %v10676_v37, %s9562_s0  ;;  %v10690_v62 = vpop.f32.mrb[101].mxu0  ;;  %v10712_v37 = vmax.f32 %v10193_v26, %v10537_v58 }
 0x1a9   :  { %14613 = vst [vmem:[#allocation92_spill] sm:$0xff] %v10690_v62  ;;  %2290 = vrot.lane.b32.xlu1 %v10680_v30, %s9562_s0  ;;  %v10728_v30 = vmax.f32 %v10200_v28, %v10524_v0 }
 0x1ab   :  { %v10698_v22 = vpop.permute.xlu0 %1616  ;;  %v10702_v3 = vpop.f32.mrb[102].mxu0  ;;  %14620 = vst [vmem:[#allocation99_spill] sm:$0xff] %v10728_v30 }
 0x1ac   :  { %1698 = vrot.lane.b32.xlu0 %v10551_v13, %s9561_s25  ;;  %14615 = vst [vmem:[#allocation94_spill] sm:$0xff] %v10702_v3  ;;  %v10706_v45 = vpop.f32.mrb[103].mxu0  ;;  %v10708_v60 = vpop.permute.xlu1 %1620 }
 0x1ad   :  { %2288 = vrot.lane.b32.xlu1 %v10696_v32, %s9562_s0  ;;  %14616 = vst [vmem:[#allocation95_spill] sm:$0xff] %v10706_v45 }
 0x1af   :  { %v10714_v24 = vpop.permute.xlu0 %1622  ;;  %v10716_v23 = vpop.f32.mrb[104].mxu0 }
 0x1b0   :  { %14617 = vst [vmem:[#allocation96_spill] sm:$0xff] %v10716_v23  ;;  %1702 = vrot.lane.b32.xlu0 %v10569_v61, %s9561_s25  ;;  %v10720_v13 = vpop.f32.mrb[105].mxu0  ;;  %v10742_v61 = vmax.f32 %v10241_v38, %v10577_v17 }
 0x1b1   :  { %14618 = vst [vmem:[#allocation97_spill] sm:$0xff] %v10720_v13  ;;  %2294 = vrot.lane.b32.xlu1 %v10712_v37, %s9562_s0 }
 0x1b2   :  { %v10724_v32 = vpop.permute.xlu1 %1630  ;;  %14623 = vst [vmem:[#allocation102_spill] sm:$0xff] %v10742_v61 }
 0x1b3   :  { %14619 = vst [vmem:[#allocation98_spill] sm:$0xff] %v10724_v32  ;;  %v10730_v26 = vpop.permute.xlu0 %1626  ;;  %v10732_v58 = vpop.f32.mrb[106].mxu0 }
 0x1b4   :  { %14621 = vst [vmem:[#allocation100_spill] sm:$0xff] %v10732_v58  ;;  %1700 = vrot.lane.b32.xlu0 %v10573_v54, %s9561_s25  ;;  %v10736_v23 = vpop.f32.mrb[107].mxu0 }
 0x1b5   :  { %14622 = vst [vmem:[#allocation101_spill] sm:$0xff] %v10736_v23  ;;  %2292 = vrot.lane.b32.xlu1 %v10728_v30, %s9562_s0 }
 0x1b6   :  { %v10744_v32 = vpop.permute.xlu1 %1634 }
 0x1b7   :  { %14624 = vst [vmem:[#allocation103_spill] sm:$0xff] %v10744_v32  ;;  %v10746_v28 = vpop.permute.xlu0 %1624 }
 0x1b8   :  { %2306 = vrot.lane.b32.xlu0 %v10742_v61, %s9562_s0  ;;  %v10750_v0 = vpop.f32.mrb[108].mxu0 }
 0x1b9   :  { %14625 = vst [vmem:[#allocation104_spill] sm:$0xff] %v10750_v0  ;;  %1694 = vrot.lane.b32.xlu1 %v10541_v12, %s9561_s25  ;;  %v10754_v54 = vpop.f32.mrb[109].mxu0  ;;  %v10772_v12 = vmax.f32 %v10225_v34, %v10562_v19  ;;  %v10792_v34 = vmax.f32 %v10232_v36, %v10549_v7  ;;  %v10812_v36 = vmax.f32 %v10248_v40, %v10567_v55 }
 0x1ba   :  { %14626 = vst [vmem:[#allocation105_spill] sm:$0xff] %v10754_v54  ;;  %v10756_v23 = vpop.permute.xlu1 %1632 }
 0x1bb   :  { %v10758_v30 = vpop.permute.xlu0 %1628 }
 0x1bc   :  { %14627 = vst [vmem:[#allocation106_spill] sm:$0xff] %v10758_v30  ;;  %1706 = vrot.lane.b32.xlu0 %v10584_v14, %s9561_s25  ;;  %v10762_v38 = vpop.f32.mrb[110].mxu0 }
 0x1bd   :  { %14628 = vst [vmem:[#allocation107_spill] sm:$0xff] %v10762_v38  ;;  %1696 = vrot.lane.b32.xlu1 %v10555_v2, %s9561_s25  ;;  %v10766_v17 = vpop.f32.mrb[111].mxu0  ;;  %v10784_v2 = vmax.f32 %v10257_v42, %v10592_v35  ;;  %v10804_v42 = vmax.f32 %v10264_v44, %v10582_v47 }
 0x1be   :  { %14629 = vst [vmem:[#allocation108_spill] sm:$0xff] %v10766_v17  ;;  %v10768_v61 = vpop.permute.xlu1 %1636 }
 0x1bf   :  { %v10786_v38 = vpop.permute.xlu0 %1638 }
 0x1c0   :  { %1704 = vrot.lane.b32.xlu0 %v10588_v15, %s9561_s25  ;;  %v10776_v30 = vpop.f32.mrb[112].mxu0  ;;  %14630 = vst [vmem:[#allocation109_spill] sm:$0xff] %v10786_v38 }
 0x1c1   :  { %2302 = vrot.lane.b32.xlu1 %v10772_v12, %s9562_s0  ;;  %v10780_v14 = vpop.f32.mrb[113].mxu0 }
 0x1c2   :  { %v10788_v32 = vpop.permute.xlu1 %1642 }
 0x1c3   :  { %14631 = vst [vmem:[#allocation110_spill] sm:$0xff] %v10788_v32 }
 0x1c4   :  { %2310 = vrot.lane.b32.xlu0 %v10784_v2, %s9562_s0  ;;  %v10796_v19 = vpop.f32.mrb[114].mxu0 }
 0x1c5   :  { %2300 = vrot.lane.b32.xlu1 %v10792_v34, %s9562_s0  ;;  %v10800_v15 = vpop.f32.mrb[115].mxu0 }
 0x1c6   :  { %14632 = vst [vmem:[#allocation111_spill] sm:$0xff] %v10800_v15  ;;  %v10806_v35 = vpop.permute.xlu1 %1640  ;;  %v10808_v32 = vpop.permute.xlu0 %1650 }
 0x1c7   :  { %14633 = vst [vmem:[#allocation112_spill] sm:$0xff] %v10806_v35  ;;  %14634 = vst [vmem:[#allocation113_spill] sm:$0xff] %v10808_v32 }
 0x1c8   :  { %2308 = vrot.lane.b32.xlu0 %v10804_v42, %s9562_s0  ;;  %v10816_v7 = vpop.f32.mrb[116].mxu0 }
 0x1c9   :  { %14635 = vst [vmem:[#allocation114_spill] sm:$0xff] %v10816_v7  ;;  %2304 = vrot.lane.b32.xlu1 %v10812_v36, %s9562_s0  ;;  %v10820_v38 = vpop.f32.mrb[117].mxu0 }
 0x1ca   :  { %v10822_v44 = vpop.permute.xlu1 %1646  ;;  %v10824_v47 = vpop.permute.xlu0 %1648 }
 0x1cb   :  { %14636 = vst [vmem:[#allocation115_spill] sm:$0xff] %v10822_v44  ;;  %14637 = vst [vmem:[#allocation116_spill] sm:$0xff] %v10824_v47 }
 0x1cc   :  { %1710 = vrot.lane.b32.xlu0 %v10596_v21, %s9561_s25  ;;  %v10828_v32 = vpop.f32.mrb[118].mxu0 }
 0x1cd   :  { %14638 = vst [vmem:[#allocation117_spill] sm:$0xff] %v10828_v32  ;;  %1714 = vrot.lane.b32.xlu1 %v10608_v57, %s9561_s25  ;;  %v10832_v40 = vpop.f32.mrb[119].mxu0  ;;  %v10847_v57 = vmax.f32 %v10273_v46, %v10604_v6 }
 0x1ce   :  { %14639 = vst [vmem:[#allocation118_spill] sm:$0xff] %v10832_v40  ;;  %v10834_v55 = vpop.permute.xlu1 %1644  ;;  %v2253_v35 = vpop.permute.xlu0 %2252 }
 0x1cf   :  { %14640 = vst [vmem:[#allocation119_spill] sm:$0xff] %v10834_v55  ;;  %v2684_v15 = vmax.f32 %v10423_v29, %v2253_v35 }
 0x1d0   :  { %1708 = vrot.lane.b32.xlu0 %v10600_v16, %s9561_s25  ;;  %v10839_v44 = vpop.f32.mrb[120].mxu0 }
 0x1d1   :  { %14641 = vst [vmem:[#allocation120_spill] sm:$0xff] %v10839_v44  ;;  %v2828_v47 = vmax.f32 %v2684_v15, 0.0  ;;  %1712 = vrot.lane.b32.xlu1 %v10612_v4, %s9561_s25  ;;  %v10843_v21 = vpop.f32.mrb[121].mxu0 }
 0x1d2   :  { %14642 = vst [vmem:[#allocation121_spill] sm:$0xff] %v10843_v21  ;;  %v2255_v55 = vpop.permute.xlu1 %2254  ;;  %v2259_v40 = vpop.permute.xlu0 %2258 }
 0x1d3   :  { %v2685_v29 = vmax.f32 %v10434_v43, %v2255_v55  ;;  %v2687_v35 = vmax.f32 %v10437_v27, %v2259_v40  ;;  %2973 = vst.msk [vmem:[#allocation2] sm:$0xff] %vm2972_vm4, %v2828_v47  ;;  %v10864_v43 = vmax.f32 %v10280_v48, %v10594_v25 }
 0x1d4   :  { %2314 = vrot.lane.b32.xlu0 %v10847_v57, %s9562_s0  ;;  %v10854_v15 = vpop.f32.mrb[122].mxu0 }
 0x1d5   :  { %14643 = vst [vmem:[#allocation122_spill] sm:$0xff] %v10854_v15  ;;  %v2829_v4 = vmax.f32 %v2685_v29, 0.0  ;;  %v10856_v16 = vmax.f32 %v2687_v35, 0.0  ;;  %1716 = vrot.lane.b32.xlu1 %v10627_v39, %s9561_s25  ;;  %v10860_v46 = vpop.f32.mrb[123].mxu0 }
 0x1d6   :  { %14644 = vst [vmem:[#allocation123_spill] sm:$0xff] %v10860_v46  ;;  %v2257_v27 = vpop.permute.xlu0 %2256 }
 0x1d7   :  { %v2686_v6 = vmax.f32 %v10448_v9, %v2257_v27  ;;  %2974 = vst.msk [vmem:[#allocation2 + $0x10] sm:$0xff] %vm2972_vm4, %v2829_v4  ;;  %2976 = vst.msk [vmem:[#allocation2 + $0x30] sm:$0xff] %vm2972_vm4, %v10856_v16  ;;  %v10882_v9 = vmax.f32 %v10289_v50, %v10616_v56  ;;  %v10899_v50 = vmax.f32 %v10293_v53, %v10606_v31  ;;  %v14650_v27 = vld [vmem:[#allocation41_spill] sm:$0xff]  ;;  %v14655_v31 = vld [vmem:[#allocation8_spill] sm:$0xff] }
 0x1d8   :  { %2312 = vrot.lane.b32.xlu0 %v10864_v43, %s9562_s0  ;;  %v10872_v47 = vpop.f32.mrb[124].mxu0  ;;  %v10903_v56 = vmax.f32 %v10314_v63, %v10647_v59  ;;  %v10922_v59 = vmax.f32 %v14655_v31, %v10637_v18  ;;  %v14663_v18 = vld [vmem:[#allocation78_spill] sm:$0xff] }
 0x1d9   :  { %14645 = vst [vmem:[#allocation124_spill] sm:$0xff] %v10872_v47  ;;  %v10874_v40 = vmax.f32 %v2686_v6, 0.0  ;;  %1722 = vrot.lane.b32.xlu1 %v10639_v41, %s9561_s25  ;;  %v10878_v48 = vpop.f32.mrb[125].mxu0  ;;  %v14664_v31 = vld [vmem:[#allocation6_spill] sm:$0xff] }
 0x1da   :  { %14646 = vst [vmem:[#allocation125_spill] sm:$0xff] %v10878_v48  ;;  %v2263_v25 = vpop.permute.xlu0 %2262  ;;  %14656 = vst [vmem:[#allocation8_spill] sm:$0xff] %v10922_v59 }
 0x1db   :  { %v2689_v4 = vmax.f32 %v10457_v5, %v2263_v25  ;;  %2975 = vst.msk [vmem:[#allocation2 + $0x20] sm:$0xff] %vm2972_vm4, %v10874_v40 }
 0x1dc   :  { %2318 = vrot.lane.b32.xlu0 %v10882_v9, %s9562_s0  ;;  %v10889_v55 = vpop.f32.mrb[126].mxu0 }
 0x1dd   :  { %14647 = vst [vmem:[#allocation126_spill] sm:$0xff] %v10889_v55  ;;  %v10891_v29 = vmax.f32 %v2689_v4, 0.0  ;;  %1720 = vrot.lane.b32.xlu1 %v10643_v51, %s9561_s25  ;;  %v10895_v35 = vpop.f32.mrb[127].mxu0 }
 0x1de   :  { %14649 = vst [vmem:[#allocation128_spill] sm:$0xff] %v10895_v35  ;;  %v2261_v5 = vpop.permute.xlu0 %2260 }
 0x1df   :  { %14648 = vst [vmem:[#allocation127_spill] sm:$0xff] %v10891_v29  ;;  %v2688_v6 = vmax.f32 %v14650_v27, %v2261_v5  ;;  %v10906_v25 = vpop.permute.xlu1 %2274  ;;  %2978 = vst.msk [vmem:[#allocation2 + $0x50] sm:$0xff] %vm2972_vm4, %v10891_v29  ;;  %v14657_v5 = vld [vmem:[#allocation45_spill] sm:$0xff]  ;;  %v14673_v29 = vld [vmem:[#allocation52_spill] sm:$0xff] }
 0x1e0   :  { %14651 = vst [vmem:[#allocation41_spill] sm:$0xff] %v10906_v25  ;;  %2316 = vrot.lane.b32.xlu0 %v10899_v50, %s9562_s0  ;;  %v10912_v4 = vpop.f32.mrb[128].mxu0 }
 0x1e1   :  { %14652 = vst [vmem:[#allocation129_spill] sm:$0xff] %v10912_v4  ;;  %v10914_v41 = vmax.f32 %v2688_v6, 0.0  ;;  %2326 = vrot.lane.b32.xlu1 %v10903_v56, %s9562_s0  ;;  %v10918_v53 = vpop.f32.mrb[129].mxu0  ;;  %v14659_v6 = vld [vmem:[#allocation76_spill] sm:$0xff] }
 0x1e2   :  { %14654 = vst [vmem:[#allocation131_spill] sm:$0xff] %v10918_v53  ;;  %v2267_v63 = vpop.permute.xlu0 %2266 }
 0x1e3   :  { %14653 = vst [vmem:[#allocation130_spill] sm:$0xff] %v10914_v41  ;;  %v2691_v27 = vmax.f32 %v14657_v5, %v2267_v63  ;;  %v10925_v51 = vpop.permute.xlu1 %2272  ;;  %2977 = vst.msk [vmem:[#allocation2 + $0x40] sm:$0xff] %vm2972_vm4, %v10914_v41  ;;  %v10941_v63 = vmax.f32 %v14664_v31, %v14663_v18  ;;  %v14670_v18 = vld [vmem:[#allocation75_spill] sm:$0xff] }
 0x1e4   :  { %14658 = vst [vmem:[#allocation45_spill] sm:$0xff] %v10925_v51  ;;  %1718 = vrot.lane.b32.xlu0 %v14659_v6, %s9561_s25  ;;  %v10931_v39 = vpop.f32.mrb[130].mxu0  ;;  %v14667_v6 = vld [vmem:[#allocation49_spill] sm:$0xff]  ;;  %v14671_v31 = vld [vmem:[#allocation7_spill] sm:$0xff] }
 0x1e5   :  { %14660 = vst [vmem:[#allocation132_spill] sm:$0xff] %v10931_v39  ;;  %v10933_v4 = vmax.f32 %v2691_v27, 0.0  ;;  %2324 = vrot.lane.b32.xlu1 %v10922_v59, %s9562_s0  ;;  %v10937_v25 = vpop.f32.mrb[131].mxu0  ;;  %14665 = vst [vmem:[#allocation78_spill] sm:$0xff] %v10941_v63  ;;  %v10958_v47 = vmax.f32 %v14671_v31, %v14670_v18  ;;  %v14677_v18 = vld [vmem:[#allocation82_spill] sm:$0xff] }
 0x1e6   :  { %14662 = vst [vmem:[#allocation134_spill] sm:$0xff] %v10937_v25  ;;  %v10943_v5 = vpop.permute.xlu0 %1660 }
 0x1e7   :  { %14661 = vst [vmem:[#allocation133_spill] sm:$0xff] %v10933_v4  ;;  %14666 = vst [vmem:[#allocation6_spill] sm:$0xff] %v10943_v5  ;;  %v2279_v51 = vpop.permute.xlu1 %2278 }
 0x1e8   :  { %2980 = vst.msk [vmem:[#allocation2 + $0x70] sm:$0xff] %vm2972_vm4, %v10933_v4  ;;  %v2697_v48 = vmax.f32 %v14667_v6, %v2279_v51  ;;  %2322 = vrot.lane.b32.xlu0 %v10941_v63, %s9562_s0  ;;  %v10950_v27 = vpop.f32.mrb[132].mxu0  ;;  %14672 = vst [vmem:[#allocation75_spill] sm:$0xff] %v10958_v47 }
 0x1e9   :  { %14668 = vst [vmem:[#allocation49_spill] sm:$0xff] %v10950_v27  ;;  %1726 = vrot.lane.b32.xlu1 %v10651_v33, %s9561_s25  ;;  %v10954_v39 = vpop.f32.mrb[133].mxu0 }
 0x1ea   :  { %14669 = vst [vmem:[#allocation135_spill] sm:$0xff] %v10954_v39  ;;  %v2841_v5 = vmax.f32 %v2697_v48, 0.0  ;;  %v2265_v41 = vpop.permute.xlu0 %2264  ;;  %v14681_v39 = vld [vmem:[#allocation55_spill] sm:$0xff] }
 0x1eb   :  { %v2690_v4 = vmax.f32 %v14673_v29, %v2265_v41  ;;  %v10961_v59 = vpop.permute.xlu1 %1672  ;;  %v14678_v41 = vld [vmem:[#allocation10_spill] sm:$0xff] }
 0x1ec   :  { %14674 = vst [vmem:[#allocation7_spill] sm:$0xff] %v10961_v59  ;;  %2984 = vst.msk [vmem:[#allocation2 + $0xb0] sm:$0xff] %vm2972_vm4, %v2841_v5  ;;  %2320 = vrot.lane.b32.xlu0 %v10958_v47, %s9562_s0  ;;  %v10967_v51 = vpop.f32.mrb[134].mxu0  ;;  %v10977_v29 = vmax.f32 %v14678_v41, %v14677_v18 }
 0x1ed   :  { %3737 = vst.msk [vmem:[#allocation2 + $0x18] sm:$0xff] %vm2972_vm4, %v2841_v5  ;;  %14675 = vst [vmem:[#allocation52_spill] sm:$0xff] %v10967_v51  ;;  %v10969_v6 = vmax.f32 %v2690_v4, 0.0  ;;  %1724 = vrot.lane.b32.xlu1 %v10655_v20, %s9561_s25  ;;  %v10973_v48 = vpop.f32.mrb[135].mxu0  ;;  %v14680_v5 = vld [vmem:[#allocation9_spill] sm:$0xff] }
 0x1ee   :  { %14676 = vst [vmem:[#allocation136_spill] sm:$0xff] %v10973_v48  ;;  %v10979_v31 = vpop.permute.xlu0 %1666  ;;  %v10983_v59 = vmax.f32 %v14680_v5, %v10662_v11  ;;  %v14684_v11 = vld [vmem:[#allocation58_spill] sm:$0xff] }
 0x1ef   :  { %14679 = vst [vmem:[#allocation82_spill] sm:$0xff] %v10979_v31  ;;  %2979 = vst.msk [vmem:[#allocation2 + $0x60] sm:$0xff] %vm2972_vm4, %v10969_v6  ;;  %v2277_v4 = vpop.permute.xlu1 %2276 }
 0x1f0   :  { %v2696_v51 = vmax.f32 %v14681_v39, %v2277_v4  ;;  %2328 = vrot.lane.b32.xlu0 %v10977_v29, %s9562_s0  ;;  %v10990_v48 = vpop.f32.mrb[136].mxu0 }
 0x1f1   :  { %14682 = vst [vmem:[#allocation10_spill] sm:$0xff] %v10990_v48  ;;  %2330 = vrot.lane.b32.xlu1 %v10983_v59, %s9562_s0  ;;  %v10994_v18 = vpop.f32.mrb[137].mxu0 }
 0x1f2   :  { %14683 = vst [vmem:[#allocation9_spill] sm:$0xff] %v10994_v18  ;;  %v2840_v41 = vmax.f32 %v2696_v51, 0.0  ;;  %v2271_v27 = vpop.permute.xlu0 %2270 }
 0x1f3   :  { %v2693_v5 = vmax.f32 %v14684_v11, %v2271_v27  ;;  %v10997_v31 = vpop.permute.xlu1 %1678  ;;  %v14689_v27 = vld [vmem:[#allocation15_spill] sm:$0xff] }
 0x1f4   :  { %14685 = vst [vmem:[#allocation55_spill] sm:$0xff] %v10997_v31  ;;  %2983 = vst.msk [vmem:[#allocation2 + $0xa0] sm:$0xff] %vm2972_vm4, %v2840_v41  ;;  %1730 = vrot.lane.b32.xlu0 %v10666_v1, %s9561_s25  ;;  %v11003_v39 = vpop.f32.mrb[138].mxu0  ;;  %v11015_v11 = vmax.f32 %v14689_v27, %v10714_v24  ;;  %v14693_v27 = vld [vmem:[#allocation63_spill] sm:$0xff]  ;;  %v14696_v31 = vld [vmem:[#allocation12_spill] sm:$0xff] }
 0x1f5   :  { %3736 = vst.msk [vmem:[#allocation2 + $0x8] sm:$0xff] %vm2972_vm4, %v2840_v41  ;;  %14686 = vst [vmem:[#allocation58_spill] sm:$0xff] %v11003_v39  ;;  %v11005_v4 = vmax.f32 %v2693_v5, 0.0  ;;  %1732 = vrot.lane.b32.xlu1 %v10690_v62, %s9561_s25  ;;  %v11009_v51 = vpop.f32.mrb[139].mxu0  ;;  %v14694_v39 = vld [vmem:[#allocation64_spill] sm:$0xff] }
 0x1f6   :  { %14687 = vst [vmem:[#allocation137_spill] sm:$0xff] %v11009_v51  ;;  %v11011_v20 = vpop.permute.xlu0 %1664 }
 0x1f7   :  { %14688 = vst [vmem:[#allocation138_spill] sm:$0xff] %v11011_v20  ;;  %2982 = vst.msk [vmem:[#allocation2 + $0x90] sm:$0xff] %vm2972_vm4, %v11005_v4  ;;  %v11019_v41 = vpop.permute.xlu1 %1676  ;;  %v14692_v20 = vld [vmem:[#allocation11_spill] sm:$0xff] }
 0x1f8   :  { %1728 = vrot.lane.b32.xlu0 %v10670_v52, %s9561_s25  ;;  %v11023_v5 = vpop.f32.mrb[140].mxu0  ;;  %v11031_v47 = vmax.f32 %v14692_v20, %v10686_v8 }
 0x1f9   :  { %14690 = vst [vmem:[#allocation15_spill] sm:$0xff] %v11023_v5  ;;  %2342 = vrot.lane.b32.xlu1 %v11015_v11, %s9562_s0  ;;  %v11027_v62 = vpop.f32.mrb[141].mxu0  ;;  %v14695_v5 = vld [vmem:[#allocation86_spill] sm:$0xff] }
 0x1fa   :  { %14691 = vst [vmem:[#allocation139_spill] sm:$0xff] %v11027_v62  ;;  %v2269_v24 = vpop.permute.xlu0 %2268  ;;  %v11043_v62 = vmax.f32 %v14696_v31, %v14695_v5 }
 0x1fb   :  { %v2692_v1 = vmax.f32 %v14693_v27, %v2269_v24  ;;  %v2283_v33 = vpop.permute.xlu1 %2282  ;;  %v14698_v24 = vld [vmem:[#allocation17_spill] sm:$0xff] }
 0x1fc   :  { %v2699_v63 = vmax.f32 %v14694_v39, %v2283_v33  ;;  %2334 = vrot.lane.b32.xlu0 %v11031_v47, %s9562_s0  ;;  %v11051_v27 = vmax.f32 %v14698_v24, %v10730_v26  ;;  %v14700_v33 = vld [vmem:[#allocation67_spill] sm:$0xff]  ;;  %v14703_v24 = vld [vmem:[#allocation13_spill] sm:$0xff] }
 0x1fd   :  { %v11037_v52 = vmax.f32 %v2692_v1, 0.0  ;;  %1740 = vrot.lane.b32.xlu1 %v10720_v13, %s9561_s25  ;;  %v14707_v13 = vld [vmem:[#allocation22_spill] sm:$0xff] }
 0x1fe   :  { %v11045_v8 = vmax.f32 %v2699_v63, 0.0  ;;  %v11047_v20 = vpop.permute.xlu0 %1670  ;;  %14699 = vst [vmem:[#allocation63_spill] sm:$0xff] %v11051_v27  ;;  %v11062_v63 = vpop.f32.mrb[142].mxu0 }
 0x1ff   :  { %14697 = vst [vmem:[#allocation11_spill] sm:$0xff] %v11047_v20  ;;  %2981 = vst.msk [vmem:[#allocation2 + $0x80] sm:$0xff] %vm2972_vm4, %v11037_v52  ;;  %v2281_v1 = vpop.permute.xlu1 %2280 }
 0x200   :  { %2986 = vst.msk [vmem:[#allocation2 + $0xd0] sm:$0xff] %vm2972_vm4, %v11045_v8  ;;  %3739 = vst.msk [vmem:[#allocation2 + $0x38] sm:$0xff] %vm2972_vm4, %v11045_v8  ;;  %v2698_v31 = vmax.f32 %v14700_v33, %v2281_v1  ;;  %2332 = vrot.lane.b32.xlu0 %v11043_v62, %s9562_s0  ;;  %v11082_v1 = vmax.f32 %v14703_v24, %v10682_v49  ;;  %v11100_v49 = vmax.f32 %v14707_v13, %v10756_v23  ;;  %v14712_v13 = vld [vmem:[#allocation79_spill] sm:$0xff] }
 0x201   :  { %14701 = vst [vmem:[#allocation64_spill] sm:$0xff] %v11062_v63  ;;  %2346 = vrot.lane.b32.xlu1 %v11051_v27, %s9562_s0  ;;  %v14706_v27 = vld [vmem:[#allocation14_spill] sm:$0xff] }
 0x202   :  { %v11066_v26 = vmax.f32 %v2698_v31, 0.0  ;;  %v11068_v39 = vpop.permute.xlu0 %1668 }
 0x203   :  { %14702 = vst [vmem:[#allocation86_spill] sm:$0xff] %v11068_v39  ;;  %v11070_v5 = vpop.permute.xlu1 %1682  ;;  %v11094_v39 = vmax.f32 %v14706_v27, %v10698_v22  ;;  %v11111_v22 = vpop.f32.mrb[143].mxu0 }
 0x204   :  { %2985 = vst.msk [vmem:[#allocation2 + $0xc0] sm:$0xff] %vm2972_vm4, %v11066_v26  ;;  %3738 = vst.msk [vmem:[#allocation2 + $0x28] sm:$0xff] %vm2972_vm4, %v11066_v26  ;;  %1734 = vrot.lane.b32.xlu0 %v10684_v10, %s9561_s25 }
 0x205   :  { %1750 = vrot.lane.b32.xlu1 %v10750_v0, %s9561_s25  ;;  %14711 = vst [vmem:[#allocation14_spill] sm:$0xff] %v11111_v22 }
 0x206   :  { %v11084_v33 = vpop.permute.xlu0 %1674 }
 0x207   :  { %14704 = vst [vmem:[#allocation12_spill] sm:$0xff] %v11084_v33  ;;  %v11086_v31 = vpop.permute.xlu1 %1680  ;;  %v14708_v33 = vld [vmem:[#allocation74_spill] sm:$0xff] }
 0x208   :  { %14705 = vst [vmem:[#allocation17_spill] sm:$0xff] %v11086_v31  ;;  %2338 = vrot.lane.b32.xlu0 %v11082_v1, %s9562_s0 }
 0x209   :  { %1748 = vrot.lane.b32.xlu1 %v10754_v54, %s9561_s25 }
 0x20a   :  { %v11096_v20 = vpop.permute.xlu0 %1690 }
 0x20b   :  { %v2287_v24 = vpop.permute.xlu1 %2286 }
 0x20c   :  { %v2701_v10 = vmax.f32 %v14708_v33, %v2287_v24  ;;  %2336 = vrot.lane.b32.xlu0 %v11094_v39, %s9562_s0  ;;  %v14714_v24 = vld [vmem:[#allocation24_spill] sm:$0xff] }
 0x20d   :  { %2352 = vrot.lane.b32.xlu1 %v11100_v49, %s9562_s0  ;;  %v11128_v22 = vmax.f32 %v14714_v24, %v10768_v61 }
 0x20e   :  { %v11107_v54 = vmax.f32 %v2701_v10, 0.0  ;;  %v11109_v0 = vpop.permute.xlu0 %1688 }
 0x20f   :  { %14710 = vst [vmem:[#allocation13_spill] sm:$0xff] %v11109_v0  ;;  %v2285_v27 = vpop.permute.xlu1 %2284 }
 0x210   :  { %14709 = vst [vmem:[#allocation67_spill] sm:$0xff] %v11107_v54  ;;  %2988 = vst.msk [vmem:[#allocation2 + $0xf0] sm:$0xff] %vm2972_vm4, %v11107_v54  ;;  %v2700_v23 = vmax.f32 %v14712_v13, %v2285_v27  ;;  %1738 = vrot.lane.b32.xlu0 %v10702_v3, %s9561_s25  ;;  %v14716_v27 = vld [vmem:[#allocation16_spill] sm:$0xff] }
 0x211   :  { %3741 = vst.msk [vmem:[#allocation2 + $0x58] sm:$0xff] %vm2972_vm4, %v11107_v54  ;;  %1752 = vrot.lane.b32.xlu1 %v10766_v17, %s9561_s25  ;;  %v11142_v13 = vmax.f32 %v14716_v27, %v10708_v60  ;;  %v14719_v17 = vld [vmem:[#allocation90_spill] sm:$0xff] }
 0x212   :  { %v11122_v10 = vmax.f32 %v2700_v23, 0.0  ;;  %v11124_v33 = vpop.permute.xlu0 %1692  ;;  %v14721_v60 = vld [vmem:[#allocation18_spill] sm:$0xff] }
 0x213   :  { %14713 = vst [vmem:[#allocation22_spill] sm:$0xff] %v11124_v33  ;;  %v11130_v0 = vpop.permute.xlu1 %1686  ;;  %14717 = vst [vmem:[#allocation79_spill] sm:$0xff] %v11142_v13  ;;  %v14720_v33 = vld [vmem:[#allocation96_spill] sm:$0xff]  ;;  %v11161_v27 = vmax.f32 %v14721_v60, %v10746_v28  ;;  %v14728_v54 = vld [vmem:[#allocation102_spill] sm:$0xff] }
 0x214   :  { %14715 = vst [vmem:[#allocation74_spill] sm:$0xff] %v11130_v0  ;;  %2987 = vst.msk [vmem:[#allocation2 + $0xe0] sm:$0xff] %vm2972_vm4, %v11122_v10  ;;  %1736 = vrot.lane.b32.xlu0 %v10706_v45, %s9561_s25 }
 0x215   :  { %3740 = vst.msk [vmem:[#allocation2 + $0x48] sm:$0xff] %vm2972_vm4, %v11122_v10  ;;  %2356 = vrot.lane.b32.xlu1 %v11128_v22, %s9562_s0  ;;  %14722 = vst [vmem:[#allocation16_spill] sm:$0xff] %v11161_v27 }
 0x216   :  { %v11144_v61 = vpop.permute.xlu0 %2298 }
 0x217   :  { %v11146_v23 = vpop.permute.xlu1 %1684 }
 0x218   :  { %14718 = vst [vmem:[#allocation24_spill] sm:$0xff] %v11146_v23  ;;  %2340 = vrot.lane.b32.xlu0 %v11142_v13, %s9562_s0 }
 0x219   :  { %1766 = vrot.lane.b32.xlu1 %v10816_v7, %s9561_s25 }
 0x21a   :  { %v11152_v24 = vpop.permute.xlu0 %2296 }
 0x21b   :  { %v2291_v45 = vpop.permute.xlu1 %2290 }
 0x21c   :  { %v2703_v3 = vmax.f32 %v14719_v17, %v2291_v45  ;;  %1742 = vrot.lane.b32.xlu0 %v14720_v33, %s9561_s25  ;;  %v14723_v45 = vld [vmem:[#allocation93_spill] sm:$0xff] }
 0x21d   :  { %1770 = vrot.lane.b32.xlu1 %v10828_v32, %s9561_s25 }
 0x21e   :  { %v11163_v23 = vmax.f32 %v2703_v3, 0.0  ;;  %v11165_v0 = vpop.permute.xlu0 %1698 }
 0x21f   :  { %v2289_v7 = vpop.permute.xlu1 %2288 }
 0x220   :  { %2990 = vst.msk [vmem:[#allocation2 + $0x110] sm:$0xff] %vm2972_vm4, %v11163_v23  ;;  %3743 = vst.msk [vmem:[#allocation2 + $0x78] sm:$0xff] %vm2972_vm4, %v11163_v23  ;;  %v2702_v17 = vmax.f32 %v14723_v45, %v2289_v7  ;;  %2344 = vrot.lane.b32.xlu0 %v11161_v27, %s9562_s0  ;;  %v14724_v27 = vld [vmem:[#allocation99_spill] sm:$0xff] }
 0x221   :  { %3073 = vrot.lane.b32.xlu1 %v10874_v40, %s9563_s17 }
 0x222   :  { %v11176_v3 = vmax.f32 %v2702_v17, 0.0  ;;  %v11178_v28 = vpop.permute.xlu0 %1702 }
 0x223   :  { %v2295_v60 = vpop.permute.xlu1 %2294 }
 0x224   :  { %2989 = vst.msk [vmem:[#allocation2 + $0x100] sm:$0xff] %vm2972_vm4, %v11176_v3  ;;  %3742 = vst.msk [vmem:[#allocation2 + $0x68] sm:$0xff] %vm2972_vm4, %v11176_v3  ;;  %v2705_v7 = vmax.f32 %v10712_v37, %v2295_v60  ;;  %1746 = vrot.lane.b32.xlu0 %v10732_v58, %s9561_s25  ;;  %v14725_v37 = vld [vmem:[#allocation101_spill] sm:$0xff]  ;;  %v14726_v60 = vld [vmem:[#allocation103_spill] sm:$0xff] }
 0x225   :  { %1778 = vrot.lane.b32.xlu1 %v10854_v15, %s9561_s25 }
 0x226   :  { %v11189_v40 = vmax.f32 %v2705_v7, 0.0  ;;  %v11191_v45 = vpop.permute.xlu0 %1700  ;;  %v14727_v7 = vld [vmem:[#allocation21_spill] sm:$0xff] }
 0x227   :  { %v2293_v17 = vpop.permute.xlu1 %2292  ;;  %v11204_v15 = vmax.f32 %v14727_v7, %v14726_v60  ;;  %v4150_v60 = vld [vmem:[%s14369_s2 + $0x10] sm:$0xff] }
 0x228   :  { %2992 = vst.msk [vmem:[#allocation2 + $0x130] sm:$0xff] %vm2972_vm4, %v11189_v40  ;;  %3745 = vst.msk [vmem:[#allocation2 + $0x98] sm:$0xff] %vm2972_vm4, %v11189_v40  ;;  %v2704_v32 = vmax.f32 %v14724_v27, %v2293_v17  ;;  %1744 = vrot.lane.b32.xlu0 %v14725_v37, %s9561_s25  ;;  %v4149_v27 = vld [vmem:[%s14369_s2 + $0x8] sm:$0xff]  ;;  %v4148_v17 = vld [vmem:[%s14369_s2] sm:$0xff] }
 0x229   :  { %1776 = vrot.lane.b32.xlu1 %v10860_v46, %s9561_s25  ;;  %v8987_v37 = vpack.c.bf16 %v4150_v60, %v4148_v17 }
 0x22a   :  { %v11206_v58 = vmax.f32 %v2704_v32, 0.0  ;;  %v2307_v33 = vpop.permute.xlu0 %2306  ;;  %v4151_v32 = vld [vmem:[%s14369_s2 + $0x18] sm:$0xff] }
 0x22b   :  { %v2711_v31 = vmax.f32 %v14728_v54, %v2307_v33  ;;  %v11209_v13 = vpop.permute.xlu1 %1694  ;;  %v8985_v33 = vpack.c.bf16 %v4151_v32, %v4149_v27  ;;  %v14729_v27 = vld [vmem:[#allocation107_spill] sm:$0xff] }
 0x22c   :  { %2991 = vst.msk [vmem:[#allocation2 + $0x120] sm:$0xff] %vm2972_vm4, %v11206_v58  ;;  %3744 = vst.msk [vmem:[#allocation2 + $0x88] sm:$0xff] %vm2972_vm4, %v11206_v58  ;;  %2354 = vrot.lane.b32.xlu0 %v11204_v15, %s9562_s0 }
 0x22d   :  { %v11223_v54 = vmax.f32 %v2711_v31, 0.0  ;;  %1786 = vrot.lane.b32.xlu1 %v10889_v55, %s9561_s25  ;;  %8986 = vmatprep.subr.bf16.mxu0 %v8985_v33 }
 0x22e   :  { %v11233_v7 = vpop.permute.xlu0 %1706  ;;  %9449 = vmatprep.subr.bf16.mxu1 %v8985_v33  ;;  %8988 = vmatpush1.bf16.msra.mxu0 %v8987_v37 }
 0x22f   :  { %2996 = vst.msk [vmem:[#allocation2 + $0x170] sm:$0xff] %vm2972_vm4, %v11223_v54  ;;  %3749 = vst.msk [vmem:[#allocation2 + $0xd8] sm:$0xff] %vm2972_vm4, %v11223_v54  ;;  %v11239_v31 = vpop.permute.xlu1 %1696  ;;  %9465 = vmatpush1.bf16.msra.mxu1 %v8987_v37 }
 0x230   :  { %1754 = vrot.lane.b32.xlu0 %v14729_v27, %s9561_s25 }
 0x231   :  { %1784 = vrot.lane.b32.xlu1 %v10895_v35, %s9561_s25 }
 0x232   :  { %v11245_v32 = vpop.permute.xlu0 %1704 }
 0x233   :  { %v2303_v17 = vpop.permute.xlu1 %2302 }
 0x234   :  { %v2709_v60 = vmax.f32 %v10772_v12, %v2303_v17  ;;  %1758 = vrot.lane.b32.xlu0 %v10776_v30, %s9561_s25 }
 0x235   :  { %1788 = vrot.lane.b32.xlu1 %v10918_v53, %s9561_s25  ;;  %v14730_v53 = vld [vmem:[#allocation48_spill] sm:$0xff] }
 0x236   :  { %v2853_v33 = vmax.f32 %v2709_v60, 0.0  ;;  %v2311_v55 = vpop.permute.xlu0 %2310 }
 0x237   :  { %v2713_v46 = vmax.f32 %v10784_v2, %v2311_v55  ;;  %v2301_v27 = vpop.permute.xlu1 %2300  ;;  %v11264_v2 = vmax.f32 %v14730_v53, %v11019_v41 }
 0x238   :  { %2994 = vst.msk [vmem:[#allocation2 + $0x150] sm:$0xff] %vm2972_vm4, %v2853_v33  ;;  %3747 = vst.msk [vmem:[#allocation2 + $0xb8] sm:$0xff] %vm2972_vm4, %v2853_v33  ;;  %v2708_v37 = vmax.f32 %v10792_v34, %v2301_v27  ;;  %1756 = vrot.lane.b32.xlu0 %v10780_v14, %s9561_s25  ;;  %v4155_v33 = vld [vmem:[%s14369_s2 + $0x38] sm:$0xff] }
 0x239   :  { %v11258_v12 = vmax.f32 %v2713_v46, 0.0  ;;  %1792 = vrot.lane.b32.xlu1 %v10937_v25, %s9561_s25 }
 0x23a   :  { %v2852_v17 = vmax.f32 %v2708_v37, 0.0  ;;  %v2309_v60 = vpop.permute.xlu0 %2308  ;;  %v14731_v37 = vld [vmem:[#allocation111_spill] sm:$0xff] }
 0x23b   :  { %2998 = vst.msk [vmem:[#allocation2 + $0x190] sm:$0xff] %vm2972_vm4, %v11258_v12  ;;  %3751 = vst.msk [vmem:[#allocation2 + $0xf8] sm:$0xff] %vm2972_vm4, %v11258_v12  ;;  %v2712_v34 = vmax.f32 %v10804_v42, %v2309_v60  ;;  %v2305_v55 = vpop.permute.xlu1 %2304  ;;  %v4152_v60 = vld [vmem:[%s14369_s2 + $0x20] sm:$0xff] }
 0x23c   :  { %2993 = vst.msk [vmem:[#allocation2 + $0x140] sm:$0xff] %vm2972_vm4, %v2852_v17  ;;  %3746 = vst.msk [vmem:[#allocation2 + $0xa8] sm:$0xff] %vm2972_vm4, %v2852_v17  ;;  %v2710_v46 = vmax.f32 %v10812_v36, %v2305_v55  ;;  %1762 = vrot.lane.b32.xlu0 %v10796_v19, %s9561_s25  ;;  %v4153_v36 = vld [vmem:[%s14369_s2 + $0x28] sm:$0xff] }
 0x23d   :  { %v11276_v53 = vmax.f32 %v2712_v34, 0.0  ;;  %2396 = vrot.lane.b32.xlu1 %v11264_v2, %s9562_s0  ;;  %v8989_v17 = vpack.c.bf16 %v4155_v33, %v4153_v36  ;;  %v4154_v34 = vld [vmem:[%s14369_s2 + $0x30] sm:$0xff] }
 0x23e   :  { %v11280_v41 = vmax.f32 %v2710_v46, 0.0  ;;  %v11282_v27 = vpop.permute.xlu0 %1710  ;;  %v8991_v55 = vpack.c.bf16 %v4154_v34, %v4152_v60 }
 0x23f   :  { %2997 = vst.msk [vmem:[#allocation2 + $0x180] sm:$0xff] %vm2972_vm4, %v11276_v53  ;;  %3750 = vst.msk [vmem:[#allocation2 + $0xe8] sm:$0xff] %vm2972_vm4, %v11276_v53  ;;  %v11288_v42 = vpop.permute.xlu1 %1714  ;;  %8990 = vmatprep.subr.bf16.mxu0 %v8989_v17  ;;  %9450 = vmatprep.subr.bf16.mxu1 %v8989_v17 }
 0x240   :  { %2995 = vst.msk [vmem:[#allocation2 + $0x160] sm:$0xff] %vm2972_vm4, %v11280_v41  ;;  %3748 = vst.msk [vmem:[#allocation2 + $0xc8] sm:$0xff] %vm2972_vm4, %v11280_v41  ;;  %1760 = vrot.lane.b32.xlu0 %v14731_v37, %s9561_s25  ;;  %8992 = vmatpush1.bf16.msra.mxu0 %v8991_v55 }
 0x241   :  { %3095 = vrot.lane.b32.xlu1 %v11045_v8, %s9563_s17  ;;  %9466 = vmatpush1.bf16.msra.mxu1 %v8991_v55  ;;  %v14732_v8 = vld [vmem:[#allocation118_spill] sm:$0xff] }
 0x242   :  { %v11310_v46 = vpop.permute.xlu0 %1708 }
 0x243   :  { %v11312_v25 = vpop.permute.xlu1 %1712 }
 0x244   :  { %1764 = vrot.lane.b32.xlu0 %v10820_v38, %s9561_s25 }
 0x245   :  { %3093 = vrot.lane.b32.xlu1 %v11066_v26, %s9563_s17 }
 0x246   :  { %v2315_v36 = vpop.permute.xlu0 %2314 }
 0x247   :  { %v2715_v33 = vmax.f32 %v10847_v57, %v2315_v36  ;;  %v11319_v35 = vpop.permute.xlu1 %1716 }
 0x248   :  { %1768 = vrot.lane.b32.xlu0 %v14732_v8, %s9561_s25 }
 0x249   :  { %v11323_v60 = vmax.f32 %v2715_v33, 0.0  ;;  %3097 = vrot.lane.b32.xlu1 %v11122_v10, %s9563_s17 }
 0x24a   :  { %v2313_v17 = vpop.permute.xlu0 %2312 }
 0x24b   :  { %3000 = vst.msk [vmem:[#allocation2 + $0x1b0] sm:$0xff] %vm2972_vm4, %v11323_v60  ;;  %3753 = vst.msk [vmem:[#allocation2 + $0x118] sm:$0xff] %vm2972_vm4, %v11323_v60  ;;  %v2714_v26 = vmax.f32 %v10864_v43, %v2313_v17  ;;  %v11332_v57 = vpop.permute.xlu1 %1722  ;;  %v4158_v17 = vld [vmem:[%s14369_s2 + $0x50] sm:$0xff] }
 0x24c   :  { %3075 = vrot.lane.b32.xlu0 %v10856_v16, %s9563_s17  ;;  %v4157_v16 = vld [vmem:[%s14369_s2 + $0x48] sm:$0xff] }
 0x24d   :  { %v11336_v34 = vmax.f32 %v2714_v26, 0.0  ;;  %3103 = vrot.lane.b32.xlu1 %v11163_v23, %s9563_s17  ;;  %v4159_v23 = vld [vmem:[%s14369_s2 + $0x58] sm:$0xff] }
 0x24e   :  { %v2319_v10 = vpop.permute.xlu0 %2318  ;;  %v8993_v33 = vpack.c.bf16 %v4159_v23, %v4157_v16 }
 0x24f   :  { %2999 = vst.msk [vmem:[#allocation2 + $0x1a0] sm:$0xff] %vm2972_vm4, %v11336_v34  ;;  %3752 = vst.msk [vmem:[#allocation2 + $0x108] sm:$0xff] %vm2972_vm4, %v11336_v34  ;;  %v2717_v55 = vmax.f32 %v10882_v9, %v2319_v10  ;;  %v11345_v43 = vpop.permute.xlu1 %1720  ;;  %v4156_v9 = vld [vmem:[%s14369_s2 + $0x40] sm:$0xff] }
 0x250   :  { %1774 = vrot.lane.b32.xlu0 %v10839_v44, %s9561_s25  ;;  %v8995_v10 = vpack.c.bf16 %v4158_v17, %v4156_v9  ;;  %v14733_v44 = vld [vmem:[#allocation56_spill] sm:$0xff]  ;;  %8994 = vmatprep.subr.bf16.mxu0 %v8993_v33  ;;  %v14735_v17 = vld [vmem:[#allocation127_spill] sm:$0xff] }
 0x251   :  { %v11355_v36 = vmax.f32 %v2717_v55, 0.0  ;;  %1806 = vrot.lane.b32.xlu1 %v10990_v48, %s9561_s25  ;;  %v11367_v8 = vmax.f32 %v14733_v44, %v11096_v20  ;;  %9451 = vmatprep.subr.bf16.mxu1 %v8993_v33  ;;  %v14738_v48 = vld [vmem:[#allocation124_spill] sm:$0xff] }
 0x252   :  { %v2317_v26 = vpop.permute.xlu0 %2316  ;;  %8996 = vmatpush1.bf16.msra.mxu0 %v8995_v10  ;;  %9467 = vmatpush1.bf16.msra.mxu1 %v8995_v10 }
 0x253   :  { %3002 = vst.msk [vmem:[#allocation2 + $0x1d0] sm:$0xff] %vm2972_vm4, %v11355_v36  ;;  %3755 = vst.msk [vmem:[#allocation2 + $0x138] sm:$0xff] %vm2972_vm4, %v11355_v36  ;;  %v2716_v55 = vmax.f32 %v10899_v50, %v2317_v26  ;;  %v2327_v16 = vpop.permute.xlu1 %2326 }
 0x254   :  { %v2721_v23 = vmax.f32 %v10903_v56, %v2327_v16  ;;  %1772 = vrot.lane.b32.xlu0 %v10843_v21, %s9561_s25  ;;  %v14734_v56 = vld [vmem:[#allocation8_spill] sm:$0xff]  ;;  %v14736_v16 = vld [vmem:[#allocation130_spill] sm:$0xff] }
 0x255   :  { %v11377_v9 = vmax.f32 %v2716_v55, 0.0  ;;  %2410 = vrot.lane.b32.xlu1 %v11367_v8, %s9562_s0 }
 0x256   :  { %v2865_v44 = vmax.f32 %v2721_v23, 0.0  ;;  %v11381_v20 = vpop.permute.xlu0 %1718 }
 0x257   :  { %3001 = vst.msk [vmem:[#allocation2 + $0x1c0] sm:$0xff] %vm2972_vm4, %v11377_v9  ;;  %3754 = vst.msk [vmem:[#allocation2 + $0x128] sm:$0xff] %vm2972_vm4, %v11377_v9  ;;  %v2325_v50 = vpop.permute.xlu1 %2324 }
 0x258   :  { %3004 = vst.msk [vmem:[#allocation2 + $0x1f0] sm:$0xff] %vm2972_vm4, %v2865_v44  ;;  %3757 = vst.msk [vmem:[#allocation2 + $0x158] sm:$0xff] %vm2972_vm4, %v2865_v44  ;;  %v2720_v33 = vmax.f32 %v14734_v56, %v2325_v50  ;;  %3079 = vrot.lane.b32.xlu0 %v14735_v17, %s9563_s17  ;;  %v4161_v17 = vld [vmem:[%s14369_s2 + $0x68] sm:$0xff] }
 0x259   :  { %3101 = vrot.lane.b32.xlu1 %v11176_v3, %s9563_s17  ;;  %v14737_v3 = vld [vmem:[#allocation133_spill] sm:$0xff] }
 0x25a   :  { %v2864_v26 = vmax.f32 %v2720_v33, 0.0  ;;  %v11394_v10 = vpop.permute.xlu0 %2322 }
 0x25b   :  { %v11396_v55 = vpop.permute.xlu1 %1726 }
 0x25c   :  { %3003 = vst.msk [vmem:[#allocation2 + $0x1e0] sm:$0xff] %vm2972_vm4, %v2864_v26  ;;  %3756 = vst.msk [vmem:[#allocation2 + $0x148] sm:$0xff] %vm2972_vm4, %v2864_v26  ;;  %3077 = vrot.lane.b32.xlu0 %v14736_v16, %s9563_s17  ;;  %v4163_v26 = vld [vmem:[%s14369_s2 + $0x78] sm:$0xff] }
 0x25d   :  { %1804 = vrot.lane.b32.xlu1 %v10994_v18, %s9561_s25 }
 0x25e   :  { %v11404_v23 = vpop.permute.xlu0 %2320 }
 0x25f   :  { %v11406_v44 = vpop.permute.xlu1 %1724 }
 0x260   :  { %3083 = vrot.lane.b32.xlu0 %v14737_v3, %s9563_s17  ;;  %v8997_v3 = vpack.c.bf16 %v4163_v26, %v4161_v17 }
 0x261   :  { %3107 = vrot.lane.b32.xlu1 %v11189_v40, %s9563_s17 }
 0x262   :  { %v2329_v50 = vpop.permute.xlu0 %2328  ;;  %8998 = vmatprep.subr.bf16.mxu0 %v8997_v3  ;;  %9452 = vmatprep.subr.bf16.mxu1 %v8997_v3 }
 0x263   :  { %v2722_v56 = vmax.f32 %v10977_v29, %v2329_v50  ;;  %v2331_v33 = vpop.permute.xlu1 %2330  ;;  %v4160_v50 = vld [vmem:[%s14369_s2 + $0x60] sm:$0xff] }
 0x264   :  { %v2723_v16 = vmax.f32 %v10983_v59, %v2331_v33  ;;  %1782 = vrot.lane.b32.xlu0 %v14738_v48, %s9561_s25  ;;  %v4162_v59 = vld [vmem:[%s14369_s2 + $0x70] sm:$0xff] }
 0x265   :  { %v11422_v18 = vmax.f32 %v2722_v56, 0.0  ;;  %3105 = vrot.lane.b32.xlu1 %v11206_v58, %s9563_s17  ;;  %v14739_v56 = vld [vmem:[#allocation85_spill] sm:$0xff]  ;;  %v8999_v17 = vpack.c.bf16 %v4162_v59, %v4160_v50 }
 0x266   :  { %v11426_v29 = vmax.f32 %v2723_v16, 0.0  ;;  %v11428_v40 = vpop.permute.xlu0 %1730  ;;  %v2707_v33 = vmax.f32 %v14739_v56, %v11144_v61  ;;  %v14740_v50 = vld [vmem:[#allocation125_spill] sm:$0xff] }
 0x267   :  { %3005 = vst.msk [vmem:[#allocation2 + $0x200] sm:$0xff] %vm2972_vm4, %v11422_v18  ;;  %3758 = vst.msk [vmem:[#allocation2 + $0x168] sm:$0xff] %vm2972_vm4, %v11422_v18  ;;  %v11442_v58 = vpop.permute.xlu1 %1732  ;;  %9000 = vmatpush1.bf16.msra.mxu0 %v8999_v17  ;;  %9468 = vmatpush1.bf16.msra.mxu1 %v8999_v17 }
 0x268   :  { %3006 = vst.msk [vmem:[#allocation2 + $0x210] sm:$0xff] %vm2972_vm4, %v11426_v29  ;;  %3759 = vst.msk [vmem:[#allocation2 + $0x178] sm:$0xff] %vm2972_vm4, %v11426_v29  ;;  %3081 = vrot.lane.b32.xlu0 %v10969_v6, %s9563_s17  ;;  %v2851_v26 = vmax.f32 %v2707_v33, 0.0  ;;  %v14742_v6 = vld [vmem:[#allocation89_spill] sm:$0xff] }
 0x269   :  { %1808 = vrot.lane.b32.xlu1 %v11009_v51, %s9561_s25  ;;  %v2706_v48 = vmax.f32 %v14742_v6, %v11152_v24  ;;  %v14743_v51 = vld [vmem:[#allocation61_spill] sm:$0xff] }
 0x26a   :  { %v11452_v61 = vpop.permute.xlu0 %1728  ;;  %v11464_v21 = vmax.f32 %v14743_v51, %v11165_v0  ;;  %v14745_v0 = vld [vmem:[#allocation41_spill] sm:$0xff]  ;;  %v14746_v51 = vld [vmem:[#allocation42_spill] sm:$0xff] }
 0x26b   :  { %v2343_v16 = vpop.permute.xlu1 %2342  ;;  %v2695_v24 = vmax.f32 %v14746_v51, %v14745_v0 }
 0x26c   :  { %v2729_v3 = vmax.f32 %v11015_v11, %v2343_v16  ;;  %1780 = vrot.lane.b32.xlu0 %v14740_v50, %s9561_s25  ;;  %14744 = vst [vmem:[#allocation18_spill] sm:$0xff] %v11464_v21 }
 0x26d   :  { %3111 = vrot.lane.b32.xlu1 %v2851_v26, %s9563_s17  ;;  %v2850_v26 = vmax.f32 %v2706_v48, 0.0  ;;  %v4167_v48 = vld [vmem:[%s14369_s2 + $0x98] sm:$0xff] }
 0x26e   :  { %v11458_v59 = vmax.f32 %v2729_v3, 0.0  ;;  %v2335_v56 = vpop.permute.xlu0 %2334 }
 0x26f   :  { %v2725_v33 = vmax.f32 %v11031_v47, %v2335_v56  ;;  %v11467_v17 = vpop.permute.xlu1 %1740  ;;  %v4164_v56 = vld [vmem:[%s14369_s2 + $0x80] sm:$0xff] }
 0x270   :  { %14741 = vst [vmem:[#allocation90_spill] sm:$0xff] %v11458_v59  ;;  %3012 = vst.msk [vmem:[#allocation2 + $0x270] sm:$0xff] %vm2972_vm4, %v11458_v59  ;;  %3087 = vrot.lane.b32.xlu0 %v11005_v4, %s9563_s17  ;;  %v4165_v4 = vld [vmem:[%s14369_s2 + $0x88] sm:$0xff] }
 0x271   :  { %3765 = vst.msk [vmem:[#allocation2 + $0x1d8] sm:$0xff] %vm2972_vm4, %v11458_v59  ;;  %v11475_v11 = vmax.f32 %v2725_v33, 0.0  ;;  %2418 = vrot.lane.b32.xlu1 %v11464_v21, %s9562_s0  ;;  %v2839_v33 = vmax.f32 %v2695_v24, 0.0  ;;  %v14749_v24 = vld [vmem:[#allocation45_spill] sm:$0xff] }
 0x272   :  { %v2333_v47 = vpop.permute.xlu0 %2332  ;;  %v14782_v21 = vld [vmem:[#allocation57_spill] sm:$0xff] }
 0x273   :  { %3008 = vst.msk [vmem:[#allocation2 + $0x230] sm:$0xff] %vm2972_vm4, %v11475_v11  ;;  %3761 = vst.msk [vmem:[#allocation2 + $0x198] sm:$0xff] %vm2972_vm4, %v11475_v11  ;;  %v2724_v16 = vmax.f32 %v11043_v62, %v2333_v47  ;;  %v11486_v3 = vpop.permute.xlu1 %2346  ;;  %v9001_v62 = vpack.c.bf16 %v4167_v48, %v4165_v4 }
 0x274   :  { %14747 = vst [vmem:[#allocation93_spill] sm:$0xff] %v11486_v3  ;;  %3085 = vrot.lane.b32.xlu0 %v11037_v52, %s9563_s17  ;;  %v4166_v52 = vld [vmem:[%s14369_s2 + $0x90] sm:$0xff] }
 0x275   :  { %v11499_v6 = vmax.f32 %v2724_v16, 0.0  ;;  %3109 = vrot.lane.b32.xlu1 %v2850_v26, %s9563_s17  ;;  %v9003_v51 = vpack.c.bf16 %v4166_v52, %v4164_v56  ;;  %9002 = vmatprep.subr.bf16.mxu0 %v9001_v62  ;;  %v14748_v26 = vld [vmem:[#allocation139_spill] sm:$0xff]  ;;  %v14750_v16 = vld [vmem:[#allocation46_spill] sm:$0xff] }
 0x276   :  { %v11505_v0 = vpop.permute.xlu0 %1734  ;;  %9453 = vmatprep.subr.bf16.mxu1 %v9001_v62  ;;  %v2694_v4 = vmax.f32 %v14750_v16, %v14749_v24  ;;  %v14751_v56 = vld [vmem:[#allocation62_spill] sm:$0xff]  ;;  %v14753_v62 = vld [vmem:[#allocation129_spill] sm:$0xff] }
 0x277   :  { %3007 = vst.msk [vmem:[#allocation2 + $0x220] sm:$0xff] %vm2972_vm4, %v11499_v6  ;;  %3760 = vst.msk [vmem:[#allocation2 + $0x188] sm:$0xff] %vm2972_vm4, %v11499_v6  ;;  %v11511_v47 = vpop.permute.xlu1 %1750  ;;  %9004 = vmatpush1.bf16.msra.mxu0 %v9003_v51  ;;  %9469 = vmatpush1.bf16.msra.mxu1 %v9003_v51  ;;  %v11520_v52 = vmax.f32 %v14751_v56, %v11239_v31 }
 0x278   :  { %3091 = vrot.lane.b32.xlu0 %v2839_v33, %s9563_s17  ;;  %v2838_v51 = vmax.f32 %v2694_v4, 0.0 }
 0x279   :  { %1812 = vrot.lane.b32.xlu1 %v14748_v26, %s9561_s25  ;;  %14752 = vst [vmem:[#allocation99_spill] sm:$0xff] %v11520_v52 }
 0x27a   :  { %v2339_v48 = vpop.permute.xlu0 %2338 }
 0x27b   :  { %v2727_v3 = vmax.f32 %v11082_v1, %v2339_v48  ;;  %v11523_v59 = vpop.permute.xlu1 %1748  ;;  %v14756_v48 = vld [vmem:[#allocation65_spill] sm:$0xff] }
 0x27c   :  { %1790 = vrot.lane.b32.xlu0 %v14753_v62, %s9561_s25  ;;  %v11548_v56 = vmax.f32 %v14756_v48, %v11178_v28  ;;  %v14759_v28 = vld [vmem:[#allocation55_spill] sm:$0xff] }
 0x27d   :  { %v11527_v33 = vmax.f32 %v2727_v3, 0.0  ;;  %2416 = vrot.lane.b32.xlu1 %v11520_v52, %s9562_s0  ;;  %v14781_v52 = vld [vmem:[#allocation13_spill] sm:$0xff] }
 0x27e   :  { %v2337_v26 = vpop.permute.xlu0 %2336  ;;  %14757 = vst [vmem:[#allocation102_spill] sm:$0xff] %v11548_v56 }
 0x27f   :  { %14754 = vst [vmem:[#allocation103_spill] sm:$0xff] %v11527_v33  ;;  %3010 = vst.msk [vmem:[#allocation2 + $0x250] sm:$0xff] %vm2972_vm4, %v11527_v33  ;;  %v2726_v1 = vmax.f32 %v11094_v39, %v2337_v26  ;;  %v2353_v31 = vpop.permute.xlu1 %2352  ;;  %v14760_v26 = vld [vmem:[#allocation47_spill] sm:$0xff] }
 0x280   :  { %3763 = vst.msk [vmem:[#allocation2 + $0x1b8] sm:$0xff] %vm2972_vm4, %v11527_v33  ;;  %v2734_v24 = vmax.f32 %v11100_v49, %v2353_v31  ;;  %3089 = vrot.lane.b32.xlu0 %v2838_v51, %s9563_s17  ;;  %v14758_v49 = vld [vmem:[#allocation132_spill] sm:$0xff]  ;;  %v11566_v51 = vmax.f32 %v14760_v26, %v14759_v28  ;;  %v14762_v31 = vld [vmem:[#allocation66_spill] sm:$0xff] }
 0x281   :  { %v11538_v3 = vmax.f32 %v2726_v1, 0.0  ;;  %1818 = vrot.lane.b32.xlu1 %v11062_v63, %s9561_s25  ;;  %v4168_v33 = vld [vmem:[%s14369_s2 + $0xa0] sm:$0xff] }
 0x282   :  { %v11542_v16 = vmax.f32 %v2734_v24, 0.0  ;;  %v11544_v4 = vpop.permute.xlu0 %1738  ;;  %14761 = vst [vmem:[#allocation48_spill] sm:$0xff] %v11566_v51  ;;  %v11572_v24 = vmax.f32 %v14762_v31, %v11191_v45  ;;  %v14764_v45 = vld [vmem:[#allocation50_spill] sm:$0xff] }
 0x283   :  { %3009 = vst.msk [vmem:[#allocation2 + $0x240] sm:$0xff] %vm2972_vm4, %v11538_v3  ;;  %3762 = vst.msk [vmem:[#allocation2 + $0x1a8] sm:$0xff] %vm2972_vm4, %v11538_v3  ;;  %v11554_v39 = vpop.permute.xlu1 %1752  ;;  %v11587_v26 = vmax.f32 %v14764_v45, %v11070_v5  ;;  %v14770_v45 = vld [vmem:[#allocation68_spill] sm:$0xff] }
 0x284   :  { %14755 = vst [vmem:[#allocation21_spill] sm:$0xff] %v11542_v16  ;;  %3015 = vst.msk [vmem:[#allocation2 + $0x2a0] sm:$0xff] %vm2972_vm4, %v11542_v16  ;;  %1794 = vrot.lane.b32.xlu0 %v14758_v49, %s9561_s25  ;;  %v4171_v49 = vld [vmem:[%s14369_s2 + $0xb8] sm:$0xff] }
 0x285   :  { %3768 = vst.msk [vmem:[#allocation2 + $0x208] sm:$0xff] %vm2972_vm4, %v11542_v16  ;;  %2422 = vrot.lane.b32.xlu1 %v11548_v56, %s9562_s0  ;;  %14763 = vst [vmem:[#allocation111_spill] sm:$0xff] %v11572_v24  ;;  %v4169_v16 = vld [vmem:[%s14369_s2 + $0xa8] sm:$0xff] }
 0x286   :  { %v11568_v1 = vpop.permute.xlu0 %1736  ;;  %v9005_v28 = vpack.c.bf16 %v4171_v49, %v4169_v16  ;;  %v14766_v16 = vld [vmem:[#allocation79_spill] sm:$0xff] }
 0x287   :  { %v2357_v48 = vpop.permute.xlu1 %2356 }
 0x288   :  { %v2736_v62 = vmax.f32 %v11128_v22, %v2357_v48  ;;  %2398 = vrot.lane.b32.xlu0 %v11566_v51, %s9562_s0  ;;  %9006 = vmatprep.subr.bf16.mxu0 %v9005_v28  ;;  %v4170_v22 = vld [vmem:[%s14369_s2 + $0xb0] sm:$0xff]  ;;  %v11683_v51 = vmax.f32 %v14782_v21, %v14781_v52  ;;  %v14785_v21 = vld [vmem:[#allocation77_spill] sm:$0xff] }
 0x289   :  { %2420 = vrot.lane.b32.xlu1 %v11572_v24, %s9562_s0  ;;  %9454 = vmatprep.subr.bf16.mxu1 %v9005_v28  ;;  %v9007_v50 = vpack.c.bf16 %v4170_v22, %v4168_v33  ;;  %v11618_v22 = vmax.f32 %v14770_v45, %v11233_v7  ;;  %v14773_v7 = vld [vmem:[#allocation71_spill] sm:$0xff]  ;;  %v14777_v45 = vld [vmem:[#allocation53_spill] sm:$0xff]  ;;  %v4174_v24 = vld [vmem:[%s14369_s2 + $0xd0] sm:$0xff]  ;;  %v11698_v52 = vmax.f32 %v14785_v21, %v11319_v35 }
 0x28a   :  { %v11589_v31 = vmax.f32 %v2736_v62, 0.0  ;;  %v2341_v63 = vpop.permute.xlu0 %2340  ;;  %v14768_v62 = vld [vmem:[#allocation17_spill] sm:$0xff]  ;;  %v14790_v35 = vld [vmem:[#allocation59_spill] sm:$0xff]  ;;  %v14792_v21 = vld [vmem:[#allocation22_spill] sm:$0xff] }
 0x28b   :  { %v2728_v49 = vmax.f32 %v14766_v16, %v2341_v63  ;;  %v11598_v48 = vpop.permute.xlu1 %1766  ;;  %9008 = vmatpush1.bf16.msra.mxu0 %v9007_v50  ;;  %v14769_v63 = vld [vmem:[#allocation51_spill] sm:$0xff]  ;;  %9470 = vmatpush1.bf16.msra.mxu1 %v9007_v50  ;;  %14771 = vst [vmem:[#allocation127_spill] sm:$0xff] %v11618_v22  ;;  %v11634_v50 = vmax.f32 %v14773_v7, %v11310_v46  ;;  %v14778_v46 = vld [vmem:[#allocation24_spill] sm:$0xff]  ;;  %v14779_v7 = vld [vmem:[#allocation54_spill] sm:$0xff] }
 0x28c   :  { %14765 = vst [vmem:[#allocation56_spill] sm:$0xff] %v11589_v31  ;;  %3017 = vst.msk [vmem:[#allocation2 + $0x2c0] sm:$0xff] %vm2972_vm4, %v11589_v31  ;;  %2402 = vrot.lane.b32.xlu0 %v11587_v26, %s9562_s0  ;;  %v11612_v28 = vmax.f32 %v14769_v63, %v14768_v62  ;;  %v14775_v62 = vld [vmem:[#allocation67_spill] sm:$0xff]  ;;  %v14776_v63 = vld [vmem:[#allocation74_spill] sm:$0xff] }
 0x28d   :  { %3770 = vst.msk [vmem:[#allocation2 + $0x228] sm:$0xff] %vm2972_vm4, %v11589_v31  ;;  %v11606_v5 = vmax.f32 %v2728_v49, 0.0  ;;  %3115 = vrot.lane.b32.xlu1 %v11223_v54, %s9563_s17  ;;  %14774 = vst [vmem:[#allocation133_spill] sm:$0xff] %v11634_v50  ;;  %v11643_v31 = vmax.f32 %v14777_v45, %v14776_v63  ;;  %v4173_v63 = vld [vmem:[%s14369_s2 + $0xc8] sm:$0xff]  ;;  %v4175_v45 = vld [vmem:[%s14369_s2 + $0xd8] sm:$0xff] }
 0x28e   :  { %v11614_v33 = vpop.permute.xlu0 %1742  ;;  %14786 = vst [vmem:[#allocation61_spill] sm:$0xff] %v11698_v52 }
 0x28f   :  { %14767 = vst [vmem:[#allocation8_spill] sm:$0xff] %v11606_v5  ;;  %3011 = vst.msk [vmem:[#allocation2 + $0x260] sm:$0xff] %vm2972_vm4, %v11606_v5  ;;  %v11624_v16 = vpop.permute.xlu1 %1770 }
 0x290   :  { %3764 = vst.msk [vmem:[#allocation2 + $0x1c8] sm:$0xff] %vm2972_vm4, %v11606_v5  ;;  %2400 = vrot.lane.b32.xlu0 %v11612_v28, %s9562_s0 }
 0x291   :  { %2426 = vrot.lane.b32.xlu1 %v11618_v22, %s9562_s0 }
 0x292   :  { %v11630_v54 = vpop.permute.xlu0 %2344 }
 0x293   :  { %14772 = vst [vmem:[#allocation130_spill] sm:$0xff] %v11630_v54  ;;  %v3074_v49 = vpop.permute.xlu1 %3073 }
 0x294   :  { %3224 = vst.msk [vmem:[#allocation2] sm:$0xff] %vm3223_vm5, %v3074_v49  ;;  %3099 = vrot.lane.b32.xlu0 %v14775_v62, %s9563_s17  ;;  %v11655_v49 = vmax.f32 %v14779_v7, %v14778_v46  ;;  %v9009_v7 = vpack.c.bf16 %v4175_v45, %v4173_v63 }
 0x295   :  { %2428 = vrot.lane.b32.xlu1 %v11634_v50, %s9562_s0  ;;  %v4172_v50 = vld [vmem:[%s14369_s2 + $0xc0] sm:$0xff] }
 0x296   :  { %v11645_v5 = vpop.permute.xlu0 %1746  ;;  %v9011_v56 = vpack.c.bf16 %v4174_v24, %v4172_v50  ;;  %9010 = vmatprep.subr.bf16.mxu0 %v9009_v7  ;;  %9455 = vmatprep.subr.bf16.mxu1 %v9009_v7  ;;  %v14789_v7 = vld [vmem:[#allocation58_spill] sm:$0xff] }
 0x297   :  { %v11647_v54 = vpop.permute.xlu1 %1778 }
 0x298   :  { %2406 = vrot.lane.b32.xlu0 %v11643_v31, %s9562_s0  ;;  %9012 = vmatpush1.bf16.msra.mxu0 %v9011_v56 }
 0x299   :  { %3123 = vrot.lane.b32.xlu1 %v11323_v60, %s9563_s17  ;;  %v14780_v60 = vld [vmem:[#allocation73_spill] sm:$0xff]  ;;  %9471 = vmatpush1.bf16.msra.mxu1 %v9011_v56 }
 0x29a   :  { %v11657_v62 = vpop.permute.xlu0 %1744  ;;  %v11670_v22 = vmax.f32 %v14780_v60, %v11312_v25  ;;  %v14787_v60 = vld [vmem:[#allocation78_spill] sm:$0xff] }
 0x29b   :  { %v11672_v46 = vpop.permute.xlu1 %1776 }
 0x29c   :  { %2404 = vrot.lane.b32.xlu0 %v11655_v49, %s9562_s0 }
 0x29d   :  { %2432 = vrot.lane.b32.xlu1 %v11670_v22, %s9562_s0 }
 0x29e   :  { %v2355_v25 = vpop.permute.xlu0 %2354 }
 0x29f   :  { %v2735_v63 = vmax.f32 %v11204_v15, %v2355_v25  ;;  %v11686_v45 = vpop.permute.xlu1 %1786  ;;  %v2719_v15 = vmax.f32 %v14787_v60, %v11394_v10  ;;  %v14793_v60 = vld [vmem:[#allocation60_spill] sm:$0xff] }
 0x2a0   :  { %14783 = vst [vmem:[#allocation85_spill] sm:$0xff] %v11686_v45  ;;  %2408 = vrot.lane.b32.xlu0 %v11683_v51, %s9562_s0 }
 0x2a1   :  { %v11690_v24 = vmax.f32 %v2735_v63, 0.0  ;;  %3127 = vrot.lane.b32.xlu1 %v11355_v36, %s9563_s17  ;;  %v11714_v36 = vmax.f32 %v14790_v35, %v11209_v13  ;;  %v2863_v10 = vmax.f32 %v2719_v15, 0.0  ;;  %v4177_v15 = vld [vmem:[%s14369_s2 + $0xe8] sm:$0xff] }
 0x2a2   :  { %v11694_v50 = vpop.permute.xlu0 %1754 }
 0x2a3   :  { %14784 = vst [vmem:[#allocation89_spill] sm:$0xff] %v11690_v24  ;;  %3016 = vst.msk [vmem:[#allocation2 + $0x2b0] sm:$0xff] %vm2972_vm4, %v11690_v24  ;;  %v11706_v56 = vpop.permute.xlu1 %1784 }
 0x2a4   :  { %3769 = vst.msk [vmem:[#allocation2 + $0x218] sm:$0xff] %vm2972_vm4, %v11690_v24  ;;  %14788 = vst [vmem:[#allocation41_spill] sm:$0xff] %v11706_v56  ;;  %1810 = vrot.lane.b32.xlu0 %v14789_v7, %s9561_s25  ;;  %v11725_v24 = vmax.f32 %v14793_v60, %v14792_v21  ;;  %v14794_v7 = vld [vmem:[#allocation81_spill] sm:$0xff]  ;;  %v14798_v56 = vld [vmem:[#allocation15_spill] sm:$0xff] }
 0x2a5   :  { %2436 = vrot.lane.b32.xlu1 %v11698_v52, %s9562_s0  ;;  %v11731_v13 = vmax.f32 %v14794_v7, %v11345_v43  ;;  %v4176_v43 = vld [vmem:[%s14369_s2 + $0xe0] sm:$0xff]  ;;  %v4178_v7 = vld [vmem:[%s14369_s2 + $0xf0] sm:$0xff] }
 0x2a6   :  { %v11716_v25 = vpop.permute.xlu0 %1758 }
 0x2a7   :  { %v11718_v63 = vpop.permute.xlu1 %1788  ;;  %14795 = vst [vmem:[#allocation45_spill] sm:$0xff] %v11731_v13 }
 0x2a8   :  { %14791 = vst [vmem:[#allocation42_spill] sm:$0xff] %v11718_v63  ;;  %2414 = vrot.lane.b32.xlu0 %v11714_v36, %s9562_s0 }
 0x2a9   :  { %3131 = vrot.lane.b32.xlu1 %v2863_v10, %s9563_s17  ;;  %v4179_v10 = vld [vmem:[%s14369_s2 + $0xf8] sm:$0xff] }
 0x2aa   :  { %v11727_v45 = vpop.permute.xlu0 %1756  ;;  %v9013_v21 = vpack.c.bf16 %v4179_v10, %v4177_v15  ;;  %v9015_v10 = vpack.c.bf16 %v4178_v7, %v4176_v43 }
 0x2ab   :  { %v11733_v35 = vpop.permute.xlu1 %1792 }
 0x2ac   :  { %14796 = vst [vmem:[#allocation46_spill] sm:$0xff] %v11733_v35  ;;  %2412 = vrot.lane.b32.xlu0 %v11725_v24, %s9562_s0  ;;  %9014 = vmatprep.subr.bf16.mxu0 %v9013_v21  ;;  %v14797_v35 = vld [vmem:[#allocation83_spill] sm:$0xff] }
 0x2ad   :  { %2440 = vrot.lane.b32.xlu1 %v11731_v13, %s9562_s0  ;;  %9456 = vmatprep.subr.bf16.mxu1 %v9013_v21  ;;  %v11755_v63 = vmax.f32 %v14797_v35, %v11396_v55  ;;  %v14799_v55 = vld [vmem:[#allocation14_spill] sm:$0xff]  ;;  %v14800_v21 = vld [vmem:[#allocation87_spill] sm:$0xff] }
 0x2ae   :  { %v11745_v60 = vpop.permute.xlu0 %1762  ;;  %9016 = vmatpush1.bf16.msra.mxu0 %v9015_v10  ;;  %9472 = vmatpush1.bf16.msra.mxu1 %v9015_v10  ;;  %v11775_v43 = vmax.f32 %v14800_v21, %v11428_v40  ;;  %v14802_v40 = vld [vmem:[#allocation88_spill] sm:$0xff] }
 0x2af   :  { %v11757_v15 = vpop.permute.xlu1 %2396  ;;  %v11791_v21 = vmax.f32 %v14802_v40, %v11452_v61  ;;  %v4180_v61 = vld [vmem:[%s14369_s2 + $0x100] sm:$0xff] }
 0x2b0   :  { %1814 = vrot.lane.b32.xlu0 %v14798_v56, %s9561_s25 }
 0x2b1   :  { %2446 = vrot.lane.b32.xlu1 %v11755_v63, %s9562_s0 }
 0x2b2   :  { %v11763_v13 = vpop.permute.xlu0 %1760 }
 0x2b3   :  { %v3096_v52 = vpop.permute.xlu1 %3095 }
 0x2b4   :  { %3235 = vst.msk [vmem:[#allocation2 + $0xb0] sm:$0xff] %vm3223_vm5, %v3096_v52  ;;  %3827 = vst.msk [vmem:[#allocation2 + $0x18] sm:$0xff] %vm3223_vm5, %v3096_v52  ;;  %1816 = vrot.lane.b32.xlu0 %v14799_v55, %s9561_s25  ;;  %v14801_v52 = vld [vmem:[#allocation69_spill] sm:$0xff] }
 0x2b5   :  { %3135 = vrot.lane.b32.xlu1 %v11426_v29, %s9563_s17  ;;  %v11785_v29 = vmax.f32 %v14801_v52, %v11245_v32  ;;  %v4183_v32 = vld [vmem:[%s14369_s2 + $0x118] sm:$0xff] }
 0x2b6   :  { %v11771_v35 = vpop.permute.xlu0 %1764 }
 0x2b7   :  { %v3094_v7 = vpop.permute.xlu1 %3093 }
 0x2b8   :  { %3234 = vst.msk [vmem:[#allocation2 + $0xa0] sm:$0xff] %vm3223_vm5, %v3094_v7  ;;  %3826 = vst.msk [vmem:[#allocation2 + $0x8] sm:$0xff] %vm3223_vm5, %v3094_v7  ;;  %3113 = vrot.lane.b32.xlu0 %v11280_v41, %s9563_s17  ;;  %v4181_v41 = vld [vmem:[%s14369_s2 + $0x108] sm:$0xff] }
 0x2b9   :  { %2450 = vrot.lane.b32.xlu1 %v11775_v43, %s9562_s0  ;;  %v9017_v7 = vpack.c.bf16 %v4183_v32, %v4181_v41  ;;  %v14803_v41 = vld [vmem:[#allocation70_spill] sm:$0xff] }
 0x2ba   :  { %v11787_v10 = vpop.permute.xlu0 %1768  ;;  %v11820_v32 = vmax.f32 %v14803_v41, %v11282_v27  ;;  %v14806_v27 = vld [vmem:[#allocation72_spill] sm:$0xff] }
 0x2bb   :  { %v3098_v56 = vpop.permute.xlu1 %3097  ;;  %9018 = vmatprep.subr.bf16.mxu0 %v9017_v7  ;;  %9457 = vmatprep.subr.bf16.mxu1 %v9017_v7  ;;  %v14804_v7 = vld [vmem:[#allocation94_spill] sm:$0xff] }
 0x2bc   :  { %3236 = vst.msk [vmem:[#allocation2 + $0xc0] sm:$0xff] %vm3223_vm5, %v3098_v56  ;;  %3828 = vst.msk [vmem:[#allocation2 + $0x28] sm:$0xff] %vm3223_vm5, %v3098_v56  ;;  %2424 = vrot.lane.b32.xlu0 %v11785_v29, %s9562_s0  ;;  %v4182_v56 = vld [vmem:[%s14369_s2 + $0x110] sm:$0xff] }
 0x2bd   :  { %2448 = vrot.lane.b32.xlu1 %v11791_v21, %s9562_s0  ;;  %v9019_v40 = vpack.c.bf16 %v4182_v56, %v4180_v61  ;;  %v11826_v56 = vmax.f32 %v14804_v7, %v11544_v4  ;;  %v11844_v4 = vmax.f32 %v14806_v27, %v11288_v42  ;;  %v14809_v42 = vld [vmem:[#allocation100_spill] sm:$0xff]  ;;  %v4185_v27 = vld [vmem:[%s14369_s2 + $0x128] sm:$0xff] }
 0x2be   :  { %v3076_v52 = vpop.permute.xlu0 %3075 }
 0x2bf   :  { %3225 = vst.msk [vmem:[#allocation2 + $0x10] sm:$0xff] %vm3223_vm5, %v3076_v52  ;;  %v3104_v55 = vpop.permute.xlu1 %3103  ;;  %9020 = vmatpush1.bf16.msra.mxu0 %v9019_v40  ;;  %9473 = vmatpush1.bf16.msra.mxu1 %v9019_v40  ;;  %v14807_v40 = vld [vmem:[#allocation96_spill] sm:$0xff] }
 0x2c0   :  { %3239 = vst.msk [vmem:[#allocation2 + $0xf0] sm:$0xff] %vm3223_vm5, %v3104_v55  ;;  %3831 = vst.msk [vmem:[#allocation2 + $0x58] sm:$0xff] %vm3223_vm5, %v3104_v55  ;;  %3119 = vrot.lane.b32.xlu0 %v11258_v12, %s9563_s17  ;;  %v11848_v41 = vmax.f32 %v14807_v40, %v11614_v33 }
 0x2c1   :  { %3137 = vrot.lane.b32.xlu1 %v11499_v6, %s9563_s17 }
 0x2c2   :  { %v11822_v61 = vpop.permute.xlu0 %1774  ;;  %14808 = vst [vmem:[#allocation65_spill] sm:$0xff] %v11848_v41 }
 0x2c3   :  { %v11828_v52 = vpop.permute.xlu1 %1806 }
 0x2c4   :  { %14805 = vst [vmem:[#allocation62_spill] sm:$0xff] %v11828_v52  ;;  %2430 = vrot.lane.b32.xlu0 %v11820_v32, %s9562_s0  ;;  %v14813_v52 = vld [vmem:[#allocation104_spill] sm:$0xff] }
 0x2c5   :  { %2458 = vrot.lane.b32.xlu1 %v11826_v56, %s9562_s0 }
 0x2c6   :  { %v11834_v12 = vpop.permute.xlu0 %1772 }
 0x2c7   :  { %v11836_v6 = vpop.permute.xlu1 %2410 }
 0x2c8   :  { %3117 = vrot.lane.b32.xlu0 %v11276_v53, %s9563_s17 }
 0x2c9   :  { %3141 = vrot.lane.b32.xlu1 %v11538_v3, %s9563_s17  ;;  %v11859_v3 = vmax.f32 %v14809_v42, %v11645_v5  ;;  %v14812_v5 = vld [vmem:[#allocation76_spill] sm:$0xff]  ;;  %v4186_v42 = vld [vmem:[%s14369_s2 + $0x130] sm:$0xff] }
 0x2ca   :  { %v3080_v55 = vpop.permute.xlu0 %3079  ;;  %v11876_v40 = vmax.f32 %v14812_v5, %v11381_v20  ;;  %v14816_v5 = vld [vmem:[#allocation75_spill] sm:$0xff] }
 0x2cb   :  { %3227 = vst.msk [vmem:[#allocation2 + $0x30] sm:$0xff] %vm3223_vm5, %v3080_v55  ;;  %v3102_v7 = vpop.permute.xlu1 %3101  ;;  %14810 = vst [vmem:[#allocation55_spill] sm:$0xff] %v11859_v3  ;;  %v4187_v55 = vld [vmem:[%s14369_s2 + $0x138] sm:$0xff] }
 0x2cc   :  { %3238 = vst.msk [vmem:[#allocation2 + $0xe0] sm:$0xff] %vm3223_vm5, %v3102_v7  ;;  %3830 = vst.msk [vmem:[#allocation2 + $0x48] sm:$0xff] %vm3223_vm5, %v3102_v7  ;;  %2434 = vrot.lane.b32.xlu0 %v11844_v4, %s9562_s0 }
 0x2cd   :  { %2462 = vrot.lane.b32.xlu1 %v11848_v41, %s9562_s0 }
 0x2ce   :  { %v3078_v53 = vpop.permute.xlu0 %3077 }
 0x2cf   :  { %3226 = vst.msk [vmem:[#allocation2 + $0x20] sm:$0xff] %vm3223_vm5, %v3078_v53  ;;  %v11862_v33 = vpop.permute.xlu1 %1804  ;;  %v9021_v53 = vpack.c.bf16 %v4187_v55, %v4185_v27 }
 0x2d0   :  { %14811 = vst [vmem:[#allocation47_spill] sm:$0xff] %v11862_v33  ;;  %3121 = vrot.lane.b32.xlu0 %v11336_v34, %s9563_s17  ;;  %v4184_v34 = vld [vmem:[%s14369_s2 + $0x120] sm:$0xff]  ;;  %v11886_v33 = vmax.f32 %v14813_v52, %v11511_v47  ;;  %v14814_v47 = vld [vmem:[#allocation107_spill] sm:$0xff] }
 0x2d1   :  { %2466 = vrot.lane.b32.xlu1 %v11859_v3, %s9562_s0  ;;  %v9023_v3 = vpack.c.bf16 %v4186_v42, %v4184_v34  ;;  %9022 = vmatprep.subr.bf16.mxu0 %v9021_v53  ;;  %v11899_v52 = vmax.f32 %v14814_v47, %v11694_v50  ;;  %v2718_v50 = vmax.f32 %v14816_v5, %v11404_v23  ;;  %v14818_v23 = vld [vmem:[#allocation114_spill] sm:$0xff]  ;;  %v4191_v5 = vld [vmem:[%s14369_s2 + $0x158] sm:$0xff] }
 0x2d2   :  { %v3084_v7 = vpop.permute.xlu0 %3083  ;;  %9458 = vmatprep.subr.bf16.mxu1 %v9021_v53  ;;  %v11928_v42 = vmax.f32 %v14818_v23, %v11598_v48  ;;  %v4189_v48 = vld [vmem:[%s14369_s2 + $0x148] sm:$0xff]  ;;  %v4190_v23 = vld [vmem:[%s14369_s2 + $0x150] sm:$0xff] }
 0x2d3   :  { %3229 = vst.msk [vmem:[#allocation2 + $0x50] sm:$0xff] %vm3223_vm5, %v3084_v7  ;;  %v3108_v41 = vpop.permute.xlu1 %3107  ;;  %9024 = vmatpush1.bf16.msra.mxu0 %v9023_v3  ;;  %9474 = vmatpush1.bf16.msra.mxu1 %v9023_v3  ;;  %v14817_v3 = vld [vmem:[#allocation108_spill] sm:$0xff] }
 0x2d4   :  { %3241 = vst.msk [vmem:[#allocation2 + $0x110] sm:$0xff] %vm3223_vm5, %v3108_v41  ;;  %3833 = vst.msk [vmem:[#allocation2 + $0x78] sm:$0xff] %vm3223_vm5, %v3108_v41  ;;  %2438 = vrot.lane.b32.xlu0 %v11876_v40, %s9562_s0  ;;  %v14815_v41 = vld [vmem:[#allocation80_spill] sm:$0xff]  ;;  %v11915_v53 = vmax.f32 %v14817_v3, %v11554_v39 }
 0x2d5   :  { %2470 = vrot.lane.b32.xlu1 %v11886_v33, %s9562_s0  ;;  %v11909_v55 = vmax.f32 %v14815_v41, %v11332_v57  ;;  %v2862_v57 = vmax.f32 %v2718_v50, 0.0  ;;  %v14819_v39 = vld [vmem:[#allocation84_spill] sm:$0xff] }
 0x2d6   :  { %v11895_v20 = vpop.permute.xlu0 %1782  ;;  %v4188_v50 = vld [vmem:[%s14369_s2 + $0x140] sm:$0xff] }
 0x2d7   :  { %v3106_v27 = vpop.permute.xlu1 %3105 }
 0x2d8   :  { %3240 = vst.msk [vmem:[#allocation2 + $0x100] sm:$0xff] %vm3223_vm5, %v3106_v27  ;;  %3832 = vst.msk [vmem:[#allocation2 + $0x68] sm:$0xff] %vm3223_vm5, %v3106_v27  ;;  %3125 = vrot.lane.b32.xlu0 %v11377_v9, %s9563_s17  ;;  %v11937_v27 = vmax.f32 %v14819_v39, %v11406_v44 }
 0x2d9   :  { %2474 = vrot.lane.b32.xlu1 %v11899_v52, %s9562_s0 }
 0x2da   :  { %v3082_v7 = vpop.permute.xlu0 %3081 }
 0x2db   :  { %3228 = vst.msk [vmem:[#allocation2 + $0x40] sm:$0xff] %vm3223_vm5, %v3082_v7  ;;  %v11918_v34 = vpop.permute.xlu1 %1808  ;;  %v14820_v7 = vld [vmem:[#allocation117_spill] sm:$0xff] }
 0x2dc   :  { %2442 = vrot.lane.b32.xlu0 %v11909_v55, %s9562_s0  ;;  %v11950_v3 = vmax.f32 %v14820_v7, %v11624_v16  ;;  %v14822_v16 = vld [vmem:[#allocation122_spill] sm:$0xff] }
 0x2dd   :  { %2472 = vrot.lane.b32.xlu1 %v11915_v53, %s9562_s0 }
 0x2de   :  { %v11924_v9 = vpop.permute.xlu0 %1780  ;;  %14821 = vst [vmem:[#allocation66_spill] sm:$0xff] %v11950_v3 }
 0x2df   :  { %v3112_v47 = vpop.permute.xlu1 %3111 }
 0x2e0   :  { %3243 = vst.msk [vmem:[#allocation2 + $0x130] sm:$0xff] %vm3223_vm5, %v3112_v47  ;;  %3835 = vst.msk [vmem:[#allocation2 + $0x98] sm:$0xff] %vm3223_vm5, %v3112_v47  ;;  %3129 = vrot.lane.b32.xlu0 %v2862_v57, %s9563_s17  ;;  %v9025_v57 = vpack.c.bf16 %v4191_v5, %v4189_v48  ;;  %v9027_v47 = vpack.c.bf16 %v4190_v23, %v4188_v50  ;;  %v14824_v50 = vld [vmem:[#allocation123_spill] sm:$0xff] }
 0x2e1   :  { %2486 = vrot.lane.b32.xlu1 %v11928_v42, %s9562_s0  ;;  %v11975_v7 = vmax.f32 %v14824_v50, %v11672_v46 }
 0x2e2   :  { %v3088_v41 = vpop.permute.xlu0 %3087  ;;  %9026 = vmatprep.subr.bf16.mxu0 %v9025_v57  ;;  %9459 = vmatprep.subr.bf16.mxu1 %v9025_v57 }
 0x2e3   :  { %3231 = vst.msk [vmem:[#allocation2 + $0x70] sm:$0xff] %vm3223_vm5, %v3088_v41  ;;  %v11953_v44 = vpop.permute.xlu1 %2418  ;;  %9028 = vmatpush1.bf16.msra.mxu0 %v9027_v47  ;;  %v11964_v41 = vmax.f32 %v14822_v16, %v11647_v54  ;;  %9475 = vmatpush1.bf16.msra.mxu1 %v9027_v47  ;;  %v2756_v54 = vmax.f32 %v11264_v2, %v11757_v15  ;;  %v14826_v2 = vld [vmem:[#allocation92_spill] sm:$0xff] }
 0x2e4   :  { %2444 = vrot.lane.b32.xlu0 %v11937_v27, %s9562_s0 }
 0x2e5   :  { %2490 = vrot.lane.b32.xlu1 %v11950_v3, %s9562_s0  ;;  %14823 = vst [vmem:[#allocation50_spill] sm:$0xff] %v11964_v41  ;;  %v2900_v46 = vmax.f32 %v2756_v54, 0.0 }
 0x2e6   :  { %v3086_v39 = vpop.permute.xlu0 %3085 }
 0x2e7   :  { %3230 = vst.msk [vmem:[#allocation2 + $0x60] sm:$0xff] %vm3223_vm5, %v3086_v39  ;;  %v3110_v48 = vpop.permute.xlu1 %3109 }
 0x2e8   :  { %3242 = vst.msk [vmem:[#allocation2 + $0x120] sm:$0xff] %vm3223_vm5, %v3110_v48  ;;  %3834 = vst.msk [vmem:[#allocation2 + $0x88] sm:$0xff] %vm3223_vm5, %v3110_v48  ;;  %3133 = vrot.lane.b32.xlu0 %v11422_v18, %s9563_s17  ;;  %v14825_v18 = vld [vmem:[#allocation91_spill] sm:$0xff] }
 0x2e9   :  { %2498 = vrot.lane.b32.xlu1 %v11964_v41, %s9562_s0  ;;  %v11988_v23 = vmax.f32 %v14825_v18, %v11505_v0  ;;  %v4193_v0 = vld [vmem:[%s14369_s2 + $0x168] sm:$0xff]  ;;  %v4195_v48 = vld [vmem:[%s14369_s2 + $0x178] sm:$0xff] }
 0x2ea   :  { %v3092_v5 = vpop.permute.xlu0 %3091  ;;  %v9029_v18 = vpack.c.bf16 %v4195_v48, %v4193_v0  ;;  %v14829_v41 = vld [vmem:[#allocation97_spill] sm:$0xff] }
 0x2eb   :  { %3233 = vst.msk [vmem:[#allocation2 + $0x90] sm:$0xff] %vm3223_vm5, %v3092_v5  ;;  %v11980_v57 = vpop.permute.xlu1 %1812  ;;  %v14827_v5 = vld [vmem:[#allocation95_spill] sm:$0xff]  ;;  %v14830_v48 = vld [vmem:[#allocation101_spill] sm:$0xff] }
 0x2ec   :  { %3139 = vrot.lane.b32.xlu0 %v11475_v11, %s9563_s17  ;;  %v11999_v11 = vmax.f32 %v14826_v2, %v11442_v58  ;;  %v4192_v58 = vld [vmem:[%s14369_s2 + $0x160] sm:$0xff]  ;;  %v12017_v50 = vmax.f32 %v14827_v5, %v11568_v1  ;;  %9030 = vmatprep.subr.bf16.mxu0 %v9029_v18  ;;  %v12030_v1 = vmax.f32 %v14829_v41, %v11467_v17  ;;  %v14831_v41 = vld [vmem:[#allocation105_spill] sm:$0xff] }
 0x2ed   :  { %2496 = vrot.lane.b32.xlu1 %v11975_v7, %s9562_s0  ;;  %9460 = vmatprep.subr.bf16.mxu1 %v9029_v18 }
 0x2ee   :  { %v11990_v47 = vpop.permute.xlu0 %1790 }
 0x2ef   :  { %v11992_v39 = vpop.permute.xlu1 %2416 }
 0x2f0   :  { %2454 = vrot.lane.b32.xlu0 %v11988_v23, %s9562_s0 }
 0x2f1   :  { %3324 = vrot.lane.b32.xlu1 %v2900_v46, %s9562_s0  ;;  %v4194_v46 = vld [vmem:[%s14369_s2 + $0x170] sm:$0xff] }
 0x2f2   :  { %v3090_v15 = vpop.permute.xlu0 %3089 }
 0x2f3   :  { %3232 = vst.msk [vmem:[#allocation2 + $0x80] sm:$0xff] %vm3223_vm5, %v3090_v15  ;;  %v12002_v16 = vpop.permute.xlu1 %1818  ;;  %v9031_v15 = vpack.c.bf16 %v4194_v46, %v4192_v58  ;;  %v12040_v58 = vmax.f32 %v14830_v48, %v11657_v62 }
 0x2f4   :  { %2452 = vrot.lane.b32.xlu0 %v11999_v11, %s9562_s0 }
 0x2f5   :  { %9032 = vmatpush1.bf16.msra.mxu0 %v9031_v15  ;;  %9476 = vmatpush1.bf16.msra.mxu1 %v9031_v15  ;;  %v12051_v15 = vmax.f32 %v14831_v41, %v11523_v59  ;;  %v4199_v59 = vld [vmem:[%s14369_s2 + $0x198] sm:$0xff]  ;;  %v4198_v41 = vld [vmem:[%s14369_s2 + $0x190] sm:$0xff] }
 0x2f6   :  { %v12019_v54 = vpop.permute.xlu0 %1794 }
 0x2f7   :  { %14828 = vst [vmem:[#allocation79_spill] sm:$0xff] %v12019_v54  ;;  %v12024_v2 = vpop.permute.xlu1 %2422 }
 0x2f8   :  { %2456 = vrot.lane.b32.xlu0 %v12017_v50, %s9562_s0 }
 0x2fa   :  { %v12032_v5 = vpop.permute.xlu0 %2398 }
 0x2fb   :  { %v12034_v0 = vpop.permute.xlu1 %2420 }
 0x2fc   :  { %2460 = vrot.lane.b32.xlu0 %v12030_v1, %s9562_s0 }
 0x2fe   :  { %v2403_v46 = vpop.permute.xlu0 %2402 }
 0x2ff   :  { %v2759_v3 = vmax.f32 %v11587_v26, %v2403_v46  ;;  %v3116_v18 = vpop.permute.xlu1 %3115 }
 0x300   :  { %3245 = vst.msk [vmem:[#allocation2 + $0x150] sm:$0xff] %vm3223_vm5, %v3116_v18  ;;  %3837 = vst.msk [vmem:[#allocation2 + $0xb8] sm:$0xff] %vm3223_vm5, %v3116_v18  ;;  %2464 = vrot.lane.b32.xlu0 %v12040_v58, %s9562_s0  ;;  %v4196_v18 = vld [vmem:[%s14369_s2 + $0x180] sm:$0xff] }
 0x301   :  { %v12047_v17 = vmax.f32 %v2759_v3, 0.0  ;;  %v4197_v3 = vld [vmem:[%s14369_s2 + $0x188] sm:$0xff] }
 0x302   :  { %v2401_v54 = vpop.permute.xlu0 %2400  ;;  %v9033_v46 = vpack.c.bf16 %v4199_v59, %v4197_v3 }
 0x303   :  { %v2758_v62 = vmax.f32 %v11612_v28, %v2401_v54  ;;  %3330 = vrot.lane.b32.xlu1 %v12047_v17, %s9562_s0  ;;  %v12056_v26 = vpop.permute.xlu1 %2426  ;;  %v12068_v28 = vmax.f32 %v10776_v30, %v11716_v25  ;;  %v9035_v30 = vpack.c.bf16 %v4198_v41, %v4196_v18  ;;  %v12085_v25 = vmax.f32 %v10780_v14, %v11727_v45 }
 0x304   :  { %2468 = vrot.lane.b32.xlu0 %v12051_v15, %s9562_s0  ;;  %9034 = vmatprep.subr.bf16.mxu0 %v9033_v46  ;;  %v12097_v14 = vmax.f32 %v10796_v19, %v11745_v60  ;;  %v12112_v19 = vmax.f32 %v14731_v37, %v11763_v13  ;;  %v12125_v37 = vmax.f32 %v10820_v38, %v11771_v35  ;;  %v4203_v38 = vld [vmem:[%s14369_s2 + $0x1b8] sm:$0xff]  ;;  %v14832_v35 = vld [vmem:[#allocation118_spill] sm:$0xff] }
 0x305   :  { %v2902_v48 = vmax.f32 %v2758_v62, 0.0  ;;  %9036 = vmatpush1.bf16.msra.mxu0 %v9035_v30  ;;  %9461 = vmatprep.subr.bf16.mxu1 %v9033_v46 }
 0x306   :  { %v3100_v54 = vpop.permute.xlu0 %3099  ;;  %9477 = vmatpush1.bf16.msra.mxu1 %v9035_v30 }
 0x307   :  { %3237 = vst.msk [vmem:[#allocation2 + $0xd0] sm:$0xff] %vm3223_vm5, %v3100_v54  ;;  %3829 = vst.msk [vmem:[#allocation2 + $0x38] sm:$0xff] %vm3223_vm5, %v3100_v54  ;;  %3535 = vrot.lane.b32.xlu1 %v2902_v48, %s9561_s25  ;;  %v12079_v62 = vpop.permute.xlu1 %2428 }
 0x308   :  { %2478 = vrot.lane.b32.xlu0 %v12068_v28, %s9562_s0 }
 0x30a   :  { %v2407_v3 = vpop.permute.xlu0 %2406 }
 0x30b   :  { %v2761_v59 = vmax.f32 %v11643_v31, %v2407_v3  ;;  %3328 = vrot.lane.b32.xlu1 %v2902_v48, %s9562_s0  ;;  %v3124_v54 = vpop.permute.xlu1 %3123  ;;  %v2763_v48 = vmax.f32 %v11367_v8, %v11836_v6 }
 0x30c   :  { %3249 = vst.msk [vmem:[#allocation2 + $0x190] sm:$0xff] %vm3223_vm5, %v3124_v54  ;;  %3841 = vst.msk [vmem:[#allocation2 + $0xf8] sm:$0xff] %vm3223_vm5, %v3124_v54  ;;  %2476 = vrot.lane.b32.xlu0 %v12085_v25, %s9562_s0  ;;  %v12146_v54 = vmax.f32 %v14832_v35, %v11787_v10 }
 0x30d   :  { %v12093_v18 = vmax.f32 %v2761_v59, 0.0  ;;  %v12120_v30 = vmax.f32 %v2763_v48, 0.0  ;;  %v4201_v59 = vld [vmem:[%s14369_s2 + $0x1a8] sm:$0xff]  ;;  %v4202_v48 = vld [vmem:[%s14369_s2 + $0x1b0] sm:$0xff] }
 0x30e   :  { %v2405_v45 = vpop.permute.xlu0 %2404 }
 0x30f   :  { %v2760_v46 = vmax.f32 %v11655_v49, %v2405_v45  ;;  %3334 = vrot.lane.b32.xlu1 %v12093_v18, %s9562_s0  ;;  %v12102_v31 = vpop.permute.xlu1 %2432 }
 0x310   :  { %2482 = vrot.lane.b32.xlu0 %v12097_v14, %s9562_s0 }
 0x311   :  { %v12108_v41 = vmax.f32 %v2760_v46, 0.0  ;;  %v9037_v46 = vpack.c.bf16 %v4203_v38, %v4201_v59 }
 0x312   :  { %v2409_v60 = vpop.permute.xlu0 %2408 }
 0x313   :  { %3332 = vrot.lane.b32.xlu1 %v12108_v41, %s9562_s0  ;;  %v3128_v49 = vpop.permute.xlu1 %3127  ;;  %v2762_v8 = vmax.f32 %v11683_v51, %v2409_v60  ;;  %v4200_v51 = vld [vmem:[%s14369_s2 + $0x1a0] sm:$0xff]  ;;  %9038 = vmatprep.subr.bf16.mxu0 %v9037_v46 }
 0x314   :  { %3251 = vst.msk [vmem:[#allocation2 + $0x1b0] sm:$0xff] %vm3223_vm5, %v3128_v49  ;;  %3843 = vst.msk [vmem:[#allocation2 + $0x118] sm:$0xff] %vm3223_vm5, %v3128_v49  ;;  %2480 = vrot.lane.b32.xlu0 %v12112_v19, %s9562_s0  ;;  %v9039_v49 = vpack.c.bf16 %v4202_v48, %v4200_v51  ;;  %9462 = vmatprep.subr.bf16.mxu1 %v9037_v46  ;;  %v14834_v48 = vld [vmem:[#allocation121_spill] sm:$0xff] }
 0x315   :  { %v2906_v3 = vmax.f32 %v2762_v8, 0.0  ;;  %v14833_v8 = vld [vmem:[#allocation120_spill] sm:$0xff] }
 0x316   :  { %v12127_v13 = vpop.permute.xlu0 %1810  ;;  %9040 = vmatpush1.bf16.msra.mxu0 %v9039_v49  ;;  %v12159_v59 = vmax.f32 %v14833_v8, %v11822_v61  ;;  %9478 = vmatpush1.bf16.msra.mxu1 %v9039_v49 }
 0x317   :  { %3338 = vrot.lane.b32.xlu1 %v12120_v30, %s9562_s0  ;;  %v12131_v6 = vpop.permute.xlu1 %2436 }
 0x318   :  { %2484 = vrot.lane.b32.xlu0 %v12125_v37, %s9562_s0 }
 0x31a   :  { %v2415_v45 = vpop.permute.xlu0 %2414 }
 0x31b   :  { %3543 = vrot.lane.b32.xlu1 %v2906_v3, %s9561_s25  ;;  %v3132_v60 = vpop.permute.xlu1 %3131  ;;  %v2765_v10 = vmax.f32 %v11714_v36, %v2415_v45  ;;  %v14836_v36 = vld [vmem:[#allocation48_spill] sm:$0xff] }
 0x31c   :  { %3253 = vst.msk [vmem:[#allocation2 + $0x1d0] sm:$0xff] %vm3223_vm5, %v3132_v60  ;;  %3845 = vst.msk [vmem:[#allocation2 + $0x138] sm:$0xff] %vm3223_vm5, %v3132_v60  ;;  %2488 = vrot.lane.b32.xlu0 %v12146_v54, %s9562_s0  ;;  %v12168_v60 = vmax.f32 %v14834_v48, %v11834_v12  ;;  %v2757_v45 = vmax.f32 %v14836_v36, %v12032_v5  ;;  %v4205_v5 = vld [vmem:[%s14369_s2 + $0x1c8] sm:$0xff]  ;;  %v4206_v36 = vld [vmem:[%s14369_s2 + $0x1d0] sm:$0xff] }
 0x31d   :  { %v2909_v35 = vmax.f32 %v2765_v10, 0.0 }
 0x31e   :  { %v2413_v38 = vpop.permute.xlu0 %2412  ;;  %14835 = vst [vmem:[#allocation17_spill] sm:$0xff] %v12168_v60  ;;  %v2901_v49 = vmax.f32 %v2757_v45, 0.0 }
 0x31f   :  { %3336 = vrot.lane.b32.xlu1 %v2906_v3, %s9562_s0  ;;  %v12162_v51 = vpop.permute.xlu1 %2440  ;;  %v2764_v3 = vmax.f32 %v11725_v24, %v2413_v38  ;;  %v4207_v24 = vld [vmem:[%s14369_s2 + $0x1d8] sm:$0xff] }
 0x320   :  { %2494 = vrot.lane.b32.xlu0 %v12159_v59, %s9562_s0  ;;  %v9041_v38 = vpack.c.bf16 %v4207_v24, %v4205_v5 }
 0x321   :  { %v2908_v8 = vmax.f32 %v2764_v3, 0.0 }
 0x322   :  { %v12172_v46 = vpop.permute.xlu0 %1814  ;;  %9042 = vmatprep.subr.bf16.mxu0 %v9041_v38  ;;  %9463 = vmatprep.subr.bf16.mxu1 %v9041_v38  ;;  %v14840_v38 = vld [vmem:[#allocation111_spill] sm:$0xff] }
 0x323   :  { %3549 = vrot.lane.b32.xlu1 %v2909_v35, %s9561_s25  ;;  %v12175_v61 = vpop.permute.xlu1 %2446 }
 0x324   :  { %2492 = vrot.lane.b32.xlu0 %v12168_v60, %s9562_s0 }
 0x326   :  { %v12180_v10 = vpop.permute.xlu0 %1816 }
 0x327   :  { %3342 = vrot.lane.b32.xlu1 %v2909_v35, %s9562_s0  ;;  %v3136_v12 = vpop.permute.xlu1 %3135  ;;  %v4204_v35 = vld [vmem:[%s14369_s2 + $0x1c0] sm:$0xff] }
 0x328   :  { %3255 = vst.msk [vmem:[#allocation2 + $0x1f0] sm:$0xff] %vm3223_vm5, %v3136_v12  ;;  %3847 = vst.msk [vmem:[#allocation2 + $0x158] sm:$0xff] %vm3223_vm5, %v3136_v12  ;;  %3326 = vrot.lane.b32.xlu0 %v2901_v49, %s9562_s0  ;;  %v9043_v3 = vpack.c.bf16 %v4206_v36, %v4204_v35  ;;  %v14837_v49 = vld [vmem:[#allocation18_spill] sm:$0xff]  ;;  %v14838_v35 = vld [vmem:[#allocation99_spill] sm:$0xff] }
 0x329   :  { %v2767_v12 = vmax.f32 %v14837_v49, %v11953_v44  ;;  %v2766_v36 = vmax.f32 %v14838_v35, %v11992_v39  ;;  %v4209_v39 = vld [vmem:[%s14369_s2 + $0x1e8] sm:$0xff] }
 0x32a   :  { %v3114_v48 = vpop.permute.xlu0 %3113  ;;  %9044 = vmatpush1.bf16.msra.mxu0 %v9043_v3  ;;  %9479 = vmatpush1.bf16.msra.mxu1 %v9043_v3  ;;  %v2768_v3 = vmax.f32 %v14840_v38, %v12034_v0  ;;  %v14842_v38 = vld [vmem:[#allocation133_spill] sm:$0xff] }
 0x32b   :  { %3244 = vst.msk [vmem:[#allocation2 + $0x140] sm:$0xff] %vm3223_vm5, %v3114_v48  ;;  %3836 = vst.msk [vmem:[#allocation2 + $0xa8] sm:$0xff] %vm3223_vm5, %v3114_v48  ;;  %3547 = vrot.lane.b32.xlu1 %v2908_v8, %s9561_s25  ;;  %v12201_v45 = vpop.permute.xlu1 %2450  ;;  %v2911_v48 = vmax.f32 %v2767_v12, 0.0 }
 0x32c   :  { %3537 = vrot.lane.b32.xlu0 %v12047_v17, %s9561_s25  ;;  %v2910_v17 = vmax.f32 %v2766_v36, 0.0  ;;  %v14841_v36 = vld [vmem:[#allocation127_spill] sm:$0xff] }
 0x32e   :  { %v2425_v5 = vpop.permute.xlu0 %2424 }
 0x32f   :  { %3340 = vrot.lane.b32.xlu1 %v2908_v8, %s9562_s0  ;;  %v12208_v24 = vpop.permute.xlu1 %2448 }
 0x330   :  { %3541 = vrot.lane.b32.xlu0 %v12093_v18, %s9561_s25  ;;  %v14839_v18 = vld [vmem:[#allocation102_spill] sm:$0xff] }
 0x331   :  { %v2769_v8 = vmax.f32 %v14839_v18, %v12024_v2  ;;  %v4210_v2 = vld [vmem:[%s14369_s2 + $0x1f0] sm:$0xff]  ;;  %v2912_v18 = vmax.f32 %v2768_v3, 0.0  ;;  %v2772_v3 = vmax.f32 %v14842_v38, %v12079_v62  ;;  %v2774_v62 = vmax.f32 %v11670_v22, %v12102_v31  ;;  %v14843_v22 = vld [vmem:[#allocation61_spill] sm:$0xff] }
 0x332   :  { %v3120_v60 = vpop.permute.xlu0 %3119  ;;  %v2776_v31 = vmax.f32 %v14843_v22, %v12131_v6  ;;  %v14844_v6 = vld [vmem:[#allocation45_spill] sm:$0xff] }
 0x333   :  { %3247 = vst.msk [vmem:[#allocation2 + $0x170] sm:$0xff] %vm3223_vm5, %v3120_v60  ;;  %3839 = vst.msk [vmem:[#allocation2 + $0xd8] sm:$0xff] %vm3223_vm5, %v3120_v60  ;;  %3553 = vrot.lane.b32.xlu1 %v2911_v48, %s9561_s25  ;;  %v3138_v44 = vpop.permute.xlu1 %3137  ;;  %v4211_v60 = vld [vmem:[%s14369_s2 + $0x1f8] sm:$0xff]  ;;  %v2913_v0 = vmax.f32 %v2769_v8, 0.0 }
 0x334   :  { %3256 = vst.msk [vmem:[#allocation2 + $0x200] sm:$0xff] %vm3223_vm5, %v3138_v44  ;;  %3848 = vst.msk [vmem:[#allocation2 + $0x168] sm:$0xff] %vm3223_vm5, %v3138_v44  ;;  %3539 = vrot.lane.b32.xlu0 %v12108_v41, %s9561_s25  ;;  %v9045_v12 = vpack.c.bf16 %v4211_v60, %v4209_v39  ;;  %v4208_v41 = vld [vmem:[%s14369_s2 + $0x1e0] sm:$0xff]  ;;  %v2771_v44 = vmax.f32 %v14841_v36, %v12056_v26  ;;  %v2770_v39 = vmax.f32 %v11785_v29, %v2425_v5 }
 0x335   :  { %v9047_v35 = vpack.c.bf16 %v4210_v2, %v4208_v41 }
 0x336   :  { %v2431_v49 = vpop.permute.xlu0 %2430  ;;  %9046 = vmatprep.subr.bf16.mxu0 %v9045_v12  ;;  %9464 = vmatprep.subr.bf16.mxu1 %v9045_v12  ;;  %v2915_v26 = vmax.f32 %v2771_v44, 0.0 }
 0x337   :  { %3551 = vrot.lane.b32.xlu1 %v2910_v17, %s9561_s25  ;;  %v12238_v48 = vpop.permute.xlu1 %2458  ;;  %9048 = vmatpush1.bf16.msra.mxu0 %v9047_v35  ;;  %v2773_v8 = vmax.f32 %v11820_v32, %v2431_v49  ;;  %v2916_v32 = vmax.f32 %v2772_v3, 0.0 }
 0x338   :  { %3545 = vrot.lane.b32.xlu0 %v12120_v30, %s9561_s25  ;;  %9480 = vmatpush1.bf16.msra.mxu1 %v9047_v35  ;;  %v2914_v30 = vmax.f32 %v2770_v39, 0.0 }
 0x339   :  { %v2917_v12 = vmax.f32 %v2773_v8, 0.0 }
 0x33a   :  { %v3118_v60 = vpop.permute.xlu0 %3117 }
 0x33b   :  { %3246 = vst.msk [vmem:[#allocation2 + $0x160] sm:$0xff] %vm3223_vm5, %v3118_v60  ;;  %3838 = vst.msk [vmem:[#allocation2 + $0xc8] sm:$0xff] %vm3223_vm5, %v3118_v60  ;;  %3346 = vrot.lane.b32.xlu1 %v2913_v0, %s9562_s0  ;;  %v3142_v17 = vpop.permute.xlu1 %3141 }
 0x33c   :  { %3258 = vst.msk [vmem:[#allocation2 + $0x220] sm:$0xff] %vm3223_vm5, %v3142_v17  ;;  %3850 = vst.msk [vmem:[#allocation2 + $0x188] sm:$0xff] %vm3223_vm5, %v3142_v17  ;;  %3344 = vrot.lane.b32.xlu0 %v2912_v18, %s9562_s0 }
 0x33e   :  { %v2435_v29 = vpop.permute.xlu0 %2434 }
 0x33f   :  { %3557 = vrot.lane.b32.xlu1 %v2915_v26, %s9561_s25  ;;  %v12253_v5 = vpop.permute.xlu1 %2462  ;;  %v2775_v49 = vmax.f32 %v11844_v4, %v2435_v29  ;;  %v2918_v4 = vmax.f32 %v2774_v62, 0.0  ;;  %v2781_v62 = vmax.f32 %v11755_v63, %v12175_v61 }
 0x340   :  { %3555 = vrot.lane.b32.xlu0 %v2914_v30, %s9561_s25 }
 0x341   :  { %v2919_v36 = vmax.f32 %v2775_v49, 0.0 }
 0x342   :  { %v3122_v41 = vpop.permute.xlu0 %3121 }
 0x343   :  { %3248 = vst.msk [vmem:[#allocation2 + $0x180] sm:$0xff] %vm3223_vm5, %v3122_v41  ;;  %3840 = vst.msk [vmem:[#allocation2 + $0xe8] sm:$0xff] %vm3223_vm5, %v3122_v41  ;;  %3350 = vrot.lane.b32.xlu1 %v2915_v26, %s9562_s0  ;;  %v12261_v2 = vpop.permute.xlu1 %2466 }
 0x344   :  { %3561 = vrot.lane.b32.xlu0 %v2917_v12, %s9561_s25 }
 0x346   :  { %v2439_v35 = vpop.permute.xlu0 %2438 }
 0x347   :  { %v12265_v0 = vpop.permute.xlu1 %2470  ;;  %3348 = vrot.lane.b32.xlu1 %v2914_v30, %s9562_s0  ;;  %v2777_v39 = vmax.f32 %v11876_v40, %v2439_v35  ;;  %v2920_v40 = vmax.f32 %v2776_v31, 0.0 }
 0x348   :  { %3559 = vrot.lane.b32.xlu0 %v2916_v32, %s9561_s25 }
 0x349   :  { %v2921_v26 = vmax.f32 %v2777_v39, 0.0 }
 0x34a   :  { %v3126_v44 = vpop.permute.xlu0 %3125 }
 0x34b   :  { %3250 = vst.msk [vmem:[#allocation2 + $0x1a0] sm:$0xff] %vm3223_vm5, %v3126_v44  ;;  %3842 = vst.msk [vmem:[#allocation2 + $0x108] sm:$0xff] %vm3223_vm5, %v3126_v44  ;;  %v12273_v18 = vpop.permute.xlu1 %2474  ;;  %3354 = vrot.lane.b32.xlu1 %v2917_v12, %s9562_s0  ;;  %v2778_v12 = vmax.f32 %v14844_v6, %v12162_v51  ;;  %v2783_v44 = vmax.f32 %v11775_v43, %v12201_v45  ;;  %v2782_v43 = vmax.f32 %v11791_v21, %v12208_v24  ;;  %v14845_v24 = vld [vmem:[#allocation55_spill] sm:$0xff] }
 0x34c   :  { %3565 = vrot.lane.b32.xlu0 %v2919_v36, %s9561_s25 }
 0x34d   :  { %v2922_v35 = vmax.f32 %v2778_v12, 0.0 }
 0x34e   :  { %v2443_v60 = vpop.permute.xlu0 %2442 }
 0x34f   :  { %v12278_v17 = vpop.permute.xlu1 %2472  ;;  %3352 = vrot.lane.b32.xlu1 %v2916_v32, %s9562_s0  ;;  %v2779_v29 = vmax.f32 %v11909_v55, %v2443_v60  ;;  %v2927_v60 = vmax.f32 %v2783_v44, 0.0 }
 0x350   :  { %3563 = vrot.lane.b32.xlu0 %v2918_v4, %s9561_s25 }
 0x351   :  { %v2923_v41 = vmax.f32 %v2779_v29, 0.0 }
 0x352   :  { %v3130_v30 = vpop.permute.xlu0 %3129 }
 0x353   :  { %3252 = vst.msk [vmem:[#allocation2 + $0x1c0] sm:$0xff] %vm3223_vm5, %v3130_v30  ;;  %3844 = vst.msk [vmem:[#allocation2 + $0x128] sm:$0xff] %vm3223_vm5, %v3130_v30  ;;  %v12286_v8 = vpop.permute.xlu1 %2486  ;;  %3358 = vrot.lane.b32.xlu1 %v2919_v36, %s9562_s0 }
 0x354   :  { %3569 = vrot.lane.b32.xlu0 %v2921_v26, %s9561_s25 }
 0x356   :  { %v2445_v38 = vpop.permute.xlu0 %2444 }
 0x357   :  { %v12291_v3 = vpop.permute.xlu1 %2490  ;;  %3356 = vrot.lane.b32.xlu1 %v2918_v4, %s9562_s0  ;;  %v2780_v55 = vmax.f32 %v11937_v27, %v2445_v38  ;;  %v2925_v27 = vmax.f32 %v2781_v62, 0.0 }
 0x358   :  { %3567 = vrot.lane.b32.xlu0 %v2920_v40, %s9561_s25 }
 0x359   :  { %v2924_v4 = vmax.f32 %v2780_v55, 0.0  ;;  %v2795_v55 = vmax.f32 %v11899_v52, %v12273_v18 }
 0x35a   :  { %v3134_v32 = vpop.permute.xlu0 %3133 }
 0x35b   :  { %3254 = vst.msk [vmem:[#allocation2 + $0x1e0] sm:$0xff] %vm3223_vm5, %v3134_v32  ;;  %3846 = vst.msk [vmem:[#allocation2 + $0x148] sm:$0xff] %vm3223_vm5, %v3134_v32  ;;  %v12299_v49 = vpop.permute.xlu1 %2498  ;;  %3362 = vrot.lane.b32.xlu1 %v2921_v26, %s9562_s0  ;;  %v2926_v26 = vmax.f32 %v2782_v43, 0.0  ;;  %v2939_v62 = vmax.f32 %v2795_v55, 0.0 }
 0x35c   :  { %3573 = vrot.lane.b32.xlu0 %v2923_v41, %s9561_s25 }
 0x35e   :  { %v3140_v36 = vpop.permute.xlu0 %3139 }
 0x35f   :  { %3257 = vst.msk [vmem:[#allocation2 + $0x210] sm:$0xff] %vm3223_vm5, %v3140_v36  ;;  %3849 = vst.msk [vmem:[#allocation2 + $0x178] sm:$0xff] %vm3223_vm5, %v3140_v36  ;;  %v12308_v51 = vpop.permute.xlu1 %2496  ;;  %3360 = vrot.lane.b32.xlu1 %v2920_v40, %s9562_s0  ;;  %v2794_v36 = vmax.f32 %v11915_v53, %v12278_v17 }
 0x360   :  { %3571 = vrot.lane.b32.xlu0 %v2922_v35, %s9561_s25 }
 0x362   :  { %v2455_v39 = vpop.permute.xlu0 %2454 }
 0x363   :  { %v2785_v63 = vmax.f32 %v11988_v23, %v2455_v39  ;;  %v3325_v61 = vpop.permute.xlu1 %3324  ;;  %3364 = vrot.lane.b32.xlu1 %v2924_v4, %s9562_s0  ;;  %v2787_v23 = vmax.f32 %v11826_v56, %v12238_v48  ;;  %v2791_v56 = vmax.f32 %v14845_v24, %v12261_v2  ;;  %v2938_v4 = vmax.f32 %v2794_v36, 0.0  ;;  %v14848_v24 = vld [vmem:[#allocation125_spill] sm:$0xff]  ;;  %v14853_v36 = vld [vmem:[#allocation38_spill] sm:$0xff] }
 0x364   :  { %3475 = vst.msk [vmem:[#allocation2] sm:$0xff] %vm3474_vm6, %v3325_v61  ;;  %3366 = vrot.lane.b32.xlu0 %v2925_v27, %s9562_s0  ;;  %v14847_v61 = vld [vmem:[#allocation35_spill] sm:$0xff] }
 0x365   :  { %v2929_v22 = vmax.f32 %v2785_v63, 0.0  ;;  %v2931_v30 = vmax.f32 %v2787_v23, 0.0  ;;  %v2935_v41 = vmax.f32 %v2791_v56, 0.0  ;;  %v12383_v56 = vmax.f32 %v14848_v24, %v11924_v9  ;;  %v14849_v9 = vld [vmem:[#allocation103_spill] sm:$0xff] }
 0x366   :  { %v2453_v31 = vpop.permute.xlu0 %2452 }
 0x367   :  { %3577 = vrot.lane.b32.xlu1 %v2927_v60, %s9561_s25  ;;  %v2784_v38 = vmax.f32 %v11999_v11, %v2453_v31 }
 0x368   :  { %3581 = vrot.lane.b32.xlu0 %v2929_v22, %s9561_s25 }
 0x369   :  { %v2928_v6 = vmax.f32 %v2784_v38, 0.0 }
 0x36a   :  { %v2457_v45 = vpop.permute.xlu0 %2456 }
 0x36b   :  { %3370 = vrot.lane.b32.xlu1 %v2927_v60, %s9562_s0 }
 0x36c   :  { %3374 = vrot.lane.b32.xlu0 %v2929_v22, %s9562_s0 }
 0x36e   :  { %v2461_v40 = vpop.permute.xlu0 %2460 }
 0x36f   :  { %v2788_v29 = vmax.f32 %v12030_v1, %v2461_v40  ;;  %3575 = vrot.lane.b32.xlu1 %v2926_v26, %s9561_s25  ;;  %v2793_v1 = vmax.f32 %v11886_v33, %v12265_v0  ;;  %v2786_v33 = vmax.f32 %v12017_v50, %v2457_v45  ;;  %v14846_v50 = vld [vmem:[#allocation65_spill] sm:$0xff] }
 0x370   :  { %3378 = vrot.lane.b32.xlu0 %v2931_v30, %s9562_s0  ;;  %v2789_v53 = vmax.f32 %v14846_v50, %v12253_v5 }
 0x371   :  { %v2932_v21 = vmax.f32 %v2788_v29, 0.0  ;;  %v2937_v2 = vmax.f32 %v2793_v1, 0.0  ;;  %v2930_v52 = vmax.f32 %v2786_v33, 0.0 }
 0x372   :  { %v2465_v48 = vpop.permute.xlu0 %2464  ;;  %v2933_v60 = vmax.f32 %v2789_v53, 0.0  ;;  %v14856_v53 = vld [vmem:[#allocation112_spill] sm:$0xff] }
 0x373   :  { %3368 = vrot.lane.b32.xlu1 %v2926_v26, %s9562_s0  ;;  %v2790_v45 = vmax.f32 %v12040_v58, %v2465_v48 }
 0x374   :  { %3380 = vrot.lane.b32.xlu0 %v2932_v21, %s9562_s0 }
 0x375   :  { %v3331_v12 = vpop.permute.xlu1 %3330 }
 0x376   :  { %3478 = vst.msk [vmem:[#allocation2 + $0x30] sm:$0xff] %vm3474_vm6, %v3331_v12  ;;  %v2469_v32 = vpop.permute.xlu0 %2468 }
 0x377   :  { %3579 = vrot.lane.b32.xlu1 %v2928_v6, %s9561_s25  ;;  %v2792_v29 = vmax.f32 %v12051_v15, %v2469_v32  ;;  %v14850_v32 = vld [vmem:[#allocation109_spill] sm:$0xff] }
 0x378   :  { %3593 = vrot.lane.b32.xlu0 %v2935_v41, %s9561_s25 }
 0x379   :  { %v3536_v11 = vpop.permute.xlu1 %3535 }
 0x37a   :  { %3686 = vst.msk [vmem:[#allocation2] sm:$0xff] %vm3685_vm7, %v3536_v11  ;;  %v2479_v35 = vpop.permute.xlu0 %2478  ;;  %v14851_v11 = vld [vmem:[#allocation23_spill] sm:$0xff] }
 0x37b   :  { %3372 = vrot.lane.b32.xlu1 %v2928_v6, %s9562_s0  ;;  %v2797_v6 = vmax.f32 %v12068_v28, %v2479_v35 }
 0x37c   :  { %3386 = vrot.lane.b32.xlu0 %v2937_v2, %s9562_s0  ;;  %v12403_v2 = vmax.f32 %v14851_v11, %v14850_v32  ;;  %v14867_v11 = vld [vmem:[#allocation49_spill] sm:$0xff] }
 0x37d   :  { %v3329_v0 = vpop.permute.xlu1 %3328  ;;  %v2941_v41 = vmax.f32 %v2797_v6, 0.0 }
 0x37e   :  { %3477 = vst.msk [vmem:[#allocation2 + $0x20] sm:$0xff] %vm3474_vm6, %v3329_v0  ;;  %v2477_v44 = vpop.permute.xlu0 %2476 }
 0x37f   :  { %3585 = vrot.lane.b32.xlu1 %v2931_v30, %s9561_s25  ;;  %v2796_v39 = vmax.f32 %v12085_v25, %v2477_v44 }
 0x380   :  { %3597 = vrot.lane.b32.xlu0 %v2939_v62, %s9561_s25 }
 0x381   :  { %v3335_v18 = vpop.permute.xlu1 %3334  ;;  %v2940_v31 = vmax.f32 %v2796_v39, 0.0  ;;  %v4048_v32 = vld [vmem:[#allocation2] sm:$0xff] }
 0x382   :  { %3480 = vst.msk [vmem:[#allocation2 + $0x50] sm:$0xff] %vm3474_vm6, %v3335_v18  ;;  %v2483_v27 = vpop.permute.xlu0 %2482  ;;  %v14854_v18 = vld [vmem:[#allocation82_spill] sm:$0xff] }
 0x383   :  { %3583 = vrot.lane.b32.xlu1 %v2930_v52, %s9561_s25  ;;  %v2799_v55 = vmax.f32 %v12097_v14, %v2483_v27  ;;  %v14852_v14 = vld [vmem:[#allocation138_spill] sm:$0xff] }
 0x384   :  { %3388 = vrot.lane.b32.xlu0 %v2938_v4, %s9562_s0  ;;  %v12420_v44 = vmax.f32 %v14853_v36, %v14852_v14 }
 0x385   :  { %v3333_v17 = vpop.permute.xlu1 %3332  ;;  %v12411_v0 = vmax.f32 %v2799_v55, 0.0 }
 0x386   :  { %3479 = vst.msk [vmem:[#allocation2 + $0x40] sm:$0xff] %vm3474_vm6, %v3333_v17  ;;  %v2481_v63 = vpop.permute.xlu0 %2480  ;;  %v14857_v17 = vld [vmem:[#allocation26_spill] sm:$0xff] }
 0x387   :  { %3376 = vrot.lane.b32.xlu1 %v2930_v52, %s9562_s0  ;;  %v2798_v5 = vmax.f32 %v12112_v19, %v2481_v63  ;;  %v2934_v19 = vmax.f32 %v2790_v45, 0.0  ;;  %v12434_v39 = vmax.f32 %v14857_v17, %v14856_v53  ;;  %v14861_v45 = vld [vmem:[#allocation9_spill] sm:$0xff] }
 0x388   :  { %1662 = vrot.lane.b32.xlu0 %v14847_v61, %s9561_s25 }
 0x389   :  { %v3339_v22 = vpop.permute.xlu1 %3338  ;;  %v12372_v30 = vmax.f32 %v2798_v5, 0.0  ;;  %v14860_v5 = vld [vmem:[#allocation47_spill] sm:$0xff] }
 0x38a   :  { %3482 = vst.msk [vmem:[#allocation2 + $0x70] sm:$0xff] %vm3474_vm6, %v3339_v22  ;;  %v12361_v43 = vpop.permute.xlu0 %2484  ;;  %v14859_v22 = vld [vmem:[#allocation25_spill] sm:$0xff] }
 0x38b   :  { %3589 = vrot.lane.b32.xlu1 %v2933_v60, %s9561_s25 }
 0x38c   :  { %3599 = vrot.lane.b32.xlu0 %v2940_v31, %s9561_s25 }
 0x38d   :  { %v3544_v25 = vpop.permute.xlu1 %3543 }
 0x38e   :  { %3690 = vst.msk [vmem:[#allocation2 + $0x40] sm:$0xff] %vm3685_vm7, %v3544_v25  ;;  %v12367_v23 = vpop.permute.xlu0 %2488 }
 0x38f   :  { %3382 = vrot.lane.b32.xlu1 %v2933_v60, %s9562_s0  ;;  %v14858_v60 = vld [vmem:[#allocation110_spill] sm:$0xff] }
 0x390   :  { %3392 = vrot.lane.b32.xlu0 %v2940_v31, %s9562_s0  ;;  %v12438_v31 = vmax.f32 %v14859_v22, %v14858_v60  ;;  %v14872_v60 = vld [vmem:[#allocation135_spill] sm:$0xff] }
 0x391   :  { %v3337_v26 = vpop.permute.xlu1 %3336 }
 0x392   :  { %3481 = vst.msk [vmem:[#allocation2 + $0x60] sm:$0xff] %vm3474_vm6, %v3337_v26  ;;  %v12375_v40 = vpop.permute.xlu0 %2494  ;;  %v12450_v26 = vmax.f32 %v14861_v45, %v14860_v5  ;;  %v14873_v5 = vld [vmem:[#allocation11_spill] sm:$0xff] }
 0x393   :  { %3587 = vrot.lane.b32.xlu1 %v2932_v21, %s9561_s25  ;;  %v2936_v21 = vmax.f32 %v2792_v29, 0.0  ;;  %v14862_v29 = vld [vmem:[#allocation62_spill] sm:$0xff]  ;;  %v14874_v45 = vld [vmem:[#allocation39_spill] sm:$0xff] }
 0x394   :  { %3603 = vrot.lane.b32.xlu0 %v12372_v30, %s9561_s25 }
 0x395   :  { %v3550_v38 = vpop.permute.xlu1 %3549 }
 0x396   :  { %3693 = vst.msk [vmem:[#allocation2 + $0x70] sm:$0xff] %vm3685_vm7, %v3550_v38  ;;  %v12386_v58 = vpop.permute.xlu0 %2492  ;;  %v14863_v38 = vld [vmem:[#allocation10_spill] sm:$0xff] }
 0x397   :  { %3591 = vrot.lane.b32.xlu1 %v2934_v19, %s9561_s25  ;;  %v12454_v24 = vmax.f32 %v14863_v38, %v14862_v29  ;;  %v14875_v38 = vld [vmem:[#allocation136_spill] sm:$0xff] }
 0x398   :  { %2500 = vrot.lane.b32.xlu0 %v12383_v56, %s9562_s0 }
 0x399   :  { %v3343_v48 = vpop.permute.xlu1 %3342 }
 0x39a   :  { %3484 = vst.msk [vmem:[#allocation2 + $0x90] sm:$0xff] %vm3474_vm6, %v3343_v48  ;;  %v3327_v15 = vpop.permute.xlu0 %3326  ;;  %v14864_v48 = vld [vmem:[#allocation137_spill] sm:$0xff] }
 0x39b   :  { %3476 = vst.msk [vmem:[#allocation2 + $0x10] sm:$0xff] %vm3474_vm6, %v3327_v15  ;;  %3384 = vrot.lane.b32.xlu1 %v2936_v21, %s9562_s0  ;;  %v12466_v6 = vmax.f32 %v14864_v48, %v11918_v34  ;;  %v14876_v48 = vld [vmem:[#allocation124_spill] sm:$0xff] }
 0x39c   :  { %3143 = vrot.lane.b32.xlu0 %v14849_v9, %s9563_s17 }
 0x39d   :  { %v3548_v12 = vpop.permute.xlu1 %3547 }
 0x39e   :  { %3692 = vst.msk [vmem:[#allocation2 + $0x60] sm:$0xff] %vm3685_vm7, %v3548_v12  ;;  %v3538_v1 = vpop.permute.xlu0 %3537  ;;  %v14865_v12 = vld [vmem:[#allocation33_spill] sm:$0xff] }
 0x39f   :  { %3687 = vst.msk [vmem:[#allocation2 + $0x10] sm:$0xff] %vm3685_vm7, %v3538_v1  ;;  %3390 = vrot.lane.b32.xlu1 %v2939_v62, %s9562_s0 }
 0x3a0   :  { %3394 = vrot.lane.b32.xlu0 %v2941_v41, %s9562_s0 }
 0x3a1   :  { %v3341_v28 = vpop.permute.xlu1 %3340 }
 0x3a2   :  { %3483 = vst.msk [vmem:[#allocation2 + $0x80] sm:$0xff] %vm3474_vm6, %v3341_v28  ;;  %v3542_v35 = vpop.permute.xlu0 %3541  ;;  %v14866_v28 = vld [vmem:[#allocation34_spill] sm:$0xff] }
 0x3a3   :  { %3689 = vst.msk [vmem:[#allocation2 + $0x30] sm:$0xff] %vm3685_vm7, %v3542_v35  ;;  %3595 = vrot.lane.b32.xlu1 %v2938_v4, %s9561_s25  ;;  %v14855_v4 = vld [vmem:[#allocation37_spill] sm:$0xff] }
 0x3a4   :  { %2358 = vrot.lane.b32.xlu0 %v12403_v2, %s9562_s0  ;;  %v12424_v27 = vmax.f32 %v14855_v4, %v14854_v18  ;;  %v14868_v35 = vld [vmem:[#allocation41_spill] sm:$0xff]  ;;  %v14870_v18 = vld [vmem:[#allocation52_spill] sm:$0xff] }
 0x3a5   :  { %v3554_v33 = vpop.permute.xlu1 %3553 }
 0x3a6   :  { %3695 = vst.msk [vmem:[#allocation2 + $0x90] sm:$0xff] %vm3685_vm7, %v3554_v33  ;;  %v3540_v62 = vpop.permute.xlu0 %3539  ;;  %v14869_v33 = vld [vmem:[#allocation128_spill] sm:$0xff] }
 0x3a7   :  { %3688 = vst.msk [vmem:[#allocation2 + $0x20] sm:$0xff] %vm3685_vm7, %v3540_v62  ;;  %3601 = vrot.lane.b32.xlu1 %v2941_v41, %s9561_s25  ;;  %v12486_v62 = vmax.f32 %v14869_v33, %v14868_v35 }
 0x3a8   :  { %3605 = vrot.lane.b32.xlu0 %v12411_v0, %s9561_s25 }
 0x3a9   :  { %v3552_v52 = vpop.permute.xlu1 %3551 }
 0x3aa   :  { %3694 = vst.msk [vmem:[#allocation2 + $0x80] sm:$0xff] %vm3685_vm7, %v3552_v52  ;;  %v3546_v50 = vpop.permute.xlu0 %3545  ;;  %v4050_v52 = vld [vmem:[#allocation2 + $0x10] sm:$0xff] }
 0x3ab   :  { %3691 = vst.msk [vmem:[#allocation2 + $0x50] sm:$0xff] %vm3685_vm7, %v3546_v50  ;;  %2384 = vrot.lane.b32.xlu1 %v12420_v44, %s9562_s0  ;;  %v14871_v50 = vld [vmem:[#allocation139_spill] sm:$0xff] }
 0x3ac   :  { %2386 = vrot.lane.b32.xlu0 %v12424_v27, %s9562_s0  ;;  %v12498_v53 = vmax.f32 %v14871_v50, %v11980_v57 }
 0x3ad   :  { %v3347_v63 = vpop.permute.xlu1 %3346 }
 0x3ae   :  { %3486 = vst.msk [vmem:[#allocation2 + $0xb0] sm:$0xff] %vm3474_vm6, %v3347_v63  ;;  %3917 = vst.msk [vmem:[#allocation2 + $0x18] sm:$0xff] %vm3474_vm6, %v3347_v63  ;;  %v3345_v25 = vpop.permute.xlu0 %3344  ;;  %v4052_v22 = vld [vmem:[#allocation2 + $0x20] sm:$0xff] }
 0x3af   :  { %3485 = vst.msk [vmem:[#allocation2 + $0xa0] sm:$0xff] %vm3474_vm6, %v3345_v25  ;;  %3916 = vst.msk [vmem:[#allocation2 + $0x8] sm:$0xff] %vm3474_vm6, %v3345_v25  ;;  %2360 = vrot.lane.b32.xlu1 %v12434_v39, %s9562_s0 }
 0x3b0   :  { %2362 = vrot.lane.b32.xlu0 %v12438_v31, %s9562_s0 }
 0x3b1   :  { %v3558_v19 = vpop.permute.xlu1 %3557 }
 0x3b2   :  { %3697 = vst.msk [vmem:[#allocation2 + $0xb0] sm:$0xff] %vm3685_vm7, %v3558_v19  ;;  %3999 = vst.msk [vmem:[#allocation2 + $0x18] sm:$0xff] %vm3685_vm7, %v3558_v19  ;;  %v3556_v21 = vpop.permute.xlu0 %3555  ;;  %v12510_v19 = vmax.f32 %v14874_v45, %v14873_v5 }
 0x3b3   :  { %3696 = vst.msk [vmem:[#allocation2 + $0xa0] sm:$0xff] %vm3685_vm7, %v3556_v21  ;;  %3998 = vst.msk [vmem:[#allocation2 + $0x8] sm:$0xff] %vm3685_vm7, %v3556_v21  ;;  %2524 = vrot.lane.b32.xlu1 %v12450_v26, %s9562_s0  ;;  %v4054_v21 = vld [vmem:[#allocation2 + $0x30] sm:$0xff] }
 0x3b4   :  { %2526 = vrot.lane.b32.xlu0 %v12454_v24, %s9562_s0 }
 0x3b5   :  { %v3351_v15 = vpop.permute.xlu1 %3350 }
 0x3b6   :  { %3488 = vst.msk [vmem:[#allocation2 + $0xd0] sm:$0xff] %vm3474_vm6, %v3351_v15  ;;  %3919 = vst.msk [vmem:[#allocation2 + $0x38] sm:$0xff] %vm3474_vm6, %v3351_v15  ;;  %v3562_v9 = vpop.permute.xlu0 %3561  ;;  %v12522_v15 = vmax.f32 %v14876_v48, %v11895_v20 }
 0x3b7   :  { %3699 = vst.msk [vmem:[#allocation2 + $0xd0] sm:$0xff] %vm3685_vm7, %v3562_v9  ;;  %4001 = vst.msk [vmem:[#allocation2 + $0x38] sm:$0xff] %vm3685_vm7, %v3562_v9  ;;  %2528 = vrot.lane.b32.xlu1 %v12466_v6, %s9562_s0 }
 0x3b8   :  { %1658 = vrot.lane.b32.xlu0 %v14865_v12, %s9561_s25 }
 0x3b9   :  { %v3349_v41 = vpop.permute.xlu1 %3348  ;;  %v4051_v55 = vld [vmem:[#allocation2 + $0x18] sm:$0xff] }
 0x3ba   :  { %3487 = vst.msk [vmem:[#allocation2 + $0xc0] sm:$0xff] %vm3474_vm6, %v3349_v41  ;;  %3918 = vst.msk [vmem:[#allocation2 + $0x28] sm:$0xff] %vm3474_vm6, %v3349_v41  ;;  %v3560_v34 = vpop.permute.xlu0 %3559  ;;  %v4049_v1 = vld [vmem:[#allocation2 + $0x8] sm:$0xff] }
 0x3bb   :  { %3698 = vst.msk [vmem:[#allocation2 + $0xc0] sm:$0xff] %vm3685_vm7, %v3560_v34  ;;  %4000 = vst.msk [vmem:[#allocation2 + $0x28] sm:$0xff] %vm3685_vm7, %v3560_v34  ;;  %1656 = vrot.lane.b32.xlu1 %v14866_v28, %s9561_s25  ;;  %4276 = vmatprep.mubr.f32.mxu0 %v4049_v1  ;;  %v4056_v1 = vld [vmem:[#allocation2 + $0x40] sm:$0xff] }
 0x3bc   :  { %1798 = vrot.lane.b32.xlu0 %v14867_v11, %s9561_s25  ;;  %4277 = vmatmul.mubr.f32.vlgmr.msra.gmra.mrb[144].mxu0 %v4048_v32  ;;  %v14877_v32 = vld [vmem:[#allocation8_spill] sm:$0xff] }
 0x3bd   :  { %v3355_v14 = vpop.permute.xlu1 %3354  ;;  %4282 = vmatprep.mubr.f32.mxu0 %v4051_v55  ;;  %v14878_v55 = vld [vmem:[#allocation58_spill] sm:$0xff] }
 0x3be   :  { %3490 = vst.msk [vmem:[#allocation2 + $0xf0] sm:$0xff] %vm3474_vm6, %v3355_v14  ;;  %3921 = vst.msk [vmem:[#allocation2 + $0x58] sm:$0xff] %vm3474_vm6, %v3355_v14  ;;  %v3566_v36 = vpop.permute.xlu0 %3565  ;;  %v4055_v57 = vld [vmem:[#allocation2 + $0x38] sm:$0xff]  ;;  %v12534_v35 = vmax.f32 %v14878_v55, %v12127_v13  ;;  %v2800_v14 = vmax.f32 %v12125_v37, %v12361_v43  ;;  %v14879_v13 = vld [vmem:[#allocation85_spill] sm:$0xff] }
 0x3bf   :  { %3701 = vst.msk [vmem:[#allocation2 + $0xf0] sm:$0xff] %vm3685_vm7, %v3566_v36  ;;  %4003 = vst.msk [vmem:[#allocation2 + $0x58] sm:$0xff] %vm3685_vm7, %v3566_v36  ;;  %2504 = vrot.lane.b32.xlu1 %v12486_v62, %s9562_s0  ;;  %v14887_v55 = vld [vmem:[#allocation14_spill] sm:$0xff] }
 0x3c0   :  { %1802 = vrot.lane.b32.xlu0 %v14870_v18, %s9561_s25  ;;  %4283 = vmatmul.mubr.f32.gmra.mrb[146].mxu0 %v4050_v52  ;;  %v4058_v52 = vld [vmem:[#allocation2 + $0x50] sm:$0xff]  ;;  %v12550_v50 = vmax.f32 %v2800_v14, 0.0 }
 0x3c1   :  { %v3353_v4 = vpop.permute.xlu1 %3352 }
 0x3c2   :  { %3489 = vst.msk [vmem:[#allocation2 + $0xe0] sm:$0xff] %vm3474_vm6, %v3353_v4  ;;  %3920 = vst.msk [vmem:[#allocation2 + $0x48] sm:$0xff] %vm3474_vm6, %v3353_v4  ;;  %v3564_v17 = vpop.permute.xlu0 %3563  ;;  %v4053_v63 = vld [vmem:[#allocation2 + $0x28] sm:$0xff]  ;;  %v14880_v4 = vld [vmem:[#allocation126_spill] sm:$0xff] }
 0x3c3   :  { %3700 = vst.msk [vmem:[#allocation2 + $0xe0] sm:$0xff] %vm3685_vm7, %v3564_v17  ;;  %4002 = vst.msk [vmem:[#allocation2 + $0x48] sm:$0xff] %vm3685_vm7, %v3564_v17  ;;  %1796 = vrot.lane.b32.xlu1 %v14872_v60, %s9561_s25  ;;  %4288 = vmatprep.mubr.f32.mxu0 %v4053_v63  ;;  %v12548_v37 = vmax.f32 %v14880_v4, %v14879_v13  ;;  %v14888_v4 = vld [vmem:[#allocation42_spill] sm:$0xff] }
 0x3c4   :  { %2532 = vrot.lane.b32.xlu0 %v12498_v53, %s9562_s0  ;;  %4289 = vmatmul.mubr.f32.gmra.mrb[148].mxu0 %v4052_v22 }
 0x3c5   :  { %v3359_v25 = vpop.permute.xlu1 %3358  ;;  %4294 = vmatprep.mubr.f32.mxu0 %v4055_v57  ;;  %v14881_v57 = vld [vmem:[#allocation86_spill] sm:$0xff] }
 0x3c6   :  { %3492 = vst.msk [vmem:[#allocation2 + $0x110] sm:$0xff] %vm3474_vm6, %v3359_v25  ;;  %3923 = vst.msk [vmem:[#allocation2 + $0x78] sm:$0xff] %vm3474_vm6, %v3359_v25  ;;  %v3570_v29 = vpop.permute.xlu0 %3569  ;;  %v4059_v20 = vld [vmem:[#allocation2 + $0x58] sm:$0xff]  ;;  %v14882_v25 = vld [vmem:[#allocation40_spill] sm:$0xff] }
 0x3c7   :  { %3703 = vst.msk [vmem:[#allocation2 + $0x110] sm:$0xff] %vm3685_vm7, %v3570_v29  ;;  %4005 = vst.msk [vmem:[#allocation2 + $0x78] sm:$0xff] %vm3685_vm7, %v3570_v29  ;;  %1800 = vrot.lane.b32.xlu1 %v14875_v38, %s9561_s25  ;;  %v12562_v5 = vmax.f32 %v14882_v25, %v14881_v57  ;;  %v14883_v29 = vld [vmem:[#allocation116_spill] sm:$0xff]  ;;  %v4066_v25 = vld [vmem:[#allocation2 + $0x90] sm:$0xff] }
 0x3c8   :  { %2390 = vrot.lane.b32.xlu0 %v12510_v19, %s9562_s0  ;;  %4295 = vmatmul.mubr.f32.gmra.mrb[150].mxu0 %v4054_v21  ;;  %v14884_v21 = vld [vmem:[#allocation30_spill] sm:$0xff] }
 0x3c9   :  { %v3357_v9 = vpop.permute.xlu1 %3356  ;;  %v12566_v48 = vmax.f32 %v14884_v21, %v14883_v29  ;;  %v14893_v29 = vld [vmem:[#allocation27_spill] sm:$0xff] }
 0x3ca   :  { %3491 = vst.msk [vmem:[#allocation2 + $0x100] sm:$0xff] %vm3474_vm6, %v3357_v9  ;;  %3922 = vst.msk [vmem:[#allocation2 + $0x68] sm:$0xff] %vm3474_vm6, %v3357_v9  ;;  %v3568_v41 = vpop.permute.xlu0 %3567  ;;  %v4057_v34 = vld [vmem:[#allocation2 + $0x48] sm:$0xff] }
 0x3cb   :  { %3702 = vst.msk [vmem:[#allocation2 + $0x100] sm:$0xff] %vm3685_vm7, %v3568_v41  ;;  %4004 = vst.msk [vmem:[#allocation2 + $0x68] sm:$0xff] %vm3685_vm7, %v3568_v41  ;;  %2502 = vrot.lane.b32.xlu1 %v12522_v15, %s9562_s0  ;;  %4300 = vmatprep.mubr.f32.mxu0 %v4057_v34  ;;  %v4062_v41 = vld [vmem:[#allocation2 + $0x70] sm:$0xff]  ;;  %v14885_v34 = vld [vmem:[#allocation119_spill] sm:$0xff] }
 0x3cc   :  { %3145 = vrot.lane.b32.xlu0 %v14877_v32, %s9563_s17  ;;  %4301 = vmatmul.mubr.f32.gmra.mrb[152].mxu0 %v4056_v1  ;;  %v14886_v1 = vld [vmem:[#allocation28_spill] sm:$0xff] }
 0x3cd   :  { %v3363_v33 = vpop.permute.xlu1 %3362  ;;  %4306 = vmatprep.mubr.f32.mxu0 %v4059_v20  ;;  %v12578_v32 = vmax.f32 %v14886_v1, %v14885_v34  ;;  %v14895_v34 = vld [vmem:[#allocation43_spill] sm:$0xff] }
 0x3ce   :  { %3494 = vst.msk [vmem:[#allocation2 + $0x130] sm:$0xff] %vm3474_vm6, %v3363_v33  ;;  %3925 = vst.msk [vmem:[#allocation2 + $0x98] sm:$0xff] %vm3474_vm6, %v3363_v33  ;;  %v3574_v36 = vpop.permute.xlu0 %3573  ;;  %v4063_v22 = vld [vmem:[#allocation2 + $0x78] sm:$0xff]  ;;  %v12582_v33 = vmax.f32 %v14887_v55, %v12180_v10 }
 0x3cf   :  { %3705 = vst.msk [vmem:[#allocation2 + $0x130] sm:$0xff] %vm3685_vm7, %v3574_v36  ;;  %4007 = vst.msk [vmem:[#allocation2 + $0x98] sm:$0xff] %vm3685_vm7, %v3574_v36  ;;  %2530 = vrot.lane.b32.xlu1 %v12534_v35, %s9562_s0  ;;  %v14896_v55 = vld [vmem:[#allocation15_spill] sm:$0xff] }
 0x3d0   :  { %3396 = vrot.lane.b32.xlu0 %v12372_v30, %s9562_s0  ;;  %4307 = vmatmul.mubr.f32.gmra.mrb[154].mxu0 %v4058_v52  ;;  %v4060_v30 = vld [vmem:[#allocation2 + $0x60] sm:$0xff] }
 0x3d1   :  { %v3361_v43 = vpop.permute.xlu1 %3360  ;;  %v4064_v52 = vld [vmem:[#allocation2 + $0x80] sm:$0xff] }
 0x3d2   :  { %3493 = vst.msk [vmem:[#allocation2 + $0x120] sm:$0xff] %vm3474_vm6, %v3361_v43  ;;  %3924 = vst.msk [vmem:[#allocation2 + $0x88] sm:$0xff] %vm3474_vm6, %v3361_v43  ;;  %v3572_v17 = vpop.permute.xlu0 %3571  ;;  %v4061_v63 = vld [vmem:[#allocation2 + $0x68] sm:$0xff]  ;;  %v14889_v43 = vld [vmem:[#allocation131_spill] sm:$0xff] }
 0x3d3   :  { %3704 = vst.msk [vmem:[#allocation2 + $0x120] sm:$0xff] %vm3685_vm7, %v3572_v17  ;;  %4006 = vst.msk [vmem:[#allocation2 + $0x88] sm:$0xff] %vm3685_vm7, %v3572_v17  ;;  %2506 = vrot.lane.b32.xlu1 %v12548_v37, %s9562_s0  ;;  %4312 = vmatprep.mubr.f32.mxu0 %v4061_v63  ;;  %v12592_v10 = vmax.f32 %v14889_v43, %v14888_v4  ;;  %v14890_v63 = vld [vmem:[#allocation46_spill] sm:$0xff]  ;;  %v14899_v43 = vld [vmem:[#allocation64_spill] sm:$0xff] }
 0x3d4   :  { %3607 = vrot.lane.b32.xlu0 %v12550_v50, %s9561_s25  ;;  %4313 = vmatmul.mubr.f32.gmra.mrb[156].mxu0 %v4060_v30  ;;  %v14891_v30 = vld [vmem:[#allocation134_spill] sm:$0xff] }
 0x3d5   :  { %v3365_v45 = vpop.permute.xlu1 %3364  ;;  %4318 = vmatprep.mubr.f32.mxu0 %v4063_v22  ;;  %v12596_v22 = vmax.f32 %v14891_v30, %v14890_v63 }
 0x3d6   :  { %3495 = vst.msk [vmem:[#allocation2 + $0x140] sm:$0xff] %vm3474_vm6, %v3365_v45  ;;  %3926 = vst.msk [vmem:[#allocation2 + $0xa8] sm:$0xff] %vm3474_vm6, %v3365_v45  ;;  %v3367_v9 = vpop.permute.xlu0 %3366  ;;  %v4067_v13 = vld [vmem:[#allocation2 + $0x98] sm:$0xff] }
 0x3d7   :  { %3496 = vst.msk [vmem:[#allocation2 + $0x150] sm:$0xff] %vm3474_vm6, %v3367_v9  ;;  %3927 = vst.msk [vmem:[#allocation2 + $0xb8] sm:$0xff] %vm3474_vm6, %v3367_v9  ;;  %2388 = vrot.lane.b32.xlu1 %v12562_v5, %s9562_s0  ;;  %v14892_v45 = vld [vmem:[#allocation115_spill] sm:$0xff] }
 0x3d8   :  { %2368 = vrot.lane.b32.xlu0 %v12566_v48, %s9562_s0  ;;  %4319 = vmatmul.mubr.f32.gmra.mrb[158].mxu0 %v4062_v41  ;;  %v12610_v21 = vmax.f32 %v14893_v29, %v14892_v45  ;;  %v14894_v41 = vld [vmem:[#allocation12_spill] sm:$0xff]  ;;  %v2802_v45 = vmax.f32 %v12146_v54, %v12367_v23  ;;  %v2801_v23 = vmax.f32 %v11928_v42, %v12286_v8 }
 0x3d9   :  { %v3578_v20 = vpop.permute.xlu1 %3577  ;;  %v12614_v1 = vmax.f32 %v14895_v34, %v14894_v41  ;;  %v14901_v41 = vld [vmem:[#allocation7_spill] sm:$0xff]  ;;  %v14902_v34 = vld [vmem:[#allocation44_spill] sm:$0xff] }
 0x3da   :  { %3707 = vst.msk [vmem:[#allocation2 + $0x150] sm:$0xff] %vm3685_vm7, %v3578_v20  ;;  %4009 = vst.msk [vmem:[#allocation2 + $0xb8] sm:$0xff] %vm3685_vm7, %v3578_v20  ;;  %v3582_v14 = vpop.permute.xlu0 %3581  ;;  %v4065_v36 = vld [vmem:[#allocation2 + $0x88] sm:$0xff]  ;;  %v2945_v42 = vmax.f32 %v2801_v23, 0.0 }
 0x3db   :  { %2364 = vrot.lane.b32.xlu1 %v12578_v32, %s9562_s0  ;;  %4324 = vmatprep.mubr.f32.mxu0 %v4065_v36  ;;  %v14906_v23 = vld [vmem:[#allocation21_spill] sm:$0xff] }
 0x3dc   :  { %2536 = vrot.lane.b32.xlu0 %v12582_v33, %s9562_s0  ;;  %4325 = vmatmul.mubr.f32.gmra.mrb[160].mxu0 %v4064_v52  ;;  %v14897_v52 = vld [vmem:[#allocation130_spill] sm:$0xff] }
 0x3dd   :  { %v3371_v17 = vpop.permute.xlu1 %3370  ;;  %4330 = vmatprep.mubr.f32.mxu0 %v4067_v13  ;;  %v14898_v13 = vld [vmem:[#allocation16_spill] sm:$0xff] }
 0x3de   :  { %3498 = vst.msk [vmem:[#allocation2 + $0x170] sm:$0xff] %vm3474_vm6, %v3371_v17  ;;  %3929 = vst.msk [vmem:[#allocation2 + $0xd8] sm:$0xff] %vm3474_vm6, %v3371_v17  ;;  %v3375_v57 = vpop.permute.xlu0 %3374  ;;  %v2730_v4 = vmax.f32 %v14898_v13, %v14897_v52  ;;  %v12632_v17 = vmax.f32 %v14899_v43, %v12002_v16  ;;  %v4070_v52 = vld [vmem:[#allocation2 + $0xb0] sm:$0xff]  ;;  %v4072_v43 = vld [vmem:[#allocation2 + $0xc0] sm:$0xff] }
 0x3df   :  { %3709 = vst.msk [vmem:[#allocation2 + $0x170] sm:$0xff] %vm3685_vm7, %v3582_v14  ;;  %4011 = vst.msk [vmem:[#allocation2 + $0xd8] sm:$0xff] %vm3685_vm7, %v3582_v14  ;;  %2508 = vrot.lane.b32.xlu1 %v12592_v10, %s9562_s0  ;;  %v12626_v14 = vmax.f32 %v14896_v55, %v12172_v46  ;;  %v14900_v46 = vld [vmem:[#allocation129_spill] sm:$0xff]  ;;  %v2946_v55 = vmax.f32 %v2802_v45, 0.0 }
 0x3e0   :  { %3500 = vst.msk [vmem:[#allocation2 + $0x190] sm:$0xff] %vm3474_vm6, %v3375_v57  ;;  %3931 = vst.msk [vmem:[#allocation2 + $0xf8] sm:$0xff] %vm3474_vm6, %v3375_v57  ;;  %2512 = vrot.lane.b32.xlu0 %v12596_v22, %s9562_s0  ;;  %4331 = vmatmul.mubr.f32.gmra.mrb[162].mxu0 %v4066_v25  ;;  %v12644_v30 = vmax.f32 %v14900_v46, %v11990_v47  ;;  %v2874_v25 = vmax.f32 %v2730_v4, 0.0 }
 0x3e1   :  { %v3576_v9 = vpop.permute.xlu1 %3575  ;;  %v4071_v47 = vld [vmem:[#allocation2 + $0xb8] sm:$0xff] }
 0x3e2   :  { %3706 = vst.msk [vmem:[#allocation2 + $0x140] sm:$0xff] %vm3685_vm7, %v3576_v9  ;;  %4008 = vst.msk [vmem:[#allocation2 + $0xa8] sm:$0xff] %vm3685_vm7, %v3576_v9  ;;  %v3379_v20 = vpop.permute.xlu0 %3378  ;;  %v4068_v9 = vld [vmem:[#allocation2 + $0xa0] sm:$0xff] }
 0x3e3   :  { %3502 = vst.msk [vmem:[#allocation2 + $0x1b0] sm:$0xff] %vm3474_vm6, %v3379_v20  ;;  %3933 = vst.msk [vmem:[#allocation2 + $0x118] sm:$0xff] %vm3474_vm6, %v3379_v20  ;;  %2366 = vrot.lane.b32.xlu1 %v12610_v21, %s9562_s0  ;;  %v12657_v20 = vmax.f32 %v14902_v34, %v14901_v41  ;;  %v2806_v34 = vmax.f32 %v11975_v7, %v12308_v51  ;;  %v2805_v7 = vmax.f32 %v12159_v59, %v12375_v40  ;;  %v14909_v59 = vld [vmem:[#allocation79_spill] sm:$0xff]  ;;  %v14910_v40 = vld [vmem:[#allocation132_spill] sm:$0xff] }
 0x3e4   :  { %2394 = vrot.lane.b32.xlu0 %v12614_v1, %s9562_s0 }
 0x3e5   :  { %v3369_v36 = vpop.permute.xlu1 %3368 }
 0x3e6   :  { %3497 = vst.msk [vmem:[#allocation2 + $0x160] sm:$0xff] %vm3474_vm6, %v3369_v36  ;;  %3928 = vst.msk [vmem:[#allocation2 + $0xc8] sm:$0xff] %vm3474_vm6, %v3369_v36  ;;  %v3381_v63 = vpop.permute.xlu0 %3380  ;;  %v4075_v46 = vld [vmem:[#allocation2 + $0xd8] sm:$0xff] }
 0x3e7   :  { %3503 = vst.msk [vmem:[#allocation2 + $0x1c0] sm:$0xff] %vm3474_vm6, %v3381_v63  ;;  %3934 = vst.msk [vmem:[#allocation2 + $0x128] sm:$0xff] %vm3474_vm6, %v3381_v63  ;;  %2534 = vrot.lane.b32.xlu1 %v12626_v14, %s9562_s0  ;;  %v14903_v63 = vld [vmem:[#allocation90_spill] sm:$0xff] }
 0x3e8   :  { %2538 = vrot.lane.b32.xlu0 %v12632_v17, %s9562_s0 }
 0x3e9   :  { %v3580_v16 = vpop.permute.xlu1 %3579  ;;  %v4069_v57 = vld [vmem:[#allocation2 + $0xa8] sm:$0xff] }
 0x3ea   :  { %3708 = vst.msk [vmem:[#allocation2 + $0x160] sm:$0xff] %vm3685_vm7, %v3580_v16  ;;  %4010 = vst.msk [vmem:[#allocation2 + $0xc8] sm:$0xff] %vm3685_vm7, %v3580_v16  ;;  %4336 = vmatprep.mubr.f32.mxu0 %v4069_v57  ;;  %v12650_v29 = vpop.permute.xlu0 %3593  ;;  %v14904_v57 = vld [vmem:[#allocation106_spill] sm:$0xff] }
 0x3eb   :  { %2510 = vrot.lane.b32.xlu1 %v12644_v30, %s9562_s0  ;;  %4337 = vmatmul.mubr.f32.gmra.mrb[164].mxu0 %v4068_v9 }
 0x3ec   :  { %3149 = vrot.lane.b32.xlu0 %v2874_v25, %s9563_s17  ;;  %4342 = vmatprep.mubr.f32.mxu0 %v4071_v47  ;;  %v14905_v25 = vld [vmem:[#allocation20_spill] sm:$0xff]  ;;  %v4074_v47 = vld [vmem:[#allocation2 + $0xd0] sm:$0xff] }
 0x3ed   :  { %v3373_v54 = vpop.permute.xlu1 %3372  ;;  %v12677_v45 = vmax.f32 %v14905_v25, %v14904_v57  ;;  %v4078_v57 = vld [vmem:[#allocation2 + $0xf0] sm:$0xff]  ;;  %v14911_v25 = vld [vmem:[#allocation93_spill] sm:$0xff] }
 0x3ee   :  { %3499 = vst.msk [vmem:[#allocation2 + $0x180] sm:$0xff] %vm3474_vm6, %v3373_v54  ;;  %3930 = vst.msk [vmem:[#allocation2 + $0xe8] sm:$0xff] %vm3474_vm6, %v3373_v54  ;;  %v3387_v36 = vpop.permute.xlu0 %3386 }
 0x3ef   :  { %3506 = vst.msk [vmem:[#allocation2 + $0x1f0] sm:$0xff] %vm3474_vm6, %v3387_v36  ;;  %3937 = vst.msk [vmem:[#allocation2 + $0x158] sm:$0xff] %vm3474_vm6, %v3387_v36  ;;  %2392 = vrot.lane.b32.xlu1 %v12657_v20, %s9562_s0  ;;  %4343 = vmatmul.mubr.f32.gmra.mrb[166].mxu0 %v4070_v52 }
 0x3f0   :  { %3611 = vrot.lane.b32.xlu0 %v2946_v55, %s9561_s25  ;;  %v14907_v55 = vld [vmem:[#allocation113_spill] sm:$0xff] }
 0x3f1   :  { %v3586_v13 = vpop.permute.xlu1 %3585  ;;  %v4073_v4 = vld [vmem:[#allocation2 + $0xc8] sm:$0xff] }
 0x3f2   :  { %3711 = vst.msk [vmem:[#allocation2 + $0x190] sm:$0xff] %vm3685_vm7, %v3586_v13  ;;  %4013 = vst.msk [vmem:[#allocation2 + $0xf8] sm:$0xff] %vm3685_vm7, %v3586_v13  ;;  %4348 = vmatprep.mubr.f32.mxu0 %v4073_v4  ;;  %v3598_v8 = vpop.permute.xlu0 %3597  ;;  %v2950_v4 = vmax.f32 %v2806_v34, 0.0  ;;  %v14913_v34 = vld [vmem:[#allocation6_spill] sm:$0xff] }
 0x3f3   :  { %3717 = vst.msk [vmem:[#allocation2 + $0x1f0] sm:$0xff] %vm3685_vm7, %v3598_v8  ;;  %4019 = vst.msk [vmem:[#allocation2 + $0x158] sm:$0xff] %vm3685_vm7, %v3598_v8  ;;  %3147 = vrot.lane.b32.xlu1 %v14903_v63, %s9563_s17  ;;  %4349 = vmatmul.mubr.f32.gmra.mrb[168].mxu0 %v4072_v43  ;;  %v12709_v43 = vmax.f32 %v14910_v40, %v14909_v59  ;;  %v14916_v40 = vld [vmem:[#allocation98_spill] sm:$0xff] }
 0x3f4   :  { %3402 = vrot.lane.b32.xlu0 %v2945_v42, %s9562_s0  ;;  %4354 = vmatprep.mubr.f32.mxu0 %v4075_v46  ;;  %v2949_v46 = vmax.f32 %v2805_v7, 0.0 }
 0x3f5   :  { %v3584_v16 = vpop.permute.xlu1 %3583 }
 0x3f6   :  { %3710 = vst.msk [vmem:[#allocation2 + $0x180] sm:$0xff] %vm3685_vm7, %v3584_v16  ;;  %4012 = vst.msk [vmem:[#allocation2 + $0xe8] sm:$0xff] %vm3685_vm7, %v3584_v16  ;;  %v3389_v9 = vpop.permute.xlu0 %3388 }
 0x3f7   :  { %3507 = vst.msk [vmem:[#allocation2 + $0x200] sm:$0xff] %vm3474_vm6, %v3389_v9  ;;  %3938 = vst.msk [vmem:[#allocation2 + $0x168] sm:$0xff] %vm3474_vm6, %v3389_v9  ;;  %3398 = vrot.lane.b32.xlu1 %v12411_v0, %s9562_s0  ;;  %4355 = vmatmul.mubr.f32.gmra.mrb[170].mxu0 %v4074_v47  ;;  %v14908_v0 = vld [vmem:[#allocation29_spill] sm:$0xff]  ;;  %v14912_v9 = vld [vmem:[#allocation63_spill] sm:$0xff] }
 0x3f8   :  { %2348 = vrot.lane.b32.xlu0 %v12677_v45, %s9562_s0  ;;  %v12696_v36 = vmax.f32 %v14908_v0, %v14907_v55  ;;  %v2731_v47 = vmax.f32 %v14912_v9, %v14911_v25 }
 0x3f9   :  { %v3377_v41 = vpop.permute.xlu1 %3376  ;;  %v4079_v8 = vld [vmem:[#allocation2 + $0xf8] sm:$0xff] }
 0x3fa   :  { %3501 = vst.msk [vmem:[#allocation2 + $0x1a0] sm:$0xff] %vm3474_vm6, %v3377_v41  ;;  %3932 = vst.msk [vmem:[#allocation2 + $0x108] sm:$0xff] %vm3474_vm6, %v3377_v41  ;;  %v1663_v54 = vpop.permute.xlu0 %1662  ;;  %v2875_v0 = vmax.f32 %v2731_v47, 0.0  ;;  %v4082_v47 = vld [vmem:[#allocation2 + $0x110] sm:$0xff] }
 0x3fb   :  { %3609 = vrot.lane.b32.xlu1 %v2945_v42, %s9561_s25  ;;  %v4076_v42 = vld [vmem:[#allocation2 + $0xe0] sm:$0xff] }
 0x3fc   :  { %3153 = vrot.lane.b32.xlu0 %v14906_v23, %s9563_s17  ;;  %v14914_v23 = vld [vmem:[#allocation36_spill] sm:$0xff] }
 0x3fd   :  { %v3590_v52 = vpop.permute.xlu1 %3589  ;;  %v4077_v13 = vld [vmem:[#allocation2 + $0xe8] sm:$0xff]  ;;  %v12726_v55 = vmax.f32 %v14914_v23, %v14913_v34  ;;  %v4084_v23 = vld [vmem:[#allocation2 + $0x120] sm:$0xff] }
 0x3fe   :  { %3713 = vst.msk [vmem:[#allocation2 + $0x1b0] sm:$0xff] %vm3685_vm7, %v3590_v52  ;;  %4015 = vst.msk [vmem:[#allocation2 + $0x118] sm:$0xff] %vm3685_vm7, %v3590_v52  ;;  %4360 = vmatprep.mubr.f32.mxu0 %v4077_v13  ;;  %v3600_v51 = vpop.permute.xlu0 %3599  ;;  %v14915_v52 = vld [vmem:[#allocation66_spill] sm:$0xff] }
 0x3ff   :  { %3718 = vst.msk [vmem:[#allocation2 + $0x200] sm:$0xff] %vm3685_vm7, %v3600_v51  ;;  %4020 = vst.msk [vmem:[#allocation2 + $0x168] sm:$0xff] %vm3685_vm7, %v3600_v51  ;;  %2370 = vrot.lane.b32.xlu1 %v12696_v36, %s9562_s0  ;;  %4361 = vmatmul.mubr.f32.gmra.mrb[172].mxu0 %v4076_v42  ;;  %v2803_v13 = vmax.f32 %v14915_v52, %v12291_v3  ;;  %v12739_v51 = vmax.f32 %v14847_v61, %v1663_v54  ;;  %v4080_v61 = vld [vmem:[#allocation2 + $0x100] sm:$0xff]  ;;  %v14919_v52 = vld [vmem:[#allocation50_spill] sm:$0xff] }
 0x400   :  { %3615 = vrot.lane.b32.xlu0 %v2950_v4, %s9561_s25  ;;  %4366 = vmatprep.mubr.f32.mxu0 %v4079_v8 }
 0x401   :  { %v3383_v63 = vpop.permute.xlu1 %3382 }
 0x402   :  { %3504 = vst.msk [vmem:[#allocation2 + $0x1d0] sm:$0xff] %vm3474_vm6, %v3383_v63  ;;  %3935 = vst.msk [vmem:[#allocation2 + $0x138] sm:$0xff] %vm3474_vm6, %v3383_v63  ;;  %v3393_v16 = vpop.permute.xlu0 %3392  ;;  %v14917_v63 = vld [vmem:[#allocation19_spill] sm:$0xff] }
 0x403   :  { %3715 = vst.msk [vmem:[#allocation2 + $0x1d0] sm:$0xff] %vm3685_vm7, %v12650_v29  ;;  %4017 = vst.msk [vmem:[#allocation2 + $0x138] sm:$0xff] %vm3685_vm7, %v12650_v29  ;;  %2514 = vrot.lane.b32.xlu1 %v12709_v43, %s9562_s0  ;;  %4367 = vmatmul.mubr.f32.gmra.mrb[174].mxu0 %v4078_v57 }
 0x404   :  { %3509 = vst.msk [vmem:[#allocation2 + $0x220] sm:$0xff] %vm3474_vm6, %v3393_v16  ;;  %3940 = vst.msk [vmem:[#allocation2 + $0x188] sm:$0xff] %vm3474_vm6, %v3393_v16  ;;  %3406 = vrot.lane.b32.xlu0 %v2949_v46, %s9562_s0  ;;  %v12756_v46 = vmax.f32 %v14917_v63, %v14916_v40  ;;  %v14918_v16 = vld [vmem:[#allocation17_spill] sm:$0xff]  ;;  %v4088_v63 = vld [vmem:[#allocation2 + $0x140] sm:$0xff] }
 0x405   :  { %v3588_v41 = vpop.permute.xlu1 %3587  ;;  %v4083_v54 = vld [vmem:[#allocation2 + $0x118] sm:$0xff]  ;;  %v2804_v57 = vmax.f32 %v14918_v16, %v12386_v58 }
 0x406   :  { %3712 = vst.msk [vmem:[#allocation2 + $0x1a0] sm:$0xff] %vm3685_vm7, %v3588_v41  ;;  %4014 = vst.msk [vmem:[#allocation2 + $0x108] sm:$0xff] %vm3685_vm7, %v3588_v41  ;;  %v3604_v29 = vpop.permute.xlu0 %3603 }
 0x407   :  { %3720 = vst.msk [vmem:[#allocation2 + $0x220] sm:$0xff] %vm3685_vm7, %v3604_v29  ;;  %4022 = vst.msk [vmem:[#allocation2 + $0x188] sm:$0xff] %vm3685_vm7, %v3604_v29  ;;  %3400 = vrot.lane.b32.xlu1 %v12550_v50, %s9562_s0  ;;  %v2947_v50 = vmax.f32 %v2803_v13, 0.0  ;;  %v2948_v41 = vmax.f32 %v2804_v57, 0.0  ;;  %v2807_v13 = vmax.f32 %v14919_v52, %v12299_v49  ;;  %v14920_v49 = vld [vmem:[#allocation89_spill] sm:$0xff]  ;;  %v4091_v57 = vld [vmem:[#allocation2 + $0x158] sm:$0xff] }
 0x408   :  { %2380 = vrot.lane.b32.xlu0 %v12726_v55, %s9562_s0  ;;  %v4092_v52 = vld [vmem:[#allocation2 + $0x160] sm:$0xff] }
 0x409   :  { %v3592_v7 = vpop.permute.xlu1 %3591 }
 0x40a   :  { %3714 = vst.msk [vmem:[#allocation2 + $0x1c0] sm:$0xff] %vm3685_vm7, %v3592_v7  ;;  %4016 = vst.msk [vmem:[#allocation2 + $0x128] sm:$0xff] %vm3685_vm7, %v3592_v7  ;;  %v12743_v42 = vpop.permute.xlu0 %2500 }
 0x40b   :  { %3151 = vrot.lane.b32.xlu1 %v2875_v0, %s9563_s17  ;;  %v4087_v0 = vld [vmem:[#allocation2 + $0x138] sm:$0xff] }
 0x40c   :  { %2382 = vrot.lane.b32.xlu0 %v12739_v51, %s9562_s0 }
 0x40d   :  { %v3385_v8 = vpop.permute.xlu1 %3384  ;;  %v4081_v59 = vld [vmem:[#allocation2 + $0x108] sm:$0xff] }
 0x40e   :  { %3505 = vst.msk [vmem:[#allocation2 + $0x1e0] sm:$0xff] %vm3474_vm6, %v3385_v8  ;;  %3936 = vst.msk [vmem:[#allocation2 + $0x148] sm:$0xff] %vm3474_vm6, %v3385_v8  ;;  %4372 = vmatprep.mubr.f32.mxu0 %v4081_v59  ;;  %v3144_v3 = vpop.permute.xlu0 %3143  ;;  %v4086_v59 = vld [vmem:[#allocation2 + $0x130] sm:$0xff] }
 0x40f   :  { %3259 = vst.msk [vmem:[#allocation2 + $0x230] sm:$0xff] %vm3223_vm5, %v3144_v3  ;;  %3851 = vst.msk [vmem:[#allocation2 + $0x198] sm:$0xff] %vm3223_vm5, %v3144_v3  ;;  %3613 = vrot.lane.b32.xlu1 %v2947_v50, %s9561_s25  ;;  %4373 = vmatmul.mubr.f32.gmra.mrb[176].mxu0 %v4080_v61 }
 0x410   :  { %4378 = vmatprep.mubr.f32.mxu0 %v4083_v54  ;;  %3408 = vrot.lane.b32.xlu0 %v2950_v4, %s9562_s0 }
 0x411   :  { %v3391_v25 = vpop.permute.xlu1 %3390  ;;  %v4085_v4 = vld [vmem:[#allocation2 + $0x128] sm:$0xff] }
 0x412   :  { %3508 = vst.msk [vmem:[#allocation2 + $0x210] sm:$0xff] %vm3474_vm6, %v3391_v25  ;;  %3939 = vst.msk [vmem:[#allocation2 + $0x178] sm:$0xff] %vm3474_vm6, %v3391_v25  ;;  %v3395_v9 = vpop.permute.xlu0 %3394 }
 0x413   :  { %3510 = vst.msk [vmem:[#allocation2 + $0x230] sm:$0xff] %vm3474_vm6, %v3395_v9  ;;  %3941 = vst.msk [vmem:[#allocation2 + $0x198] sm:$0xff] %vm3474_vm6, %v3395_v9  ;;  %2350 = vrot.lane.b32.xlu1 %v12756_v46, %s9562_s0  ;;  %4379 = vmatmul.mubr.f32.gmra.mrb[178].mxu0 %v4082_v47 }
 0x414   :  { %4384 = vmatprep.mubr.f32.mxu0 %v4085_v4 }
 0x415   :  { %v3596_v34 = vpop.permute.xlu1 %3595 }
 0x416   :  { %3716 = vst.msk [vmem:[#allocation2 + $0x1e0] sm:$0xff] %vm3685_vm7, %v3596_v34  ;;  %4018 = vst.msk [vmem:[#allocation2 + $0x148] sm:$0xff] %vm3685_vm7, %v3596_v34  ;;  %v2359_v58 = vpop.permute.xlu0 %2358  ;;  %v14921_v34 = vld [vmem:[#allocation32_spill] sm:$0xff] }
 0x417   :  { %v2737_v29 = vmax.f32 %v12403_v2, %v2359_v58  ;;  %3404 = vrot.lane.b32.xlu1 %v2948_v41, %s9562_s0  ;;  %4385 = vmatmul.mubr.f32.gmra.mrb[180].mxu0 %v4084_v23  ;;  %v12784_v2 = vmax.f32 %v2807_v13, 0.0  ;;  %v4090_v41 = vld [vmem:[#allocation2 + $0x150] sm:$0xff]  ;;  %v4093_v58 = vld [vmem:[#allocation2 + $0x168] sm:$0xff] }
 0x418   :  { %4390 = vmatprep.mubr.f32.mxu0 %v4087_v0 }
 0x419   :  { %v12772_v7 = vmax.f32 %v2737_v29, 0.0  ;;  %v3602_v50 = vpop.permute.xlu1 %3601 }
 0x41a   :  { %3719 = vst.msk [vmem:[#allocation2 + $0x210] sm:$0xff] %vm3685_vm7, %v3602_v50  ;;  %4021 = vst.msk [vmem:[#allocation2 + $0x178] sm:$0xff] %vm3685_vm7, %v3602_v50  ;;  %v3606_v8 = vpop.permute.xlu0 %3605 }
 0x41b   :  { %3018 = vst.msk [vmem:[#allocation2 + $0x2d0] sm:$0xff] %vm2972_vm4, %v12772_v7  ;;  %3771 = vst.msk [vmem:[#allocation2 + $0x238] sm:$0xff] %vm2972_vm4, %v12772_v7  ;;  %3155 = vrot.lane.b32.xlu1 %v14920_v49, %s9563_s17  ;;  %4391 = vmatmul.mubr.f32.gmra.mrb[182].mxu0 %v4086_v59  ;;  %v4094_v59 = vld [vmem:[#allocation2 + $0x170] sm:$0xff]  ;;  %v4097_v49 = vld [vmem:[#allocation2 + $0x188] sm:$0xff] }
 0x41c   :  { %3721 = vst.msk [vmem:[#allocation2 + $0x230] sm:$0xff] %vm3685_vm7, %v3606_v8  ;;  %4023 = vst.msk [vmem:[#allocation2 + $0x198] sm:$0xff] %vm3685_vm7, %v3606_v8 }
 0x41d   :  { %v2385_v3 = vpop.permute.xlu1 %2384  ;;  %v4089_v61 = vld [vmem:[#allocation2 + $0x148] sm:$0xff] }
 0x41e   :  { %v2750_v54 = vmax.f32 %v12420_v44, %v2385_v3  ;;  %4396 = vmatprep.mubr.f32.mxu0 %v4089_v61  ;;  %v2387_v40 = vpop.permute.xlu0 %2386 }
 0x41f   :  { %v2751_v16 = vmax.f32 %v12424_v27, %v2387_v40  ;;  %3617 = vrot.lane.b32.xlu1 %v12784_v2, %s9561_s25  ;;  %4397 = vmatmul.mubr.f32.gmra.mrb[184].mxu0 %v4088_v63 }
 0x420   :  { %v2894_v25 = vmax.f32 %v2750_v54, 0.0  ;;  %4402 = vmatprep.mubr.f32.mxu0 %v4091_v57  ;;  %v2808_v54 = vmax.f32 %v12383_v56, %v12743_v42  ;;  %v4098_v56 = vld [vmem:[#allocation2 + $0x190] sm:$0xff] }
 0x421   :  { %v12790_v9 = vmax.f32 %v2751_v16, 0.0  ;;  %v2361_v47 = vpop.permute.xlu1 %2360  ;;  %v4095_v13 = vld [vmem:[#allocation2 + $0x178] sm:$0xff]  ;;  %v4096_v16 = vld [vmem:[#allocation2 + $0x180] sm:$0xff] }
 0x422   :  { %3782 = vst.msk [vmem:[#allocation2 + $0x2e8] sm:$0xff] %vm2972_vm4, %v2894_v25  ;;  %v2738_v4 = vmax.f32 %v12434_v39, %v2361_v47  ;;  %v2363_v44 = vpop.permute.xlu0 %2362  ;;  %v2952_v47 = vmax.f32 %v2808_v54, 0.0 }
 0x423   :  { %3783 = vst.msk [vmem:[#allocation2 + $0x2f8] sm:$0xff] %vm2972_vm4, %v12790_v9  ;;  %v2739_v27 = vmax.f32 %v12438_v31, %v2363_v44  ;;  %1652 = vrot.lane.b32.xlu1 %v14921_v34, %s9561_s25  ;;  %4403 = vmatmul.mubr.f32.gmra.mrb[186].mxu0 %v4090_v41  ;;  %v14922_v31 = vld [vmem:[#allocation56_spill] sm:$0xff]  ;;  %v4099_v57 = vld [vmem:[#allocation2 + $0x198] sm:$0xff] }
 0x424   :  { %v2882_v23 = vmax.f32 %v2738_v4, 0.0  ;;  %4408 = vmatprep.mubr.f32.mxu0 %v4093_v58 }
 0x425   :  { %v12799_v29 = vmax.f32 %v2739_v27, 0.0  ;;  %v2525_v0 = vpop.permute.xlu1 %2524  ;;  %v14923_v27 = vld [vmem:[#allocation31_spill] sm:$0xff] }
 0x426   :  { %3019 = vst.msk [vmem:[#allocation2 + $0x2e0] sm:$0xff] %vm2972_vm4, %v2882_v23  ;;  %3772 = vst.msk [vmem:[#allocation2 + $0x248] sm:$0xff] %vm2972_vm4, %v2882_v23  ;;  %v12803_v39 = vpop.permute.xlu0 %2526  ;;  %v2820_v3 = vmax.f32 %v12450_v26, %v2525_v0 }
 0x427   :  { %3020 = vst.msk [vmem:[#allocation2 + $0x2f0] sm:$0xff] %vm2972_vm4, %v12799_v29  ;;  %3773 = vst.msk [vmem:[#allocation2 + $0x258] sm:$0xff] %vm2972_vm4, %v12799_v29  ;;  %3157 = vrot.lane.b32.xlu1 %v14922_v31, %s9563_s17  ;;  %4409 = vmatmul.mubr.f32.gmra.mrb[188].mxu0 %v4092_v52 }
 0x428   :  { %4414 = vmatprep.mubr.f32.mxu0 %v4095_v13 }
 0x429   :  { %v2529_v50 = vpop.permute.xlu1 %2528 }
 0x42a   :  { %v1659_v8 = vpop.permute.xlu0 %1658  ;;  %v2822_v42 = vmax.f32 %v12466_v6, %v2529_v50 }
 0x42b   :  { %3804 = vrot.lane.b32.xlu1 %v2894_v25, %s9563_s17  ;;  %4415 = vmatmul.mubr.f32.gmra.mrb[190].mxu0 %v4094_v59  ;;  %v12821_v25 = vmax.f32 %v2820_v3, 0.0 }
 0x42c   :  { %4420 = vmatprep.mubr.f32.mxu0 %v4097_v49  ;;  %v12867_v49 = vmax.f32 %v14865_v12, %v1659_v8 }
 0x42d   :  { %v1657_v61 = vpop.permute.xlu1 %1656 }
 0x42e   :  { %v12816_v40 = vmax.f32 %v14866_v28, %v1657_v61  ;;  %v1799_v63 = vpop.permute.xlu0 %1798 }
 0x42f   :  { %3161 = vrot.lane.b32.xlu1 %v2882_v23, %s9563_s17  ;;  %4421 = vmatmul.mubr.f32.gmra.mrb[192].mxu0 %v4096_v16  ;;  %v12838_v23 = vmax.f32 %v2822_v42, 0.0 }
 0x430   :  { %2376 = vrot.lane.b32.xlu0 %v12816_v40, %s9562_s0  ;;  %4426 = vmatprep.mubr.f32.mxu0 %v4099_v57  ;;  %v12887_v57 = vmax.f32 %v14867_v11, %v1799_v63 }
 0x431   :  { %v2505_v26 = vpop.permute.xlu1 %2504 }
 0x432   :  { %v12823_v4 = vpop.permute.xlu0 %1802  ;;  %v2810_v31 = vmax.f32 %v12486_v62, %v2505_v26 }
 0x433   :  { %3894 = vrot.lane.b32.xlu1 %v12821_v25, %s9562_s0  ;;  %4427 = vmatmul.mubr.f32.gmra.mrb[194].mxu0 %v4098_v56 }
 0x434   :  { %3619 = vrot.lane.b32.xlu0 %v2952_v47, %s9561_s25  ;;  %v12858_v59 = vmax.f32 %v2810_v31, 0.0 }
 0x435   :  { %v1797_v28 = vpop.permute.xlu1 %1796 }
 0x436   :  { %v12830_v44 = vmax.f32 %v14872_v60, %v1797_v28  ;;  %v12832_v41 = vpop.permute.xlu0 %2532  ;;  %v12907_v28 = vmax.f32 %v14870_v18, %v12823_v4 }
 0x438   :  { %2516 = vrot.lane.b32.xlu1 %v12830_v44, %s9562_s0  ;;  %1654 = vrot.lane.b32.xlu0 %v14923_v27, %s9561_s25 }
 0x439   :  { %v1801_v58 = vpop.permute.xlu1 %1800 }
 0x43a   :  { %v2391_v0 = vpop.permute.xlu0 %2390  ;;  %v12848_v13 = vmax.f32 %v14875_v38, %v1801_v58 }
 0x43b   :  { %v2753_v52 = vmax.f32 %v12510_v19, %v2391_v0 }
 0x43c   :  { %3976 = vrot.lane.b32.xlu1 %v12838_v23, %s9561_s25  ;;  %3412 = vrot.lane.b32.xlu0 %v2952_v47, %s9562_s0 }
 0x43d   :  { %v12844_v6 = vmax.f32 %v2753_v52, 0.0  ;;  %v2503_v60 = vpop.permute.xlu1 %2502 }
 0x43e   :  { %v3146_v50 = vpop.permute.xlu0 %3145 }
 0x43f   :  { %3785 = vst.msk [vmem:[#allocation2 + $0x318] sm:$0xff] %vm2972_vm4, %v12844_v6 }
 0x440   :  { %3260 = vst.msk [vmem:[#allocation2 + $0x240] sm:$0xff] %vm3223_vm5, %v3146_v50  ;;  %3852 = vst.msk [vmem:[#allocation2 + $0x1a8] sm:$0xff] %vm3223_vm5, %v3146_v50  ;;  %2520 = vrot.lane.b32.xlu0 %v12848_v13, %s9562_s0  ;;  %3159 = vrot.lane.b32.xlu1 %v12772_v7, %s9563_s17  ;;  %v2809_v7 = vmax.f32 %v12522_v15, %v2503_v60 }
 0x441   :  { %v2531_v19 = vpop.permute.xlu1 %2530 }
 0x442   :  { %v3397_v62 = vpop.permute.xlu0 %3396  ;;  %v2953_v54 = vmax.f32 %v2809_v7, 0.0  ;;  %v2823_v26 = vmax.f32 %v12534_v35, %v2531_v19 }
 0x443   :  { %3511 = vst.msk [vmem:[#allocation2 + $0x240] sm:$0xff] %vm3474_vm6, %v3397_v62  ;;  %3942 = vst.msk [vmem:[#allocation2 + $0x1a8] sm:$0xff] %vm3474_vm6, %v3397_v62 }
 0x444   :  { %3623 = vrot.lane.b32.xlu0 %v12858_v59, %s9561_s25  ;;  %3410 = vrot.lane.b32.xlu1 %v12784_v2, %s9562_s0  ;;  %v2821_v2 = vmax.f32 %v12454_v24, %v12803_v39  ;;  %v2967_v63 = vmax.f32 %v2823_v26, 0.0 }
 0x445   :  { %v2507_v38 = vpop.permute.xlu1 %2506 }
 0x446   :  { %v3608_v3 = vpop.permute.xlu0 %3607  ;;  %v2811_v35 = vmax.f32 %v12548_v37, %v2507_v38 }
 0x447   :  { %3722 = vst.msk [vmem:[#allocation2 + $0x240] sm:$0xff] %vm3685_vm7, %v3608_v3  ;;  %4024 = vst.msk [vmem:[#allocation2 + $0x1a8] sm:$0xff] %vm3685_vm7, %v3608_v3 }
 0x448   :  { %3806 = vrot.lane.b32.xlu0 %v12790_v9, %s9563_s17  ;;  %2378 = vrot.lane.b32.xlu1 %v12867_v49, %s9562_s0  ;;  %v12884_v9 = vmax.f32 %v2821_v2, 0.0  ;;  %v2955_v42 = vmax.f32 %v2811_v35, 0.0 }
 0x449   :  { %v2389_v61 = vpop.permute.xlu1 %2388 }
 0x44a   :  { %v2752_v12 = vmax.f32 %v12562_v5, %v2389_v61  ;;  %v12879_v8 = vpop.permute.xlu0 %2368 }
 0x44c   :  { %v2896_v15 = vmax.f32 %v2752_v12, 0.0  ;;  %3163 = vrot.lane.b32.xlu0 %v12799_v29, %s9563_s17  ;;  %3621 = vrot.lane.b32.xlu1 %v2953_v54, %s9561_s25  ;;  %v4100_v29 = vld [vmem:[#allocation2 + $0x1a0] sm:$0xff] }
 0x44d   :  { %v2365_v16 = vpop.permute.xlu1 %2364 }
 0x44e   :  { %3784 = vst.msk [vmem:[#allocation2 + $0x308] sm:$0xff] %vm2972_vm4, %v2896_v15  ;;  %v2740_v24 = vmax.f32 %v12578_v32, %v2365_v16  ;;  %v12892_v5 = vpop.permute.xlu0 %2536  ;;  %v4101_v39 = vld [vmem:[#allocation2 + $0x1a8] sm:$0xff] }
 0x44f   :  { %4432 = vmatprep.mubr.f32.mxu0 %v4101_v39  ;;  %v2826_v26 = vmax.f32 %v12582_v33, %v12892_v5 }
 0x450   :  { %v2884_v47 = vmax.f32 %v2740_v24, 0.0  ;;  %3896 = vrot.lane.b32.xlu0 %v12884_v9, %s9562_s0  ;;  %2518 = vrot.lane.b32.xlu1 %v12887_v57, %s9562_s0 }
 0x451   :  { %4433 = vmatmul.mubr.f32.gmra.mrb[196].mxu0 %v4100_v29  ;;  %v2509_v11 = vpop.permute.xlu1 %2508 }
 0x452   :  { %3021 = vst.msk [vmem:[#allocation2 + $0x300] sm:$0xff] %vm2972_vm4, %v2884_v47  ;;  %3774 = vst.msk [vmem:[#allocation2 + $0x268] sm:$0xff] %vm2972_vm4, %v2884_v47  ;;  %v12901_v32 = vpop.permute.xlu0 %2512  ;;  %v2812_v4 = vmax.f32 %v12592_v10, %v2509_v11  ;;  %v2970_v11 = vmax.f32 %v2826_v26, 0.0 }
 0x453   :  { %v2814_v24 = vmax.f32 %v12596_v22, %v12901_v32 }
 0x454   :  { %3414 = vrot.lane.b32.xlu0 %v2953_v54, %s9562_s0  ;;  %3978 = vrot.lane.b32.xlu1 %v2967_v63, %s9561_s25  ;;  %v2956_v62 = vmax.f32 %v2812_v4, 0.0 }
 0x455   :  { %v2367_v56 = vpop.permute.xlu1 %2366 }
 0x456   :  { %v2741_v58 = vmax.f32 %v12610_v21, %v2367_v56  ;;  %v12910_v0 = vpop.permute.xlu0 %2394  ;;  %v2824_v21 = vmax.f32 %v12498_v53, %v12832_v41 }
 0x457   :  { %v2755_v35 = vmax.f32 %v12614_v1, %v12910_v0 }
 0x458   :  { %v2885_v37 = vmax.f32 %v2741_v58, 0.0  ;;  %3625 = vrot.lane.b32.xlu1 %v2955_v42, %s9561_s25  ;;  %2522 = vrot.lane.b32.xlu0 %v12907_v28, %s9562_s0  ;;  %v2968_v19 = vmax.f32 %v2824_v21, 0.0 }
 0x459   :  { %v2535_v52 = vpop.permute.xlu1 %2534  ;;  %v2899_v56 = vmax.f32 %v2755_v35, 0.0 }
 0x45a   :  { %3022 = vst.msk [vmem:[#allocation2 + $0x310] sm:$0xff] %vm2972_vm4, %v2885_v37  ;;  %3775 = vst.msk [vmem:[#allocation2 + $0x278] sm:$0xff] %vm2972_vm4, %v2885_v37  ;;  %v12917_v60 = vpop.permute.xlu0 %2538 }
 0x45c   :  { %3165 = vrot.lane.b32.xlu1 %v2884_v47, %s9563_s17  ;;  %3808 = vrot.lane.b32.xlu0 %v2896_v15, %s9563_s17  ;;  %v4102_v47 = vld [vmem:[#allocation2 + $0x1b0] sm:$0xff] }
 0x45d   :  { %v2511_v18 = vpop.permute.xlu1 %2510 }
 0x45e   :  { %v3150_v31 = vpop.permute.xlu0 %3149 }
 0x45f   :  { %3262 = vst.msk [vmem:[#allocation2 + $0x260] sm:$0xff] %vm3223_vm5, %v3150_v31  ;;  %3854 = vst.msk [vmem:[#allocation2 + $0x1c8] sm:$0xff] %vm3223_vm5, %v3150_v31 }
 0x460   :  { %3416 = vrot.lane.b32.xlu1 %v12858_v59, %s9562_s0  ;;  %3898 = vrot.lane.b32.xlu0 %v12838_v23, %s9562_s0  ;;  %v2825_v23 = vmax.f32 %v12626_v14, %v2535_v52  ;;  %v2813_v59 = vmax.f32 %v12644_v30, %v2511_v18 }
 0x461   :  { %v2393_v50 = vpop.permute.xlu1 %2392 }
 0x462   :  { %v3612_v38 = vpop.permute.xlu0 %3611  ;;  %v12948_v54 = vmax.f32 %v2825_v23, 0.0  ;;  %v2957_v14 = vmax.f32 %v2813_v59, 0.0  ;;  %v2754_v30 = vmax.f32 %v12657_v20, %v2393_v50 }
 0x464   :  { %3627 = vrot.lane.b32.xlu1 %v2956_v62, %s9561_s25  ;;  %3980 = vrot.lane.b32.xlu0 %v2968_v19, %s9561_s25 }
 0x465   :  { %v3148_v53 = vpop.permute.xlu1 %3147 }
 0x466   :  { %3261 = vst.msk [vmem:[#allocation2 + $0x250] sm:$0xff] %vm3223_vm5, %v3148_v53  ;;  %3853 = vst.msk [vmem:[#allocation2 + $0x1b8] sm:$0xff] %vm3223_vm5, %v3148_v53  ;;  %v12934_v10 = vpop.permute.xlu0 %3402  ;;  %v4106_v53 = vld [vmem:[#allocation2 + $0x1d0] sm:$0xff] }
 0x468   :  { %3167 = vrot.lane.b32.xlu1 %v2885_v37, %s9563_s17  ;;  %3810 = vrot.lane.b32.xlu0 %v12844_v6, %s9563_s17  ;;  %v2742_v6 = vmax.f32 %v12566_v48, %v12879_v8  ;;  %v2827_v37 = vmax.f32 %v12632_v17, %v12917_v60  ;;  %v7636_v17 = vld [vmem:[%s14370_s3 + $0x40] sm:$0xff] }
 0x469   :  { %v3399_v41 = vpop.permute.xlu1 %3398 }
 0x46a   :  { %3512 = vst.msk [vmem:[#allocation2 + $0x250] sm:$0xff] %vm3474_vm6, %v3399_v41  ;;  %3943 = vst.msk [vmem:[#allocation2 + $0x1b8] sm:$0xff] %vm3474_vm6, %v3399_v41  ;;  %v2349_v7 = vpop.permute.xlu0 %2348  ;;  %v2886_v20 = vmax.f32 %v2742_v6, 0.0  ;;  %v2971_v4 = vmax.f32 %v2827_v37, 0.0 }
 0x46b   :  { %v2732_v3 = vmax.f32 %v12677_v45, %v2349_v7  ;;  %v2898_v45 = vmax.f32 %v2754_v30, 0.0 }
 0x46c   :  { %3418 = vrot.lane.b32.xlu1 %v2955_v42, %s9562_s0  ;;  %3900 = vrot.lane.b32.xlu0 %v2967_v63, %s9562_s0  ;;  %v2958_v63 = vmax.f32 %v2814_v24, 0.0 }
 0x46d   :  { %v2876_v61 = vmax.f32 %v2732_v3, 0.0  ;;  %v3610_v2 = vpop.permute.xlu1 %3609  ;;  %v4108_v3 = vld [vmem:[#allocation2 + $0x1e0] sm:$0xff] }
 0x46e   :  { %3723 = vst.msk [vmem:[#allocation2 + $0x250] sm:$0xff] %vm3685_vm7, %v3610_v2  ;;  %4025 = vst.msk [vmem:[#allocation2 + $0x1b8] sm:$0xff] %vm3685_vm7, %v3610_v2  ;;  %v3154_v12 = vpop.permute.xlu0 %3153 }
 0x46f   :  { %3013 = vst.msk [vmem:[#allocation2 + $0x280] sm:$0xff] %vm2972_vm4, %v2876_v61  ;;  %3766 = vst.msk [vmem:[#allocation2 + $0x1e8] sm:$0xff] %vm2972_vm4, %v2876_v61 }
 0x470   :  { %3264 = vst.msk [vmem:[#allocation2 + $0x280] sm:$0xff] %vm3223_vm5, %v3154_v12  ;;  %3856 = vst.msk [vmem:[#allocation2 + $0x1e8] sm:$0xff] %vm3223_vm5, %v3154_v12  ;;  %3629 = vrot.lane.b32.xlu1 %v2957_v14, %s9561_s25  ;;  %3982 = vrot.lane.b32.xlu0 %v12948_v54, %s9561_s25 }
 0x471   :  { %v2371_v48 = vpop.permute.xlu1 %2370 }
 0x472   :  { %v12960_v8 = vpop.permute.xlu0 %3615  ;;  %v2743_v33 = vmax.f32 %v12696_v36, %v2371_v48  ;;  %v4110_v48 = vld [vmem:[#allocation2 + $0x1f0] sm:$0xff] }
 0x474   :  { %3812 = vrot.lane.b32.xlu0 %v2898_v45, %s9563_s17  ;;  %3169 = vrot.lane.b32.xlu1 %v2886_v20, %s9563_s17  ;;  %v2887_v36 = vmax.f32 %v2743_v33, 0.0 }
 0x475   :  { %v2515_v15 = vpop.permute.xlu1 %2514  ;;  %v4103_v16 = vld [vmem:[#allocation2 + $0x1b8] sm:$0xff] }
 0x476   :  { %4438 = vmatprep.mubr.f32.mxu0 %v4103_v16  ;;  %v12968_v39 = vpop.permute.xlu0 %3406  ;;  %v2815_v52 = vmax.f32 %v12709_v43, %v2515_v15  ;;  %v7637_v43 = vld [vmem:[%s14370_s3 + $0x48] sm:$0xff] }
 0x477   :  { %4439 = vmatmul.mubr.f32.gmra.mrb[198].mxu0 %v4102_v47  ;;  %v13013_v21 = vpack.c.bf16 %v7637_v43, %v7636_v17 }
 0x478   :  { %3902 = vrot.lane.b32.xlu0 %v2968_v19, %s9562_s0  ;;  %3420 = vrot.lane.b32.xlu1 %v2956_v62, %s9562_s0  ;;  %v2959_v31 = vmax.f32 %v2815_v52, 0.0 }
 0x479   :  { %v3401_v29 = vpop.permute.xlu1 %3400  ;;  %9050 = vmatprep.subr.bf16.mxu1 %v13013_v21 }
 0x47a   :  { %3513 = vst.msk [vmem:[#allocation2 + $0x260] sm:$0xff] %vm3474_vm6, %v3401_v29  ;;  %3944 = vst.msk [vmem:[#allocation2 + $0x1c8] sm:$0xff] %vm3474_vm6, %v3401_v29  ;;  %v2381_v22 = vpop.permute.xlu0 %2380 }
 0x47b   :  { %3724 = vst.msk [vmem:[#allocation2 + $0x260] sm:$0xff] %vm3685_vm7, %v3612_v38  ;;  %4026 = vst.msk [vmem:[#allocation2 + $0x1c8] sm:$0xff] %vm3685_vm7, %v3612_v38  ;;  %v2748_v5 = vmax.f32 %v12726_v55, %v2381_v22 }
 0x47c   :  { %3984 = vrot.lane.b32.xlu0 %v2970_v11, %s9561_s25  ;;  %3631 = vrot.lane.b32.xlu1 %v2958_v63, %s9561_s25 }
 0x47d   :  { %v12982_v32 = vmax.f32 %v2748_v5, 0.0  ;;  %v3152_v1 = vpop.permute.xlu1 %3151 }
 0x47e   :  { %3263 = vst.msk [vmem:[#allocation2 + $0x270] sm:$0xff] %vm3223_vm5, %v3152_v1  ;;  %3855 = vst.msk [vmem:[#allocation2 + $0x1d8] sm:$0xff] %vm3223_vm5, %v3152_v1  ;;  %v2383_v42 = vpop.permute.xlu0 %2382 }
 0x47f   :  { %3780 = vst.msk [vmem:[#allocation2 + $0x2c8] sm:$0xff] %vm2972_vm4, %v12982_v32  ;;  %v2749_v55 = vmax.f32 %v12739_v51, %v2383_v42  ;;  %v4104_v51 = vld [vmem:[#allocation2 + $0x1c0] sm:$0xff] }
 0x480   :  { %3514 = vst.msk [vmem:[#allocation2 + $0x270] sm:$0xff] %vm3474_vm6, %v12934_v10  ;;  %3945 = vst.msk [vmem:[#allocation2 + $0x1d8] sm:$0xff] %vm3474_vm6, %v12934_v10  ;;  %3171 = vrot.lane.b32.xlu1 %v2887_v36, %s9563_s17  ;;  %3814 = vrot.lane.b32.xlu0 %v2899_v56, %s9563_s17 }
 0x481   :  { %v12995_v58 = vmax.f32 %v2749_v55, 0.0  ;;  %v3614_v0 = vpop.permute.xlu1 %3613 }
 0x482   :  { %3725 = vst.msk [vmem:[#allocation2 + $0x270] sm:$0xff] %vm3685_vm7, %v3614_v0  ;;  %4027 = vst.msk [vmem:[#allocation2 + $0x1d8] sm:$0xff] %vm3685_vm7, %v3614_v0  ;;  %v4105_v18 = vld [vmem:[#allocation2 + $0x1c8] sm:$0xff]  ;;  %v3409_v12 = vpop.permute.xlu0 %3408 }
 0x483   :  { %3781 = vst.msk [vmem:[#allocation2 + $0x2d8] sm:$0xff] %vm2972_vm4, %v12995_v58  ;;  %4444 = vmatprep.mubr.f32.mxu0 %v4105_v18 }
 0x484   :  { %3422 = vrot.lane.b32.xlu1 %v2957_v14, %s9562_s0  ;;  %3904 = vrot.lane.b32.xlu0 %v12948_v54, %s9562_s0 }
 0x485   :  { %4445 = vmatmul.mubr.f32.gmra.mrb[200].mxu0 %v4104_v51  ;;  %v2351_v60 = vpop.permute.xlu1 %2350 }
 0x486   :  { %v2733_v50 = vmax.f32 %v12756_v46, %v2351_v60 }
 0x488   :  { %v2877_v19 = vmax.f32 %v2733_v50, 0.0  ;;  %3633 = vrot.lane.b32.xlu1 %v2959_v31, %s9561_s25  ;;  %3986 = vrot.lane.b32.xlu0 %v2971_v4, %s9561_s25 }
 0x489   :  { %v3405_v62 = vpop.permute.xlu1 %3404  ;;  %v4107_v38 = vld [vmem:[#allocation2 + $0x1d8] sm:$0xff] }
 0x48a   :  { %3014 = vst.msk [vmem:[#allocation2 + $0x290] sm:$0xff] %vm2972_vm4, %v2877_v19  ;;  %3767 = vst.msk [vmem:[#allocation2 + $0x1f8] sm:$0xff] %vm2972_vm4, %v2877_v19  ;;  %4450 = vmatprep.mubr.f32.mxu0 %v4107_v38 }
 0x48b   :  { %3515 = vst.msk [vmem:[#allocation2 + $0x280] sm:$0xff] %vm3474_vm6, %v3405_v62  ;;  %3946 = vst.msk [vmem:[#allocation2 + $0x1e8] sm:$0xff] %vm3474_vm6, %v3405_v62  ;;  %4451 = vmatmul.mubr.f32.gmra.mrb[202].mxu0 %v4106_v53 }
 0x48c   :  { %3726 = vst.msk [vmem:[#allocation2 + $0x280] sm:$0xff] %vm3685_vm7, %v12960_v8  ;;  %4028 = vst.msk [vmem:[#allocation2 + $0x1e8] sm:$0xff] %vm3685_vm7, %v12960_v8 }
 0x48d   :  { %v3156_v46 = vpop.permute.xlu1 %3155 }
 0x48e   :  { %3265 = vst.msk [vmem:[#allocation2 + $0x290] sm:$0xff] %vm3223_vm5, %v3156_v46  ;;  %3857 = vst.msk [vmem:[#allocation2 + $0x1f8] sm:$0xff] %vm3223_vm5, %v3156_v46  ;;  %v7638_v46 = vld [vmem:[%s14370_s3 + $0x50] sm:$0xff] }
 0x48f   :  { %3516 = vst.msk [vmem:[#allocation2 + $0x290] sm:$0xff] %vm3474_vm6, %v12968_v39  ;;  %3947 = vst.msk [vmem:[#allocation2 + $0x1f8] sm:$0xff] %vm3474_vm6, %v12968_v39  ;;  %v13033_v10 = vpop.f32.mrb[144].mxu0 }
 0x490   :  { %v13035_v41 = vpop.f32.mrb[145].mxu0 }
 0x491   :  { %v3618_v23 = vpop.permute.xlu1 %3617 }
 0x492   :  { %3727 = vst.msk [vmem:[#allocation2 + $0x290] sm:$0xff] %vm3685_vm7, %v3618_v23  ;;  %4029 = vst.msk [vmem:[#allocation2 + $0x1f8] sm:$0xff] %vm3685_vm7, %v3618_v23  ;;  %v7639_v23 = vld [vmem:[%s14370_s3 + $0x58] sm:$0xff] }
 0x493   :  { %v4109_v59 = vld [vmem:[#allocation2 + $0x1e8] sm:$0xff]  ;;  %v13039_v7 = vpop.f32.mrb[146].mxu0 }
 0x494   :  { %4456 = vmatprep.mubr.f32.mxu0 %v4109_v59  ;;  %v13041_v61 = vpop.f32.mrb[147].mxu0 }
 0x495   :  { %4457 = vmatmul.mubr.f32.gmra.mrb[204].mxu0 %v4108_v3  ;;  %v1653_v2 = vpop.permute.xlu1 %1652 }
 0x496   :  { %v13084_v35 = vmax.f32 %v14921_v34, %v1653_v2 }
 0x497   :  { %v13043_v6 = vpop.f32.mrb[148].mxu0 }
 0x498   :  { %v13045_v54 = vpop.f32.mrb[149].mxu0  ;;  %4631 = vrot.lane.b32.xlu0 %v13043_v6, %s9562_s0 }
 0x499   :  { %v3158_v14 = vpop.permute.xlu1 %3157  ;;  %4881 = vrot.lane.b32.xlu1 %v13045_v54, %s9562_s0  ;;  %v4111_v30 = vld [vmem:[#allocation2 + $0x1f8] sm:$0xff] }
 0x49a   :  { %3266 = vst.msk [vmem:[#allocation2 + $0x2a0] sm:$0xff] %vm3223_vm5, %v3158_v14  ;;  %3858 = vst.msk [vmem:[#allocation2 + $0x208] sm:$0xff] %vm3223_vm5, %v3158_v14  ;;  %4462 = vmatprep.mubr.f32.mxu0 %v4111_v30  ;;  %v9053_v30 = vpack.c.bf16 %v7639_v23, %v7638_v46 }
 0x49b   :  { %3517 = vst.msk [vmem:[#allocation2 + $0x2a0] sm:$0xff] %vm3474_vm6, %v3409_v12  ;;  %3948 = vst.msk [vmem:[#allocation2 + $0x208] sm:$0xff] %vm3474_vm6, %v3409_v12  ;;  %v13055_v20 = vpop.f32.mrb[150].mxu0  ;;  %4463 = vmatmul.mubr.f32.gmra.mrb[206].mxu0 %v4110_v48  ;;  %v7640_v48 = vld [vmem:[%s14370_s3 + $0x60] sm:$0xff] }
 0x49c   :  { %v13057_v45 = vpop.f32.mrb[151].mxu0  ;;  %4633 = vrot.lane.b32.xlu0 %v13055_v20, %s9562_s0 }
 0x49d   :  { %v3805_v8 = vpop.permute.xlu1 %3804  ;;  %4883 = vrot.lane.b32.xlu1 %v13057_v45, %s9562_s0 }
 0x49e   :  { %3870 = vst.msk [vmem:[#allocation2 + $0x2c8] sm:$0xff] %vm3223_vm5, %v3805_v8  ;;  %v7641_v8 = vld [vmem:[%s14370_s3 + $0x68] sm:$0xff] }
 0x49f   :  { %v13064_v15 = vpop.f32.mrb[152].mxu0 }
 0x4a0   :  { %v13066_v16 = vpop.f32.mrb[153].mxu0  ;;  %4627 = vrot.lane.b32.xlu0 %v13033_v10, %s9562_s0 }
 0x4a1   :  { %v3162_v26 = vpop.permute.xlu1 %3161  ;;  %4877 = vrot.lane.b32.xlu1 %v13035_v41, %s9562_s0 }
 0x4a2   :  { %3268 = vst.msk [vmem:[#allocation2 + $0x2c0] sm:$0xff] %vm3223_vm5, %v3162_v26  ;;  %3860 = vst.msk [vmem:[#allocation2 + $0x228] sm:$0xff] %vm3223_vm5, %v3162_v26  ;;  %v2377_v24 = vpop.permute.xlu0 %2376 }
 0x4a3   :  { %v2746_v39 = vmax.f32 %v12816_v40, %v2377_v24  ;;  %v13075_v47 = vpop.f32.mrb[154].mxu0 }
 0x4a4   :  { %v13077_v29 = vpop.f32.mrb[155].mxu0  ;;  %4629 = vrot.lane.b32.xlu0 %v13039_v7, %s9562_s0 }
 0x4a5   :  { %v2890_v11 = vmax.f32 %v2746_v39, 0.0  ;;  %v3895_v63 = vpop.permute.xlu1 %3894  ;;  %4879 = vrot.lane.b32.xlu1 %v13041_v61, %s9562_s0  ;;  %v9057_v39 = vpack.c.bf16 %v7641_v8, %v7640_v48 }
 0x4a6   :  { %3960 = vst.msk [vmem:[#allocation2 + $0x2c8] sm:$0xff] %vm3474_vm6, %v3895_v63  ;;  %v3620_v33 = vpop.permute.xlu0 %3619 }
 0x4a7   :  { %3778 = vst.msk [vmem:[#allocation2 + $0x2a8] sm:$0xff] %vm2972_vm4, %v2890_v11  ;;  %v13090_v40 = vpop.f32.mrb[156].mxu0 }
 0x4a8   :  { %3728 = vst.msk [vmem:[#allocation2 + $0x2a0] sm:$0xff] %vm3685_vm7, %v3620_v33  ;;  %4030 = vst.msk [vmem:[#allocation2 + $0x208] sm:$0xff] %vm3685_vm7, %v3620_v33  ;;  %v13092_v22 = vpop.f32.mrb[157].mxu0  ;;  %2372 = vrot.lane.b32.xlu0 %v13084_v35, %s9562_s0 }
 0x4aa   :  { %v2517_v5 = vpop.permute.xlu1 %2516  ;;  %v1655_v1 = vpop.permute.xlu0 %1654 }
 0x4ab   :  { %v2816_v34 = vmax.f32 %v12830_v44, %v2517_v5  ;;  %v13098_v56 = vmax.f32 %v14923_v27, %v1655_v1  ;;  %v13100_v36 = vpop.f32.mrb[158].mxu0  ;;  %v4112_v27 = vld [vmem:[#allocation2 + $0x200] sm:$0xff]  ;;  %v7642_v5 = vld [vmem:[%s14370_s3 + $0x70] sm:$0xff] }
 0x4ac   :  { %v13102_v42 = vpop.f32.mrb[159].mxu0  ;;  %3796 = vrot.lane.b32.xlu0 %v2890_v11, %s9563_s17 }
 0x4ad   :  { %2374 = vrot.lane.b32.xlu1 %v13098_v56, %s9562_s0  ;;  %v2960_v52 = vmax.f32 %v2816_v34, 0.0 }
 0x4ae   :  { %v3977_v55 = vpop.permute.xlu1 %3976  ;;  %v3413_v0 = vpop.permute.xlu0 %3412 }
 0x4af   :  { %v4113_v37 = vld [vmem:[#allocation2 + $0x208] sm:$0xff]  ;;  %4042 = vst.msk [vmem:[#allocation2 + $0x2c8] sm:$0xff] %vm3685_vm7, %v3977_v55  ;;  %v13110_v44 = vpop.f32.mrb[160].mxu0 }
 0x4b0   :  { %3519 = vst.msk [vmem:[#allocation2 + $0x2c0] sm:$0xff] %vm3474_vm6, %v3413_v0  ;;  %3950 = vst.msk [vmem:[#allocation2 + $0x228] sm:$0xff] %vm3474_vm6, %v3413_v0  ;;  %4468 = vmatprep.mubr.f32.mxu0 %v4113_v37  ;;  %v13112_v18 = vpop.f32.mrb[161].mxu0 }
 0x4b1   :  { %4469 = vmatmul.mubr.f32.gmra.mrb[208].mxu0 %v4112_v27  ;;  %3886 = vrot.lane.b32.xlu1 %v2960_v52, %s9562_s0  ;;  %v4114_v27 = vld [vmem:[#allocation2 + $0x210] sm:$0xff] }
 0x4b2   :  { %v3160_v51 = vpop.permute.xlu1 %3159  ;;  %v2521_v17 = vpop.permute.xlu0 %2520 }
 0x4b3   :  { %3267 = vst.msk [vmem:[#allocation2 + $0x2b0] sm:$0xff] %vm3223_vm5, %v3160_v51  ;;  %3859 = vst.msk [vmem:[#allocation2 + $0x218] sm:$0xff] %vm3223_vm5, %v3160_v51  ;;  %v2818_v43 = vmax.f32 %v12848_v13, %v2521_v17  ;;  %v13118_v60 = vpop.f32.mrb[162].mxu0  ;;  %v5177_v51 = vld [vmem:[%s14370_s3] sm:$0xff]  ;;  %v5178_v17 = vld [vmem:[%s14370_s3 + $0x8] sm:$0xff] }
 0x4b4   :  { %v13120_v4 = vpop.f32.mrb[163].mxu0 }
 0x4b5   :  { %v13122_v31 = vmax.f32 %v2818_v43, 0.0 }
 0x4b6   :  { %v3411_v50 = vpop.permute.xlu1 %3410  ;;  %v3624_v19 = vpop.permute.xlu0 %3623  ;;  %v4137_v62 = vld [vmem:[#allocation2 + $0x2c8] sm:$0xff] }
 0x4b7   :  { %3518 = vst.msk [vmem:[#allocation2 + $0x2b0] sm:$0xff] %vm3474_vm6, %v3411_v50  ;;  %3949 = vst.msk [vmem:[#allocation2 + $0x218] sm:$0xff] %vm3474_vm6, %v3411_v50  ;;  %4540 = vmatprep.mubr.f32.mxu1 %v4137_v62  ;;  %3968 = vrot.lane.b32.xlu0 %v13122_v31, %s9561_s25  ;;  %v13191_v62 = vpack.c.bf16 %v5178_v17, %v5177_v51 }
 0x4b8   :  { %3730 = vst.msk [vmem:[#allocation2 + $0x2c0] sm:$0xff] %vm3685_vm7, %v3624_v19  ;;  %4032 = vst.msk [vmem:[#allocation2 + $0x228] sm:$0xff] %vm3685_vm7, %v3624_v19 }
 0x4ba   :  { %v2379_v13 = vpop.permute.xlu1 %2378  ;;  %v3807_v38 = vpop.permute.xlu0 %3806 }
 0x4bb   :  { %v2747_v53 = vmax.f32 %v12867_v49, %v2379_v13  ;;  %3871 = vst.msk [vmem:[#allocation2 + $0x2d8] sm:$0xff] %vm3223_vm5, %v3807_v38  ;;  %4885 = vrot.lane.b32.xlu0 %v13066_v16, %s9562_s0 }
 0x4bd   :  { %v2891_v59 = vmax.f32 %v2747_v53, 0.0  ;;  %v4116_v53 = vld [vmem:[#allocation2 + $0x220] sm:$0xff] }
 0x4be   :  { %v13140_v3 = vpop.f32.mrb[164].mxu0  ;;  %v3622_v2 = vpop.permute.xlu1 %3621 }
 0x4bf   :  { %v4136_v14 = vld [vmem:[#allocation2 + $0x2c0] sm:$0xff]  ;;  %3779 = vst.msk [vmem:[#allocation2 + $0x2b8] sm:$0xff] %vm2972_vm4, %v2891_v59  ;;  %v3164_v49 = vpop.permute.xlu0 %3163  ;;  %v13145_v12 = vpop.f32.mrb[165].mxu0  ;;  %3798 = vrot.lane.b32.xlu1 %v2891_v59, %s9563_s17  ;;  %4887 = vrot.lane.b32.xlu0 %v13077_v29, %s9562_s0  ;;  %v4117_v43 = vld [vmem:[#allocation2 + $0x228] sm:$0xff] }
 0x4c0   :  { %3729 = vst.msk [vmem:[#allocation2 + $0x2b0] sm:$0xff] %vm3685_vm7, %v3622_v2  ;;  %4031 = vst.msk [vmem:[#allocation2 + $0x218] sm:$0xff] %vm3685_vm7, %v3622_v2  ;;  %4541 = vmatmul.mubr.f32.vlgmr.msra.gmra.mrb[0].mxu1 %v4136_v14 }
 0x4c1   :  { %3269 = vst.msk [vmem:[#allocation2 + $0x2d0] sm:$0xff] %vm3223_vm5, %v3164_v49  ;;  %3861 = vst.msk [vmem:[#allocation2 + $0x238] sm:$0xff] %vm3223_vm5, %v3164_v49  ;;  %9052 = vmatpush3.bf16.msra.mxu1 %v13013_v21  ;;  %v7643_v21 = vld [vmem:[%s14370_s3 + $0x78] sm:$0xff] }
 0x4c2   :  { %v13159_v26 = vpop.f32.mrb[166].mxu0  ;;  %v2519_v24 = vpop.permute.xlu1 %2518  ;;  %9054 = vmatprep.subr.bf16.mxu1 %v9053_v30  ;;  %v9061_v0 = vpack.c.bf16 %v7643_v21, %v7642_v5 }
 0x4c3   :  { %v2817_v11 = vmax.f32 %v12887_v57, %v2519_v24  ;;  %v3897_v63 = vpop.permute.xlu0 %3896  ;;  %v13162_v33 = vpop.f32.mrb[167].mxu0  ;;  %4635 = vrot.lane.b32.xlu1 %v13064_v15, %s9562_s0  ;;  %v4118_v24 = vld [vmem:[#allocation2 + $0x230] sm:$0xff] }
 0x4c4   :  { %3961 = vst.msk [vmem:[#allocation2 + $0x2d8] sm:$0xff] %vm3474_vm6, %v3897_v63 }
 0x4c5   :  { %v2961_v1 = vmax.f32 %v2817_v11, 0.0  ;;  %9056 = vmatpush3.bf16.msra.mxu1 %v9053_v30 }
 0x4c6   :  { %v13173_v34 = vpop.f32.mrb[168].mxu0  ;;  %v3979_v57 = vpop.permute.xlu1 %3978  ;;  %9058 = vmatprep.subr.bf16.mxu1 %v9057_v39 }
 0x4c7   :  { %v4115_v55 = vld [vmem:[#allocation2 + $0x218] sm:$0xff]  ;;  %4043 = vst.msk [vmem:[#allocation2 + $0x2d8] sm:$0xff] %vm3685_vm7, %v3979_v57  ;;  %v3415_v37 = vpop.permute.xlu0 %3414  ;;  %v13176_v52 = vpop.f32.mrb[169].mxu0  ;;  %4637 = vrot.lane.b32.xlu1 %v13075_v47, %s9562_s0  ;;  %3888 = vrot.lane.b32.xlu0 %v2961_v1, %s9562_s0 }
 0x4c8   :  { %4474 = vmatprep.mubr.f32.mxu0 %v4115_v55  ;;  %3520 = vst.msk [vmem:[#allocation2 + $0x2d0] sm:$0xff] %vm3474_vm6, %v3415_v37  ;;  %3951 = vst.msk [vmem:[#allocation2 + $0x238] sm:$0xff] %vm3474_vm6, %v3415_v37  ;;  %v4120_v37 = vld [vmem:[#allocation2 + $0x240] sm:$0xff] }
 0x4c9   :  { %4475 = vmatmul.mubr.f32.gmra.mrb[210].mxu0 %v4114_v27  ;;  %9060 = vmatpush3.bf16.msra.mxu1 %v9057_v39 }
 0x4ca   :  { %4480 = vmatprep.mubr.f32.mxu0 %v4117_v43  ;;  %v13189_v50 = vpop.f32.mrb[170].mxu0  ;;  %v3626_v19 = vpop.permute.xlu1 %3625  ;;  %9062 = vmatprep.subr.bf16.mxu1 %v9061_v0 }
 0x4cb   :  { %3731 = vst.msk [vmem:[#allocation2 + $0x2d0] sm:$0xff] %vm3685_vm7, %v3626_v19  ;;  %4033 = vst.msk [vmem:[#allocation2 + $0x238] sm:$0xff] %vm3685_vm7, %v3626_v19  ;;  %v2523_v13 = vpop.permute.xlu0 %2522  ;;  %v13195_v38 = vpop.f32.mrb[171].mxu0  ;;  %3800 = vrot.lane.b32.xlu0 %v12982_v32, %s9563_s17 }
 0x4cc   :  { %v2819_v46 = vmax.f32 %v12907_v28, %v2523_v13 }
 0x4cd   :  { %4481 = vmatmul.mubr.f32.gmra.mrb[212].mxu0 %v4116_v53  ;;  %9064 = vmatpush3.bf16.msra.mxu1 %v9061_v0 }
 0x4ce   :  { %v2963_v23 = vmax.f32 %v2819_v46, 0.0  ;;  %v3166_v59 = vpop.permute.xlu1 %3165  ;;  %v4139_v2 = vld [vmem:[#allocation2 + $0x2d8] sm:$0xff]  ;;  %9066 = vmatprep.subr.bf16.mxu1 %v13191_v62 }
 0x4cf   :  { %3270 = vst.msk [vmem:[#allocation2 + $0x2e0] sm:$0xff] %vm3223_vm5, %v3166_v59  ;;  %3862 = vst.msk [vmem:[#allocation2 + $0x248] sm:$0xff] %vm3223_vm5, %v3166_v59  ;;  %v3809_v14 = vpop.permute.xlu0 %3808  ;;  %4546 = vmatprep.mubr.f32.mxu1 %v4139_v2  ;;  %4639 = vrot.lane.b32.xlu0 %v13090_v40, %s9562_s0 }
 0x4d0   :  { %3872 = vst.msk [vmem:[#allocation2 + $0x2e8] sm:$0xff] %vm3223_vm5, %v3809_v14  ;;  %3970 = vrot.lane.b32.xlu1 %v2963_v23, %s9561_s25 }
 0x4d2   :  { %v13207_v28 = vpop.f32.mrb[172].mxu0  ;;  %v3417_v32 = vpop.permute.xlu1 %3416  ;;  %v4119_v30 = vld [vmem:[#allocation2 + $0x238] sm:$0xff]  ;;  %v4138_v49 = vld [vmem:[#allocation2 + $0x2d0] sm:$0xff] }
 0x4d3   :  { %3521 = vst.msk [vmem:[#allocation2 + $0x2e0] sm:$0xff] %vm3474_vm6, %v3417_v32  ;;  %3952 = vst.msk [vmem:[#allocation2 + $0x248] sm:$0xff] %vm3474_vm6, %v3417_v32  ;;  %v3899_v48 = vpop.permute.xlu0 %3898  ;;  %v13211_v8 = vpop.f32.mrb[173].mxu0  ;;  %4486 = vmatprep.mubr.f32.mxu0 %v4119_v30  ;;  %4547 = vmatmul.mubr.f32.gmra.mrb[2].mxu1 %v4138_v49  ;;  %v4122_v30 = vld [vmem:[#allocation2 + $0x250] sm:$0xff] }
 0x4d4   :  { %3962 = vst.msk [vmem:[#allocation2 + $0x2e8] sm:$0xff] %vm3474_vm6, %v3899_v48  ;;  %4641 = vrot.lane.b32.xlu0 %v13100_v36, %s9562_s0  ;;  %3890 = vrot.lane.b32.xlu1 %v13122_v31, %s9562_s0 }
 0x4d5   :  { %4487 = vmatmul.mubr.f32.gmra.mrb[214].mxu0 %v4118_v24 }
 0x4d6   :  { %v13218_v39 = vpop.f32.mrb[174].mxu0  ;;  %v3628_v11 = vpop.permute.xlu1 %3627 }
 0x4d7   :  { %3732 = vst.msk [vmem:[#allocation2 + $0x2e0] sm:$0xff] %vm3685_vm7, %v3628_v11  ;;  %4034 = vst.msk [vmem:[#allocation2 + $0x248] sm:$0xff] %vm3685_vm7, %v3628_v11  ;;  %v3981_v63 = vpop.permute.xlu0 %3980  ;;  %v13222_v5 = vpop.f32.mrb[175].mxu0 }
 0x4d8   :  { %4044 = vst.msk [vmem:[#allocation2 + $0x2e8] sm:$0xff] %vm3685_vm7, %v3981_v63  ;;  %3972 = vrot.lane.b32.xlu0 %v12821_v25, %s9561_s25  ;;  %4889 = vrot.lane.b32.xlu1 %v13092_v22, %s9562_s0 }
 0x4da   :  { %v3168_v31 = vpop.permute.xlu1 %3167 }
 0x4db   :  { %3271 = vst.msk [vmem:[#allocation2 + $0x2f0] sm:$0xff] %vm3223_vm5, %v3168_v31  ;;  %3863 = vst.msk [vmem:[#allocation2 + $0x258] sm:$0xff] %vm3223_vm5, %v3168_v31  ;;  %v3811_v21 = vpop.permute.xlu0 %3810 }
 0x4dc   :  { %3873 = vst.msk [vmem:[#allocation2 + $0x2f8] sm:$0xff] %vm3223_vm5, %v3811_v21  ;;  %3892 = vrot.lane.b32.xlu0 %v2963_v23, %s9562_s0  ;;  %4891 = vrot.lane.b32.xlu1 %v13102_v42, %s9562_s0 }
 0x4de   :  { %v3419_v1 = vpop.permute.xlu1 %3418  ;;  %v4121_v57 = vld [vmem:[#allocation2 + $0x248] sm:$0xff]  ;;  %v4140_v0 = vld [vmem:[#allocation2 + $0x2e0] sm:$0xff] }
 0x4df   :  { %3522 = vst.msk [vmem:[#allocation2 + $0x2f0] sm:$0xff] %vm3474_vm6, %v3419_v1  ;;  %3953 = vst.msk [vmem:[#allocation2 + $0x258] sm:$0xff] %vm3474_vm6, %v3419_v1  ;;  %v3901_v25 = vpop.permute.xlu0 %3900  ;;  %4492 = vmatprep.mubr.f32.mxu0 %v4121_v57  ;;  %v4141_v55 = vld [vmem:[#allocation2 + $0x2e8] sm:$0xff] }
 0x4e0   :  { %3963 = vst.msk [vmem:[#allocation2 + $0x2f8] sm:$0xff] %vm3474_vm6, %v3901_v25  ;;  %4643 = vrot.lane.b32.xlu0 %v13110_v44, %s9562_s0  ;;  %3802 = vrot.lane.b32.xlu1 %v12995_v58, %s9563_s17 }
 0x4e1   :  { %4552 = vmatprep.mubr.f32.mxu1 %v4141_v55  ;;  %4493 = vmatmul.mubr.f32.gmra.mrb[216].mxu0 %v4120_v37 }
 0x4e2   :  { %4553 = vmatmul.mubr.f32.gmra.mrb[4].mxu1 %v4140_v0  ;;  %v13242_v27 = vpop.f32.mrb[176].mxu0  ;;  %v3630_v51 = vpop.permute.xlu1 %3629 }
 0x4e3   :  { %3733 = vst.msk [vmem:[#allocation2 + $0x2f0] sm:$0xff] %vm3685_vm7, %v3630_v51  ;;  %4035 = vst.msk [vmem:[#allocation2 + $0x258] sm:$0xff] %vm3685_vm7, %v3630_v51  ;;  %v3983_v17 = vpop.permute.xlu0 %3982  ;;  %v13246_v43 = vpop.f32.mrb[177].mxu0 }
 0x4e4   :  { %4045 = vst.msk [vmem:[#allocation2 + $0x2f8] sm:$0xff] %vm3685_vm7, %v3983_v17  ;;  %4645 = vrot.lane.b32.xlu0 %v13118_v60, %s9562_s0  ;;  %3974 = vrot.lane.b32.xlu1 %v12884_v9, %s9561_s25 }
 0x4e6   :  { %v13253_v58 = vpop.f32.mrb[178].mxu0  ;;  %v3170_v19 = vpop.permute.xlu1 %3169 }
 0x4e7   :  { %3272 = vst.msk [vmem:[#allocation2 + $0x300] sm:$0xff] %vm3223_vm5, %v3170_v19  ;;  %3864 = vst.msk [vmem:[#allocation2 + $0x268] sm:$0xff] %vm3223_vm5, %v3170_v19  ;;  %v3813_v13 = vpop.permute.xlu0 %3812  ;;  %v13257_v53 = vpop.f32.mrb[179].mxu0  ;;  %v4124_v19 = vld [vmem:[#allocation2 + $0x260] sm:$0xff] }
 0x4e8   :  { %3874 = vst.msk [vmem:[#allocation2 + $0x308] sm:$0xff] %vm3223_vm5, %v3813_v13  ;;  %4647 = vrot.lane.b32.xlu0 %v13140_v3, %s9562_s0  ;;  %4893 = vrot.lane.b32.xlu1 %v13112_v18, %s9562_s0 }
 0x4ea   :  { %v13264_v46 = vpop.f32.mrb[180].mxu0  ;;  %v3421_v9 = vpop.permute.xlu1 %3420  ;;  %v4123_v23 = vld [vmem:[#allocation2 + $0x258] sm:$0xff]  ;;  %v4142_v32 = vld [vmem:[#allocation2 + $0x2f0] sm:$0xff] }
 0x4eb   :  { %14924 = vst [vmem:[#allocation51_spill] sm:$0xff] %v13264_v46  ;;  %3523 = vst.msk [vmem:[#allocation2 + $0x300] sm:$0xff] %vm3474_vm6, %v3421_v9  ;;  %v3903_v59 = vpop.permute.xlu0 %3902  ;;  %v13268_v2 = vpop.f32.mrb[181].mxu0  ;;  %4498 = vmatprep.mubr.f32.mxu0 %v4123_v23  ;;  %v4143_v14 = vld [vmem:[#allocation2 + $0x2f8] sm:$0xff] }
 0x4ec   :  { %3954 = vst.msk [vmem:[#allocation2 + $0x268] sm:$0xff] %vm3474_vm6, %v3421_v9  ;;  %3964 = vst.msk [vmem:[#allocation2 + $0x308] sm:$0xff] %vm3474_vm6, %v3903_v59  ;;  %4649 = vrot.lane.b32.xlu0 %v13159_v26, %s9562_s0  ;;  %4895 = vrot.lane.b32.xlu1 %v13120_v4, %s9562_s0 }
 0x4ed   :  { %4558 = vmatprep.mubr.f32.mxu1 %v4143_v14  ;;  %4499 = vmatmul.mubr.f32.gmra.mrb[218].mxu0 %v4122_v30 }
 0x4ee   :  { %4559 = vmatmul.mubr.f32.gmra.mrb[6].mxu1 %v4142_v32  ;;  %v13275_v49 = vpop.f32.mrb[182].mxu0  ;;  %v3632_v48 = vpop.permute.xlu1 %3631 }
 0x4ef   :  { %3734 = vst.msk [vmem:[#allocation2 + $0x300] sm:$0xff] %vm3685_vm7, %v3632_v48  ;;  %4036 = vst.msk [vmem:[#allocation2 + $0x268] sm:$0xff] %vm3685_vm7, %v3632_v48  ;;  %v3985_v24 = vpop.permute.xlu0 %3984  ;;  %v13279_v11 = vpop.f32.mrb[183].mxu0 }
 0x4f0   :  { %4046 = vst.msk [vmem:[#allocation2 + $0x308] sm:$0xff] %vm3685_vm7, %v3985_v24  ;;  %4651 = vrot.lane.b32.xlu0 %v13173_v34, %s9562_s0  ;;  %4897 = vrot.lane.b32.xlu1 %v13145_v12, %s9562_s0 }
 0x4f2   :  { %v13286_v63 = vpop.f32.mrb[184].mxu0  ;;  %v3172_v31 = vpop.permute.xlu1 %3171 }
 0x4f3   :  { %3273 = vst.msk [vmem:[#allocation2 + $0x310] sm:$0xff] %vm3223_vm5, %v3172_v31  ;;  %3865 = vst.msk [vmem:[#allocation2 + $0x278] sm:$0xff] %vm3223_vm5, %v3172_v31  ;;  %v3815_v21 = vpop.permute.xlu0 %3814  ;;  %v13290_v1 = vpop.f32.mrb[185].mxu0 }
 0x4f4   :  { %3875 = vst.msk [vmem:[#allocation2 + $0x318] sm:$0xff] %vm3223_vm5, %v3815_v21  ;;  %4653 = vrot.lane.b32.xlu0 %v13189_v50, %s9562_s0  ;;  %4899 = vrot.lane.b32.xlu1 %v13162_v33, %s9562_s0 }
 0x4f6   :  { %v13297_v57 = vpop.f32.mrb[186].mxu0  ;;  %v3423_v25 = vpop.permute.xlu1 %3422  ;;  %v4125_v55 = vld [vmem:[#allocation2 + $0x268] sm:$0xff]  ;;  %v4144_v17 = vld [vmem:[#allocation2 + $0x300] sm:$0xff] }
 0x4f7   :  { %3524 = vst.msk [vmem:[#allocation2 + $0x310] sm:$0xff] %vm3474_vm6, %v3423_v25  ;;  %3955 = vst.msk [vmem:[#allocation2 + $0x278] sm:$0xff] %vm3474_vm6, %v3423_v25  ;;  %v3905_v0 = vpop.permute.xlu0 %3904  ;;  %v13301_v37 = vpop.f32.mrb[187].mxu0  ;;  %4504 = vmatprep.mubr.f32.mxu0 %v4125_v55  ;;  %v4145_v51 = vld [vmem:[#allocation2 + $0x308] sm:$0xff]  ;;  %v4126_v25 = vld [vmem:[#allocation2 + $0x270] sm:$0xff] }
 0x4f8   :  { %3965 = vst.msk [vmem:[#allocation2 + $0x318] sm:$0xff] %vm3474_vm6, %v3905_v0  ;;  %4655 = vrot.lane.b32.xlu0 %v13207_v28, %s9562_s0  ;;  %4901 = vrot.lane.b32.xlu1 %v13176_v52, %s9562_s0 }
 0x4f9   :  { %4564 = vmatprep.mubr.f32.mxu1 %v4145_v51  ;;  %4505 = vmatmul.mubr.f32.gmra.mrb[220].mxu0 %v4124_v19 }
 0x4fa   :  { %4565 = vmatmul.mubr.f32.gmra.mrb[8].mxu1 %v4144_v17  ;;  %v13308_v13 = vpop.f32.mrb[188].mxu0  ;;  %v3634_v9 = vpop.permute.xlu1 %3633 }
 0x4fb   :  { %3735 = vst.msk [vmem:[#allocation2 + $0x310] sm:$0xff] %vm3685_vm7, %v3634_v9  ;;  %4037 = vst.msk [vmem:[#allocation2 + $0x278] sm:$0xff] %vm3685_vm7, %v3634_v9  ;;  %v3987_v23 = vpop.permute.xlu0 %3986  ;;  %v13312_v59 = vpop.f32.mrb[189].mxu0 }
 0x4fc   :  { %4047 = vst.msk [vmem:[#allocation2 + $0x318] sm:$0xff] %vm3685_vm7, %v3987_v23  ;;  %4657 = vrot.lane.b32.xlu0 %v13218_v39, %s9562_s0  ;;  %4903 = vrot.lane.b32.xlu1 %v13195_v38, %s9562_s0 }
 0x4fe   :  { %v13319_v14 = vpop.f32.mrb[190].mxu0 }
 0x4ff   :  { %v13321_v32 = vpop.f32.mrb[191].mxu0 }
 0x500   :  { %4659 = vrot.lane.b32.xlu0 %v13242_v27, %s9562_s0  ;;  %4905 = vrot.lane.b32.xlu1 %v13211_v8, %s9562_s0 }
 0x502   :  { %v13327_v30 = vpop.f32.mrb[192].mxu0  ;;  %v4127_v48 = vld [vmem:[#allocation2 + $0x278] sm:$0xff]  ;;  %v4146_v21 = vld [vmem:[#allocation2 + $0x310] sm:$0xff] }
 0x503   :  { %v13329_v24 = vpop.f32.mrb[193].mxu0  ;;  %4510 = vmatprep.mubr.f32.mxu0 %v4127_v48  ;;  %v4147_v31 = vld [vmem:[#allocation2 + $0x318] sm:$0xff] }
 0x504   :  { %4661 = vrot.lane.b32.xlu0 %v13253_v58, %s9562_s0  ;;  %4907 = vrot.lane.b32.xlu1 %v13222_v5, %s9562_s0 }
 0x505   :  { %4570 = vmatprep.mubr.f32.mxu1 %v4147_v31  ;;  %4511 = vmatmul.mubr.f32.gmra.mrb[222].mxu0 %v4126_v25 }
 0x506   :  { %4571 = vmatmul.mubr.f32.gmra.mrb[10].mxu1 %v4146_v21  ;;  %v13335_v55 = vpop.f32.mrb[194].mxu0 }
 0x507   :  { %v13337_v0 = vpop.f32.mrb[195].mxu0 }
 0x508   :  { %4663 = vrot.lane.b32.xlu0 %v13264_v46, %s9562_s0  ;;  %4909 = vrot.lane.b32.xlu1 %v13246_v43, %s9562_s0 }
 0x50a   :  { %v4632_v51 = vpop.permute.xlu0 %4631 }
 0x50b   :  { %v4779_v17 = vmax.f32 %v13043_v6, %v4632_v51  ;;  %v4882_v19 = vpop.permute.xlu1 %4881  ;;  %v5179_v51 = vld [vmem:[%s14370_s3 + $0x10] sm:$0xff] }
 0x50c   :  { %v5029_v9 = vmax.f32 %v13045_v54, %v4882_v19  ;;  %4665 = vrot.lane.b32.xlu0 %v13275_v49, %s9562_s0  ;;  %4911 = vrot.lane.b32.xlu1 %v13257_v53, %s9562_s0 }
 0x50e   :  { %v5079_v23 = vmax.f32 %v4779_v17, %v5029_v9  ;;  %v4634_v48 = vpop.permute.xlu0 %4633 }
 0x50f   :  { %v4780_v31 = vmax.f32 %v13055_v20, %v4634_v48  ;;  %v4884_v21 = vpop.permute.xlu1 %4883  ;;  %v5180_v20 = vld [vmem:[%s14370_s3 + $0x18] sm:$0xff] }
 0x510   :  { %v5129_v25 = vmax.f32 %v5079_v23, 0.0  ;;  %v5030_v46 = vmax.f32 %v13057_v45, %v4884_v21  ;;  %4667 = vrot.lane.b32.xlu0 %v13286_v63, %s9562_s0  ;;  %4913 = vrot.lane.b32.xlu1 %v13268_v2, %s9562_s0 }
 0x512   :  { %v5080_v6 = vmax.f32 %v4780_v31, %v5030_v46  ;;  %8516 = vmatprep.mubr.msk.f32.mxu1 %vm5194_vm8, %v5129_v25  ;;  %v4628_v54 = vpop.permute.xlu0 %4627  ;;  %v9069_v46 = vpack.c.bf16 %v5180_v20, %v5179_v51  ;;  %v5181_v31 = vld [vmem:[%s14370_s3 + $0x20] sm:$0xff] }
 0x513   :  { %v4777_v45 = vmax.f32 %v13033_v10, %v4628_v54  ;;  %v4878_v17 = vpop.permute.xlu1 %4877  ;;  %v5182_v10 = vld [vmem:[%s14370_s3 + $0x28] sm:$0xff] }
 0x514   :  { %v5130_v19 = vmax.f32 %v5080_v6, 0.0  ;;  %v5027_v9 = vmax.f32 %v13035_v41, %v4878_v17  ;;  %4669 = vrot.lane.b32.xlu0 %v13297_v57, %s9562_s0  ;;  %4915 = vrot.lane.b32.xlu1 %v13279_v11, %s9562_s0  ;;  %v9073_v54 = vpack.c.bf16 %v5182_v10, %v5181_v31  ;;  %v7650_v10 = vld [vmem:[%s14370_s3 + $0x90] sm:$0xff] }
 0x516   :  { %v5077_v23 = vmax.f32 %v4777_v45, %v5027_v9  ;;  %8517 = vmatmul.mubr.msk.f32.vlgmr.msra.gmra.mrb[12].mxu1 %vm5194_vm8, %v5130_v19  ;;  %v4630_v48 = vpop.permute.xlu0 %4629  ;;  %v7648_v9 = vld [vmem:[%s14370_s3 + $0x80] sm:$0xff] }
 0x517   :  { %9068 = vmatpush3.bf16.msra.mxu1 %v13191_v62  ;;  %v4778_v41 = vmax.f32 %v13039_v7, %v4630_v48  ;;  %v4880_v21 = vpop.permute.xlu1 %4879  ;;  %v5183_v7 = vld [vmem:[%s14370_s3 + $0x30] sm:$0xff] }
 0x518   :  { %v5127_v25 = vmax.f32 %v5077_v23, 0.0  ;;  %v5028_v6 = vmax.f32 %v13041_v61, %v4880_v21  ;;  %4671 = vrot.lane.b32.xlu0 %v13308_v13, %s9562_s0  ;;  %4917 = vrot.lane.b32.xlu1 %v13290_v1, %s9562_s0  ;;  %v5184_v61 = vld [vmem:[%s14370_s3 + $0x38] sm:$0xff] }
 0x519   :  { %9070 = vmatprep.subr.bf16.mxu1 %v9069_v46  ;;  %v9077_v17 = vpack.c.bf16 %v5184_v61, %v5183_v7 }
 0x51a   :  { %v5078_v51 = vmax.f32 %v4778_v41, %v5028_v6  ;;  %8535 = vmatprep.mubr.msk.f32.mxu1 %vm5194_vm8, %v5127_v25  ;;  %v2373_v20 = vpop.permute.xlu0 %2372  ;;  %v7651_v41 = vld [vmem:[%s14370_s3 + $0x98] sm:$0xff] }
 0x51b   :  { %9072 = vmatpush3.bf16.msra.mxu1 %v9069_v46  ;;  %v2744_v62 = vmax.f32 %v13084_v35, %v2373_v20  ;;  %v7649_v46 = vld [vmem:[%s14370_s3 + $0x88] sm:$0xff] }
 0x51c   :  { %4673 = vrot.lane.b32.xlu0 %v13319_v14, %s9562_s0  ;;  %4919 = vrot.lane.b32.xlu1 %v13301_v37, %s9562_s0  ;;  %v9081_v48 = vpack.c.bf16 %v7649_v46, %v7648_v9  ;;  %v7653_v20 = vld [vmem:[%s14370_s3 + $0xa8] sm:$0xff] }
 0x51d   :  { %v2888_v45 = vmax.f32 %v2744_v62, 0.0  ;;  %9074 = vmatprep.subr.bf16.mxu1 %v9073_v54  ;;  %v7654_v62 = vld [vmem:[%s14370_s3 + $0xb0] sm:$0xff]  ;;  %v7659_v9 = vld [vmem:[%s14370_s3 + $0xc8] sm:$0xff] }
 0x51e   :  { %v3797_v19 = vpop.permute.xlu0 %3796 }
 0x51f   :  { %3776 = vst.msk [vmem:[#allocation2 + $0x288] sm:$0xff] %vm2972_vm4, %v2888_v45  ;;  %9076 = vmatpush3.bf16.msra.mxu1 %v9073_v54  ;;  %v2375_v35 = vpop.permute.xlu1 %2374  ;;  %v9085_v54 = vpack.c.bf16 %v7651_v41, %v7650_v10  ;;  %v7655_v45 = vld [vmem:[%s14370_s3 + $0xb8] sm:$0xff] }
 0x520   :  { %3866 = vst.msk [vmem:[#allocation2 + $0x288] sm:$0xff] %vm3223_vm5, %v3797_v19  ;;  %v2745_v23 = vmax.f32 %v13098_v56, %v2375_v35  ;;  %4675 = vrot.lane.b32.xlu0 %v13327_v30, %s9562_s0  ;;  %4921 = vrot.lane.b32.xlu1 %v13312_v59, %s9562_s0  ;;  %v5128_v56 = vmax.f32 %v5078_v51, 0.0  ;;  %v7652_v51 = vld [vmem:[%s14370_s3 + $0xa0] sm:$0xff] }
 0x521   :  { %9078 = vmatprep.subr.bf16.mxu1 %v9077_v17  ;;  %v9089_v7 = vpack.c.bf16 %v7653_v20, %v7652_v51  ;;  %v7658_v19 = vld [vmem:[%s14370_s3 + $0xc0] sm:$0xff] }
 0x522   :  { %v2889_v31 = vmax.f32 %v2745_v23, 0.0  ;;  %v9097_v35 = vpack.c.bf16 %v7659_v9, %v7658_v19  ;;  %v7663_v9 = vld [vmem:[%s14370_s3 + $0xe8] sm:$0xff] }
 0x523   :  { %9080 = vmatpush3.bf16.msra.mxu1 %v9077_v17  ;;  %v3887_v21 = vpop.permute.xlu1 %3886  ;;  %v9093_v17 = vpack.c.bf16 %v7655_v45, %v7654_v62  ;;  %v7660_v45 = vld [vmem:[%s14370_s3 + $0xd0] sm:$0xff] }
 0x524   :  { %3777 = vst.msk [vmem:[#allocation2 + $0x298] sm:$0xff] %vm2972_vm4, %v2889_v31  ;;  %v13414_v25 = vpop.f32.mrb[196].mxu0  ;;  %4677 = vrot.lane.b32.xlu0 %v13335_v55, %s9562_s0  ;;  %4923 = vrot.lane.b32.xlu1 %v13321_v32, %s9562_s0  ;;  %v4128_v31 = vld [vmem:[#allocation2 + $0x280] sm:$0xff] }
 0x525   :  { %3956 = vst.msk [vmem:[#allocation2 + $0x288] sm:$0xff] %vm3474_vm6, %v3887_v21  ;;  %v13421_v6 = vpop.f32.mrb[197].mxu0  ;;  %9082 = vmatprep.subr.bf16.mxu1 %v9081_v48 }
 0x526   :  { %8536 = vmatmul.mubr.msk.f32.vlgmr.msra.gmra.mrb[12].mxu1 %vm5194_vm8, %v5128_v56 }
 0x527   :  { %9084 = vmatpush3.bf16.msra.mxu1 %v9081_v48 }
 0x528   :  { %4679 = vrot.lane.b32.xlu0 %v13414_v25, %s9562_s0  ;;  %4925 = vrot.lane.b32.xlu1 %v13329_v24, %s9562_s0 }
 0x529   :  { %v3969_v61 = vpop.permute.xlu0 %3968  ;;  %9086 = vmatprep.subr.bf16.mxu1 %v9085_v54 }
 0x52a   :  { %4038 = vst.msk [vmem:[#allocation2 + $0x288] sm:$0xff] %vm3685_vm7, %v3969_v61 }
 0x52b   :  { %9088 = vmatpush3.bf16.msra.mxu1 %v9085_v54 }
 0x52c   :  { %4927 = vrot.lane.b32.xlu1 %v13337_v0, %s9562_s0  ;;  %9090 = vmatprep.subr.bf16.mxu1 %v9089_v7 }
 0x52d   :  { %v4886_v46 = vpop.permute.xlu0 %4885 }
 0x52e   :  { %v5031_v41 = vmax.f32 %v13066_v16, %v4886_v46  ;;  %v7661_v16 = vld [vmem:[%s14370_s3 + $0xd8] sm:$0xff] }
 0x52f   :  { %9092 = vmatpush3.bf16.msra.mxu1 %v9089_v7 }
 0x530   :  { %4929 = vrot.lane.b32.xlu1 %v13421_v6, %s9562_s0  ;;  %9094 = vmatprep.subr.bf16.mxu1 %v9093_v17 }
 0x531   :  { %v3799_v23 = vpop.permute.xlu1 %3798  ;;  %v4129_v48 = vld [vmem:[#allocation2 + $0x288] sm:$0xff]  ;;  %v4888_v21 = vpop.permute.xlu0 %4887 }
 0x532   :  { %3867 = vst.msk [vmem:[#allocation2 + $0x298] sm:$0xff] %vm3223_vm5, %v3799_v23  ;;  %4516 = vmatprep.mubr.f32.mxu0 %v4129_v48  ;;  %v5032_v20 = vmax.f32 %v13077_v29, %v4888_v21  ;;  %v9101_v29 = vpack.c.bf16 %v7661_v16, %v7660_v45 }
 0x533   :  { %4517 = vmatmul.mubr.f32.gmra.mrb[224].mxu0 %v4128_v31  ;;  %9096 = vmatpush3.bf16.msra.mxu1 %v9093_v17  ;;  %v7664_v31 = vld [vmem:[%s14370_s3 + $0xf0] sm:$0xff] }
 0x534   :  { %9098 = vmatprep.subr.bf16.mxu1 %v9097_v35 }
 0x535   :  { %v4636_v10 = vpop.permute.xlu1 %4635 }
 0x536   :  { %v4781_v56 = vmax.f32 %v13064_v15, %v4636_v10  ;;  %v7665_v10 = vld [vmem:[%s14370_s3 + $0xf8] sm:$0xff] }
 0x538   :  { %v5081_v54 = vmax.f32 %v4781_v56, %v5031_v41  ;;  %v9109_v56 = vpack.c.bf16 %v7665_v10, %v7664_v31 }
 0x539   :  { %v4638_v51 = vpop.permute.xlu1 %4637  ;;  %v3889_v62 = vpop.permute.xlu0 %3888 }
 0x53a   :  { %v5131_v7 = vmax.f32 %v5081_v54, 0.0  ;;  %v4782_v61 = vmax.f32 %v13075_v47, %v4638_v51  ;;  %3957 = vst.msk [vmem:[#allocation2 + $0x298] sm:$0xff] %vm3474_vm6, %v3889_v62  ;;  %v7662_v47 = vld [vmem:[%s14370_s3 + $0xe0] sm:$0xff]  ;;  %v7669_v54 = vld [vmem:[%s14370_s3 + $0x108] sm:$0xff] }
 0x53b   :  { %v9105_v48 = vpack.c.bf16 %v7663_v9, %v7662_v47 }
 0x53c   :  { %v5082_v17 = vmax.f32 %v4782_v61, %v5032_v20  ;;  %8554 = vmatprep.mubr.msk.f32.mxu1 %vm5194_vm8, %v5131_v7 }
 0x53d   :  { %v3801_v19 = vpop.permute.xlu0 %3800 }
 0x53e   :  { %v5132_v15 = vmax.f32 %v5082_v17, 0.0  ;;  %3868 = vst.msk [vmem:[#allocation2 + $0x2a8] sm:$0xff] %vm3223_vm5, %v3801_v19  ;;  %v4130_v17 = vld [vmem:[#allocation2 + $0x290] sm:$0xff] }
 0x540   :  { %8555 = vmatmul.mubr.msk.f32.vlgmr.msra.gmra.mrb[12].mxu1 %vm5194_vm8, %v5132_v15 }
 0x541   :  { %9100 = vmatpush3.bf16.msra.mxu1 %v9097_v35  ;;  %v4640_v23 = vpop.permute.xlu0 %4639  ;;  %v7668_v35 = vld [vmem:[%s14370_s3 + $0x100] sm:$0xff] }
 0x542   :  { %v3971_v46 = vpop.permute.xlu1 %3970  ;;  %9102 = vmatprep.subr.bf16.mxu1 %v9101_v29  ;;  %v9113_v61 = vpack.c.bf16 %v7669_v54, %v7668_v35  ;;  %v4783_v62 = vmax.f32 %v13090_v40, %v4640_v23  ;;  %v7671_v23 = vld [vmem:[%s14370_s3 + $0x118] sm:$0xff]  ;;  %v7673_v35 = vld [vmem:[%s14370_s3 + $0x128] sm:$0xff] }
 0x543   :  { %4039 = vst.msk [vmem:[#allocation2 + $0x298] sm:$0xff] %vm3685_vm7, %v3971_v46  ;;  %v7670_v46 = vld [vmem:[%s14370_s3 + $0x110] sm:$0xff] }
 0x545   :  { %9104 = vmatpush3.bf16.msra.mxu1 %v9101_v29 }
 0x546   :  { %v3891_v41 = vpop.permute.xlu1 %3890  ;;  %v4642_v21 = vpop.permute.xlu0 %4641  ;;  %9106 = vmatprep.subr.bf16.mxu1 %v9105_v48 }
 0x547   :  { %3958 = vst.msk [vmem:[#allocation2 + $0x2a8] sm:$0xff] %vm3474_vm6, %v3891_v41 }
 0x549   :  { %9108 = vmatpush3.bf16.msra.mxu1 %v9105_v48 }
 0x54a   :  { %v4890_v51 = vpop.permute.xlu1 %4889  ;;  %v3973_v20 = vpop.permute.xlu0 %3972  ;;  %v4131_v7 = vld [vmem:[#allocation2 + $0x298] sm:$0xff]  ;;  %9110 = vmatprep.subr.bf16.mxu1 %v9109_v56 }
 0x54b   :  { %v5033_v45 = vmax.f32 %v13092_v22, %v4890_v51  ;;  %4040 = vst.msk [vmem:[#allocation2 + $0x2a8] sm:$0xff] %vm3685_vm7, %v3973_v20  ;;  %v13489_v16 = vpop.f32.mrb[198].mxu0  ;;  %4522 = vmatprep.mubr.f32.mxu0 %v4131_v7  ;;  %v4784_v22 = vmax.f32 %v13100_v36, %v4642_v21  ;;  %v4132_v36 = vld [vmem:[#allocation2 + $0x2a0] sm:$0xff] }
 0x54c   :  { %v13491_v15 = vpop.f32.mrb[199].mxu0  ;;  %4681 = vrot.lane.b32.xlu0 %v13489_v16, %s9562_s0  ;;  %4523 = vmatmul.mubr.f32.gmra.mrb[226].mxu0 %v4130_v17  ;;  %v7672_v21 = vld [vmem:[%s14370_s3 + $0x120] sm:$0xff] }
 0x54d   :  { %v5083_v19 = vmax.f32 %v4783_v62, %v5033_v45  ;;  %4931 = vrot.lane.b32.xlu1 %v13491_v15, %s9562_s0  ;;  %9112 = vmatpush3.bf16.msra.mxu1 %v9109_v56  ;;  %v9121_v20 = vpack.c.bf16 %v7673_v35, %v7672_v21  ;;  %v7674_v62 = vld [vmem:[%s14370_s3 + $0x130] sm:$0xff]  ;;  %v7675_v45 = vld [vmem:[%s14370_s3 + $0x138] sm:$0xff] }
 0x54e   :  { %v4892_v40 = vpop.permute.xlu1 %4891  ;;  %v3893_v29 = vpop.permute.xlu0 %3892  ;;  %9114 = vmatprep.subr.bf16.mxu1 %v9113_v61  ;;  %v7680_v21 = vld [vmem:[%s14370_s3 + $0x150] sm:$0xff] }
 0x54f   :  { %v5133_v47 = vmax.f32 %v5083_v19, 0.0  ;;  %v5034_v9 = vmax.f32 %v13102_v42, %v4892_v40  ;;  %v9117_v42 = vpack.c.bf16 %v7671_v23, %v7670_v46 }
 0x551   :  { %v5084_v48 = vmax.f32 %v4784_v22, %v5034_v9  ;;  %8573 = vmatprep.mubr.msk.f32.mxu1 %vm5194_vm8, %v5133_v47  ;;  %v9125_v22 = vpack.c.bf16 %v7675_v45, %v7674_v62  ;;  %v7678_v47 = vld [vmem:[%s14370_s3 + $0x140] sm:$0xff]  ;;  %v7679_v9 = vld [vmem:[%s14370_s3 + $0x148] sm:$0xff] }
 0x552   :  { %v3803_v31 = vpop.permute.xlu1 %3802  ;;  %v4644_v10 = vpop.permute.xlu0 %4643  ;;  %v4133_v41 = vld [vmem:[#allocation2 + $0x2a8] sm:$0xff] }
 0x553   :  { %v5134_v56 = vmax.f32 %v5084_v48, 0.0  ;;  %3869 = vst.msk [vmem:[#allocation2 + $0x2b8] sm:$0xff] %vm3223_vm5, %v3803_v31  ;;  %4528 = vmatprep.mubr.f32.mxu0 %v4133_v41  ;;  %v4785_v40 = vmax.f32 %v13110_v44, %v4644_v10 }
 0x554   :  { %3959 = vst.msk [vmem:[#allocation2 + $0x2b8] sm:$0xff] %vm3474_vm6, %v3893_v29  ;;  %4529 = vmatmul.mubr.f32.gmra.mrb[228].mxu0 %v4132_v36  ;;  %v9129_v36 = vpack.c.bf16 %v7679_v9, %v7678_v47 }
 0x555   :  { %8574 = vmatmul.mubr.msk.f32.vlgmr.msra.gmra.mrb[12].mxu1 %vm5194_vm8, %v5134_v56  ;;  %v4134_v56 = vld [vmem:[#allocation2 + $0x2b0] sm:$0xff] }
 0x556   :  { %9116 = vmatpush3.bf16.msra.mxu1 %v9113_v61  ;;  %v3975_v54 = vpop.permute.xlu1 %3974  ;;  %v4646_v51 = vpop.permute.xlu0 %4645 }
 0x557   :  { %4041 = vst.msk [vmem:[#allocation2 + $0x2b8] sm:$0xff] %vm3685_vm7, %v3975_v54  ;;  %9118 = vmatprep.subr.bf16.mxu1 %v9117_v42  ;;  %v4786_v41 = vmax.f32 %v13118_v60, %v4646_v51  ;;  %v7681_v60 = vld [vmem:[%s14370_s3 + $0x158] sm:$0xff] }
 0x558   :  { %v13516_v7 = vpop.f32.mrb[200].mxu0  ;;  %v9133_v45 = vpack.c.bf16 %v7681_v60, %v7680_v21  ;;  %v7689_v21 = vld [vmem:[%s14370_s3 + $0x188] sm:$0xff] }
 0x559   :  { %v13524_v17 = vpop.f32.mrb[201].mxu0  ;;  %4683 = vrot.lane.b32.xlu0 %v13516_v7, %s9562_s0 }
 0x55a   :  { %9120 = vmatpush3.bf16.msra.mxu1 %v9117_v42  ;;  %4933 = vrot.lane.b32.xlu1 %v13524_v17, %s9562_s0  ;;  %v4894_v61 = vpop.permute.xlu1 %4893  ;;  %v4648_v19 = vpop.permute.xlu0 %4647 }
 0x55b   :  { %v5035_v29 = vmax.f32 %v13112_v18, %v4894_v61  ;;  %9122 = vmatprep.subr.bf16.mxu1 %v9121_v20  ;;  %v4787_v51 = vmax.f32 %v13140_v3, %v4648_v19  ;;  %v7682_v61 = vld [vmem:[%s14370_s3 + $0x160] sm:$0xff] }
 0x55d   :  { %v5085_v46 = vmax.f32 %v4785_v40, %v5035_v29  ;;  %v7683_v40 = vld [vmem:[%s14370_s3 + $0x168] sm:$0xff] }
 0x55e   :  { %9124 = vmatpush3.bf16.msra.mxu1 %v9121_v20  ;;  %v4896_v23 = vpop.permute.xlu1 %4895  ;;  %v4650_v48 = vpop.permute.xlu0 %4649  ;;  %v4135_v31 = vld [vmem:[#allocation2 + $0x2b8] sm:$0xff] }
 0x55f   :  { %v5135_v44 = vmax.f32 %v5085_v46, 0.0  ;;  %v5036_v18 = vmax.f32 %v13120_v4, %v4896_v23  ;;  %v13540_v10 = vpop.f32.mrb[202].mxu0  ;;  %4534 = vmatprep.mubr.f32.mxu0 %v4135_v31  ;;  %9126 = vmatprep.subr.bf16.mxu1 %v9125_v22  ;;  %v4788_v3 = vmax.f32 %v13159_v26, %v4650_v48  ;;  %v9137_v46 = vpack.c.bf16 %v7683_v40, %v7682_v61  ;;  %v7684_v31 = vld [vmem:[%s14370_s3 + $0x170] sm:$0xff]  ;;  %v7685_v26 = vld [vmem:[%s14370_s3 + $0x178] sm:$0xff] }
 0x560   :  { %v13542_v42 = vpop.f32.mrb[203].mxu0  ;;  %4685 = vrot.lane.b32.xlu0 %v13540_v10, %s9562_s0  ;;  %4535 = vmatmul.mubr.f32.gmra.mrb[230].mxu0 %v4134_v56  ;;  %v9141_v56 = vpack.c.bf16 %v7685_v26, %v7684_v31 }
 0x561   :  { %v5086_v4 = vmax.f32 %v4786_v41, %v5036_v18  ;;  %4935 = vrot.lane.b32.xlu1 %v13542_v42, %s9562_s0  ;;  %8592 = vmatprep.mubr.msk.f32.mxu1 %vm5194_vm8, %v5135_v44 }
 0x562   :  { %9128 = vmatpush3.bf16.msra.mxu1 %v9125_v22  ;;  %v4898_v35 = vpop.permute.xlu1 %4897  ;;  %v4652_v54 = vpop.permute.xlu0 %4651 }
 0x563   :  { %v5136_v20 = vmax.f32 %v5086_v4, 0.0  ;;  %v5037_v62 = vmax.f32 %v13145_v12, %v4898_v35  ;;  %9130 = vmatprep.subr.bf16.mxu1 %v9129_v36  ;;  %v4789_v44 = vmax.f32 %v13173_v34, %v4652_v54 }
 0x565   :  { %v5087_v29 = vmax.f32 %v4787_v51, %v5037_v62  ;;  %8593 = vmatmul.mubr.msk.f32.vlgmr.msra.gmra.mrb[12].mxu1 %vm5194_vm8, %v5136_v20  ;;  %v7690_v62 = vld [vmem:[%s14370_s3 + $0x190] sm:$0xff] }
 0x566   :  { %9132 = vmatpush3.bf16.msra.mxu1 %v9129_v36  ;;  %v4900_v22 = vpop.permute.xlu1 %4899  ;;  %v4654_v47 = vpop.permute.xlu0 %4653  ;;  %v7688_v36 = vld [vmem:[%s14370_s3 + $0x180] sm:$0xff] }
 0x567   :  { %v5137_v19 = vmax.f32 %v5087_v29, 0.0  ;;  %v5038_v12 = vmax.f32 %v13162_v33, %v4900_v22  ;;  %9134 = vmatprep.subr.bf16.mxu1 %v9133_v45  ;;  %v4790_v51 = vmax.f32 %v13189_v50, %v4654_v47 }
 0x568   :  { %v13566_v9 = vpop.f32.mrb[204].mxu0 }
 0x569   :  { %v13568_v23 = vpop.f32.mrb[205].mxu0  ;;  %4687 = vrot.lane.b32.xlu0 %v13566_v9, %s9562_s0  ;;  %v5088_v48 = vmax.f32 %v4788_v3, %v5038_v12  ;;  %8611 = vmatprep.mubr.msk.f32.mxu1 %vm5194_vm8, %v5137_v19  ;;  %v7692_v19 = vld [vmem:[%s14370_s3 + $0x1a0] sm:$0xff]  ;;  %v7693_v12 = vld [vmem:[%s14370_s3 + $0x1a8] sm:$0xff] }
 0x56a   :  { %4937 = vrot.lane.b32.xlu1 %v13568_v23, %s9562_s0  ;;  %9136 = vmatpush3.bf16.msra.mxu1 %v9133_v45  ;;  %v4902_v33 = vpop.permute.xlu1 %4901  ;;  %v4656_v41 = vpop.permute.xlu0 %4655  ;;  %v7691_v45 = vld [vmem:[%s14370_s3 + $0x198] sm:$0xff] }
 0x56b   :  { %v5039_v18 = vmax.f32 %v13176_v52, %v4902_v33  ;;  %9138 = vmatprep.subr.bf16.mxu1 %v9137_v46  ;;  %v9145_v52 = vpack.c.bf16 %v7689_v21, %v7688_v36  ;;  %v5138_v40 = vmax.f32 %v5088_v48, 0.0  ;;  %v4791_v29 = vmax.f32 %v13207_v28, %v4656_v41  ;;  %v7694_v33 = vld [vmem:[%s14370_s3 + $0x1b0] sm:$0xff]  ;;  %v7695_v41 = vld [vmem:[%s14370_s3 + $0x1b8] sm:$0xff]  ;;  %v7698_v21 = vld [vmem:[%s14370_s3 + $0x1c0] sm:$0xff] }
 0x56c   :  { %v9149_v47 = vpack.c.bf16 %v7691_v45, %v7690_v62  ;;  %v9153_v48 = vpack.c.bf16 %v7693_v12, %v7692_v19  ;;  %v7701_v62 = vld [vmem:[%s14370_s3 + $0x1d8] sm:$0xff]  ;;  %v7702_v12 = vld [vmem:[%s14370_s3 + $0x1e0] sm:$0xff] }
 0x56d   :  { %v5089_v60 = vmax.f32 %v4789_v44, %v5039_v18 }
 0x56e   :  { %9140 = vmatpush3.bf16.msra.mxu1 %v9137_v46  ;;  %v4904_v4 = vpop.permute.xlu1 %4903  ;;  %v4658_v35 = vpop.permute.xlu0 %4657 }
 0x56f   :  { %v5040_v34 = vmax.f32 %v13195_v38, %v4904_v4  ;;  %v13591_v54 = vpop.f32.mrb[206].mxu0  ;;  %9142 = vmatprep.subr.bf16.mxu1 %v9141_v56  ;;  %v5139_v3 = vmax.f32 %v5089_v60, 0.0  ;;  %v7699_v60 = vld [vmem:[%s14370_s3 + $0x1c8] sm:$0xff] }
 0x570   :  { %v13593_v20 = vpop.f32.mrb[207].mxu0  ;;  %4689 = vrot.lane.b32.xlu0 %v13591_v54, %s9562_s0 }
 0x571   :  { %v5090_v50 = vmax.f32 %v4790_v51, %v5040_v34  ;;  %4939 = vrot.lane.b32.xlu1 %v13593_v20, %s9562_s0 }
 0x572   :  { %9144 = vmatpush3.bf16.msra.mxu1 %v9141_v56  ;;  %v4906_v38 = vpop.permute.xlu1 %4905  ;;  %v4660_v61 = vpop.permute.xlu0 %4659 }
 0x573   :  { %v5041_v22 = vmax.f32 %v13211_v8, %v4906_v38  ;;  %9146 = vmatprep.subr.bf16.mxu1 %v9145_v52  ;;  %v4792_v8 = vmax.f32 %v13218_v39, %v4658_v35  ;;  %v4793_v36 = vmax.f32 %v13242_v27, %v4660_v61 }
 0x575   :  { %v5091_v46 = vmax.f32 %v4791_v29, %v5041_v22  ;;  %8612 = vmatmul.mubr.msk.f32.vlgmr.msra.gmra.mrb[12].mxu1 %vm5194_vm8, %v5138_v40  ;;  %v5140_v40 = vmax.f32 %v5090_v50, 0.0  ;;  %v14925_v29 = vld [vmem:[#allocation51_spill] sm:$0xff]  ;;  %v7703_v50 = vld [vmem:[%s14370_s3 + $0x1e8] sm:$0xff] }
 0x576   :  { %9148 = vmatpush3.bf16.msra.mxu1 %v9145_v52  ;;  %8630 = vmatprep.mubr.msk.f32.mxu1 %vm5194_vm8, %v5139_v3  ;;  %v4908_v28 = vpop.permute.xlu1 %4907  ;;  %v4662_v31 = vpop.permute.xlu0 %4661  ;;  %v7700_v52 = vld [vmem:[%s14370_s3 + $0x1d0] sm:$0xff] }
 0x577   :  { %v5042_v26 = vmax.f32 %v13222_v5, %v4908_v28  ;;  %9150 = vmatprep.subr.bf16.mxu1 %v9149_v47  ;;  %v9157_v5 = vpack.c.bf16 %v7695_v41, %v7694_v33  ;;  %v4794_v34 = vmax.f32 %v13253_v58, %v4662_v31  ;;  %v5141_v3 = vmax.f32 %v5091_v46, 0.0  ;;  %v7705_v33 = vld [vmem:[%s14370_s3 + $0x1f8] sm:$0xff] }
 0x579   :  { %v13623_v44 = vmax.f32 %v4792_v8, %v5042_v26  ;;  %v9169_v26 = vpack.c.bf16 %v7703_v50, %v7702_v12  ;;  %v7714_v12 = vld [vmem:[%s14370_s3 + $0x230] sm:$0xff]  ;;  %v7715_v50 = vld [vmem:[%s14370_s3 + $0x238] sm:$0xff] }
 0x57a   :  { %9152 = vmatpush3.bf16.msra.mxu1 %v9149_v47  ;;  %v4910_v18 = vpop.permute.xlu1 %4909  ;;  %v4664_v56 = vpop.permute.xlu0 %4663  ;;  %v9165_v47 = vpack.c.bf16 %v7701_v62, %v7700_v52 }
 0x57b   :  { %v5043_v39 = vmax.f32 %v13246_v43, %v4910_v18  ;;  %9154 = vmatprep.subr.bf16.mxu1 %v9153_v48  ;;  %v9161_v43 = vpack.c.bf16 %v7699_v60, %v7698_v21  ;;  %v4795_v58 = vmax.f32 %v14925_v29, %v4664_v56  ;;  %v5142_v62 = vmax.f32 %v13623_v44, 0.0  ;;  %v7713_v44 = vld [vmem:[%s14370_s3 + $0x228] sm:$0xff] }
 0x57d   :  { %v13633_v4 = vmax.f32 %v4793_v36, %v5043_v39  ;;  %v7708_v39 = vld [vmem:[%s14370_s3 + $0x200] sm:$0xff] }
 0x57e   :  { %9156 = vmatpush3.bf16.msra.mxu1 %v9153_v48  ;;  %v4912_v35 = vpop.permute.xlu1 %4911  ;;  %v4666_v51 = vpop.permute.xlu0 %4665  ;;  %v7704_v48 = vld [vmem:[%s14370_s3 + $0x1f0] sm:$0xff] }
 0x57f   :  { %v5044_v27 = vmax.f32 %v13257_v53, %v4912_v35  ;;  %9158 = vmatprep.subr.bf16.mxu1 %v9157_v5  ;;  %v4796_v31 = vmax.f32 %v13275_v49, %v4666_v51 }
 0x581   :  { %v13643_v45 = vmax.f32 %v4794_v34, %v5044_v27  ;;  %v7710_v34 = vld [vmem:[%s14370_s3 + $0x210] sm:$0xff]  ;;  %v7711_v27 = vld [vmem:[%s14370_s3 + $0x218] sm:$0xff] }
 0x582   :  { %9160 = vmatpush3.bf16.msra.mxu1 %v9157_v5  ;;  %v4914_v38 = vpop.permute.xlu1 %4913  ;;  %v4668_v61 = vpop.permute.xlu0 %4667  ;;  %v7709_v5 = vld [vmem:[%s14370_s3 + $0x208] sm:$0xff] }
 0x583   :  { %v5045_v53 = vmax.f32 %v13268_v2, %v4914_v38  ;;  %9162 = vmatprep.subr.bf16.mxu1 %v9161_v43  ;;  %v4797_v36 = vmax.f32 %v13286_v63, %v4668_v61  ;;  %v9181_v61 = vpack.c.bf16 %v7711_v27, %v7710_v34 }
 0x584   :  { %v13647_v22 = vpop.f32.mrb[208].mxu0 }
 0x585   :  { %v13649_v19 = vpop.f32.mrb[209].mxu0  ;;  %4691 = vrot.lane.b32.xlu0 %v13647_v22, %s9562_s0  ;;  %v13659_v28 = vmax.f32 %v4795_v58, %v5045_v53  ;;  %8631 = vmatmul.mubr.msk.f32.vlgmr.msra.gmra.mrb[12].mxu1 %vm5194_vm8, %v5140_v40  ;;  %v5143_v40 = vmax.f32 %v13633_v4, 0.0  ;;  %v7712_v53 = vld [vmem:[%s14370_s3 + $0x220] sm:$0xff] }
 0x586   :  { %4941 = vrot.lane.b32.xlu1 %v13649_v19, %s9562_s0  ;;  %9164 = vmatpush3.bf16.msra.mxu1 %v9161_v43  ;;  %v4916_v2 = vpop.permute.xlu1 %4915  ;;  %v4670_v46 = vpop.permute.xlu0 %4669 }
 0x587   :  { %8649 = vmatprep.mubr.msk.f32.mxu1 %vm5194_vm8, %v5141_v3  ;;  %v5046_v8 = vmax.f32 %v13279_v11, %v4916_v2  ;;  %9166 = vmatprep.subr.bf16.mxu1 %v9165_v47  ;;  %v9173_v11 = vpack.c.bf16 %v7705_v33, %v7704_v48  ;;  %v4798_v51 = vmax.f32 %v13297_v57, %v4670_v46  ;;  %v7718_v33 = vld [vmem:[%s14370_s3 + $0x240] sm:$0xff]  ;;  %v5145_v27 = vmax.f32 %v13659_v28, 0.0 }
 0x588   :  { %v9185_v3 = vpack.c.bf16 %v7713_v44, %v7712_v53  ;;  %v7728_v53 = vld [vmem:[%s14370_s3 + $0x280] sm:$0xff]  ;;  %v7729_v44 = vld [vmem:[%s14370_s3 + $0x288] sm:$0xff] }
 0x589   :  { %v13673_v41 = vmax.f32 %v4796_v31, %v5046_v8 }
 0x58a   :  { %9168 = vmatpush3.bf16.msra.mxu1 %v9165_v47  ;;  %v4918_v18 = vpop.permute.xlu1 %4917  ;;  %v4672_v56 = vpop.permute.xlu0 %4671 }
 0x58b   :  { %v5047_v49 = vmax.f32 %v13290_v1, %v4918_v18  ;;  %9170 = vmatprep.subr.bf16.mxu1 %v9169_v26  ;;  %v9177_v1 = vpack.c.bf16 %v7709_v5, %v7708_v39  ;;  %v4799_v57 = vmax.f32 %v13308_v13, %v4672_v56  ;;  %v7719_v18 = vld [vmem:[%s14370_s3 + $0x248] sm:$0xff] }
 0x58d   :  { %v13683_v21 = vmax.f32 %v4797_v36, %v5047_v49 }
 0x58e   :  { %9172 = vmatpush3.bf16.msra.mxu1 %v9169_v26  ;;  %v4920_v60 = vpop.permute.xlu1 %4919  ;;  %v4674_v35 = vpop.permute.xlu0 %4673  ;;  %v9189_v26 = vpack.c.bf16 %v7715_v50, %v7714_v12 }
 0x58f   :  { %v5048_v63 = vmax.f32 %v13301_v37, %v4920_v60  ;;  %9174 = vmatprep.subr.bf16.mxu1 %v9173_v11  ;;  %v4800_v4 = vmax.f32 %v13319_v14, %v4674_v35  ;;  %v7720_v60 = vld [vmem:[%s14370_s3 + $0x250] sm:$0xff]  ;;  %v5147_v50 = vmax.f32 %v13683_v21, 0.0 }
 0x591   :  { %v13693_v43 = vmax.f32 %v4798_v51, %v5048_v63  ;;  %v5144_v51 = vmax.f32 %v13643_v45, 0.0 }
 0x592   :  { %9176 = vmatpush3.bf16.msra.mxu1 %v9173_v11  ;;  %v4922_v52 = vpop.permute.xlu1 %4921  ;;  %v4676_v29 = vpop.permute.xlu0 %4675  ;;  %v9193_v11 = vpack.c.bf16 %v7719_v18, %v7718_v33  ;;  %v7734_v33 = vld [vmem:[%s14370_s3 + $0x2b0] sm:$0xff]  ;;  %v7735_v18 = vld [vmem:[%s14370_s3 + $0x2b8] sm:$0xff] }
 0x593   :  { %v5049_v37 = vmax.f32 %v13312_v59, %v4922_v52  ;;  %v13698_v38 = vpop.f32.mrb[0].mxu1  ;;  %9178 = vmatprep.subr.bf16.mxu1 %v9177_v1  ;;  %v4801_v8 = vmax.f32 %v13327_v30, %v4676_v29  ;;  %v7722_v52 = vld [vmem:[%s14370_s3 + $0x260] sm:$0xff] }
 0x594   :  { %v13701_v58 = vpop.f32.mrb[1].mxu1 }
 0x595   :  { %v13709_v13 = vmax.f32 %v4799_v57, %v5049_v37  ;;  %8650 = vmatmul.mubr.msk.f32.vlgmr.msra.gmra.mrb[12].mxu1 %vm5194_vm8, %v5142_v62  ;;  %v7723_v62 = vld [vmem:[%s14370_s3 + $0x268] sm:$0xff]  ;;  %v7724_v37 = vld [vmem:[%s14370_s3 + $0x270] sm:$0xff] }
 0x596   :  { %9180 = vmatpush3.bf16.msra.mxu1 %v9177_v1  ;;  %8668 = vmatprep.mubr.msk.f32.mxu1 %vm5194_vm8, %v5143_v40  ;;  %v4924_v59 = vpop.permute.xlu1 %4923  ;;  %v4678_v46 = vpop.permute.xlu0 %4677  ;;  %v9201_v45 = vpack.c.bf16 %v7723_v62, %v7722_v52  ;;  %v5148_v52 = vmax.f32 %v13693_v43, 0.0  ;;  %v7744_v43 = vld [vmem:[%s14370_s3 + $0x2f0] sm:$0xff] }
 0x597   :  { %v5050_v47 = vmax.f32 %v13321_v32, %v4924_v59  ;;  %9182 = vmatprep.subr.bf16.mxu1 %v9181_v61  ;;  %v4802_v56 = vmax.f32 %v13335_v55, %v4678_v46  ;;  %v7721_v55 = vld [vmem:[%s14370_s3 + $0x258] sm:$0xff]  ;;  %v9209_v59 = vpack.c.bf16 %v7729_v44, %v7728_v53 }
 0x598   :  { %v9197_v34 = vpack.c.bf16 %v7721_v55, %v7720_v60 }
 0x599   :  { %v13721_v2 = vmax.f32 %v4800_v4, %v5050_v47  ;;  %v7730_v4 = vld [vmem:[%s14370_s3 + $0x290] sm:$0xff]  ;;  %v7731_v47 = vld [vmem:[%s14370_s3 + $0x298] sm:$0xff] }
 0x59a   :  { %9184 = vmatpush3.bf16.msra.mxu1 %v9181_v61  ;;  %v4926_v31 = vpop.permute.xlu1 %4925  ;;  %v4680_v39 = vpop.permute.xlu0 %4679  ;;  %v7725_v61 = vld [vmem:[%s14370_s3 + $0x278] sm:$0xff]  ;;  %v9213_v12 = vpack.c.bf16 %v7731_v47, %v7730_v4 }
 0x59b   :  { %v5051_v14 = vmax.f32 %v13329_v24, %v4926_v31  ;;  %9186 = vmatprep.subr.bf16.mxu1 %v9185_v3  ;;  %v4803_v63 = vmax.f32 %v13414_v25, %v4680_v39  ;;  %v9205_v29 = vpack.c.bf16 %v7725_v61, %v7724_v37  ;;  %v7732_v31 = vld [vmem:[%s14370_s3 + $0x2a0] sm:$0xff]  ;;  %v7743_v61 = vld [vmem:[%s14370_s3 + $0x2e8] sm:$0xff] }
 0x59c   :  { %v13725_v32 = vpop.f32.mrb[210].mxu0  ;;  %v7742_v37 = vld [vmem:[%s14370_s3 + $0x2e0] sm:$0xff] }
 0x59d   :  { %v13727_v48 = vpop.f32.mrb[211].mxu0  ;;  %4693 = vrot.lane.b32.xlu0 %v13725_v32, %s9562_s0  ;;  %v13737_v30 = vmax.f32 %v4801_v8, %v5051_v14  ;;  %v7733_v8 = vld [vmem:[%s14370_s3 + $0x2a8] sm:$0xff] }
 0x59e   :  { %4943 = vrot.lane.b32.xlu1 %v13727_v48, %s9562_s0  ;;  %9188 = vmatpush3.bf16.msra.mxu1 %v9185_v3  ;;  %v4928_v24 = vpop.permute.xlu1 %4927  ;;  %v5146_v3 = vmax.f32 %v13673_v41, 0.0  ;;  %v9217_v21 = vpack.c.bf16 %v7733_v8, %v7732_v31 }
 0x59f   :  { %v5052_v36 = vmax.f32 %v13337_v0, %v4928_v24  ;;  %9190 = vmatprep.subr.bf16.mxu1 %v9189_v26  ;;  %v9221_v24 = vpack.c.bf16 %v7735_v18, %v7734_v33  ;;  %v7751_v18 = vld [vmem:[%s14370_s3 + $0x318] sm:$0xff] }
 0x5a0   :  { %v13743_v49 = vpop.f32.mrb[212].mxu0 }
 0x5a1   :  { %v13745_v5 = vpop.f32.mrb[213].mxu0  ;;  %4695 = vrot.lane.b32.xlu0 %v13743_v49, %s9562_s0  ;;  %v13755_v35 = vmax.f32 %v4802_v56, %v5052_v36  ;;  %v7738_v56 = vld [vmem:[%s14370_s3 + $0x2c0] sm:$0xff]  ;;  %v7739_v36 = vld [vmem:[%s14370_s3 + $0x2c8] sm:$0xff] }
 0x5a2   :  { %4945 = vrot.lane.b32.xlu1 %v13745_v5, %s9562_s0  ;;  %9192 = vmatpush3.bf16.msra.mxu1 %v9189_v26  ;;  %v4930_v0 = vpop.permute.xlu1 %4929  ;;  %v9225_v55 = vpack.c.bf16 %v7739_v36, %v7738_v56  ;;  %v5150_v56 = vmax.f32 %v13721_v2, 0.0 }
 0x5a3   :  { %v5053_v1 = vmax.f32 %v13421_v6, %v4930_v0  ;;  %9194 = vmatprep.subr.bf16.mxu1 %v9193_v11 }
 0x5a5   :  { %v13769_v57 = vmax.f32 %v4803_v63, %v5053_v1  ;;  %8669 = vmatmul.mubr.msk.f32.vlgmr.msra.gmra.mrb[12].mxu1 %vm5194_vm8, %v5144_v51  ;;  %v7740_v63 = vld [vmem:[%s14370_s3 + $0x2d0] sm:$0xff]  ;;  %v7741_v1 = vld [vmem:[%s14370_s3 + $0x2d8] sm:$0xff] }
 0x5a6   :  { %9196 = vmatpush3.bf16.msra.mxu1 %v9193_v11  ;;  %8687 = vmatprep.mubr.msk.f32.mxu1 %vm5194_vm8, %v5145_v27  ;;  %v13773_v25 = vpop.f32.mrb[2].mxu1  ;;  %v9229_v62 = vpack.c.bf16 %v7741_v1, %v7740_v63  ;;  %v7753_v63 = vld [vmem:[%s14370_s3 + $0x328] sm:$0xff]  ;;  %v7755_v1 = vld [vmem:[%s14370_s3 + $0x338] sm:$0xff] }
 0x5a7   :  { %v13775_v6 = vpop.f32.mrb[3].mxu1  ;;  %9198 = vmatprep.subr.bf16.mxu1 %v9197_v34 }
 0x5a8   :  { %v13777_v28 = vpop.f32.mrb[214].mxu0 }
 0x5a9   :  { %v13785_v40 = vpop.f32.mrb[215].mxu0  ;;  %4697 = vrot.lane.b32.xlu0 %v13777_v28, %s9562_s0 }
 0x5aa   :  { %9200 = vmatpush3.bf16.msra.mxu1 %v9197_v34  ;;  %4947 = vrot.lane.b32.xlu1 %v13785_v40, %s9562_s0 }
 0x5ab   :  { %9202 = vmatprep.subr.bf16.mxu1 %v9201_v45 }
 0x5ae   :  { %9204 = vmatpush3.bf16.msra.mxu1 %v9201_v45  ;;  %v5149_v45 = vmax.f32 %v13709_v13, 0.0  ;;  %v7745_v13 = vld [vmem:[%s14370_s3 + $0x2f8] sm:$0xff] }
 0x5af   :  { %9206 = vmatprep.subr.bf16.mxu1 %v9205_v29  ;;  %v9237_v44 = vpack.c.bf16 %v7745_v13, %v7744_v43 }
 0x5b2   :  { %9208 = vmatpush3.bf16.msra.mxu1 %v9205_v29  ;;  %v9233_v29 = vpack.c.bf16 %v7743_v61, %v7742_v37 }
 0x5b3   :  { %9210 = vmatprep.subr.bf16.mxu1 %v9209_v59 }
 0x5b4   :  { %v13805_v46 = vpop.f32.mrb[216].mxu0 }
 0x5b5   :  { %v13813_v14 = vpop.f32.mrb[4].mxu1  ;;  %8688 = vmatmul.mubr.msk.f32.vlgmr.msra.gmra.mrb[12].mxu1 %vm5194_vm8, %v5146_v3  ;;  %v13816_v26 = vpop.f32.mrb[217].mxu0  ;;  %4699 = vrot.lane.b32.xlu0 %v13805_v46, %s9562_s0  ;;  %v7748_v3 = vld [vmem:[%s14370_s3 + $0x300] sm:$0xff] }
 0x5b6   :  { %v13820_v41 = vpop.f32.mrb[5].mxu1  ;;  %9212 = vmatpush3.bf16.msra.mxu1 %v9209_v59  ;;  %8706 = vmatprep.mubr.msk.f32.mxu1 %vm5194_vm8, %v5147_v50 }
 0x5b7   :  { %4949 = vrot.lane.b32.xlu1 %v13816_v26, %s9562_s0  ;;  %9214 = vmatprep.subr.bf16.mxu1 %v9213_v12 }
 0x5ba   :  { %9216 = vmatpush3.bf16.msra.mxu1 %v9213_v12  ;;  %v7749_v12 = vld [vmem:[%s14370_s3 + $0x308] sm:$0xff] }
 0x5bb   :  { %9218 = vmatprep.subr.bf16.mxu1 %v9217_v21  ;;  %v9241_v33 = vpack.c.bf16 %v7749_v12, %v7748_v3  ;;  %v5152_v12 = vmax.f32 %v13755_v35, 0.0 }
 0x5be   :  { %9220 = vmatpush3.bf16.msra.mxu1 %v9217_v21  ;;  %v4682_v11 = vpop.permute.xlu0 %4681 }
 0x5bf   :  { %v4804_v39 = vmax.f32 %v13489_v16, %v4682_v11  ;;  %v4932_v60 = vpop.permute.xlu1 %4931  ;;  %9222 = vmatprep.subr.bf16.mxu1 %v9221_v24 }
 0x5c0   :  { %v5054_v0 = vmax.f32 %v13491_v15, %v4932_v60  ;;  %v13839_v51 = vpop.f32.mrb[218].mxu0  ;;  %v5151_v60 = vmax.f32 %v13737_v30, 0.0 }
 0x5c1   :  { %v13847_v34 = vpop.f32.mrb[6].mxu1  ;;  %v13849_v27 = vpop.f32.mrb[219].mxu0  ;;  %4701 = vrot.lane.b32.xlu0 %v13839_v51, %s9562_s0 }
 0x5c2   :  { %v13853_v16 = vmax.f32 %v4804_v39, %v5054_v0  ;;  %v13855_v15 = vpop.f32.mrb[7].mxu1  ;;  %9224 = vmatpush3.bf16.msra.mxu1 %v9221_v24  ;;  %4951 = vrot.lane.b32.xlu1 %v13849_v27, %s9562_s0  ;;  %v7752_v0 = vld [vmem:[%s14370_s3 + $0x320] sm:$0xff] }
 0x5c3   :  { %9226 = vmatprep.subr.bf16.mxu1 %v9225_v55 }
 0x5c5   :  { %8707 = vmatmul.mubr.msk.f32.vlgmr.msra.gmra.mrb[12].mxu1 %vm5194_vm8, %v5148_v52 }
 0x5c6   :  { %9228 = vmatpush3.bf16.msra.mxu1 %v9225_v55  ;;  %8725 = vmatprep.mubr.msk.f32.mxu1 %vm5194_vm8, %v5149_v45 }
 0x5c7   :  { %9230 = vmatprep.subr.bf16.mxu1 %v9229_v62 }
 0x5ca   :  { %9232 = vmatpush3.bf16.msra.mxu1 %v9229_v62 }
 0x5cb   :  { %v4684_v53 = vpop.permute.xlu0 %4683  ;;  %9234 = vmatprep.subr.bf16.mxu1 %v9233_v29 }
 0x5cc   :  { %v4805_v59 = vmax.f32 %v13516_v7, %v4684_v53  ;;  %v13876_v4 = vpop.f32.mrb[220].mxu0  ;;  %v4934_v47 = vpop.permute.xlu1 %4933  ;;  %v7758_v53 = vld [vmem:[%s14370_s3 + $0x340] sm:$0xff] }
 0x5cd   :  { %v5055_v50 = vmax.f32 %v13524_v17, %v4934_v47  ;;  %v13885_v31 = vpop.f32.mrb[8].mxu1  ;;  %v13887_v8 = vpop.f32.mrb[221].mxu0  ;;  %4703 = vrot.lane.b32.xlu0 %v13876_v4, %s9562_s0  ;;  %v7750_v17 = vld [vmem:[%s14370_s3 + $0x310] sm:$0xff] }
 0x5ce   :  { %v13891_v7 = vpop.f32.mrb[9].mxu1  ;;  %9236 = vmatpush3.bf16.msra.mxu1 %v9233_v29  ;;  %4953 = vrot.lane.b32.xlu1 %v13887_v8, %s9562_s0  ;;  %v9245_v39 = vpack.c.bf16 %v7751_v18, %v7750_v17  ;;  %v5153_v18 = vmax.f32 %v13769_v57, 0.0  ;;  %v7765_v57 = vld [vmem:[%s14370_s3 + $0x378] sm:$0xff] }
 0x5cf   :  { %v13895_v21 = vmax.f32 %v4805_v59, %v5055_v50  ;;  %9238 = vmatprep.subr.bf16.mxu1 %v9237_v44 }
 0x5d2   :  { %9240 = vmatpush3.bf16.msra.mxu1 %v9237_v44  ;;  %v4686_v24 = vpop.permute.xlu0 %4685  ;;  %v7759_v44 = vld [vmem:[%s14370_s3 + $0x348] sm:$0xff] }
 0x5d3   :  { %v4806_v36 = vmax.f32 %v13540_v10, %v4686_v24  ;;  %v4936_v11 = vpop.permute.xlu1 %4935  ;;  %9242 = vmatprep.subr.bf16.mxu1 %v9241_v33  ;;  %v9249_v10 = vpack.c.bf16 %v7753_v63, %v7752_v0  ;;  %v9257_v47 = vpack.c.bf16 %v7759_v44, %v7758_v53  ;;  %v7770_v0 = vld [vmem:[%s14370_s3 + $0x390] sm:$0xff]  ;;  %v7771_v63 = vld [vmem:[%s14370_s3 + $0x398] sm:$0xff] }
 0x5d4   :  { %v5056_v55 = vmax.f32 %v13542_v42, %v4936_v11  ;;  %v7754_v42 = vld [vmem:[%s14370_s3 + $0x330] sm:$0xff]  ;;  %v7775_v44 = vld [vmem:[%s14370_s3 + $0x3b8] sm:$0xff] }
 0x5d5   :  { %8726 = vmatmul.mubr.msk.f32.vlgmr.msra.gmra.mrb[12].mxu1 %vm5194_vm8, %v5150_v56  ;;  %v9253_v43 = vpack.c.bf16 %v7755_v1, %v7754_v42  ;;  %v7762_v56 = vld [vmem:[%s14370_s3 + $0x360] sm:$0xff]  ;;  %v9277_v42 = vpack.c.bf16 %v7771_v63, %v7770_v0  ;;  %v5155_v1 = vmax.f32 %v13895_v21, 0.0  ;;  %v7774_v53 = vld [vmem:[%s14370_s3 + $0x3b0] sm:$0xff] }
 0x5d6   :  { %v13914_v2 = vmax.f32 %v4806_v36, %v5056_v55  ;;  %9244 = vmatpush3.bf16.msra.mxu1 %v9241_v33  ;;  %8744 = vmatprep.mubr.msk.f32.mxu1 %vm5194_vm8, %v5151_v60  ;;  %v7763_v36 = vld [vmem:[%s14370_s3 + $0x368] sm:$0xff] }
 0x5d7   :  { %9246 = vmatprep.subr.bf16.mxu1 %v9245_v39  ;;  %v7769_v60 = vld [vmem:[%s14370_s3 + $0x388] sm:$0xff] }
 0x5d8   :  { %v13917_v30 = vpop.f32.mrb[222].mxu0 }
 0x5d9   :  { %v13925_v52 = vpop.f32.mrb[10].mxu1  ;;  %v13927_v62 = vpop.f32.mrb[223].mxu0  ;;  %4705 = vrot.lane.b32.xlu0 %v13917_v30, %s9562_s0 }
 0x5da   :  { %v13931_v45 = vpop.f32.mrb[11].mxu1  ;;  %9248 = vmatpush3.bf16.msra.mxu1 %v9245_v39  ;;  %4955 = vrot.lane.b32.xlu1 %v13927_v62, %s9562_s0  ;;  %v7768_v39 = vld [vmem:[%s14370_s3 + $0x380] sm:$0xff] }
 0x5db   :  { %v4688_v37 = vpop.permute.xlu0 %4687  ;;  %9250 = vmatprep.subr.bf16.mxu1 %v9249_v10  ;;  %v9273_v55 = vpack.c.bf16 %v7769_v60, %v7768_v39 }
 0x5dc   :  { %v4807_v61 = vmax.f32 %v13566_v9, %v4688_v37  ;;  %v4938_v29 = vpop.permute.xlu1 %4937  ;;  %v7760_v9 = vld [vmem:[%s14370_s3 + $0x350] sm:$0xff]  ;;  %v7772_v37 = vld [vmem:[%s14370_s3 + $0x3a0] sm:$0xff] }
 0x5dd   :  { %v5057_v13 = vmax.f32 %v13568_v23, %v4938_v29  ;;  %v7761_v23 = vld [vmem:[%s14370_s3 + $0x358] sm:$0xff] }
 0x5de   :  { %9252 = vmatpush3.bf16.msra.mxu1 %v9249_v10  ;;  %v9261_v17 = vpack.c.bf16 %v7761_v23, %v7760_v9  ;;  %v5154_v10 = vmax.f32 %v13853_v16, 0.0  ;;  %v9285_v9 = vpack.c.bf16 %v7775_v44, %v7774_v53 }
 0x5df   :  { %v13943_v59 = vmax.f32 %v4807_v61, %v5057_v13  ;;  %9254 = vmatprep.subr.bf16.mxu1 %v9253_v43  ;;  %v7773_v61 = vld [vmem:[%s14370_s3 + $0x3a8] sm:$0xff] }
 0x5e0   :  { %v9281_v13 = vpack.c.bf16 %v7773_v61, %v7772_v37 }
 0x5e2   :  { %9256 = vmatpush3.bf16.msra.mxu1 %v9253_v43  ;;  %v4690_v3 = vpop.permute.xlu0 %4689 }
 0x5e3   :  { %v4808_v50 = vmax.f32 %v13591_v54, %v4690_v3  ;;  %v4940_v33 = vpop.permute.xlu1 %4939  ;;  %9258 = vmatprep.subr.bf16.mxu1 %v9257_v47  ;;  %v9265_v54 = vpack.c.bf16 %v7763_v36, %v7762_v56  ;;  %v7780_v3 = vld [vmem:[%s14370_s3 + $0x3d0] sm:$0xff] }
 0x5e4   :  { %v5058_v24 = vmax.f32 %v13593_v20, %v4940_v33  ;;  %v7764_v20 = vld [vmem:[%s14370_s3 + $0x370] sm:$0xff] }
 0x5e5   :  { %8745 = vmatmul.mubr.msk.f32.vlgmr.msra.gmra.mrb[12].mxu1 %vm5194_vm8, %v5152_v12  ;;  %v9269_v11 = vpack.c.bf16 %v7765_v57, %v7764_v20  ;;  %v7781_v12 = vld [vmem:[%s14370_s3 + $0x3d8] sm:$0xff]  ;;  %v7784_v36 = vld [vmem:[%s14370_s3 + $0x3f0] sm:$0xff]  ;;  %v7788_v57 = vld [vmem:[%s14370_s3 + $0x400] sm:$0xff] }
 0x5e6   :  { %v13962_v35 = vmax.f32 %v4808_v50, %v5058_v24  ;;  %9260 = vmatpush3.bf16.msra.mxu1 %v9257_v47  ;;  %8763 = vmatprep.mubr.msk.f32.mxu1 %vm5194_vm8, %v5153_v18  ;;  %v5156_v50 = vmax.f32 %v13914_v2, 0.0  ;;  %v9293_v33 = vpack.c.bf16 %v7781_v12, %v7780_v3  ;;  %v7782_v18 = vld [vmem:[%s14370_s3 + $0x3e0] sm:$0xff]  ;;  %v7783_v24 = vld [vmem:[%s14370_s3 + $0x3e8] sm:$0xff] }
 0x5e7   :  { %9262 = vmatprep.subr.bf16.mxu1 %v9261_v17 }
 0x5e8   :  { %v5158_v61 = vmax.f32 %v13962_v35, 0.0  ;;  %v7795_v35 = vld [vmem:[%s14370_s3 + $0x438] sm:$0xff] }
 0x5ea   :  { %9264 = vmatpush3.bf16.msra.mxu1 %v9261_v17  ;;  %v5157_v17 = vmax.f32 %v13943_v59, 0.0  ;;  %v9297_v59 = vpack.c.bf16 %v7783_v24, %v7782_v18  ;;  %v7801_v18 = vld [vmem:[%s14370_s3 + $0x458] sm:$0xff] }
 0x5eb   :  { %9266 = vmatprep.subr.bf16.mxu1 %v9265_v54 }
 0x5ee   :  { %9268 = vmatpush3.bf16.msra.mxu1 %v9265_v54  ;;  %v7785_v54 = vld [vmem:[%s14370_s3 + $0x3f8] sm:$0xff] }
 0x5ef   :  { %9270 = vmatprep.subr.bf16.mxu1 %v9269_v11  ;;  %v9301_v20 = vpack.c.bf16 %v7785_v54, %v7784_v36  ;;  %v7802_v36 = vld [vmem:[%s14370_s3 + $0x460] sm:$0xff]  ;;  %v7803_v54 = vld [vmem:[%s14370_s3 + $0x468] sm:$0xff] }
 0x5f2   :  { %9272 = vmatpush3.bf16.msra.mxu1 %v9269_v11  ;;  %v7789_v11 = vld [vmem:[%s14370_s3 + $0x408] sm:$0xff] }
 0x5f3   :  { %9274 = vmatprep.subr.bf16.mxu1 %v9273_v55  ;;  %v9305_v0 = vpack.c.bf16 %v7789_v11, %v7788_v57  ;;  %v9329_v11 = vpack.c.bf16 %v7803_v54, %v7802_v36  ;;  %v7822_v54 = vld [vmem:[%s14370_s3 + $0x4e0] sm:$0xff] }
 0x5f5   :  { %8764 = vmatmul.mubr.msk.f32.vlgmr.msra.gmra.mrb[12].mxu1 %vm5194_vm8, %v5154_v10  ;;  %v7790_v10 = vld [vmem:[%s14370_s3 + $0x410] sm:$0xff] }
 0x5f6   :  { %9276 = vmatpush3.bf16.msra.mxu1 %v9273_v55  ;;  %8782 = vmatprep.mubr.msk.f32.mxu1 %vm5194_vm8, %v5155_v1 }
 0x5f7   :  { %v4692_v29 = vpop.permute.xlu0 %4691  ;;  %9278 = vmatprep.subr.bf16.mxu1 %v9277_v42 }
 0x5f8   :  { %v4809_v16 = vmax.f32 %v13647_v22, %v4692_v29  ;;  %v4942_v43 = vpop.permute.xlu1 %4941  ;;  %v7778_v22 = vld [vmem:[%s14370_s3 + $0x3c0] sm:$0xff] }
 0x5f9   :  { %v5059_v21 = vmax.f32 %v13649_v19, %v4942_v43  ;;  %v7779_v19 = vld [vmem:[%s14370_s3 + $0x3c8] sm:$0xff] }
 0x5fa   :  { %9280 = vmatpush3.bf16.msra.mxu1 %v9277_v42  ;;  %v9289_v23 = vpack.c.bf16 %v7779_v19, %v7778_v22  ;;  %v7791_v42 = vld [vmem:[%s14370_s3 + $0x418] sm:$0xff]  ;;  %v7798_v19 = vld [vmem:[%s14370_s3 + $0x440] sm:$0xff] }
 0x5fb   :  { %v5109_v47 = vmax.f32 %v4809_v16, %v5059_v21  ;;  %9282 = vmatprep.subr.bf16.mxu1 %v9281_v13  ;;  %v9309_v16 = vpack.c.bf16 %v7791_v42, %v7790_v10  ;;  %v7793_v21 = vld [vmem:[%s14370_s3 + $0x428] sm:$0xff] }
 0x5fd   :  { %v5159_v43 = vmax.f32 %v5109_v47, 0.0 }
 0x5fe   :  { %9284 = vmatpush3.bf16.msra.mxu1 %v9281_v13  ;;  %v7792_v13 = vld [vmem:[%s14370_s3 + $0x420] sm:$0xff] }
 0x5ff   :  { %9286 = vmatprep.subr.bf16.mxu1 %v9285_v9 }
 0x602   :  { %9288 = vmatpush3.bf16.msra.mxu1 %v9285_v9 }
 0x603   :  { %9290 = vmatprep.subr.bf16.mxu1 %v9289_v23 }
 0x605   :  { %8783 = vmatmul.mubr.msk.f32.vlgmr.msra.gmra.mrb[12].mxu1 %vm5194_vm8, %v5156_v50 }
 0x606   :  { %9292 = vmatpush3.bf16.msra.mxu1 %v9289_v23  ;;  %8801 = vmatprep.mubr.msk.f32.mxu1 %vm5194_vm8, %v5157_v17  ;;  %v14023_v56 = vpop.f32.mrb[224].mxu0  ;;  %v7799_v23 = vld [vmem:[%s14370_s3 + $0x448] sm:$0xff]  ;;  %v7800_v17 = vld [vmem:[%s14370_s3 + $0x450] sm:$0xff] }
 0x607   :  { %4707 = vrot.lane.b32.xlu0 %v14023_v56, %s9562_s0  ;;  %v14027_v2 = vpop.f32.mrb[225].mxu0  ;;  %9294 = vmatprep.subr.bf16.mxu1 %v9293_v33  ;;  %v9325_v24 = vpack.c.bf16 %v7801_v18, %v7800_v17  ;;  %v7820_v18 = vld [vmem:[%s14370_s3 + $0x4d0] sm:$0xff] }
 0x608   :  { %4957 = vrot.lane.b32.xlu1 %v14027_v2, %s9562_s0 }
 0x60a   :  { %9296 = vmatpush3.bf16.msra.mxu1 %v9293_v33  ;;  %v9321_v33 = vpack.c.bf16 %v7799_v23, %v7798_v19  ;;  %v7818_v19 = vld [vmem:[%s14370_s3 + $0x4c0] sm:$0xff]  ;;  %v7819_v23 = vld [vmem:[%s14370_s3 + $0x4c8] sm:$0xff] }
 0x60b   :  { %9298 = vmatprep.subr.bf16.mxu1 %v9297_v59 }
 0x60e   :  { %9300 = vmatpush3.bf16.msra.mxu1 %v9297_v59 }
 0x60f   :  { %v4694_v39 = vpop.permute.xlu0 %4693  ;;  %9302 = vmatprep.subr.bf16.mxu1 %v9301_v20 }
 0x610   :  { %v4810_v60 = vmax.f32 %v13725_v32, %v4694_v39  ;;  %v4944_v55 = vpop.permute.xlu1 %4943 }
 0x611   :  { %v5060_v63 = vmax.f32 %v13727_v48, %v4944_v55  ;;  %v7804_v55 = vld [vmem:[%s14370_s3 + $0x470] sm:$0xff] }
 0x612   :  { %9304 = vmatpush3.bf16.msra.mxu1 %v9301_v20 }
 0x613   :  { %v5110_v1 = vmax.f32 %v4810_v60, %v5060_v63  ;;  %v4696_v37 = vpop.permute.xlu0 %4695  ;;  %9306 = vmatprep.subr.bf16.mxu1 %v9305_v0 }
 0x614   :  { %v4811_v32 = vmax.f32 %v13743_v49, %v4696_v37  ;;  %v4946_v29 = vpop.permute.xlu1 %4945  ;;  %v9313_v49 = vpack.c.bf16 %v7793_v21, %v7792_v13  ;;  %v7809_v37 = vld [vmem:[%s14370_s3 + $0x488] sm:$0xff] }
 0x615   :  { %v5061_v48 = vmax.f32 %v13745_v5, %v4946_v29  ;;  %8802 = vmatmul.mubr.msk.f32.vlgmr.msra.gmra.mrb[12].mxu1 %vm5194_vm8, %v5158_v61  ;;  %v7794_v5 = vld [vmem:[%s14370_s3 + $0x430] sm:$0xff] }
 0x616   :  { %9308 = vmatpush3.bf16.msra.mxu1 %v9305_v0  ;;  %8820 = vmatprep.mubr.msk.f32.mxu1 %vm5194_vm8, %v5159_v43  ;;  %v9317_v47 = vpack.c.bf16 %v7795_v35, %v7794_v5  ;;  %v7805_v0 = vld [vmem:[%s14370_s3 + $0x478] sm:$0xff]  ;;  %v7812_v5 = vld [vmem:[%s14370_s3 + $0x4a0] sm:$0xff]  ;;  %v7813_v35 = vld [vmem:[%s14370_s3 + $0x4a8] sm:$0xff] }
 0x617   :  { %v5111_v53 = vmax.f32 %v4811_v32, %v5061_v48  ;;  %9310 = vmatprep.subr.bf16.mxu1 %v9309_v16  ;;  %v7810_v32 = vld [vmem:[%s14370_s3 + $0x490] sm:$0xff] }
 0x619   :  { %v5161_v59 = vmax.f32 %v5111_v53, 0.0 }
 0x61a   :  { %9312 = vmatpush3.bf16.msra.mxu1 %v9309_v16 }
 0x61b   :  { %v4698_v44 = vpop.permute.xlu0 %4697  ;;  %9314 = vmatprep.subr.bf16.mxu1 %v9313_v49 }
 0x61c   :  { %v4812_v9 = vmax.f32 %v13777_v28, %v4698_v44  ;;  %v4948_v22 = vpop.permute.xlu1 %4947 }
 0x61d   :  { %v5062_v3 = vmax.f32 %v13785_v40, %v4948_v22  ;;  %v5160_v40 = vmax.f32 %v5110_v1, 0.0  ;;  %v7808_v1 = vld [vmem:[%s14370_s3 + $0x480] sm:$0xff] }
 0x61e   :  { %9316 = vmatpush3.bf16.msra.mxu1 %v9313_v49  ;;  %v9337_v61 = vpack.c.bf16 %v7809_v37, %v7808_v1  ;;  %v7829_v1 = vld [vmem:[%s14370_s3 + $0x508] sm:$0xff] }
 0x61f   :  { %v5112_v12 = vmax.f32 %v4812_v9, %v5062_v3  ;;  %v14076_v50 = vpop.f32.mrb[226].mxu0  ;;  %9318 = vmatprep.subr.bf16.mxu1 %v9317_v47  ;;  %v7814_v9 = vld [vmem:[%s14370_s3 + $0x4b0] sm:$0xff] }
 0x620   :  { %4709 = vrot.lane.b32.xlu0 %v14076_v50, %s9562_s0  ;;  %v14080_v28 = vpop.f32.mrb[227].mxu0 }
 0x621   :  { %4959 = vrot.lane.b32.xlu1 %v14080_v28, %s9562_s0  ;;  %v5162_v29 = vmax.f32 %v5112_v12, 0.0  ;;  %v9353_v12 = vpack.c.bf16 %v7819_v23, %v7818_v19 }
 0x622   :  { %9320 = vmatpush3.bf16.msra.mxu1 %v9317_v47  ;;  %v9345_v47 = vpack.c.bf16 %v7813_v35, %v7812_v5  ;;  %v7838_v35 = vld [vmem:[%s14370_s3 + $0x540] sm:$0xff] }
 0x623   :  { %9322 = vmatprep.subr.bf16.mxu1 %v9321_v33 }
 0x625   :  { %8821 = vmatmul.mubr.msk.f32.vlgmr.msra.gmra.mrb[12].mxu1 %vm5194_vm8, %v5160_v40  ;;  %v7821_v40 = vld [vmem:[%s14370_s3 + $0x4d8] sm:$0xff] }
 0x626   :  { %9324 = vmatpush3.bf16.msra.mxu1 %v9321_v33  ;;  %8839 = vmatprep.mubr.msk.f32.mxu1 %vm5194_vm8, %v5161_v59  ;;  %v9357_v36 = vpack.c.bf16 %v7821_v40, %v7820_v18  ;;  %v7840_v18 = vld [vmem:[%s14370_s3 + $0x550] sm:$0xff] }
 0x627   :  { %v14098_v20 = vpop.f32.mrb[228].mxu0  ;;  %v4700_v57 = vpop.permute.xlu0 %4699  ;;  %9326 = vmatprep.subr.bf16.mxu1 %v9325_v24 }
 0x628   :  { %v4813_v39 = vmax.f32 %v13805_v46, %v4700_v57  ;;  %4711 = vrot.lane.b32.xlu0 %v14098_v20, %s9562_s0  ;;  %v14103_v60 = vpop.f32.mrb[229].mxu0  ;;  %v9333_v46 = vpack.c.bf16 %v7805_v0, %v7804_v55  ;;  %v7823_v57 = vld [vmem:[%s14370_s3 + $0x4e8] sm:$0xff]  ;;  %v7825_v55 = vld [vmem:[%s14370_s3 + $0x4f8] sm:$0xff] }
 0x629   :  { %v4950_v63 = vpop.permute.xlu1 %4949  ;;  %4961 = vrot.lane.b32.xlu1 %v14103_v60, %s9562_s0 }
 0x62a   :  { %v5063_v10 = vmax.f32 %v13816_v26, %v4950_v63  ;;  %9328 = vmatpush3.bf16.msra.mxu1 %v9325_v24  ;;  %v7811_v26 = vld [vmem:[%s14370_s3 + $0x498] sm:$0xff] }
 0x62b   :  { %9330 = vmatprep.subr.bf16.mxu1 %v9329_v11  ;;  %v9341_v48 = vpack.c.bf16 %v7811_v26, %v7810_v32  ;;  %v7830_v32 = vld [vmem:[%s14370_s3 + $0x510] sm:$0xff]  ;;  %v7831_v26 = vld [vmem:[%s14370_s3 + $0x518] sm:$0xff] }
 0x62c   :  { %v5113_v42 = vmax.f32 %v4813_v39, %v5063_v10  ;;  %v7824_v39 = vld [vmem:[%s14370_s3 + $0x4f0] sm:$0xff] }
 0x62d   :  { %v9365_v63 = vpack.c.bf16 %v7825_v55, %v7824_v39 }
 0x62e   :  { %9332 = vmatpush3.bf16.msra.mxu1 %v9329_v11  ;;  %v5163_v13 = vmax.f32 %v5113_v42, 0.0  ;;  %v9361_v11 = vpack.c.bf16 %v7823_v57, %v7822_v54  ;;  %v7828_v42 = vld [vmem:[%s14370_s3 + $0x500] sm:$0xff] }
 0x62f   :  { %9334 = vmatprep.subr.bf16.mxu1 %v9333_v46 }
 0x632   :  { %9336 = vmatpush3.bf16.msra.mxu1 %v9333_v46 }
 0x633   :  { %v14126_v16 = vpop.f32.mrb[230].mxu0  ;;  %v4702_v43 = vpop.permute.xlu0 %4701  ;;  %9338 = vmatprep.subr.bf16.mxu1 %v9337_v61 }
 0x634   :  { %v4814_v21 = vmax.f32 %v13839_v51, %v4702_v43  ;;  %v4952_v53 = vpop.permute.xlu1 %4951  ;;  %4713 = vrot.lane.b32.xlu0 %v14126_v16, %s9562_s0  ;;  %v14131_v49 = vpop.f32.mrb[231].mxu0  ;;  %v9373_v43 = vpack.c.bf16 %v7831_v26, %v7830_v32 }
 0x635   :  { %v5064_v44 = vmax.f32 %v13849_v27, %v4952_v53  ;;  %8840 = vmatmul.mubr.msk.f32.vlgmr.msra.gmra.mrb[12].mxu1 %vm5194_vm8, %v5162_v29  ;;  %4963 = vrot.lane.b32.xlu1 %v14131_v49, %s9562_s0  ;;  %v7815_v27 = vld [vmem:[%s14370_s3 + $0x4b8] sm:$0xff] }
 0x636   :  { %9340 = vmatpush3.bf16.msra.mxu1 %v9337_v61  ;;  %8858 = vmatprep.mubr.msk.f32.mxu1 %vm5194_vm8, %v5163_v13  ;;  %v9349_v22 = vpack.c.bf16 %v7815_v27, %v7814_v9  ;;  %v7835_v53 = vld [vmem:[%s14370_s3 + $0x538] sm:$0xff] }
 0x637   :  { %v5114_v51 = vmax.f32 %v4814_v21, %v5064_v44  ;;  %9342 = vmatprep.subr.bf16.mxu1 %v9341_v48  ;;  %v7834_v21 = vld [vmem:[%s14370_s3 + $0x530] sm:$0xff]  ;;  %v7839_v44 = vld [vmem:[%s14370_s3 + $0x548] sm:$0xff] }
 0x638   :  { %4715 = vrot.lane.b32.xlu0 %v13698_v38, %s9562_s0  ;;  %v9381_v5 = vpack.c.bf16 %v7835_v53, %v7834_v21 }
 0x639   :  { %4965 = vrot.lane.b32.xlu1 %v13701_v58, %s9562_s0  ;;  %v5164_v59 = vmax.f32 %v5114_v51, 0.0  ;;  %v9385_v51 = vpack.c.bf16 %v7839_v44, %v7838_v35  ;;  %v7854_v44 = vld [vmem:[%s14370_s3 + $0x5b0] sm:$0xff] }
 0x63a   :  { %9344 = vmatpush3.bf16.msra.mxu1 %v9341_v48  ;;  %v7833_v48 = vld [vmem:[%s14370_s3 + $0x528] sm:$0xff] }
 0x63b   :  { %9346 = vmatprep.subr.bf16.mxu1 %v9345_v47 }
 0x63c   :  { %4717 = vrot.lane.b32.xlu0 %v13773_v25, %s9562_s0 }
 0x63d   :  { %4967 = vrot.lane.b32.xlu1 %v13775_v6, %s9562_s0 }
 0x63e   :  { %9348 = vmatpush3.bf16.msra.mxu1 %v9345_v47 }
 0x63f   :  { %v4704_v3 = vpop.permute.xlu0 %4703  ;;  %9350 = vmatprep.subr.bf16.mxu1 %v9349_v22 }
 0x640   :  { %v4815_v33 = vmax.f32 %v13876_v4, %v4704_v3  ;;  %v4954_v17 = vpop.permute.xlu1 %4953  ;;  %4719 = vrot.lane.b32.xlu0 %v13813_v14, %s9562_s0 }
 0x641   :  { %v5065_v24 = vmax.f32 %v13887_v8, %v4954_v17  ;;  %4969 = vrot.lane.b32.xlu1 %v13820_v41, %s9562_s0 }
 0x642   :  { %9352 = vmatpush3.bf16.msra.mxu1 %v9349_v22 }
 0x643   :  { %v5115_v4 = vmax.f32 %v4815_v33, %v5065_v24  ;;  %9354 = vmatprep.subr.bf16.mxu1 %v9353_v12 }
 0x644   :  { %4721 = vrot.lane.b32.xlu0 %v13847_v34, %s9562_s0 }
 0x645   :  { %v5165_v8 = vmax.f32 %v5115_v4, 0.0  ;;  %8859 = vmatmul.mubr.msk.f32.vlgmr.msra.gmra.mrb[12].mxu1 %vm5194_vm8, %v5164_v59  ;;  %4971 = vrot.lane.b32.xlu1 %v13855_v15, %s9562_s0  ;;  %v7842_v59 = vld [vmem:[%s14370_s3 + $0x560] sm:$0xff] }
 0x646   :  { %9356 = vmatpush3.bf16.msra.mxu1 %v9353_v12 }
 0x647   :  { %8877 = vmatprep.mubr.msk.f32.mxu1 %vm5194_vm8, %v5165_v8  ;;  %9358 = vmatprep.subr.bf16.mxu1 %v9357_v36  ;;  %v7844_v8 = vld [vmem:[%s14370_s3 + $0x570] sm:$0xff] }
 0x648   :  { %4723 = vrot.lane.b32.xlu0 %v13885_v31, %s9562_s0 }
 0x649   :  { %4973 = vrot.lane.b32.xlu1 %v13891_v7, %s9562_s0 }
 0x64a   :  { %9360 = vmatpush3.bf16.msra.mxu1 %v9357_v36 }
 0x64b   :  { %v4706_v0 = vpop.permute.xlu0 %4705  ;;  %9362 = vmatprep.subr.bf16.mxu1 %v9361_v11 }
 0x64c   :  { %v4816_v10 = vmax.f32 %v13917_v30, %v4706_v0  ;;  %v4956_v46 = vpop.permute.xlu1 %4955  ;;  %4725 = vrot.lane.b32.xlu0 %v13925_v52, %s9562_s0  ;;  %v9369_v30 = vpack.c.bf16 %v7829_v1, %v7828_v42 }
 0x64d   :  { %v5066_v37 = vmax.f32 %v13927_v62, %v4956_v46  ;;  %4975 = vrot.lane.b32.xlu1 %v13931_v45, %s9562_s0  ;;  %v7832_v62 = vld [vmem:[%s14370_s3 + $0x520] sm:$0xff] }
 0x64e   :  { %9364 = vmatpush3.bf16.msra.mxu1 %v9361_v11  ;;  %v9377_v13 = vpack.c.bf16 %v7833_v48, %v7832_v62  ;;  %v7845_v11 = vld [vmem:[%s14370_s3 + $0x578] sm:$0xff]  ;;  %v7853_v48 = vld [vmem:[%s14370_s3 + $0x5a8] sm:$0xff] }
 0x64f   :  { %v5116_v61 = vmax.f32 %v4816_v10, %v5066_v37  ;;  %9366 = vmatprep.subr.bf16.mxu1 %v9365_v63  ;;  %v9397_v0 = vpack.c.bf16 %v7845_v11, %v7844_v8  ;;  %v7850_v37 = vld [vmem:[%s14370_s3 + $0x590] sm:$0xff] }
 0x651   :  { %v5166_v29 = vmax.f32 %v5116_v61, 0.0  ;;  %v7851_v61 = vld [vmem:[%s14370_s3 + $0x598] sm:$0xff] }
 0x652   :  { %9368 = vmatpush3.bf16.msra.mxu1 %v9365_v63  ;;  %v9405_v62 = vpack.c.bf16 %v7851_v61, %v7850_v37  ;;  %v7872_v37 = vld [vmem:[%s14370_s3 + $0x620] sm:$0xff]  ;;  %v7873_v61 = vld [vmem:[%s14370_s3 + $0x628] sm:$0xff] }
 0x653   :  { %9370 = vmatprep.subr.bf16.mxu1 %v9369_v30 }
 0x655   :  { %8878 = vmatmul.mubr.msk.f32.vlgmr.msra.gmra.mrb[12].mxu1 %vm5194_vm8, %v5166_v29 }
 0x656   :  { %9372 = vmatpush3.bf16.msra.mxu1 %v9369_v30 }
 0x657   :  { %9374 = vmatprep.subr.bf16.mxu1 %v9373_v43 }
 0x65a   :  { %9376 = vmatpush3.bf16.msra.mxu1 %v9373_v43 }
 0x65b   :  { %9378 = vmatprep.subr.bf16.mxu1 %v9377_v13 }
 0x65e   :  { %9380 = vmatpush3.bf16.msra.mxu1 %v9377_v13 }
 0x65f   :  { %9382 = vmatprep.subr.bf16.mxu1 %v9381_v5 }
 0x662   :  { %9384 = vmatpush3.bf16.msra.mxu1 %v9381_v5 }
 0x663   :  { %9386 = vmatprep.subr.bf16.mxu1 %v9385_v51 }
 0x679   :  { %v4708_v47 = vpop.permute.xlu0 %4707 }
 0x67a   :  { %v4817_v9 = vmax.f32 %v14023_v56, %v4708_v47  ;;  %v4958_v27 = vpop.permute.xlu1 %4957  ;;  %v7841_v56 = vld [vmem:[%s14370_s3 + $0x558] sm:$0xff] }
 0x67b   :  { %v5067_v22 = vmax.f32 %v14027_v2, %v4958_v27  ;;  %v9389_v24 = vpack.c.bf16 %v7841_v56, %v7840_v18  ;;  %v7860_v18 = vld [vmem:[%s14370_s3 + $0x5d0] sm:$0xff]  ;;  %v7861_v56 = vld [vmem:[%s14370_s3 + $0x5d8] sm:$0xff] }
 0x67d   :  { %v5117_v19 = vmax.f32 %v4817_v9, %v5067_v22 }
 0x67f   :  { %v5167_v23 = vmax.f32 %v5117_v19, 0.0  ;;  %v7858_v19 = vld [vmem:[%s14370_s3 + $0x5c0] sm:$0xff] }
 0x681   :  { %8896 = vmatprep.mubr.msk.f32.mxu1 %vm5194_vm8, %v5167_v23  ;;  %v7859_v23 = vld [vmem:[%s14370_s3 + $0x5c8] sm:$0xff] }
 0x692   :  { %v4710_v3 = vpop.permute.xlu0 %4709 }
 0x693   :  { %v4818_v12 = vmax.f32 %v14076_v50, %v4710_v3  ;;  %v4960_v33 = vpop.permute.xlu1 %4959  ;;  %v7843_v50 = vld [vmem:[%s14370_s3 + $0x568] sm:$0xff] }
 0x694   :  { %v5068_v17 = vmax.f32 %v14080_v28, %v4960_v33  ;;  %v9393_v57 = vpack.c.bf16 %v7843_v50, %v7842_v59 }
 0x696   :  { %v5118_v40 = vmax.f32 %v4818_v12, %v5068_v17 }
 0x698   :  { %v5168_v2 = vmax.f32 %v5118_v40, 0.0 }
 0x69a   :  { %8897 = vmatmul.mubr.msk.f32.vlgmr.msra.gmra.mrb[12].mxu1 %vm5194_vm8, %v5168_v2  ;;  %v4712_v28 = vpop.permute.xlu0 %4711 }
 0x69b   :  { %v4819_v4 = vmax.f32 %v14098_v20, %v4712_v28  ;;  %v4962_v36 = vpop.permute.xlu1 %4961  ;;  %9388 = vmatpush3.bf16.msra.mxu1 %v9385_v51  ;;  %v7848_v20 = vld [vmem:[%s14370_s3 + $0x580] sm:$0xff]  ;;  %v7855_v51 = vld [vmem:[%s14370_s3 + $0x5b8] sm:$0xff] }
 0x69c   :  { %v5069_v54 = vmax.f32 %v14103_v60, %v4962_v36  ;;  %9390 = vmatprep.subr.bf16.mxu1 %v9389_v24  ;;  %v7849_v60 = vld [vmem:[%s14370_s3 + $0x588] sm:$0xff]  ;;  %v9413_v22 = vpack.c.bf16 %v7855_v51, %v7854_v44 }
 0x69d   :  { %v9401_v63 = vpack.c.bf16 %v7849_v60, %v7848_v20  ;;  %v7863_v36 = vld [vmem:[%s14370_s3 + $0x5e8] sm:$0xff] }
 0x69e   :  { %v5119_v39 = vmax.f32 %v4819_v4, %v5069_v54  ;;  %v7862_v4 = vld [vmem:[%s14370_s3 + $0x5e0] sm:$0xff] }
 0x69f   :  { %9392 = vmatpush3.bf16.msra.mxu1 %v9389_v24  ;;  %v9425_v11 = vpack.c.bf16 %v7863_v36, %v7862_v4 }
 0x6a0   :  { %v5169_v55 = vmax.f32 %v5119_v39, 0.0  ;;  %9394 = vmatprep.subr.bf16.mxu1 %v9393_v57  ;;  %v7864_v39 = vld [vmem:[%s14370_s3 + $0x5f0] sm:$0xff] }
 0x6a2   :  { %8915 = vmatprep.mubr.msk.f32.mxu1 %vm5194_vm8, %v5169_v55  ;;  %v7865_v55 = vld [vmem:[%s14370_s3 + $0x5f8] sm:$0xff] }
 0x6a3   :  { %9396 = vmatpush3.bf16.msra.mxu1 %v9393_v57  ;;  %v9429_v20 = vpack.c.bf16 %v7865_v55, %v7864_v39 }
 0x6a4   :  { %9398 = vmatprep.subr.bf16.mxu1 %v9397_v0 }
 0x6a6   :  { %v4714_v10 = vpop.permute.xlu0 %4713 }
 0x6a7   :  { %v4820_v46 = vmax.f32 %v14126_v16, %v4714_v10  ;;  %v4964_v42 = vpop.permute.xlu1 %4963  ;;  %9400 = vmatpush3.bf16.msra.mxu1 %v9397_v0  ;;  %v7871_v10 = vld [vmem:[%s14370_s3 + $0x618] sm:$0xff] }
 0x6a8   :  { %v5070_v1 = vmax.f32 %v14131_v49, %v4964_v42  ;;  %9402 = vmatprep.subr.bf16.mxu1 %v9401_v63  ;;  %v7852_v49 = vld [vmem:[%s14370_s3 + $0x5a0] sm:$0xff] }
 0x6a9   :  { %v9409_v35 = vpack.c.bf16 %v7853_v48, %v7852_v49 }
 0x6aa   :  { %v5120_v30 = vmax.f32 %v4820_v46, %v5070_v1  ;;  %v4716_v32 = vpop.permute.xlu0 %4715 }
 0x6ab   :  { %v4821_v26 = vmax.f32 %v13698_v38, %v4716_v32  ;;  %v4966_v29 = vpop.permute.xlu1 %4965  ;;  %v7874_v32 = vld [vmem:[%s14370_s3 + $0x630] sm:$0xff] }
 0x6ac   :  { %v5170_v43 = vmax.f32 %v5120_v30, 0.0  ;;  %v5071_v16 = vmax.f32 %v13701_v58, %v4966_v29  ;;  %v9441_v30 = vpack.c.bf16 %v7873_v61, %v7872_v37 }
 0x6ae   :  { %v5121_v13 = vmax.f32 %v4821_v26, %v5071_v16  ;;  %8916 = vmatmul.mubr.msk.f32.vlgmr.msra.gmra.mrb[12].mxu1 %vm5194_vm8, %v5170_v43  ;;  %v4718_v21 = vpop.permute.xlu0 %4717  ;;  %v7875_v26 = vld [vmem:[%s14370_s3 + $0x638] sm:$0xff] }
 0x6af   :  { %9404 = vmatpush3.bf16.msra.mxu1 %v9401_v63  ;;  %v4822_v38 = vmax.f32 %v13773_v25, %v4718_v21  ;;  %v4968_v53 = vpop.permute.xlu1 %4967  ;;  %v7870_v63 = vld [vmem:[%s14370_s3 + $0x610] sm:$0xff]  ;;  %v9445_v29 = vpack.c.bf16 %v7875_v26, %v7874_v32 }
 0x6b0   :  { %v5171_v5 = vmax.f32 %v5121_v13, 0.0  ;;  %v5072_v58 = vmax.f32 %v13775_v6, %v4968_v53  ;;  %9406 = vmatprep.subr.bf16.mxu1 %v9405_v62  ;;  %v9437_v42 = vpack.c.bf16 %v7871_v10, %v7870_v63 }
 0x6b2   :  { %v5122_v47 = vmax.f32 %v4822_v38, %v5072_v58  ;;  %8934 = vmatprep.mubr.msk.f32.mxu1 %vm5194_vm8, %v5171_v5  ;;  %v4720_v9 = vpop.permute.xlu0 %4719 }
 0x6b3   :  { %9408 = vmatpush3.bf16.msra.mxu1 %v9405_v62  ;;  %v4823_v25 = vmax.f32 %v13813_v14, %v4720_v9  ;;  %v4970_v27 = vpop.permute.xlu1 %4969 }
 0x6b4   :  { %v5073_v6 = vmax.f32 %v13820_v41, %v4970_v27  ;;  %9410 = vmatprep.subr.bf16.mxu1 %v9409_v35  ;;  %v9417_v41 = vpack.c.bf16 %v7859_v23, %v7858_v19 }
 0x6b6   :  { %v5123_v3 = vmax.f32 %v4823_v25, %v5073_v6  ;;  %v4722_v12 = vpop.permute.xlu0 %4721 }
 0x6b7   :  { %9412 = vmatpush3.bf16.msra.mxu1 %v9409_v35  ;;  %v4824_v33 = vmax.f32 %v13847_v34, %v4722_v12  ;;  %v4972_v17 = vpop.permute.xlu1 %4971  ;;  %v5172_v34 = vmax.f32 %v5122_v47, 0.0 }
 0x6b8   :  { %v5074_v14 = vmax.f32 %v13855_v15, %v4972_v17  ;;  %9414 = vmatprep.subr.bf16.mxu1 %v9413_v22  ;;  %v9421_v15 = vpack.c.bf16 %v7861_v56, %v7860_v18  ;;  %v5173_v28 = vmax.f32 %v5123_v3, 0.0 }
 0x6ba   :  { %v5124_v40 = vmax.f32 %v4824_v33, %v5074_v14  ;;  %v4724_v2 = vpop.permute.xlu0 %4723 }
 0x6bb   :  { %9416 = vmatpush3.bf16.msra.mxu1 %v9413_v22  ;;  %v4825_v24 = vmax.f32 %v13885_v31, %v4724_v2  ;;  %v4974_v59 = vpop.permute.xlu1 %4973 }
 0x6bc   :  { %v5075_v50 = vmax.f32 %v13891_v7, %v4974_v59  ;;  %9418 = vmatprep.subr.bf16.mxu1 %v9417_v41  ;;  %v5174_v46 = vmax.f32 %v5124_v40, 0.0 }
 0x6be   :  { %v5125_v54 = vmax.f32 %v4825_v24, %v5075_v50  ;;  %8935 = vmatmul.mubr.msk.f32.vlgmr.msra.gmra.mrb[12].mxu1 %vm5194_vm8, %v5172_v34  ;;  %v4726_v57 = vpop.permute.xlu0 %4725 }
 0x6bf   :  { %9420 = vmatpush3.bf16.msra.mxu1 %v9417_v41  ;;  %8953 = vmatprep.mubr.msk.f32.mxu1 %vm5194_vm8, %v5173_v28  ;;  %v4826_v31 = vmax.f32 %v13925_v52, %v4726_v57  ;;  %v4976_v7 = vpop.permute.xlu1 %4975  ;;  %v7868_v52 = vld [vmem:[%s14370_s3 + $0x600] sm:$0xff] }
 0x6c0   :  { %v5076_v8 = vmax.f32 %v13931_v45, %v4976_v7  ;;  %9422 = vmatprep.subr.bf16.mxu1 %v9421_v15  ;;  %v7869_v45 = vld [vmem:[%s14370_s3 + $0x608] sm:$0xff]  ;;  %v5175_v1 = vmax.f32 %v5125_v54, 0.0 }
 0x6c1   :  { %v9433_v60 = vpack.c.bf16 %v7869_v45, %v7868_v52 }
 0x6c2   :  { %v5126_v0 = vmax.f32 %v4826_v31, %v5076_v8 }
 0x6c3   :  { %9424 = vmatpush3.bf16.msra.mxu1 %v9421_v15 }
 0x6c4   :  { %9426 = vmatprep.subr.bf16.mxu1 %v9425_v11  ;;  %v5176_v43 = vmax.f32 %v5126_v0, 0.0 }
 0x6c7   :  { %9428 = vmatpush3.bf16.msra.mxu1 %v9425_v11 }
 0x6c8   :  { %9430 = vmatprep.subr.bf16.mxu1 %v9429_v20 }
 0x6cb   :  { %9432 = vmatpush3.bf16.msra.mxu1 %v9429_v20 }
 0x6cc   :  { %9434 = vmatprep.subr.bf16.mxu1 %v9433_v60 }
 0x6ce   :  { %8954 = vmatmul.mubr.msk.f32.vlgmr.msra.gmra.mrb[12].mxu1 %vm5194_vm8, %v5174_v46 }
 0x6cf   :  { %9436 = vmatpush3.bf16.msra.mxu1 %v9433_v60  ;;  %8972 = vmatprep.mubr.msk.f32.mxu1 %vm5194_vm8, %v5175_v1 }
 0x6d0   :  { %9438 = vmatprep.subr.bf16.mxu1 %v9437_v42 }
 0x6d3   :  { %9440 = vmatpush3.bf16.msra.mxu1 %v9437_v42 }
 0x6d4   :  { %9442 = vmatprep.subr.bf16.mxu1 %v9441_v30 }
 0x6d7   :  { %9444 = vmatpush3.bf16.msra.mxu1 %v9441_v30 }
 0x6d8   :  { %9446 = vmatprep.subr.bf16.mxu1 %v9445_v29 }
 0x6db   :  { %9448 = vmatpush3.bf16.msra.mxu1 %v9445_v29 }
 0x6de   :  { %8973 = vmatmul.mubr.msk.f32.vlgmr.msra.gmra.mrb[12].mxu1 %vm5194_vm8, %v5176_v43 }
 0x7b1   :  { %v8974_v16 = vpop.f32.mrb[12].mxu1 }
 0x7b2   :  { %7474 = vst [vmem:[#allocation3 + $0x8] sm:$0xff] %v8974_v16  ;;  %v7462_v62 = vpop.f32.mrb[13].mxu1 }
 0x7b3   :  { %7473 = vst [vmem:[#allocation3] sm:$0xff] %v7462_v62 }
 0x7b4   :  { %9547 = shalt.err (!%p9544_p4)
}
 0x7b5   :  { %s9548_s29 = scalar_lea.hbm %s14371_s4, 256 }
 0x7b6   :  { %p9549_p5 = scmp.ne.s32.totalorder %s14371_s4, %s9548_s29  ;;  %p9552_p6 = scmp.lt.u32.totalorder %s9548_s29, %s14371_s4 }
 0x7b8   :  { %p9554_p7 = pnand %p9552_p6, %p9549_p5 }
 0x7ba   :  { %9557 = shalt.err (!%p9554_p7)
}
 0x7bb   :  { %s9565_s8 = smov 128   ;;  %s9566_s9 = smov 8  }
 0x7bc   :  { %7486 = dma.vmem_to_hbm [thread:$0]  %s7481_s27, 256, %s14371_s4, [#allocation4], %s9565_s8, %s9565_s8, %s9566_s9  }
 0x7bd   :  { %9558 = dma.done.wait [#allocation4], 256  }
 0x7be   :  { %9559 = vsyncadd [#allocation4], 4294967040 }
 0x7bf   :  { %7490 = vsyncpa [#allocation4], 1 }

</bundles_post_ra>
